<compile_context>
chip_gen: v6e
topology: v6e:2x2x1
jax: 0.10.0
libtpu: 0.0.40
codegen_flags: <defaults>
</compile_context>

<pallas_src>
import math

import numpy as np
import jax
import jax.numpy as jnp
from jax.experimental import pallas as pl
from jax.experimental.pallas import tpu as pltpu

# ----------------------------- configuration ---------------------------------
CFG_DMODEL = 32          # Configs.dmodel
CFG_TRANSITION = 8       # Configs.transition_dim
CFG_HORIZON = 16         # Configs.horizon (== 2 * transition_dim, required by reduce2)
DIM = 32
DIM_MULTS = (1, 2)
T_IN = CFG_TRANSITION
TRANSITION_UNET = T_IN + CFG_TRANSITION      # channels entering the UNet (= 16)
GN_GROUPS = 8
GN_EPS = 1e-5


# ===================== host-side dense lowering (numpy, runs once) ============
def _conv1d_dense(W, b, Lin, stride, pad):
    """Conv1d -> dense matrix over channel-major flattened activations.
    W: [Cout, Cin, K], b: [Cout].  Row index = ci*Lin + li, col index = co*Lout + lo."""
    Cout, Cin, K = W.shape
    Lout = (Lin + 2 * pad - K) // stride + 1
    Wd = np.zeros((Cin * Lin, Cout * Lout), np.float32)
    rows = np.arange(Cin) * Lin
    cols = np.arange(Cout) * Lout
    for lo in range(Lout):
        for k in range(K):
            li = lo * stride + k - pad
            if 0 <= li < Lin:
                Wd[np.ix_(rows + li, cols + lo)] += W[:, :, k].T
    return Wd, np.repeat(b, Lout).astype(np.float32), Lout


def _convt1d_dense(W, b, Lin, stride, pad):
    """ConvTranspose1d -> dense matrix.  W: [Cin, Cout, K] (PyTorch layout)."""
    Cin, Cout, K = W.shape
    Lout = (Lin - 1) * stride - 2 * pad + K
    Wd = np.zeros((Cin * Lin, Cout * Lout), np.float32)
    rows = np.arange(Cin) * Lin
    cols = np.arange(Cout) * Lout
    for li in range(Lin):
        for k in range(K):
            lo = li * stride + k - pad
            if 0 <= lo < Lout:
                Wd[np.ix_(rows + li, cols + lo)] += W[:, :, k]
    return Wd, np.repeat(b, Lout).astype(np.float32), Lout


def _linear_over_len_dense(W, b, L):
    """time-mlp Linear(embed -> Cout) broadcast over length L.  W: [Cout, E]."""
    return (np.repeat(W.T, L, axis=1).astype(np.float32),
            np.repeat(b, L).astype(np.float32))


def _group_mean_matrix(C, L, groups):
    """Block-diagonal averaging matrix: x @ M gives per-column group means.
    All entries are 1/2^k so the matrix is exact in bfloat16."""
    n = (C // groups) * L
    M = np.zeros((C * L, C * L), np.float32)
    for g in range(groups):
        M[g * n:(g + 1) * n, g * n:(g + 1) * n] = 1.0 / n
    return M


def _frontend_dense(reduce_w, reduce_b, reduce2_w, reduce2_b):
    """Fold rearrange(b h t -> b t h) + reduce(history) + concat + reduce2 into two
    dense matrices acting on flattened inputs:
        x_flat    [B, H*T]  (index h*T + t)
        hist_flat [B, H*D]  (index h*D + d)
    producing the UNet input in channel-major layout [B, C*L] (index c*L + l)."""
    H, T, D, L = CFG_HORIZON, CFG_TRANSITION, CFG_DMODEL, CFG_TRANSITION
    C = TRANSITION_UNET
    Wx = np.zeros((H * T, C * L), np.float32)
    for t in range(T):
        Wx[np.ix_(np.arange(H) * T + t, t * L + np.arange(L))] = reduce2_w.T
    Wh = np.zeros((H * D, C * L), np.float32)
    Wh[:, T * L:] = np.einsum('td,lh->hdtl', reduce_w, reduce2_w).reshape(H * D, T * L)
    bias = np.zeros((C * L,), np.float32)
    for c in range(C):
        for l in range(L):
            if c < T:
                bias[c * L + l] = reduce2_b[l]
            else:
                bias[c * L + l] = reduce_b[c - T] * reduce2_w[l, :].sum() + reduce2_b[l]
    return Wx, Wh, bias


def _final_dense(W, b, L):
    """Final 1x1 Conv1d; keep only the first CFG_TRANSITION output channels and emit the
    output directly in [B, l*T + c] layout so the wrapper only reshapes."""
    T = CFG_TRANSITION
    Cin = W.shape[1]
    Wd = np.zeros((Cin * L, T * L), np.float32)
    for l in range(L):
        Wd[np.ix_(np.arange(Cin) * L + l, l * T + np.arange(T))] = W[:T, :, 0].T
    bias = np.tile(b[:T].astype(np.float32), L)
    return Wd, bias


# ----------------------------- parameters -------------------------------------
def build_raw_params():
    """Parameters in original PyTorch layouts (used for the dense lowering AND the reference)."""
    rng = np.random.default_rng(0)

    def rnd(*shape):
        return (0.1 * rng.standard_normal(shape)).astype(np.float32)

    def conv_block(cin, cout, k):
        return dict(w=rnd(cout, cin, k), b=rnd(cout),
                    g=(1.0 + rnd(cout)).astype(np.float32), beta=rnd(cout))

    def res_block(cin, cout):
        d = dict(b0=conv_block(cin, cout, 5), b1=conv_block(cout, cout, 5),
                 time_w=rnd(cout, DIM), time_b=rnd(cout))
        if cin != cout:
            d['res_w'] = rnd(cout, cin, 1)
            d['res_b'] = rnd(cout)
        return d

    dims = [TRANSITION_UNET] + [DIM * m for m in DIM_MULTS]       # [16, 32, 64]
    in_out = list(zip(dims[:-1], dims[1:]))                       # [(16, 32), (32, 64)]
    num_res = len(in_out)

    raw = dict(
        reduce_w=rnd(CFG_TRANSITION, CFG_DMODEL), reduce_b=rnd(CFG_TRANSITION),
        reduce2_w=rnd(CFG_TRANSITION, 2 * CFG_TRANSITION), reduce2_b=rnd(CFG_TRANSITION),
        time1_w=rnd(DIM * 4, DIM), time1_b=rnd(DIM * 4),
        time2_w=rnd(DIM, DIM * 4), time2_b=rnd(DIM),
        downs=[], ups=[],
        mid1=res_block(dims[-1], dims[-1]), mid2=res_block(dims[-1], dims[-1]),
        final_block=conv_block(DIM, DIM, 5),
        final_w=rnd(TRANSITION_UNET, DIM, 1), final_b=rnd(TRANSITION_UNET),
    )
    for ind, (din, dout) in enumerate(in_out):
        is_last = ind >= num_res - 1
        st = dict(res1=res_block(din, dout), res2=res_block(dout, dout))
        if not is_last:
            st['down_w'] = rnd(dout, dout, 3)
            st['down_b'] = rnd(dout)
        raw['downs'].append(st)
    for ind, (din, dout) in enumerate(reversed(in_out[1:])):
        is_last = ind >= num_res - 1
        st = dict(res1=res_block(dout * 2, din), res2=res_block(din, din))
        if not is_last:
            st['up_w'] = rnd(din, din, 4)      # ConvTranspose1d weight layout: [Cin, Cout, K]
            st['up_b'] = rnd(din)
        raw['ups'].append(st)
    return raw


def build_dense_params(raw):
    """Lower every layer to dense matrices over channel-major [B, C*L] activations.
    Returns (V, H): V = weights that go through the normal auto-DMA path (bf16 mats +
    f32 biases / gamma / beta), H = the late (mid / up / final) conv matrices that stay
    in HBM and are manually DMA'd into VMEM scratch inside the kernel."""

    def bf(a):
        return jnp.asarray(np.asarray(a, np.float32), dtype=jnp.bfloat16)

    def row(a):
        return jnp.asarray(np.asarray(a, np.float32).reshape(1, -1), dtype=jnp.float32)

    def dense_res_block(rb, Lin, split_rows=0):
        big, small = {}, {}
        W0, b0, _ = _conv1d_dense(rb['b0']['w'], rb['b0']['b'], Lin, stride=1, pad=2)
        if split_rows:
            big['w0'], big['w0_skip'] = bf(W0[:split_rows]), bf(W0[split_rows:])
        else:
            big['w0'] = bf(W0)
        small['b0'] = row(b0)
        small['g0'] = row(np.repeat(rb['b0']['g'], Lin))
        small['be0'] = row(np.repeat(rb['b0']['beta'], Lin))
        Wt, bt = _linear_over_len_dense(rb['time_w'], rb['time_b'], Lin)
        small['wt'], small['bt'] = bf(Wt), row(bt)
        W1, b1, _ = _conv1d_dense(rb['b1']['w'], rb['b1']['b'], Lin, stride=1, pad=2)
        big['w1'] = bf(W1)
        small['b1'] = row(b1)
        small['g1'] = row(np.repeat(rb['b1']['g'], Lin))
        small['be1'] = row(np.repeat(rb['b1']['beta'], Lin))
        if 'res_w' in rb:
            Wr, br, _ = _conv1d_dense(rb['res_w'], rb['res_b'], Lin, stride=1, pad=0)
            if split_rows:
                big['wres'], big['wres_skip'] = bf(Wr[:split_rows]), bf(Wr[split_rows:])
            else:
                big['wres'] = bf(Wr)
            small['bres'] = row(br)
        return big, small

    V = dict(
        # Both (C=32,L=8) and (C=64,L=4) GroupNorms share the same 256x256 averaging
        # matrix (8 contiguous 32-column groups); (C=32,L=4) uses the 128x128 one.
        m256=bf(_group_mean_matrix(2 * DIM, 4, GN_GROUPS)),
        m128=bf(_group_mean_matrix(DIM, 4, GN_GROUPS)),
    )
    Fx, Fh, fb = _frontend_dense(raw['reduce_w'], raw['reduce_b'],
                                 raw['reduce2_w'], raw['reduce2_b'])
    V['front_x'], V['front_h'], V['front_b'] = bf(Fx), bf(Fh), row(fb)
    V['t1'], V['t1b'] = bf(raw['time1_w'].T), row(raw['time1_b'])
    V['t2'], V['t2b'] = bf(raw['time2_w'].T), row(raw['time2_b'])

    dims = [TRANSITION_UNET] + [DIM * m for m in DIM_MULTS]
    in_out = list(zip(dims[:-1], dims[1:]))

    L = CFG_TRANSITION                       # UNet length after reduce2 (= 8)
    downs = []
    for st in raw['downs']:
        b1_, s1_ = dense_res_block(st['res1'], L)
        b2_, s2_ = dense_res_block(st['res2'], L)
        d = dict(res1={**b1_, **s1_}, res2={**b2_, **s2_})
        if 'down_w' in st:
            Wd, bd, L = _conv1d_dense(st['down_w'], st['down_b'], L, stride=2, pad=1)
            d['down'], d['down_b'] = bf(Wd), row(bd)
        downs.append(d)
    V['downs'] = downs

    H = {}
    bm1, sm1 = dense_res_block(raw['mid1'], L)
    bm2, sm2 = dense_res_block(raw['mid2'], L)
    V['mid1_s'], V['mid2_s'] = sm1, sm2
    H['mid1'], H['mid2'] = bm1, bm2

    ups_s, ups_w = [], []
    for st, (din, dout) in zip(raw['ups'], reversed(in_out[1:])):
        # concat input = [x (dout channels) ; skip (dout channels)] -> split the conv rows
        b1_, s1_ = dense_res_block(st['res1'], L, split_rows=dout * L)
        b2_, s2_ = dense_res_block(st['res2'], L)
        us, uw = dict(res1=s1_, res2=s2_), dict(res1=b1_, res2=b2_)
        if 'up_w' in st:
            Wu, bu, L = _convt1d_dense(st['up_w'], st['up_b'], L, stride=2, pad=1)
            uw['up'], us['up_b'] = bf(Wu), row(bu)
        ups_s.append(us)
        ups_w.append(uw)
    V['ups_s'], H['ups'] = ups_s, ups_w

    Wfb, bfb, _ = _conv1d_dense(raw['final_block']['w'], raw['final_block']['b'],
                                L, stride=1, pad=2)
    H['fb_w'] = bf(Wfb)
    V['fb_b'] = row(bfb)
    V['fb_g'] = row(np.repeat(raw['final_block']['g'], L))
    V['fb_be'] = row(np.repeat(raw['final_block']['beta'], L))
    Wfin, bfin = _final_dense(raw['final_w'], raw['final_b'], L)
    H['fin_w'] = bf(Wfin)
    V['fin_b'] = row(bfin)
    return V, H


# ============================ fused Pallas kernel ==============================
def _mish(x):
    # x * tanh(softplus(x)) == x * u(u+2) / (u(u+2)+2) with u = exp(x);
    # PyTorch softplus threshold=20 behaviour: identity for x > 20.  Clamping the exp
    # argument keeps u(u+2) far from f32 overflow.
    u = jnp.exp(jnp.minimum(x, 20.0))
    w = u * (u + 2.0)
    y = x * w * pl.reciprocal(w + 2.0, approx=True)
    return jnp.where(x > 20.0, x, y)


def make_forward(params_vmem, params_hbm):
    """Returns forward(x, cond, time, history_embd) running the whole UNet in one pallas_call."""
    v_leaves, v_tree = jax.tree_util.tree_flatten(params_vmem)
    h_leaves, h_tree = jax.tree_util.tree_flatten(params_hbm)
    n_v, n_h = len(v_leaves), len(h_leaves)

    def kernel(*refs):
        idx = 0
        x_ref, hist_ref, tf_ref = refs[0], refs[1], refs[2]
        idx = 3
        v_refs = refs[idx:idx + n_v]; idx += n_v
        h_refs = refs[idx:idx + n_h]; idx += n_h
        out_ref = refs[idx]; idx += 1
        s_refs = refs[idx:idx + n_h]; idx += n_h
        sem = refs[idx]

        P = jax.tree_util.tree_unflatten(v_tree, v_refs)      # auto-DMA'd (VMEM) params
        W = jax.tree_util.tree_unflatten(h_tree, s_refs)      # late weights (VMEM scratch)

        # ---- kick off background DMA of mid/up/final weights: HBM -> VMEM scratch ----
        copies = []
        for i, (src, dst) in enumerate(zip(h_refs, s_refs)):
            cp = pltpu.make_async_copy(src, dst, sem.at[i])
            cp.start()
            copies.append(cp)

        bf16 = jnp.bfloat16

        def mm(x, w_ref):                                      # bf16 MXU matmul, f32 acc
            return jnp.dot(x.astype(bf16), w_ref[...], preferred_element_type=jnp.float32)

        def mmb(x, w_ref, b_ref):
            return mm(x, w_ref) + b_ref[...]

        def gn_mish(c, g_ref, be_ref):
            # mean and E[x^2] in ONE matmul: dot([c ; c*c], M); var = E[x^2] - mu^2.
            b, n = c.shape
            m_ref = P['m256'] if n == 256 else P['m128']
            stats = jnp.dot(jnp.concatenate([c, c * c], axis=0).astype(bf16), m_ref[...],
                            preferred_element_type=jnp.float32)
            mu, ex2 = stats[:b], stats[b:]
            var = ex2 - mu * mu
            y = (c - mu) * jax.lax.rsqrt(var + GN_EPS) * g_ref[...] + be_ref[...]
            return _mish(y)

        # ---- time MLP (SinusoidalPosEmb computed host-side); mish(t) hoisted once ----
        t = mmb(_mish(mmb(tf_ref[...], P['t1'], P['t1b'])), P['t2'], P['t2b'])
        tmish = _mish(t)

        def res_block(x, skip, rp):
            c0 = mmb(x, rp['w0'], rp['b0'])
            if 'w0_skip' in rp:
                c0 = c0 + mm(skip, rp['w0_skip'])
            a0 = gn_mish(c0, rp['g0'], rp['be0']) + mmb(tmish, rp['wt'], rp['bt'])
            a1 = gn_mish(mmb(a0, rp['w1'], rp['b1']), rp['g1'], rp['be1'])
            if 'wres' in rp:
                r = mmb(x, rp['wres'], rp['bres'])
                if 'wres_skip' in rp:
                    r = r + mm(skip, rp['wres_skip'])
            else:
                r = x
            return a1 + r

        # ---- front end: rearrange + reduce + concat + reduce2 folded into two matmuls ----
        x = mmb(x_ref[...], P['front_x'], P['front_b']) + mm(hist_ref[...], P['front_h'])

        hs = []
        for st in P['downs']:
            x = res_block(x, None, st['res1'])
            x = res_block(x, None, st['res2'])
            hs.append(x)
            if 'down' in st:
                x = mmb(x, st['down'], st['down_b'])

        # ---- the mid/up/final weight DMA has been overlapping the down path ----
        for cp in copies:
            cp.wait()

        x = res_block(x, None, {**P['mid1_s'], **W['mid1']})
        x = res_block(x, None, {**P['mid2_s'], **W['mid2']})

        for st_s, st_w in zip(P['ups_s'], W['ups']):
            skip = hs.pop()
            x = res_block(x, skip, {**st_s['res1'], **st_w['res1']})
            x = res_block(x, None, {**st_s['res2'], **st_w['res2']})
            if 'up' in st_w:
                x = mmb(x, st_w['up'], st_s['up_b'])

        x = gn_mish(mmb(x, W['fb_w'], P['fb_b']), P['fb_g'], P['fb_be'])
        out_ref[...] = mmb(x, W['fin_w'], P['fin_b'])

    def forward(x, cond, time, history_embd):
        del cond                                                   # unused, as in the module
        B = x.shape[0]
        BP = max(8, ((B + 7) // 8) * 8)                            # pad batch to full sublanes

        def padb(a):
            return jnp.pad(a, ((0, BP - B), (0, 0)))

        x_flat = padb(x.reshape(B, CFG_HORIZON * T_IN).astype(jnp.float32))
        hist_flat = padb(history_embd[:, -CFG_HORIZON:, :].reshape(
            B, CFG_HORIZON * CFG_DMODEL).astype(jnp.float32))
        half = DIM // 2
        freqs = jnp.exp(jnp.arange(half, dtype=jnp.float32) * -(math.log(10000.0) / (half - 1)))
        ang = time.astype(jnp.float32)[:, None] * freqs[None, :]
        tfeat = padb(jnp.concatenate([jnp.sin(ang), jnp.cos(ang)], axis=-1))

        in_specs = ([pl.BlockSpec(memory_space=pltpu.MemorySpace.VMEM)] * (3 + n_v)
                    + [pl.BlockSpec(memory_space=pl.ANY)] * n_h)
        scratch_shapes = ([pltpu.VMEM(l.shape, l.dtype) for l in h_leaves]
                          + [pltpu.SemaphoreType.DMA((n_h,))])

        out_flat = pl.pallas_call(
            kernel,
            out_shape=jax.ShapeDtypeStruct((BP, CFG_TRANSITION * CFG_TRANSITION), jnp.float32),
            in_specs=in_specs,
            out_specs=pl.BlockSpec(memory_space=pltpu.MemorySpace.VMEM),
            scratch_shapes=scratch_shapes,
            compiler_params=pltpu.CompilerParams(vmem_limit_bytes=32 * 1024 * 1024),
        )(x_flat, hist_flat, tfeat, *v_leaves, *h_leaves)
        # kernel emits columns l*T + c  ->  [B, horizon//2, transition] = [B, 8, 8]
        return out_flat[:B].reshape(B, CFG_TRANSITION, CFG_TRANSITION)

    return forward


# ===================== float64 numpy reference (for validation) ===============
def _np_mish(x):
    sp = np.where(x > 20.0, x, np.log1p(np.exp(np.minimum(x, 20.0))))
    return x * np.tanh(sp)


def _np_conv1d(x, W, b, stride=1, pad=0):
    B, Cin, L = x.shape
    Cout, _, K = W.shape
    xp = np.pad(x, ((0, 0), (0, 0), (pad, pad)))
    Lout = (L + 2 * pad - K) // stride + 1
    cols = np.stack([xp[:, :, k:k + stride * (Lout - 1) + 1:stride] for k in range(K)], axis=-1)
    return np.einsum('bilk,oik->bol', cols, W) + b[None, :, None]


def _np_convt1d(x, W, b, stride=2, pad=1):
    B, Cin, L = x.shape
    _, Cout, K = W.shape
    xz = np.zeros((B, Cin, (L - 1) * stride + 1), x.dtype)
    xz[:, :, ::stride] = x
    Weq = np.flip(W, axis=2).transpose(1, 0, 2)
    return _np_conv1d(xz, Weq, b, stride=1, pad=K - 1 - pad)


def _np_groupnorm(x, gamma, beta, groups=GN_GROUPS, eps=GN_EPS):
    B, C, L = x.shape
    xg = x.reshape(B, groups, -1)
    mu = xg.mean(axis=2, keepdims=True)
    var = ((xg - mu) ** 2).mean(axis=2, keepdims=True)
    xn = ((xg - mu) / np.sqrt(var + eps)).reshape(B, C, L)
    return xn * gamma[None, :, None] + beta[None, :, None]


def _np_conv_block(cb, x):
    y = _np_conv1d(x, cb['w'], cb['b'], stride=1, pad=cb['w'].shape[2] // 2)
    return _np_mish(_np_groupnorm(y, cb['g'], cb['beta']))


def _np_res_block(rb, x, t):
    out = _np_conv_block(rb['b0'], x)
    temb = _np_mish(t) @ rb['time_w'].T + rb['time_b']
    out = out + temb[:, :, None]
    out = _np_conv_block(rb['b1'], out)
    res = _np_conv1d(x, rb['res_w'], rb['res_b']) if 'res_w' in rb else x
    return out + res


def reference_forward(raw, x, time, history_embd):
    x = np.asarray(x, np.float64)
    time = np.asarray(time, np.float64)
    history_embd = np.asarray(history_embd, np.float64)

    hist = history_embd[:, -CFG_HORIZON:, :]
    xr = np.transpose(x, (0, 2, 1))                                # b h t -> b t h
    hist_red = hist @ raw['reduce_w'].T + raw['reduce_b']
    xc = np.concatenate([xr, np.transpose(hist_red, (0, 2, 1))], axis=1)
    cur = xc @ raw['reduce2_w'].T + raw['reduce2_b']

    half = DIM // 2
    freqs = np.exp(np.arange(half) * -(math.log(10000.0) / (half - 1)))
    ang = time[:, None] * freqs[None, :]
    tf = np.concatenate([np.sin(ang), np.cos(ang)], axis=-1)
    t = _np_mish(tf @ raw['time1_w'].T + raw['time1_b']) @ raw['time2_w'].T + raw['time2_b']

    hsave = []
    for st in raw['downs']:
        cur = _np_res_block(st['res1'], cur, t)
        cur = _np_res_block(st['res2'], cur, t)
        hsave.append(cur)
        if 'down_w' in st:
            cur = _np_conv1d(cur, st['down_w'], st['down_b'], stride=2, pad=1)
    cur = _np_res_block(raw['mid1'], cur, t)
    cur = _np_res_block(raw['mid2'], cur, t)
    for st in raw['ups']:
        cur = np.concatenate([cur, hsave.pop()], axis=1)
        cur = _np_res_block(st['res1'], cur, t)
        cur = _np_res_block(st['res2'], cur, t)
        if 'up_w' in st:
            cur = _np_convt1d(cur, st['up_w'], st['up_b'], stride=2, pad=1)
    cur = _np_conv_block(raw['final_block'], cur)
    cur = _np_conv1d(cur, raw['final_w'], raw['final_b'], stride=1, pad=0)
    return np.transpose(cur, (0, 2, 1))[:, :, :CFG_TRANSITION]


# ----------------------------------- main --------------------------------------
if __name__ == "__main__":
    raw = build_raw_params()
    V, H = build_dense_params(raw)
    fwd = jax.jit(make_forward(V, H))

    key = jax.random.PRNGKey(0)
    k1, k2 = jax.random.split(key, 2)
    B = 2
    x = jax.random.normal(k1, (B, CFG_HORIZON, T_IN), jnp.float32)            # [2, 16, 8]
    history_embd = jax.random.normal(k2, (B, 20, CFG_DMODEL), jnp.float32)    # [2, 20, 32]
    time = jnp.array([3.0, 7.0], jnp.float32)
    cond = jnp.zeros((B, 4), jnp.float32)                                     # unused

    out = jax.block_until_ready(fwd(x, cond, time, history_embd))

    assert out.shape == (B, CFG_TRANSITION, CFG_TRANSITION), out.shape
    out_np = np.asarray(out)
    assert np.all(np.isfinite(out_np))

    # Validate the fused bf16-weight kernel against a float64 numpy reference.
    ref = reference_forward(raw, np.asarray(x), np.asarray(time), np.asarray(history_embd))
    max_err = float(np.max(np.abs(out_np - ref)))
    assert np.allclose(out_np, ref, rtol=3e-2, atol=3e-2), f"max abs err = {max_err}"

    print("KERNEL_OK")
</pallas_src>

<mosaic_0001>
module attributes {stable_mosaic.version = 11 : i64} {
  func.func @kernel(%arg0: memref<8x128xf32, #tpu.memory_space<vmem>>, %arg1: memref<8x512xf32, #tpu.memory_space<vmem>>, %arg2: memref<8x32xf32, #tpu.memory_space<vmem>>, %arg3: memref<256x128xbf16, #tpu.memory_space<vmem>>, %arg4: memref<1x128xf32, #tpu.memory_space<vmem>>, %arg5: memref<1x256xf32, #tpu.memory_space<vmem>>, %arg6: memref<1x256xf32, #tpu.memory_space<vmem>>, %arg7: memref<1x256xf32, #tpu.memory_space<vmem>>, %arg8: memref<1x256xf32, #tpu.memory_space<vmem>>, %arg9: memref<1x256xf32, #tpu.memory_space<vmem>>, %arg10: memref<1x256xf32, #tpu.memory_space<vmem>>, %arg11: memref<1x256xf32, #tpu.memory_space<vmem>>, %arg12: memref<1x256xf32, #tpu.memory_space<vmem>>, %arg13: memref<128x256xbf16, #tpu.memory_space<vmem>>, %arg14: memref<256x256xbf16, #tpu.memory_space<vmem>>, %arg15: memref<128x256xbf16, #tpu.memory_space<vmem>>, %arg16: memref<32x256xbf16, #tpu.memory_space<vmem>>, %arg17: memref<1x256xf32, #tpu.memory_space<vmem>>, %arg18: memref<1x256xf32, #tpu.memory_space<vmem>>, %arg19: memref<1x256xf32, #tpu.memory_space<vmem>>, %arg20: memref<1x256xf32, #tpu.memory_space<vmem>>, %arg21: memref<1x256xf32, #tpu.memory_space<vmem>>, %arg22: memref<1x256xf32, #tpu.memory_space<vmem>>, %arg23: memref<1x256xf32, #tpu.memory_space<vmem>>, %arg24: memref<256x256xbf16, #tpu.memory_space<vmem>>, %arg25: memref<256x256xbf16, #tpu.memory_space<vmem>>, %arg26: memref<32x256xbf16, #tpu.memory_space<vmem>>, %arg27: memref<1x256xf32, #tpu.memory_space<vmem>>, %arg28: memref<1x256xf32, #tpu.memory_space<vmem>>, %arg29: memref<1x256xf32, #tpu.memory_space<vmem>>, %arg30: memref<1x256xf32, #tpu.memory_space<vmem>>, %arg31: memref<1x256xf32, #tpu.memory_space<vmem>>, %arg32: memref<1x256xf32, #tpu.memory_space<vmem>>, %arg33: memref<1x256xf32, #tpu.memory_space<vmem>>, %arg34: memref<1x256xf32, #tpu.memory_space<vmem>>, %arg35: memref<128x256xbf16, #tpu.memory_space<vmem>>, %arg36: memref<256x256xbf16, #tpu.memory_space<vmem>>, %arg37: memref<128x256xbf16, #tpu.memory_space<vmem>>, %arg38: memref<32x256xbf16, #tpu.memory_space<vmem>>, %arg39: memref<1x256xf32, #tpu.memory_space<vmem>>, %arg40: memref<1x256xf32, #tpu.memory_space<vmem>>, %arg41: memref<1x256xf32, #tpu.memory_space<vmem>>, %arg42: memref<1x256xf32, #tpu.memory_space<vmem>>, %arg43: memref<1x256xf32, #tpu.memory_space<vmem>>, %arg44: memref<1x256xf32, #tpu.memory_space<vmem>>, %arg45: memref<1x256xf32, #tpu.memory_space<vmem>>, %arg46: memref<256x256xbf16, #tpu.memory_space<vmem>>, %arg47: memref<256x256xbf16, #tpu.memory_space<vmem>>, %arg48: memref<32x256xbf16, #tpu.memory_space<vmem>>, %arg49: memref<1x256xf32, #tpu.memory_space<vmem>>, %arg50: memref<1x256xf32, #tpu.memory_space<vmem>>, %arg51: memref<1x256xf32, #tpu.memory_space<vmem>>, %arg52: memref<1x64xf32, #tpu.memory_space<vmem>>, %arg53: memref<1x128xf32, #tpu.memory_space<vmem>>, %arg54: memref<512x128xbf16, #tpu.memory_space<vmem>>, %arg55: memref<128x128xbf16, #tpu.memory_space<vmem>>, %arg56: memref<128x128xbf16, #tpu.memory_space<vmem>>, %arg57: memref<256x256xbf16, #tpu.memory_space<vmem>>, %arg58: memref<1x256xf32, #tpu.memory_space<vmem>>, %arg59: memref<1x256xf32, #tpu.memory_space<vmem>>, %arg60: memref<1x256xf32, #tpu.memory_space<vmem>>, %arg61: memref<1x256xf32, #tpu.memory_space<vmem>>, %arg62: memref<1x256xf32, #tpu.memory_space<vmem>>, %arg63: memref<1x256xf32, #tpu.memory_space<vmem>>, %arg64: memref<1x256xf32, #tpu.memory_space<vmem>>, %arg65: memref<32x256xbf16, #tpu.memory_space<vmem>>, %arg66: memref<1x256xf32, #tpu.memory_space<vmem>>, %arg67: memref<1x256xf32, #tpu.memory_space<vmem>>, %arg68: memref<1x256xf32, #tpu.memory_space<vmem>>, %arg69: memref<1x256xf32, #tpu.memory_space<vmem>>, %arg70: memref<1x256xf32, #tpu.memory_space<vmem>>, %arg71: memref<1x256xf32, #tpu.memory_space<vmem>>, %arg72: memref<1x256xf32, #tpu.memory_space<vmem>>, %arg73: memref<32x256xbf16, #tpu.memory_space<vmem>>, %arg74: memref<32x128xbf16, #tpu.memory_space<vmem>>, %arg75: memref<1x128xf32, #tpu.memory_space<vmem>>, %arg76: memref<128x32xbf16, #tpu.memory_space<vmem>>, %arg77: memref<1x32xf32, #tpu.memory_space<vmem>>, %arg78: memref<1x128xf32, #tpu.memory_space<vmem>>, %arg79: memref<1x128xf32, #tpu.memory_space<vmem>>, %arg80: memref<1x128xf32, #tpu.memory_space<vmem>>, %arg81: memref<1x128xf32, #tpu.memory_space<vmem>>, %arg82: memref<1x128xf32, #tpu.memory_space<vmem>>, %arg83: memref<1x128xf32, #tpu.memory_space<vmem>>, %arg84: memref<1x128xf32, #tpu.memory_space<vmem>>, %arg85: memref<1x128xf32, #tpu.memory_space<vmem>>, %arg86: memref<32x128xbf16, #tpu.memory_space<vmem>>, %arg87: memref<1x128xf32, #tpu.memory_space<vmem>>, %arg88: memref<1x128xf32, #tpu.memory_space<vmem>>, %arg89: memref<1x128xf32, #tpu.memory_space<vmem>>, %arg90: memref<1x128xf32, #tpu.memory_space<vmem>>, %arg91: memref<1x128xf32, #tpu.memory_space<vmem>>, %arg92: memref<1x128xf32, #tpu.memory_space<vmem>>, %arg93: memref<1x128xf32, #tpu.memory_space<vmem>>, %arg94: memref<32x128xbf16, #tpu.memory_space<vmem>>, %arg95: memref<1x256xf32, #tpu.memory_space<vmem>>, %arg96: memref<256x256xbf16, #tpu.memory_space<any>>, %arg97: memref<256x64xbf16, #tpu.memory_space<any>>, %arg98: memref<256x256xbf16, #tpu.memory_space<any>>, %arg99: memref<256x256xbf16, #tpu.memory_space<any>>, %arg100: memref<256x256xbf16, #tpu.memory_space<any>>, %arg101: memref<256x256xbf16, #tpu.memory_space<any>>, %arg102: memref<256x128xbf16, #tpu.memory_space<any>>, %arg103: memref<256x128xbf16, #tpu.memory_space<any>>, %arg104: memref<128x128xbf16, #tpu.memory_space<any>>, %arg105: memref<256x128xbf16, #tpu.memory_space<any>>, %arg106: memref<256x128xbf16, #tpu.memory_space<any>>, %arg107: memref<128x128xbf16, #tpu.memory_space<any>>, %arg108: memref<128x128xbf16, #tpu.memory_space<any>>, %arg109: memref<128x256xbf16, #tpu.memory_space<any>>, %arg110: memref<8x64xf32, #tpu.memory_space<vmem>>, %arg111: memref<256x256xbf16, #tpu.memory_space<vmem>>, %arg112: memref<256x64xbf16, #tpu.memory_space<vmem>>, %arg113: memref<256x256xbf16, #tpu.memory_space<vmem>>, %arg114: memref<256x256xbf16, #tpu.memory_space<vmem>>, %arg115: memref<256x256xbf16, #tpu.memory_space<vmem>>, %arg116: memref<256x256xbf16, #tpu.memory_space<vmem>>, %arg117: memref<256x128xbf16, #tpu.memory_space<vmem>>, %arg118: memref<256x128xbf16, #tpu.memory_space<vmem>>, %arg119: memref<128x128xbf16, #tpu.memory_space<vmem>>, %arg120: memref<256x128xbf16, #tpu.memory_space<vmem>>, %arg121: memref<256x128xbf16, #tpu.memory_space<vmem>>, %arg122: memref<128x128xbf16, #tpu.memory_space<vmem>>, %arg123: memref<128x128xbf16, #tpu.memory_space<vmem>>, %arg124: memref<128x256xbf16, #tpu.memory_space<vmem>>, %arg125: memref<14x!tpu.dma_semaphore, #tpu.memory_space<semaphore_mem>>) attributes {dimension_semantics = [], scalar_prefetch = 0 : i64, scratch_operands = 15 : i64, tpu.core_type = #tpu.core_type<tc>} {
    %c0_i32 = arith.constant 0 : i32
    %0 = tpu.memref_slice %arg125[%c0_i32] : memref<14x!tpu.dma_semaphore, #tpu.memory_space<semaphore_mem>> -> memref<1x!tpu.dma_semaphore, #tpu.memory_space<semaphore_mem>>
    %1 = tpu.memref_squeeze %0 : memref<1x!tpu.dma_semaphore, #tpu.memory_space<semaphore_mem>> -> memref<!tpu.dma_semaphore, #tpu.memory_space<semaphore_mem>>
    tpu.enqueue_dma source(%arg96 : memref<256x256xbf16, #tpu.memory_space<any>>) target(%arg111 : memref<256x256xbf16, #tpu.memory_space<vmem>>) target_semaphore(%1 : memref<!tpu.dma_semaphore, #tpu.memory_space<semaphore_mem>>)
    %c1_i32 = arith.constant 1 : i32
    %2 = tpu.memref_slice %arg125[%c1_i32] : memref<14x!tpu.dma_semaphore, #tpu.memory_space<semaphore_mem>> -> memref<1x!tpu.dma_semaphore, #tpu.memory_space<semaphore_mem>>
    %3 = tpu.memref_squeeze %2 : memref<1x!tpu.dma_semaphore, #tpu.memory_space<semaphore_mem>> -> memref<!tpu.dma_semaphore, #tpu.memory_space<semaphore_mem>>
    tpu.enqueue_dma source(%arg97 : memref<256x64xbf16, #tpu.memory_space<any>>) target(%arg112 : memref<256x64xbf16, #tpu.memory_space<vmem>>) target_semaphore(%3 : memref<!tpu.dma_semaphore, #tpu.memory_space<semaphore_mem>>)
    %c2_i32 = arith.constant 2 : i32
    %4 = tpu.memref_slice %arg125[%c2_i32] : memref<14x!tpu.dma_semaphore, #tpu.memory_space<semaphore_mem>> -> memref<1x!tpu.dma_semaphore, #tpu.memory_space<semaphore_mem>>
    %5 = tpu.memref_squeeze %4 : memref<1x!tpu.dma_semaphore, #tpu.memory_space<semaphore_mem>> -> memref<!tpu.dma_semaphore, #tpu.memory_space<semaphore_mem>>
    tpu.enqueue_dma source(%arg98 : memref<256x256xbf16, #tpu.memory_space<any>>) target(%arg113 : memref<256x256xbf16, #tpu.memory_space<vmem>>) target_semaphore(%5 : memref<!tpu.dma_semaphore, #tpu.memory_space<semaphore_mem>>)
    %c3_i32 = arith.constant 3 : i32
    %6 = tpu.memref_slice %arg125[%c3_i32] : memref<14x!tpu.dma_semaphore, #tpu.memory_space<semaphore_mem>> -> memref<1x!tpu.dma_semaphore, #tpu.memory_space<semaphore_mem>>
    %7 = tpu.memref_squeeze %6 : memref<1x!tpu.dma_semaphore, #tpu.memory_space<semaphore_mem>> -> memref<!tpu.dma_semaphore, #tpu.memory_space<semaphore_mem>>
    tpu.enqueue_dma source(%arg99 : memref<256x256xbf16, #tpu.memory_space<any>>) target(%arg114 : memref<256x256xbf16, #tpu.memory_space<vmem>>) target_semaphore(%7 : memref<!tpu.dma_semaphore, #tpu.memory_space<semaphore_mem>>)
    %c4_i32 = arith.constant 4 : i32
    %8 = tpu.memref_slice %arg125[%c4_i32] : memref<14x!tpu.dma_semaphore, #tpu.memory_space<semaphore_mem>> -> memref<1x!tpu.dma_semaphore, #tpu.memory_space<semaphore_mem>>
    %9 = tpu.memref_squeeze %8 : memref<1x!tpu.dma_semaphore, #tpu.memory_space<semaphore_mem>> -> memref<!tpu.dma_semaphore, #tpu.memory_space<semaphore_mem>>
    tpu.enqueue_dma source(%arg100 : memref<256x256xbf16, #tpu.memory_space<any>>) target(%arg115 : memref<256x256xbf16, #tpu.memory_space<vmem>>) target_semaphore(%9 : memref<!tpu.dma_semaphore, #tpu.memory_space<semaphore_mem>>)
    %c5_i32 = arith.constant 5 : i32
    %10 = tpu.memref_slice %arg125[%c5_i32] : memref<14x!tpu.dma_semaphore, #tpu.memory_space<semaphore_mem>> -> memref<1x!tpu.dma_semaphore, #tpu.memory_space<semaphore_mem>>
    %11 = tpu.memref_squeeze %10 : memref<1x!tpu.dma_semaphore, #tpu.memory_space<semaphore_mem>> -> memref<!tpu.dma_semaphore, #tpu.memory_space<semaphore_mem>>
    tpu.enqueue_dma source(%arg101 : memref<256x256xbf16, #tpu.memory_space<any>>) target(%arg116 : memref<256x256xbf16, #tpu.memory_space<vmem>>) target_semaphore(%11 : memref<!tpu.dma_semaphore, #tpu.memory_space<semaphore_mem>>)
    %c6_i32 = arith.constant 6 : i32
    %12 = tpu.memref_slice %arg125[%c6_i32] : memref<14x!tpu.dma_semaphore, #tpu.memory_space<semaphore_mem>> -> memref<1x!tpu.dma_semaphore, #tpu.memory_space<semaphore_mem>>
    %13 = tpu.memref_squeeze %12 : memref<1x!tpu.dma_semaphore, #tpu.memory_space<semaphore_mem>> -> memref<!tpu.dma_semaphore, #tpu.memory_space<semaphore_mem>>
    tpu.enqueue_dma source(%arg102 : memref<256x128xbf16, #tpu.memory_space<any>>) target(%arg117 : memref<256x128xbf16, #tpu.memory_space<vmem>>) target_semaphore(%13 : memref<!tpu.dma_semaphore, #tpu.memory_space<semaphore_mem>>)
    %c7_i32 = arith.constant 7 : i32
    %14 = tpu.memref_slice %arg125[%c7_i32] : memref<14x!tpu.dma_semaphore, #tpu.memory_space<semaphore_mem>> -> memref<1x!tpu.dma_semaphore, #tpu.memory_space<semaphore_mem>>
    %15 = tpu.memref_squeeze %14 : memref<1x!tpu.dma_semaphore, #tpu.memory_space<semaphore_mem>> -> memref<!tpu.dma_semaphore, #tpu.memory_space<semaphore_mem>>
    tpu.enqueue_dma source(%arg103 : memref<256x128xbf16, #tpu.memory_space<any>>) target(%arg118 : memref<256x128xbf16, #tpu.memory_space<vmem>>) target_semaphore(%15 : memref<!tpu.dma_semaphore, #tpu.memory_space<semaphore_mem>>)
    %c8_i32 = arith.constant 8 : i32
    %16 = tpu.memref_slice %arg125[%c8_i32] : memref<14x!tpu.dma_semaphore, #tpu.memory_space<semaphore_mem>> -> memref<1x!tpu.dma_semaphore, #tpu.memory_space<semaphore_mem>>
    %17 = tpu.memref_squeeze %16 : memref<1x!tpu.dma_semaphore, #tpu.memory_space<semaphore_mem>> -> memref<!tpu.dma_semaphore, #tpu.memory_space<semaphore_mem>>
    tpu.enqueue_dma source(%arg104 : memref<128x128xbf16, #tpu.memory_space<any>>) target(%arg119 : memref<128x128xbf16, #tpu.memory_space<vmem>>) target_semaphore(%17 : memref<!tpu.dma_semaphore, #tpu.memory_space<semaphore_mem>>)
    %c9_i32 = arith.constant 9 : i32
    %18 = tpu.memref_slice %arg125[%c9_i32] : memref<14x!tpu.dma_semaphore, #tpu.memory_space<semaphore_mem>> -> memref<1x!tpu.dma_semaphore, #tpu.memory_space<semaphore_mem>>
    %19 = tpu.memref_squeeze %18 : memref<1x!tpu.dma_semaphore, #tpu.memory_space<semaphore_mem>> -> memref<!tpu.dma_semaphore, #tpu.memory_space<semaphore_mem>>
    tpu.enqueue_dma source(%arg105 : memref<256x128xbf16, #tpu.memory_space<any>>) target(%arg120 : memref<256x128xbf16, #tpu.memory_space<vmem>>) target_semaphore(%19 : memref<!tpu.dma_semaphore, #tpu.memory_space<semaphore_mem>>)
    %c10_i32 = arith.constant 10 : i32
    %20 = tpu.memref_slice %arg125[%c10_i32] : memref<14x!tpu.dma_semaphore, #tpu.memory_space<semaphore_mem>> -> memref<1x!tpu.dma_semaphore, #tpu.memory_space<semaphore_mem>>
    %21 = tpu.memref_squeeze %20 : memref<1x!tpu.dma_semaphore, #tpu.memory_space<semaphore_mem>> -> memref<!tpu.dma_semaphore, #tpu.memory_space<semaphore_mem>>
    tpu.enqueue_dma source(%arg106 : memref<256x128xbf16, #tpu.memory_space<any>>) target(%arg121 : memref<256x128xbf16, #tpu.memory_space<vmem>>) target_semaphore(%21 : memref<!tpu.dma_semaphore, #tpu.memory_space<semaphore_mem>>)
    %c11_i32 = arith.constant 11 : i32
    %22 = tpu.memref_slice %arg125[%c11_i32] : memref<14x!tpu.dma_semaphore, #tpu.memory_space<semaphore_mem>> -> memref<1x!tpu.dma_semaphore, #tpu.memory_space<semaphore_mem>>
    %23 = tpu.memref_squeeze %22 : memref<1x!tpu.dma_semaphore, #tpu.memory_space<semaphore_mem>> -> memref<!tpu.dma_semaphore, #tpu.memory_space<semaphore_mem>>
    tpu.enqueue_dma source(%arg107 : memref<128x128xbf16, #tpu.memory_space<any>>) target(%arg122 : memref<128x128xbf16, #tpu.memory_space<vmem>>) target_semaphore(%23 : memref<!tpu.dma_semaphore, #tpu.memory_space<semaphore_mem>>)
    %c12_i32 = arith.constant 12 : i32
    %24 = tpu.memref_slice %arg125[%c12_i32] : memref<14x!tpu.dma_semaphore, #tpu.memory_space<semaphore_mem>> -> memref<1x!tpu.dma_semaphore, #tpu.memory_space<semaphore_mem>>
    %25 = tpu.memref_squeeze %24 : memref<1x!tpu.dma_semaphore, #tpu.memory_space<semaphore_mem>> -> memref<!tpu.dma_semaphore, #tpu.memory_space<semaphore_mem>>
    tpu.enqueue_dma source(%arg108 : memref<128x128xbf16, #tpu.memory_space<any>>) target(%arg123 : memref<128x128xbf16, #tpu.memory_space<vmem>>) target_semaphore(%25 : memref<!tpu.dma_semaphore, #tpu.memory_space<semaphore_mem>>)
    %c13_i32 = arith.constant 13 : i32
    %26 = tpu.memref_slice %arg125[%c13_i32] : memref<14x!tpu.dma_semaphore, #tpu.memory_space<semaphore_mem>> -> memref<1x!tpu.dma_semaphore, #tpu.memory_space<semaphore_mem>>
    %27 = tpu.memref_squeeze %26 : memref<1x!tpu.dma_semaphore, #tpu.memory_space<semaphore_mem>> -> memref<!tpu.dma_semaphore, #tpu.memory_space<semaphore_mem>>
    tpu.enqueue_dma source(%arg109 : memref<128x256xbf16, #tpu.memory_space<any>>) target(%arg124 : memref<128x256xbf16, #tpu.memory_space<vmem>>) target_semaphore(%27 : memref<!tpu.dma_semaphore, #tpu.memory_space<semaphore_mem>>)
    %c0 = arith.constant 0 : index
    %c0_0 = arith.constant 0 : index
    %28 = vector.load %arg2[%c0, %c0_0] : memref<8x32xf32, #tpu.memory_space<vmem>>, vector<8x32xf32>
    %29 = arith.truncf %28 : vector<8x32xf32> to vector<8x32xbf16>
    %c0_1 = arith.constant 0 : index
    %c0_2 = arith.constant 0 : index
    %30 = vector.load %arg74[%c0_1, %c0_2] : memref<32x128xbf16, #tpu.memory_space<vmem>>, vector<32x128xbf16>
    %cst = arith.constant dense<0.000000e+00> : vector<8x128xf32>
    %31 = tpu.matmul %29, %30, %cst {dimension_numbers = #tpu.dot_dimension_numbers<[1], [0], [0], [1], [0, 0, 1, 1], [], []>} : vector<8x32xbf16>, vector<32x128xbf16>, vector<8x128xf32> -> vector<8x128xf32>
    %c0_3 = arith.constant 0 : index
    %c0_4 = arith.constant 0 : index
    %32 = vector.load %arg75[%c0_3, %c0_4] : memref<1x128xf32, #tpu.memory_space<vmem>>, vector<1x128xf32>
    %33 = vector.broadcast %32 : vector<1x128xf32> to vector<8x128xf32>
    %34 = arith.addf %31, %33 : vector<8x128xf32>
    %cst_5 = arith.constant 2.000000e+01 : f32
    %35 = vector.broadcast %cst_5 : f32 to vector<8x128xf32>
    %36 = arith.minimumf %34, %35 : vector<8x128xf32>
    %37 = math.exp %36 : vector<8x128xf32>
    %cst_6 = arith.constant 2.000000e+00 : f32
    %38 = vector.broadcast %cst_6 : f32 to vector<8x128xf32>
    %39 = arith.addf %37, %38 : vector<8x128xf32>
    %40 = arith.mulf %37, %39 : vector<8x128xf32>
    %41 = arith.mulf %34, %40 : vector<8x128xf32>
    %cst_7 = arith.constant 2.000000e+00 : f32
    %42 = vector.broadcast %cst_7 : f32 to vector<8x128xf32>
    %43 = arith.addf %40, %42 : vector<8x128xf32>
    %44 = tpu.reciprocal %43 {approx = true} : vector<8x128xf32> -> vector<8x128xf32>
    %45 = arith.mulf %41, %44 : vector<8x128xf32>
    %cst_8 = arith.constant 2.000000e+01 : f32
    %46 = vector.broadcast %cst_8 : f32 to vector<8x128xf32>
    %47 = arith.cmpf ogt, %34, %46 : vector<8x128xf32>
    %48 = arith.select %47, %34, %45 : vector<8x128xi1>, vector<8x128xf32>
    %49 = arith.truncf %48 : vector<8x128xf32> to vector<8x128xbf16>
    %c0_9 = arith.constant 0 : index
    %c0_10 = arith.constant 0 : index
    %50 = vector.load %arg76[%c0_9, %c0_10] : memref<128x32xbf16, #tpu.memory_space<vmem>>, vector<128x32xbf16>
    %cst_11 = arith.constant dense<0.000000e+00> : vector<8x32xf32>
    %51 = tpu.matmul %49, %50, %cst_11 {dimension_numbers = #tpu.dot_dimension_numbers<[1], [0], [0], [1], [0, 0, 1, 1], [], []>} : vector<8x128xbf16>, vector<128x32xbf16>, vector<8x32xf32> -> vector<8x32xf32>
    %c0_12 = arith.constant 0 : index
    %c0_13 = arith.constant 0 : index
    %52 = vector.load %arg77[%c0_12, %c0_13] : memref<1x32xf32, #tpu.memory_space<vmem>>, vector<1x32xf32>
    %53 = vector.broadcast %52 : vector<1x32xf32> to vector<8x32xf32>
    %54 = arith.addf %51, %53 : vector<8x32xf32>
    %cst_14 = arith.constant 2.000000e+01 : f32
    %55 = vector.broadcast %cst_14 : f32 to vector<8x32xf32>
    %56 = arith.minimumf %54, %55 : vector<8x32xf32>
    %57 = math.exp %56 : vector<8x32xf32>
    %cst_15 = arith.constant 2.000000e+00 : f32
    %58 = vector.broadcast %cst_15 : f32 to vector<8x32xf32>
    %59 = arith.addf %57, %58 : vector<8x32xf32>
    %60 = arith.mulf %57, %59 : vector<8x32xf32>
    %61 = arith.mulf %54, %60 : vector<8x32xf32>
    %cst_16 = arith.constant 2.000000e+00 : f32
    %62 = vector.broadcast %cst_16 : f32 to vector<8x32xf32>
    %63 = arith.addf %60, %62 : vector<8x32xf32>
    %64 = tpu.reciprocal %63 {approx = true} : vector<8x32xf32> -> vector<8x32xf32>
    %65 = arith.mulf %61, %64 : vector<8x32xf32>
    %cst_17 = arith.constant 2.000000e+01 : f32
    %66 = vector.broadcast %cst_17 : f32 to vector<8x32xf32>
    %67 = arith.cmpf ogt, %54, %66 : vector<8x32xf32>
    %68 = arith.select %67, %54, %65 : vector<8x32xi1>, vector<8x32xf32>
    %c0_18 = arith.constant 0 : index
    %c0_19 = arith.constant 0 : index
    %69 = vector.load %arg0[%c0_18, %c0_19] : memref<8x128xf32, #tpu.memory_space<vmem>>, vector<8x128xf32>
    %70 = arith.truncf %69 : vector<8x128xf32> to vector<8x128xbf16>
    %c0_20 = arith.constant 0 : index
    %c0_21 = arith.constant 0 : index
    %71 = vector.load %arg55[%c0_20, %c0_21] : memref<128x128xbf16, #tpu.memory_space<vmem>>, vector<128x128xbf16>
    %cst_22 = arith.constant dense<0.000000e+00> : vector<8x128xf32>
    %72 = tpu.matmul %70, %71, %cst_22 {dimension_numbers = #tpu.dot_dimension_numbers<[1], [0], [0], [1], [0, 0, 1, 1], [], []>} : vector<8x128xbf16>, vector<128x128xbf16>, vector<8x128xf32> -> vector<8x128xf32>
    %c0_23 = arith.constant 0 : index
    %c0_24 = arith.constant 0 : index
    %73 = vector.load %arg53[%c0_23, %c0_24] : memref<1x128xf32, #tpu.memory_space<vmem>>, vector<1x128xf32>
    %74 = vector.broadcast %73 : vector<1x128xf32> to vector<8x128xf32>
    %75 = arith.addf %72, %74 : vector<8x128xf32>
    %c0_25 = arith.constant 0 : index
    %c0_26 = arith.constant 0 : index
    %76 = vector.load %arg1[%c0_25, %c0_26] : memref<8x512xf32, #tpu.memory_space<vmem>>, vector<8x512xf32>
    %77 = arith.truncf %76 : vector<8x512xf32> to vector<8x512xbf16>
    %c0_27 = arith.constant 0 : index
    %c0_28 = arith.constant 0 : index
    %78 = vector.load %arg54[%c0_27, %c0_28] : memref<512x128xbf16, #tpu.memory_space<vmem>>, vector<512x128xbf16>
    %cst_29 = arith.constant dense<0.000000e+00> : vector<8x128xf32>
    %79 = tpu.matmul %77, %78, %cst_29 {dimension_numbers = #tpu.dot_dimension_numbers<[1], [0], [0], [1], [0, 0, 1, 1], [], []>} : vector<8x512xbf16>, vector<512x128xbf16>, vector<8x128xf32> -> vector<8x128xf32>
    %80 = arith.addf %75, %79 : vector<8x128xf32>
    %81 = arith.truncf %80 : vector<8x128xf32> to vector<8x128xbf16>
    %c0_30 = arith.constant 0 : index
    %c0_31 = arith.constant 0 : index
    %82 = vector.load %arg13[%c0_30, %c0_31] : memref<128x256xbf16, #tpu.memory_space<vmem>>, vector<128x256xbf16>
    %cst_32 = arith.constant dense<0.000000e+00> : vector<8x256xf32>
    %83 = tpu.matmul %81, %82, %cst_32 {dimension_numbers = #tpu.dot_dimension_numbers<[1], [0], [0], [1], [0, 0, 1, 1], [], []>} : vector<8x128xbf16>, vector<128x256xbf16>, vector<8x256xf32> -> vector<8x256xf32>
    %c0_33 = arith.constant 0 : index
    %c0_34 = arith.constant 0 : index
    %84 = vector.load %arg5[%c0_33, %c0_34] : memref<1x256xf32, #tpu.memory_space<vmem>>, vector<1x256xf32>
    %85 = vector.broadcast %84 : vector<1x256xf32> to vector<8x256xf32>
    %86 = arith.addf %83, %85 : vector<8x256xf32>
    %87 = arith.mulf %86, %86 : vector<8x256xf32>
    %88 = tpu.concatenate %86, %87 in 0 : vector<8x256xf32>, vector<8x256xf32> -> vector<16x256xf32>
    %89 = arith.truncf %88 : vector<16x256xf32> to vector<16x256xbf16>
    %c0_35 = arith.constant 0 : index
    %c0_36 = arith.constant 0 : index
    %90 = vector.load %arg57[%c0_35, %c0_36] : memref<256x256xbf16, #tpu.memory_space<vmem>>, vector<256x256xbf16>
    %cst_37 = arith.constant dense<0.000000e+00> : vector<16x256xf32>
    %91 = tpu.matmul %89, %90, %cst_37 {dimension_numbers = #tpu.dot_dimension_numbers<[1], [0], [0], [1], [0, 0, 1, 1], [], []>} : vector<16x256xbf16>, vector<256x256xbf16>, vector<16x256xf32> -> vector<16x256xf32>
    %92 = vector.extract_strided_slice %91 {offsets = [0, 0], sizes = [8, 256], strides = [1, 1]} : vector<16x256xf32> to vector<8x256xf32>
    %93 = vector.extract_strided_slice %91 {offsets = [8, 0], sizes = [8, 256], strides = [1, 1]} : vector<16x256xf32> to vector<8x256xf32>
    %94 = arith.mulf %92, %92 : vector<8x256xf32>
    %95 = arith.subf %93, %94 : vector<8x256xf32>
    %96 = arith.subf %86, %92 : vector<8x256xf32>
    %cst_38 = arith.constant 9.99999974E-6 : f32
    %97 = vector.broadcast %cst_38 : f32 to vector<8x256xf32>
    %98 = arith.addf %95, %97 : vector<8x256xf32>
    %99 = math.rsqrt %98 : vector<8x256xf32>
    %100 = arith.mulf %96, %99 : vector<8x256xf32>
    %c0_39 = arith.constant 0 : index
    %c0_40 = arith.constant 0 : index
    %101 = vector.load %arg11[%c0_39, %c0_40] : memref<1x256xf32, #tpu.memory_space<vmem>>, vector<1x256xf32>
    %102 = vector.broadcast %101 : vector<1x256xf32> to vector<8x256xf32>
    %103 = arith.mulf %100, %102 : vector<8x256xf32>
    %c0_41 = arith.constant 0 : index
    %c0_42 = arith.constant 0 : index
    %104 = vector.load %arg7[%c0_41, %c0_42] : memref<1x256xf32, #tpu.memory_space<vmem>>, vector<1x256xf32>
    %105 = vector.broadcast %104 : vector<1x256xf32> to vector<8x256xf32>
    %106 = arith.addf %103, %105 : vector<8x256xf32>
    %cst_43 = arith.constant 2.000000e+01 : f32
    %107 = vector.broadcast %cst_43 : f32 to vector<8x256xf32>
    %108 = arith.minimumf %106, %107 : vector<8x256xf32>
    %109 = math.exp %108 : vector<8x256xf32>
    %cst_44 = arith.constant 2.000000e+00 : f32
    %110 = vector.broadcast %cst_44 : f32 to vector<8x256xf32>
    %111 = arith.addf %109, %110 : vector<8x256xf32>
    %112 = arith.mulf %109, %111 : vector<8x256xf32>
    %113 = arith.mulf %106, %112 : vector<8x256xf32>
    %cst_45 = arith.constant 2.000000e+00 : f32
    %114 = vector.broadcast %cst_45 : f32 to vector<8x256xf32>
    %115 = arith.addf %112, %114 : vector<8x256xf32>
    %116 = tpu.reciprocal %115 {approx = true} : vector<8x256xf32> -> vector<8x256xf32>
    %117 = arith.mulf %113, %116 : vector<8x256xf32>
    %cst_46 = arith.constant 2.000000e+01 : f32
    %118 = vector.broadcast %cst_46 : f32 to vector<8x256xf32>
    %119 = arith.cmpf ogt, %106, %118 : vector<8x256xf32>
    %120 = arith.select %119, %106, %117 : vector<8x256xi1>, vector<8x256xf32>
    %121 = arith.truncf %68 : vector<8x32xf32> to vector<8x32xbf16>
    %c0_47 = arith.constant 0 : index
    %c0_48 = arith.constant 0 : index
    %122 = vector.load %arg16[%c0_47, %c0_48] : memref<32x256xbf16, #tpu.memory_space<vmem>>, vector<32x256xbf16>
    %cst_49 = arith.constant dense<0.000000e+00> : vector<8x256xf32>
    %123 = tpu.matmul %121, %122, %cst_49 {dimension_numbers = #tpu.dot_dimension_numbers<[1], [0], [0], [1], [0, 0, 1, 1], [], []>} : vector<8x32xbf16>, vector<32x256xbf16>, vector<8x256xf32> -> vector<8x256xf32>
    %c0_50 = arith.constant 0 : index
    %c0_51 = arith.constant 0 : index
    %124 = vector.load %arg10[%c0_50, %c0_51] : memref<1x256xf32, #tpu.memory_space<vmem>>, vector<1x256xf32>
    %125 = vector.broadcast %124 : vector<1x256xf32> to vector<8x256xf32>
    %126 = arith.addf %123, %125 : vector<8x256xf32>
    %127 = arith.addf %120, %126 : vector<8x256xf32>
    %128 = arith.truncf %127 : vector<8x256xf32> to vector<8x256xbf16>
    %c0_52 = arith.constant 0 : index
    %c0_53 = arith.constant 0 : index
    %129 = vector.load %arg14[%c0_52, %c0_53] : memref<256x256xbf16, #tpu.memory_space<vmem>>, vector<256x256xbf16>
    %cst_54 = arith.constant dense<0.000000e+00> : vector<8x256xf32>
    %130 = tpu.matmul %128, %129, %cst_54 {dimension_numbers = #tpu.dot_dimension_numbers<[1], [0], [0], [1], [0, 0, 1, 1], [], []>} : vector<8x256xbf16>, vector<256x256xbf16>, vector<8x256xf32> -> vector<8x256xf32>
    %c0_55 = arith.constant 0 : index
    %c0_56 = arith.constant 0 : index
    %131 = vector.load %arg6[%c0_55, %c0_56] : memref<1x256xf32, #tpu.memory_space<vmem>>, vector<1x256xf32>
    %132 = vector.broadcast %131 : vector<1x256xf32> to vector<8x256xf32>
    %133 = arith.addf %130, %132 : vector<8x256xf32>
    %134 = arith.mulf %133, %133 : vector<8x256xf32>
    %135 = tpu.concatenate %133, %134 in 0 : vector<8x256xf32>, vector<8x256xf32> -> vector<16x256xf32>
    %136 = arith.truncf %135 : vector<16x256xf32> to vector<16x256xbf16>
    %c0_57 = arith.constant 0 : index
    %c0_58 = arith.constant 0 : index
    %137 = vector.load %arg57[%c0_57, %c0_58] : memref<256x256xbf16, #tpu.memory_space<vmem>>, vector<256x256xbf16>
    %cst_59 = arith.constant dense<0.000000e+00> : vector<16x256xf32>
    %138 = tpu.matmul %136, %137, %cst_59 {dimension_numbers = #tpu.dot_dimension_numbers<[1], [0], [0], [1], [0, 0, 1, 1], [], []>} : vector<16x256xbf16>, vector<256x256xbf16>, vector<16x256xf32> -> vector<16x256xf32>
    %139 = vector.extract_strided_slice %138 {offsets = [0, 0], sizes = [8, 256], strides = [1, 1]} : vector<16x256xf32> to vector<8x256xf32>
    %140 = vector.extract_strided_slice %138 {offsets = [8, 0], sizes = [8, 256], strides = [1, 1]} : vector<16x256xf32> to vector<8x256xf32>
    %141 = arith.mulf %139, %139 : vector<8x256xf32>
    %142 = arith.subf %140, %141 : vector<8x256xf32>
    %143 = arith.subf %133, %139 : vector<8x256xf32>
    %cst_60 = arith.constant 9.99999974E-6 : f32
    %144 = vector.broadcast %cst_60 : f32 to vector<8x256xf32>
    %145 = arith.addf %142, %144 : vector<8x256xf32>
    %146 = math.rsqrt %145 : vector<8x256xf32>
    %147 = arith.mulf %143, %146 : vector<8x256xf32>
    %c0_61 = arith.constant 0 : index
    %c0_62 = arith.constant 0 : index
    %148 = vector.load %arg12[%c0_61, %c0_62] : memref<1x256xf32, #tpu.memory_space<vmem>>, vector<1x256xf32>
    %149 = vector.broadcast %148 : vector<1x256xf32> to vector<8x256xf32>
    %150 = arith.mulf %147, %149 : vector<8x256xf32>
    %c0_63 = arith.constant 0 : index
    %c0_64 = arith.constant 0 : index
    %151 = vector.load %arg8[%c0_63, %c0_64] : memref<1x256xf32, #tpu.memory_space<vmem>>, vector<1x256xf32>
    %152 = vector.broadcast %151 : vector<1x256xf32> to vector<8x256xf32>
    %153 = arith.addf %150, %152 : vector<8x256xf32>
    %cst_65 = arith.constant 2.000000e+01 : f32
    %154 = vector.broadcast %cst_65 : f32 to vector<8x256xf32>
    %155 = arith.minimumf %153, %154 : vector<8x256xf32>
    %156 = math.exp %155 : vector<8x256xf32>
    %cst_66 = arith.constant 2.000000e+00 : f32
    %157 = vector.broadcast %cst_66 : f32 to vector<8x256xf32>
    %158 = arith.addf %156, %157 : vector<8x256xf32>
    %159 = arith.mulf %156, %158 : vector<8x256xf32>
    %160 = arith.mulf %153, %159 : vector<8x256xf32>
    %cst_67 = arith.constant 2.000000e+00 : f32
    %161 = vector.broadcast %cst_67 : f32 to vector<8x256xf32>
    %162 = arith.addf %159, %161 : vector<8x256xf32>
    %163 = tpu.reciprocal %162 {approx = true} : vector<8x256xf32> -> vector<8x256xf32>
    %164 = arith.mulf %160, %163 : vector<8x256xf32>
    %cst_68 = arith.constant 2.000000e+01 : f32
    %165 = vector.broadcast %cst_68 : f32 to vector<8x256xf32>
    %166 = arith.cmpf ogt, %153, %165 : vector<8x256xf32>
    %167 = arith.select %166, %153, %164 : vector<8x256xi1>, vector<8x256xf32>
    %168 = arith.truncf %80 : vector<8x128xf32> to vector<8x128xbf16>
    %c0_69 = arith.constant 0 : index
    %c0_70 = arith.constant 0 : index
    %169 = vector.load %arg15[%c0_69, %c0_70] : memref<128x256xbf16, #tpu.memory_space<vmem>>, vector<128x256xbf16>
    %cst_71 = arith.constant dense<0.000000e+00> : vector<8x256xf32>
    %170 = tpu.matmul %168, %169, %cst_71 {dimension_numbers = #tpu.dot_dimension_numbers<[1], [0], [0], [1], [0, 0, 1, 1], [], []>} : vector<8x128xbf16>, vector<128x256xbf16>, vector<8x256xf32> -> vector<8x256xf32>
    %c0_72 = arith.constant 0 : index
    %c0_73 = arith.constant 0 : index
    %171 = vector.load %arg9[%c0_72, %c0_73] : memref<1x256xf32, #tpu.memory_space<vmem>>, vector<1x256xf32>
    %172 = vector.broadcast %171 : vector<1x256xf32> to vector<8x256xf32>
    %173 = arith.addf %170, %172 : vector<8x256xf32>
    %174 = arith.addf %167, %173 : vector<8x256xf32>
    %175 = arith.truncf %174 : vector<8x256xf32> to vector<8x256xbf16>
    %c0_74 = arith.constant 0 : index
    %c0_75 = arith.constant 0 : index
    %176 = vector.load %arg24[%c0_74, %c0_75] : memref<256x256xbf16, #tpu.memory_space<vmem>>, vector<256x256xbf16>
    %cst_76 = arith.constant dense<0.000000e+00> : vector<8x256xf32>
    %177 = tpu.matmul %175, %176, %cst_76 {dimension_numbers = #tpu.dot_dimension_numbers<[1], [0], [0], [1], [0, 0, 1, 1], [], []>} : vector<8x256xbf16>, vector<256x256xbf16>, vector<8x256xf32> -> vector<8x256xf32>
    %c0_77 = arith.constant 0 : index
    %c0_78 = arith.constant 0 : index
    %178 = vector.load %arg17[%c0_77, %c0_78] : memref<1x256xf32, #tpu.memory_space<vmem>>, vector<1x256xf32>
    %179 = vector.broadcast %178 : vector<1x256xf32> to vector<8x256xf32>
    %180 = arith.addf %177, %179 : vector<8x256xf32>
    %181 = arith.mulf %180, %180 : vector<8x256xf32>
    %182 = tpu.concatenate %180, %181 in 0 : vector<8x256xf32>, vector<8x256xf32> -> vector<16x256xf32>
    %183 = arith.truncf %182 : vector<16x256xf32> to vector<16x256xbf16>
    %c0_79 = arith.constant 0 : index
    %c0_80 = arith.constant 0 : index
    %184 = vector.load %arg57[%c0_79, %c0_80] : memref<256x256xbf16, #tpu.memory_space<vmem>>, vector<256x256xbf16>
    %cst_81 = arith.constant dense<0.000000e+00> : vector<16x256xf32>
    %185 = tpu.matmul %183, %184, %cst_81 {dimension_numbers = #tpu.dot_dimension_numbers<[1], [0], [0], [1], [0, 0, 1, 1], [], []>} : vector<16x256xbf16>, vector<256x256xbf16>, vector<16x256xf32> -> vector<16x256xf32>
    %186 = vector.extract_strided_slice %185 {offsets = [0, 0], sizes = [8, 256], strides = [1, 1]} : vector<16x256xf32> to vector<8x256xf32>
    %187 = vector.extract_strided_slice %185 {offsets = [8, 0], sizes = [8, 256], strides = [1, 1]} : vector<16x256xf32> to vector<8x256xf32>
    %188 = arith.mulf %186, %186 : vector<8x256xf32>
    %189 = arith.subf %187, %188 : vector<8x256xf32>
    %190 = arith.subf %180, %186 : vector<8x256xf32>
    %cst_82 = arith.constant 9.99999974E-6 : f32
    %191 = vector.broadcast %cst_82 : f32 to vector<8x256xf32>
    %192 = arith.addf %189, %191 : vector<8x256xf32>
    %193 = math.rsqrt %192 : vector<8x256xf32>
    %194 = arith.mulf %190, %193 : vector<8x256xf32>
    %c0_83 = arith.constant 0 : index
    %c0_84 = arith.constant 0 : index
    %195 = vector.load %arg22[%c0_83, %c0_84] : memref<1x256xf32, #tpu.memory_space<vmem>>, vector<1x256xf32>
    %196 = vector.broadcast %195 : vector<1x256xf32> to vector<8x256xf32>
    %197 = arith.mulf %194, %196 : vector<8x256xf32>
    %c0_85 = arith.constant 0 : index
    %c0_86 = arith.constant 0 : index
    %198 = vector.load %arg19[%c0_85, %c0_86] : memref<1x256xf32, #tpu.memory_space<vmem>>, vector<1x256xf32>
    %199 = vector.broadcast %198 : vector<1x256xf32> to vector<8x256xf32>
    %200 = arith.addf %197, %199 : vector<8x256xf32>
    %cst_87 = arith.constant 2.000000e+01 : f32
    %201 = vector.broadcast %cst_87 : f32 to vector<8x256xf32>
    %202 = arith.minimumf %200, %201 : vector<8x256xf32>
    %203 = math.exp %202 : vector<8x256xf32>
    %cst_88 = arith.constant 2.000000e+00 : f32
    %204 = vector.broadcast %cst_88 : f32 to vector<8x256xf32>
    %205 = arith.addf %203, %204 : vector<8x256xf32>
    %206 = arith.mulf %203, %205 : vector<8x256xf32>
    %207 = arith.mulf %200, %206 : vector<8x256xf32>
    %cst_89 = arith.constant 2.000000e+00 : f32
    %208 = vector.broadcast %cst_89 : f32 to vector<8x256xf32>
    %209 = arith.addf %206, %208 : vector<8x256xf32>
    %210 = tpu.reciprocal %209 {approx = true} : vector<8x256xf32> -> vector<8x256xf32>
    %211 = arith.mulf %207, %210 : vector<8x256xf32>
    %cst_90 = arith.constant 2.000000e+01 : f32
    %212 = vector.broadcast %cst_90 : f32 to vector<8x256xf32>
    %213 = arith.cmpf ogt, %200, %212 : vector<8x256xf32>
    %214 = arith.select %213, %200, %211 : vector<8x256xi1>, vector<8x256xf32>
    %215 = arith.truncf %68 : vector<8x32xf32> to vector<8x32xbf16>
    %c0_91 = arith.constant 0 : index
    %c0_92 = arith.constant 0 : index
    %216 = vector.load %arg26[%c0_91, %c0_92] : memref<32x256xbf16, #tpu.memory_space<vmem>>, vector<32x256xbf16>
    %cst_93 = arith.constant dense<0.000000e+00> : vector<8x256xf32>
    %217 = tpu.matmul %215, %216, %cst_93 {dimension_numbers = #tpu.dot_dimension_numbers<[1], [0], [0], [1], [0, 0, 1, 1], [], []>} : vector<8x32xbf16>, vector<32x256xbf16>, vector<8x256xf32> -> vector<8x256xf32>
    %c0_94 = arith.constant 0 : index
    %c0_95 = arith.constant 0 : index
    %218 = vector.load %arg21[%c0_94, %c0_95] : memref<1x256xf32, #tpu.memory_space<vmem>>, vector<1x256xf32>
    %219 = vector.broadcast %218 : vector<1x256xf32> to vector<8x256xf32>
    %220 = arith.addf %217, %219 : vector<8x256xf32>
    %221 = arith.addf %214, %220 : vector<8x256xf32>
    %222 = arith.truncf %221 : vector<8x256xf32> to vector<8x256xbf16>
    %c0_96 = arith.constant 0 : index
    %c0_97 = arith.constant 0 : index
    %223 = vector.load %arg25[%c0_96, %c0_97] : memref<256x256xbf16, #tpu.memory_space<vmem>>, vector<256x256xbf16>
    %cst_98 = arith.constant dense<0.000000e+00> : vector<8x256xf32>
    %224 = tpu.matmul %222, %223, %cst_98 {dimension_numbers = #tpu.dot_dimension_numbers<[1], [0], [0], [1], [0, 0, 1, 1], [], []>} : vector<8x256xbf16>, vector<256x256xbf16>, vector<8x256xf32> -> vector<8x256xf32>
    %c0_99 = arith.constant 0 : index
    %c0_100 = arith.constant 0 : index
    %225 = vector.load %arg18[%c0_99, %c0_100] : memref<1x256xf32, #tpu.memory_space<vmem>>, vector<1x256xf32>
    %226 = vector.broadcast %225 : vector<1x256xf32> to vector<8x256xf32>
    %227 = arith.addf %224, %226 : vector<8x256xf32>
    %228 = arith.mulf %227, %227 : vector<8x256xf32>
    %229 = tpu.concatenate %227, %228 in 0 : vector<8x256xf32>, vector<8x256xf32> -> vector<16x256xf32>
    %230 = arith.truncf %229 : vector<16x256xf32> to vector<16x256xbf16>
    %c0_101 = arith.constant 0 : index
    %c0_102 = arith.constant 0 : index
    %231 = vector.load %arg57[%c0_101, %c0_102] : memref<256x256xbf16, #tpu.memory_space<vmem>>, vector<256x256xbf16>
    %cst_103 = arith.constant dense<0.000000e+00> : vector<16x256xf32>
    %232 = tpu.matmul %230, %231, %cst_103 {dimension_numbers = #tpu.dot_dimension_numbers<[1], [0], [0], [1], [0, 0, 1, 1], [], []>} : vector<16x256xbf16>, vector<256x256xbf16>, vector<16x256xf32> -> vector<16x256xf32>
    %233 = vector.extract_strided_slice %232 {offsets = [0, 0], sizes = [8, 256], strides = [1, 1]} : vector<16x256xf32> to vector<8x256xf32>
    %234 = vector.extract_strided_slice %232 {offsets = [8, 0], sizes = [8, 256], strides = [1, 1]} : vector<16x256xf32> to vector<8x256xf32>
    %235 = arith.mulf %233, %233 : vector<8x256xf32>
    %236 = arith.subf %234, %235 : vector<8x256xf32>
    %237 = arith.subf %227, %233 : vector<8x256xf32>
    %cst_104 = arith.constant 9.99999974E-6 : f32
    %238 = vector.broadcast %cst_104 : f32 to vector<8x256xf32>
    %239 = arith.addf %236, %238 : vector<8x256xf32>
    %240 = math.rsqrt %239 : vector<8x256xf32>
    %241 = arith.mulf %237, %240 : vector<8x256xf32>
    %c0_105 = arith.constant 0 : index
    %c0_106 = arith.constant 0 : index
    %242 = vector.load %arg23[%c0_105, %c0_106] : memref<1x256xf32, #tpu.memory_space<vmem>>, vector<1x256xf32>
    %243 = vector.broadcast %242 : vector<1x256xf32> to vector<8x256xf32>
    %244 = arith.mulf %241, %243 : vector<8x256xf32>
    %c0_107 = arith.constant 0 : index
    %c0_108 = arith.constant 0 : index
    %245 = vector.load %arg20[%c0_107, %c0_108] : memref<1x256xf32, #tpu.memory_space<vmem>>, vector<1x256xf32>
    %246 = vector.broadcast %245 : vector<1x256xf32> to vector<8x256xf32>
    %247 = arith.addf %244, %246 : vector<8x256xf32>
    %cst_109 = arith.constant 2.000000e+01 : f32
    %248 = vector.broadcast %cst_109 : f32 to vector<8x256xf32>
    %249 = arith.minimumf %247, %248 : vector<8x256xf32>
    %250 = math.exp %249 : vector<8x256xf32>
    %cst_110 = arith.constant 2.000000e+00 : f32
    %251 = vector.broadcast %cst_110 : f32 to vector<8x256xf32>
    %252 = arith.addf %250, %251 : vector<8x256xf32>
    %253 = arith.mulf %250, %252 : vector<8x256xf32>
    %254 = arith.mulf %247, %253 : vector<8x256xf32>
    %cst_111 = arith.constant 2.000000e+00 : f32
    %255 = vector.broadcast %cst_111 : f32 to vector<8x256xf32>
    %256 = arith.addf %253, %255 : vector<8x256xf32>
    %257 = tpu.reciprocal %256 {approx = true} : vector<8x256xf32> -> vector<8x256xf32>
    %258 = arith.mulf %254, %257 : vector<8x256xf32>
    %cst_112 = arith.constant 2.000000e+01 : f32
    %259 = vector.broadcast %cst_112 : f32 to vector<8x256xf32>
    %260 = arith.cmpf ogt, %247, %259 : vector<8x256xf32>
    %261 = arith.select %260, %247, %258 : vector<8x256xi1>, vector<8x256xf32>
    %262 = arith.addf %261, %174 : vector<8x256xf32>
    %263 = arith.truncf %262 : vector<8x256xf32> to vector<8x256xbf16>
    %c0_113 = arith.constant 0 : index
    %c0_114 = arith.constant 0 : index
    %264 = vector.load %arg3[%c0_113, %c0_114] : memref<256x128xbf16, #tpu.memory_space<vmem>>, vector<256x128xbf16>
    %cst_115 = arith.constant dense<0.000000e+00> : vector<8x128xf32>
    %265 = tpu.matmul %263, %264, %cst_115 {dimension_numbers = #tpu.dot_dimension_numbers<[1], [0], [0], [1], [0, 0, 1, 1], [], []>} : vector<8x256xbf16>, vector<256x128xbf16>, vector<8x128xf32> -> vector<8x128xf32>
    %c0_116 = arith.constant 0 : index
    %c0_117 = arith.constant 0 : index
    %266 = vector.load %arg4[%c0_116, %c0_117] : memref<1x128xf32, #tpu.memory_space<vmem>>, vector<1x128xf32>
    %267 = vector.broadcast %266 : vector<1x128xf32> to vector<8x128xf32>
    %268 = arith.addf %265, %267 : vector<8x128xf32>
    %269 = arith.truncf %268 : vector<8x128xf32> to vector<8x128xbf16>
    %c0_118 = arith.constant 0 : index
    %c0_119 = arith.constant 0 : index
    %270 = vector.load %arg35[%c0_118, %c0_119] : memref<128x256xbf16, #tpu.memory_space<vmem>>, vector<128x256xbf16>
    %cst_120 = arith.constant dense<0.000000e+00> : vector<8x256xf32>
    %271 = tpu.matmul %269, %270, %cst_120 {dimension_numbers = #tpu.dot_dimension_numbers<[1], [0], [0], [1], [0, 0, 1, 1], [], []>} : vector<8x128xbf16>, vector<128x256xbf16>, vector<8x256xf32> -> vector<8x256xf32>
    %c0_121 = arith.constant 0 : index
    %c0_122 = arith.constant 0 : index
    %272 = vector.load %arg27[%c0_121, %c0_122] : memref<1x256xf32, #tpu.memory_space<vmem>>, vector<1x256xf32>
    %273 = vector.broadcast %272 : vector<1x256xf32> to vector<8x256xf32>
    %274 = arith.addf %271, %273 : vector<8x256xf32>
    %275 = arith.mulf %274, %274 : vector<8x256xf32>
    %276 = tpu.concatenate %274, %275 in 0 : vector<8x256xf32>, vector<8x256xf32> -> vector<16x256xf32>
    %277 = arith.truncf %276 : vector<16x256xf32> to vector<16x256xbf16>
    %c0_123 = arith.constant 0 : index
    %c0_124 = arith.constant 0 : index
    %278 = vector.load %arg57[%c0_123, %c0_124] : memref<256x256xbf16, #tpu.memory_space<vmem>>, vector<256x256xbf16>
    %cst_125 = arith.constant dense<0.000000e+00> : vector<16x256xf32>
    %279 = tpu.matmul %277, %278, %cst_125 {dimension_numbers = #tpu.dot_dimension_numbers<[1], [0], [0], [1], [0, 0, 1, 1], [], []>} : vector<16x256xbf16>, vector<256x256xbf16>, vector<16x256xf32> -> vector<16x256xf32>
    %280 = vector.extract_strided_slice %279 {offsets = [0, 0], sizes = [8, 256], strides = [1, 1]} : vector<16x256xf32> to vector<8x256xf32>
    %281 = vector.extract_strided_slice %279 {offsets = [8, 0], sizes = [8, 256], strides = [1, 1]} : vector<16x256xf32> to vector<8x256xf32>
    %282 = arith.mulf %280, %280 : vector<8x256xf32>
    %283 = arith.subf %281, %282 : vector<8x256xf32>
    %284 = arith.subf %274, %280 : vector<8x256xf32>
    %cst_126 = arith.constant 9.99999974E-6 : f32
    %285 = vector.broadcast %cst_126 : f32 to vector<8x256xf32>
    %286 = arith.addf %283, %285 : vector<8x256xf32>
    %287 = math.rsqrt %286 : vector<8x256xf32>
    %288 = arith.mulf %284, %287 : vector<8x256xf32>
    %c0_127 = arith.constant 0 : index
    %c0_128 = arith.constant 0 : index
    %289 = vector.load %arg33[%c0_127, %c0_128] : memref<1x256xf32, #tpu.memory_space<vmem>>, vector<1x256xf32>
    %290 = vector.broadcast %289 : vector<1x256xf32> to vector<8x256xf32>
    %291 = arith.mulf %288, %290 : vector<8x256xf32>
    %c0_129 = arith.constant 0 : index
    %c0_130 = arith.constant 0 : index
    %292 = vector.load %arg29[%c0_129, %c0_130] : memref<1x256xf32, #tpu.memory_space<vmem>>, vector<1x256xf32>
    %293 = vector.broadcast %292 : vector<1x256xf32> to vector<8x256xf32>
    %294 = arith.addf %291, %293 : vector<8x256xf32>
    %cst_131 = arith.constant 2.000000e+01 : f32
    %295 = vector.broadcast %cst_131 : f32 to vector<8x256xf32>
    %296 = arith.minimumf %294, %295 : vector<8x256xf32>
    %297 = math.exp %296 : vector<8x256xf32>
    %cst_132 = arith.constant 2.000000e+00 : f32
    %298 = vector.broadcast %cst_132 : f32 to vector<8x256xf32>
    %299 = arith.addf %297, %298 : vector<8x256xf32>
    %300 = arith.mulf %297, %299 : vector<8x256xf32>
    %301 = arith.mulf %294, %300 : vector<8x256xf32>
    %cst_133 = arith.constant 2.000000e+00 : f32
    %302 = vector.broadcast %cst_133 : f32 to vector<8x256xf32>
    %303 = arith.addf %300, %302 : vector<8x256xf32>
    %304 = tpu.reciprocal %303 {approx = true} : vector<8x256xf32> -> vector<8x256xf32>
    %305 = arith.mulf %301, %304 : vector<8x256xf32>
    %cst_134 = arith.constant 2.000000e+01 : f32
    %306 = vector.broadcast %cst_134 : f32 to vector<8x256xf32>
    %307 = arith.cmpf ogt, %294, %306 : vector<8x256xf32>
    %308 = arith.select %307, %294, %305 : vector<8x256xi1>, vector<8x256xf32>
    %309 = arith.truncf %68 : vector<8x32xf32> to vector<8x32xbf16>
    %c0_135 = arith.constant 0 : index
    %c0_136 = arith.constant 0 : index
    %310 = vector.load %arg38[%c0_135, %c0_136] : memref<32x256xbf16, #tpu.memory_space<vmem>>, vector<32x256xbf16>
    %cst_137 = arith.constant dense<0.000000e+00> : vector<8x256xf32>
    %311 = tpu.matmul %309, %310, %cst_137 {dimension_numbers = #tpu.dot_dimension_numbers<[1], [0], [0], [1], [0, 0, 1, 1], [], []>} : vector<8x32xbf16>, vector<32x256xbf16>, vector<8x256xf32> -> vector<8x256xf32>
    %c0_138 = arith.constant 0 : index
    %c0_139 = arith.constant 0 : index
    %312 = vector.load %arg32[%c0_138, %c0_139] : memref<1x256xf32, #tpu.memory_space<vmem>>, vector<1x256xf32>
    %313 = vector.broadcast %312 : vector<1x256xf32> to vector<8x256xf32>
    %314 = arith.addf %311, %313 : vector<8x256xf32>
    %315 = arith.addf %308, %314 : vector<8x256xf32>
    %316 = arith.truncf %315 : vector<8x256xf32> to vector<8x256xbf16>
    %c0_140 = arith.constant 0 : index
    %c0_141 = arith.constant 0 : index
    %317 = vector.load %arg36[%c0_140, %c0_141] : memref<256x256xbf16, #tpu.memory_space<vmem>>, vector<256x256xbf16>
    %cst_142 = arith.constant dense<0.000000e+00> : vector<8x256xf32>
    %318 = tpu.matmul %316, %317, %cst_142 {dimension_numbers = #tpu.dot_dimension_numbers<[1], [0], [0], [1], [0, 0, 1, 1], [], []>} : vector<8x256xbf16>, vector<256x256xbf16>, vector<8x256xf32> -> vector<8x256xf32>
    %c0_143 = arith.constant 0 : index
    %c0_144 = arith.constant 0 : index
    %319 = vector.load %arg28[%c0_143, %c0_144] : memref<1x256xf32, #tpu.memory_space<vmem>>, vector<1x256xf32>
    %320 = vector.broadcast %319 : vector<1x256xf32> to vector<8x256xf32>
    %321 = arith.addf %318, %320 : vector<8x256xf32>
    %322 = arith.mulf %321, %321 : vector<8x256xf32>
    %323 = tpu.concatenate %321, %322 in 0 : vector<8x256xf32>, vector<8x256xf32> -> vector<16x256xf32>
    %324 = arith.truncf %323 : vector<16x256xf32> to vector<16x256xbf16>
    %c0_145 = arith.constant 0 : index
    %c0_146 = arith.constant 0 : index
    %325 = vector.load %arg57[%c0_145, %c0_146] : memref<256x256xbf16, #tpu.memory_space<vmem>>, vector<256x256xbf16>
    %cst_147 = arith.constant dense<0.000000e+00> : vector<16x256xf32>
    %326 = tpu.matmul %324, %325, %cst_147 {dimension_numbers = #tpu.dot_dimension_numbers<[1], [0], [0], [1], [0, 0, 1, 1], [], []>} : vector<16x256xbf16>, vector<256x256xbf16>, vector<16x256xf32> -> vector<16x256xf32>
    %327 = vector.extract_strided_slice %326 {offsets = [0, 0], sizes = [8, 256], strides = [1, 1]} : vector<16x256xf32> to vector<8x256xf32>
    %328 = vector.extract_strided_slice %326 {offsets = [8, 0], sizes = [8, 256], strides = [1, 1]} : vector<16x256xf32> to vector<8x256xf32>
    %329 = arith.mulf %327, %327 : vector<8x256xf32>
    %330 = arith.subf %328, %329 : vector<8x256xf32>
    %331 = arith.subf %321, %327 : vector<8x256xf32>
    %cst_148 = arith.constant 9.99999974E-6 : f32
    %332 = vector.broadcast %cst_148 : f32 to vector<8x256xf32>
    %333 = arith.addf %330, %332 : vector<8x256xf32>
    %334 = math.rsqrt %333 : vector<8x256xf32>
    %335 = arith.mulf %331, %334 : vector<8x256xf32>
    %c0_149 = arith.constant 0 : index
    %c0_150 = arith.constant 0 : index
    %336 = vector.load %arg34[%c0_149, %c0_150] : memref<1x256xf32, #tpu.memory_space<vmem>>, vector<1x256xf32>
    %337 = vector.broadcast %336 : vector<1x256xf32> to vector<8x256xf32>
    %338 = arith.mulf %335, %337 : vector<8x256xf32>
    %c0_151 = arith.constant 0 : index
    %c0_152 = arith.constant 0 : index
    %339 = vector.load %arg30[%c0_151, %c0_152] : memref<1x256xf32, #tpu.memory_space<vmem>>, vector<1x256xf32>
    %340 = vector.broadcast %339 : vector<1x256xf32> to vector<8x256xf32>
    %341 = arith.addf %338, %340 : vector<8x256xf32>
    %cst_153 = arith.constant 2.000000e+01 : f32
    %342 = vector.broadcast %cst_153 : f32 to vector<8x256xf32>
    %343 = arith.minimumf %341, %342 : vector<8x256xf32>
    %344 = math.exp %343 : vector<8x256xf32>
    %cst_154 = arith.constant 2.000000e+00 : f32
    %345 = vector.broadcast %cst_154 : f32 to vector<8x256xf32>
    %346 = arith.addf %344, %345 : vector<8x256xf32>
    %347 = arith.mulf %344, %346 : vector<8x256xf32>
    %348 = arith.mulf %341, %347 : vector<8x256xf32>
    %cst_155 = arith.constant 2.000000e+00 : f32
    %349 = vector.broadcast %cst_155 : f32 to vector<8x256xf32>
    %350 = arith.addf %347, %349 : vector<8x256xf32>
    %351 = tpu.reciprocal %350 {approx = true} : vector<8x256xf32> -> vector<8x256xf32>
    %352 = arith.mulf %348, %351 : vector<8x256xf32>
    %cst_156 = arith.constant 2.000000e+01 : f32
    %353 = vector.broadcast %cst_156 : f32 to vector<8x256xf32>
    %354 = arith.cmpf ogt, %341, %353 : vector<8x256xf32>
    %355 = arith.select %354, %341, %352 : vector<8x256xi1>, vector<8x256xf32>
    %356 = arith.truncf %268 : vector<8x128xf32> to vector<8x128xbf16>
    %c0_157 = arith.constant 0 : index
    %c0_158 = arith.constant 0 : index
    %357 = vector.load %arg37[%c0_157, %c0_158] : memref<128x256xbf16, #tpu.memory_space<vmem>>, vector<128x256xbf16>
    %cst_159 = arith.constant dense<0.000000e+00> : vector<8x256xf32>
    %358 = tpu.matmul %356, %357, %cst_159 {dimension_numbers = #tpu.dot_dimension_numbers<[1], [0], [0], [1], [0, 0, 1, 1], [], []>} : vector<8x128xbf16>, vector<128x256xbf16>, vector<8x256xf32> -> vector<8x256xf32>
    %c0_160 = arith.constant 0 : index
    %c0_161 = arith.constant 0 : index
    %359 = vector.load %arg31[%c0_160, %c0_161] : memref<1x256xf32, #tpu.memory_space<vmem>>, vector<1x256xf32>
    %360 = vector.broadcast %359 : vector<1x256xf32> to vector<8x256xf32>
    %361 = arith.addf %358, %360 : vector<8x256xf32>
    %362 = arith.addf %355, %361 : vector<8x256xf32>
    %363 = arith.truncf %362 : vector<8x256xf32> to vector<8x256xbf16>
    %c0_162 = arith.constant 0 : index
    %c0_163 = arith.constant 0 : index
    %364 = vector.load %arg46[%c0_162, %c0_163] : memref<256x256xbf16, #tpu.memory_space<vmem>>, vector<256x256xbf16>
    %cst_164 = arith.constant dense<0.000000e+00> : vector<8x256xf32>
    %365 = tpu.matmul %363, %364, %cst_164 {dimension_numbers = #tpu.dot_dimension_numbers<[1], [0], [0], [1], [0, 0, 1, 1], [], []>} : vector<8x256xbf16>, vector<256x256xbf16>, vector<8x256xf32> -> vector<8x256xf32>
    %c0_165 = arith.constant 0 : index
    %c0_166 = arith.constant 0 : index
    %366 = vector.load %arg39[%c0_165, %c0_166] : memref<1x256xf32, #tpu.memory_space<vmem>>, vector<1x256xf32>
    %367 = vector.broadcast %366 : vector<1x256xf32> to vector<8x256xf32>
    %368 = arith.addf %365, %367 : vector<8x256xf32>
    %369 = arith.mulf %368, %368 : vector<8x256xf32>
    %370 = tpu.concatenate %368, %369 in 0 : vector<8x256xf32>, vector<8x256xf32> -> vector<16x256xf32>
    %371 = arith.truncf %370 : vector<16x256xf32> to vector<16x256xbf16>
    %c0_167 = arith.constant 0 : index
    %c0_168 = arith.constant 0 : index
    %372 = vector.load %arg57[%c0_167, %c0_168] : memref<256x256xbf16, #tpu.memory_space<vmem>>, vector<256x256xbf16>
    %cst_169 = arith.constant dense<0.000000e+00> : vector<16x256xf32>
    %373 = tpu.matmul %371, %372, %cst_169 {dimension_numbers = #tpu.dot_dimension_numbers<[1], [0], [0], [1], [0, 0, 1, 1], [], []>} : vector<16x256xbf16>, vector<256x256xbf16>, vector<16x256xf32> -> vector<16x256xf32>
    %374 = vector.extract_strided_slice %373 {offsets = [0, 0], sizes = [8, 256], strides = [1, 1]} : vector<16x256xf32> to vector<8x256xf32>
    %375 = vector.extract_strided_slice %373 {offsets = [8, 0], sizes = [8, 256], strides = [1, 1]} : vector<16x256xf32> to vector<8x256xf32>
    %376 = arith.mulf %374, %374 : vector<8x256xf32>
    %377 = arith.subf %375, %376 : vector<8x256xf32>
    %378 = arith.subf %368, %374 : vector<8x256xf32>
    %cst_170 = arith.constant 9.99999974E-6 : f32
    %379 = vector.broadcast %cst_170 : f32 to vector<8x256xf32>
    %380 = arith.addf %377, %379 : vector<8x256xf32>
    %381 = math.rsqrt %380 : vector<8x256xf32>
    %382 = arith.mulf %378, %381 : vector<8x256xf32>
    %c0_171 = arith.constant 0 : index
    %c0_172 = arith.constant 0 : index
    %383 = vector.load %arg44[%c0_171, %c0_172] : memref<1x256xf32, #tpu.memory_space<vmem>>, vector<1x256xf32>
    %384 = vector.broadcast %383 : vector<1x256xf32> to vector<8x256xf32>
    %385 = arith.mulf %382, %384 : vector<8x256xf32>
    %c0_173 = arith.constant 0 : index
    %c0_174 = arith.constant 0 : index
    %386 = vector.load %arg41[%c0_173, %c0_174] : memref<1x256xf32, #tpu.memory_space<vmem>>, vector<1x256xf32>
    %387 = vector.broadcast %386 : vector<1x256xf32> to vector<8x256xf32>
    %388 = arith.addf %385, %387 : vector<8x256xf32>
    %cst_175 = arith.constant 2.000000e+01 : f32
    %389 = vector.broadcast %cst_175 : f32 to vector<8x256xf32>
    %390 = arith.minimumf %388, %389 : vector<8x256xf32>
    %391 = math.exp %390 : vector<8x256xf32>
    %cst_176 = arith.constant 2.000000e+00 : f32
    %392 = vector.broadcast %cst_176 : f32 to vector<8x256xf32>
    %393 = arith.addf %391, %392 : vector<8x256xf32>
    %394 = arith.mulf %391, %393 : vector<8x256xf32>
    %395 = arith.mulf %388, %394 : vector<8x256xf32>
    %cst_177 = arith.constant 2.000000e+00 : f32
    %396 = vector.broadcast %cst_177 : f32 to vector<8x256xf32>
    %397 = arith.addf %394, %396 : vector<8x256xf32>
    %398 = tpu.reciprocal %397 {approx = true} : vector<8x256xf32> -> vector<8x256xf32>
    %399 = arith.mulf %395, %398 : vector<8x256xf32>
    %cst_178 = arith.constant 2.000000e+01 : f32
    %400 = vector.broadcast %cst_178 : f32 to vector<8x256xf32>
    %401 = arith.cmpf ogt, %388, %400 : vector<8x256xf32>
    %402 = arith.select %401, %388, %399 : vector<8x256xi1>, vector<8x256xf32>
    %403 = arith.truncf %68 : vector<8x32xf32> to vector<8x32xbf16>
    %c0_179 = arith.constant 0 : index
    %c0_180 = arith.constant 0 : index
    %404 = vector.load %arg48[%c0_179, %c0_180] : memref<32x256xbf16, #tpu.memory_space<vmem>>, vector<32x256xbf16>
    %cst_181 = arith.constant dense<0.000000e+00> : vector<8x256xf32>
    %405 = tpu.matmul %403, %404, %cst_181 {dimension_numbers = #tpu.dot_dimension_numbers<[1], [0], [0], [1], [0, 0, 1, 1], [], []>} : vector<8x32xbf16>, vector<32x256xbf16>, vector<8x256xf32> -> vector<8x256xf32>
    %c0_182 = arith.constant 0 : index
    %c0_183 = arith.constant 0 : index
    %406 = vector.load %arg43[%c0_182, %c0_183] : memref<1x256xf32, #tpu.memory_space<vmem>>, vector<1x256xf32>
    %407 = vector.broadcast %406 : vector<1x256xf32> to vector<8x256xf32>
    %408 = arith.addf %405, %407 : vector<8x256xf32>
    %409 = arith.addf %402, %408 : vector<8x256xf32>
    %410 = arith.truncf %409 : vector<8x256xf32> to vector<8x256xbf16>
    %c0_184 = arith.constant 0 : index
    %c0_185 = arith.constant 0 : index
    %411 = vector.load %arg47[%c0_184, %c0_185] : memref<256x256xbf16, #tpu.memory_space<vmem>>, vector<256x256xbf16>
    %cst_186 = arith.constant dense<0.000000e+00> : vector<8x256xf32>
    %412 = tpu.matmul %410, %411, %cst_186 {dimension_numbers = #tpu.dot_dimension_numbers<[1], [0], [0], [1], [0, 0, 1, 1], [], []>} : vector<8x256xbf16>, vector<256x256xbf16>, vector<8x256xf32> -> vector<8x256xf32>
    %c0_187 = arith.constant 0 : index
    %c0_188 = arith.constant 0 : index
    %413 = vector.load %arg40[%c0_187, %c0_188] : memref<1x256xf32, #tpu.memory_space<vmem>>, vector<1x256xf32>
    %414 = vector.broadcast %413 : vector<1x256xf32> to vector<8x256xf32>
    %415 = arith.addf %412, %414 : vector<8x256xf32>
    %416 = arith.mulf %415, %415 : vector<8x256xf32>
    %417 = tpu.concatenate %415, %416 in 0 : vector<8x256xf32>, vector<8x256xf32> -> vector<16x256xf32>
    %418 = arith.truncf %417 : vector<16x256xf32> to vector<16x256xbf16>
    %c0_189 = arith.constant 0 : index
    %c0_190 = arith.constant 0 : index
    %419 = vector.load %arg57[%c0_189, %c0_190] : memref<256x256xbf16, #tpu.memory_space<vmem>>, vector<256x256xbf16>
    %cst_191 = arith.constant dense<0.000000e+00> : vector<16x256xf32>
    %420 = tpu.matmul %418, %419, %cst_191 {dimension_numbers = #tpu.dot_dimension_numbers<[1], [0], [0], [1], [0, 0, 1, 1], [], []>} : vector<16x256xbf16>, vector<256x256xbf16>, vector<16x256xf32> -> vector<16x256xf32>
    %421 = vector.extract_strided_slice %420 {offsets = [0, 0], sizes = [8, 256], strides = [1, 1]} : vector<16x256xf32> to vector<8x256xf32>
    %422 = vector.extract_strided_slice %420 {offsets = [8, 0], sizes = [8, 256], strides = [1, 1]} : vector<16x256xf32> to vector<8x256xf32>
    %423 = arith.mulf %421, %421 : vector<8x256xf32>
    %424 = arith.subf %422, %423 : vector<8x256xf32>
    %425 = arith.subf %415, %421 : vector<8x256xf32>
    %cst_192 = arith.constant 9.99999974E-6 : f32
    %426 = vector.broadcast %cst_192 : f32 to vector<8x256xf32>
    %427 = arith.addf %424, %426 : vector<8x256xf32>
    %428 = math.rsqrt %427 : vector<8x256xf32>
    %429 = arith.mulf %425, %428 : vector<8x256xf32>
    %c0_193 = arith.constant 0 : index
    %c0_194 = arith.constant 0 : index
    %430 = vector.load %arg45[%c0_193, %c0_194] : memref<1x256xf32, #tpu.memory_space<vmem>>, vector<1x256xf32>
    %431 = vector.broadcast %430 : vector<1x256xf32> to vector<8x256xf32>
    %432 = arith.mulf %429, %431 : vector<8x256xf32>
    %c0_195 = arith.constant 0 : index
    %c0_196 = arith.constant 0 : index
    %433 = vector.load %arg42[%c0_195, %c0_196] : memref<1x256xf32, #tpu.memory_space<vmem>>, vector<1x256xf32>
    %434 = vector.broadcast %433 : vector<1x256xf32> to vector<8x256xf32>
    %435 = arith.addf %432, %434 : vector<8x256xf32>
    %cst_197 = arith.constant 2.000000e+01 : f32
    %436 = vector.broadcast %cst_197 : f32 to vector<8x256xf32>
    %437 = arith.minimumf %435, %436 : vector<8x256xf32>
    %438 = math.exp %437 : vector<8x256xf32>
    %cst_198 = arith.constant 2.000000e+00 : f32
    %439 = vector.broadcast %cst_198 : f32 to vector<8x256xf32>
    %440 = arith.addf %438, %439 : vector<8x256xf32>
    %441 = arith.mulf %438, %440 : vector<8x256xf32>
    %442 = arith.mulf %435, %441 : vector<8x256xf32>
    %cst_199 = arith.constant 2.000000e+00 : f32
    %443 = vector.broadcast %cst_199 : f32 to vector<8x256xf32>
    %444 = arith.addf %441, %443 : vector<8x256xf32>
    %445 = tpu.reciprocal %444 {approx = true} : vector<8x256xf32> -> vector<8x256xf32>
    %446 = arith.mulf %442, %445 : vector<8x256xf32>
    %cst_200 = arith.constant 2.000000e+01 : f32
    %447 = vector.broadcast %cst_200 : f32 to vector<8x256xf32>
    %448 = arith.cmpf ogt, %435, %447 : vector<8x256xf32>
    %449 = arith.select %448, %435, %446 : vector<8x256xi1>, vector<8x256xf32>
    %450 = arith.addf %449, %362 : vector<8x256xf32>
    %c0_i32_201 = arith.constant 0 : i32
    %451 = tpu.memref_slice %arg125[%c0_i32_201] : memref<14x!tpu.dma_semaphore, #tpu.memory_space<semaphore_mem>> -> memref<1x!tpu.dma_semaphore, #tpu.memory_space<semaphore_mem>>
    %452 = tpu.memref_squeeze %451 : memref<1x!tpu.dma_semaphore, #tpu.memory_space<semaphore_mem>> -> memref<!tpu.dma_semaphore, #tpu.memory_space<semaphore_mem>>
    tpu.wait_dma2 semaphore(%452 : memref<!tpu.dma_semaphore, #tpu.memory_space<semaphore_mem>>) src(%arg96 : memref<256x256xbf16, #tpu.memory_space<any>>) dst(%arg111 : memref<256x256xbf16, #tpu.memory_space<vmem>>)
    %c1_i32_202 = arith.constant 1 : i32
    %453 = tpu.memref_slice %arg125[%c1_i32_202] : memref<14x!tpu.dma_semaphore, #tpu.memory_space<semaphore_mem>> -> memref<1x!tpu.dma_semaphore, #tpu.memory_space<semaphore_mem>>
    %454 = tpu.memref_squeeze %453 : memref<1x!tpu.dma_semaphore, #tpu.memory_space<semaphore_mem>> -> memref<!tpu.dma_semaphore, #tpu.memory_space<semaphore_mem>>
    tpu.wait_dma2 semaphore(%454 : memref<!tpu.dma_semaphore, #tpu.memory_space<semaphore_mem>>) src(%arg97 : memref<256x64xbf16, #tpu.memory_space<any>>) dst(%arg112 : memref<256x64xbf16, #tpu.memory_space<vmem>>)
    %c2_i32_203 = arith.constant 2 : i32
    %455 = tpu.memref_slice %arg125[%c2_i32_203] : memref<14x!tpu.dma_semaphore, #tpu.memory_space<semaphore_mem>> -> memref<1x!tpu.dma_semaphore, #tpu.memory_space<semaphore_mem>>
    %456 = tpu.memref_squeeze %455 : memref<1x!tpu.dma_semaphore, #tpu.memory_space<semaphore_mem>> -> memref<!tpu.dma_semaphore, #tpu.memory_space<semaphore_mem>>
    tpu.wait_dma2 semaphore(%456 : memref<!tpu.dma_semaphore, #tpu.memory_space<semaphore_mem>>) src(%arg98 : memref<256x256xbf16, #tpu.memory_space<any>>) dst(%arg113 : memref<256x256xbf16, #tpu.memory_space<vmem>>)
    %c3_i32_204 = arith.constant 3 : i32
    %457 = tpu.memref_slice %arg125[%c3_i32_204] : memref<14x!tpu.dma_semaphore, #tpu.memory_space<semaphore_mem>> -> memref<1x!tpu.dma_semaphore, #tpu.memory_space<semaphore_mem>>
    %458 = tpu.memref_squeeze %457 : memref<1x!tpu.dma_semaphore, #tpu.memory_space<semaphore_mem>> -> memref<!tpu.dma_semaphore, #tpu.memory_space<semaphore_mem>>
    tpu.wait_dma2 semaphore(%458 : memref<!tpu.dma_semaphore, #tpu.memory_space<semaphore_mem>>) src(%arg99 : memref<256x256xbf16, #tpu.memory_space<any>>) dst(%arg114 : memref<256x256xbf16, #tpu.memory_space<vmem>>)
    %c4_i32_205 = arith.constant 4 : i32
    %459 = tpu.memref_slice %arg125[%c4_i32_205] : memref<14x!tpu.dma_semaphore, #tpu.memory_space<semaphore_mem>> -> memref<1x!tpu.dma_semaphore, #tpu.memory_space<semaphore_mem>>
    %460 = tpu.memref_squeeze %459 : memref<1x!tpu.dma_semaphore, #tpu.memory_space<semaphore_mem>> -> memref<!tpu.dma_semaphore, #tpu.memory_space<semaphore_mem>>
    tpu.wait_dma2 semaphore(%460 : memref<!tpu.dma_semaphore, #tpu.memory_space<semaphore_mem>>) src(%arg100 : memref<256x256xbf16, #tpu.memory_space<any>>) dst(%arg115 : memref<256x256xbf16, #tpu.memory_space<vmem>>)
    %c5_i32_206 = arith.constant 5 : i32
    %461 = tpu.memref_slice %arg125[%c5_i32_206] : memref<14x!tpu.dma_semaphore, #tpu.memory_space<semaphore_mem>> -> memref<1x!tpu.dma_semaphore, #tpu.memory_space<semaphore_mem>>
    %462 = tpu.memref_squeeze %461 : memref<1x!tpu.dma_semaphore, #tpu.memory_space<semaphore_mem>> -> memref<!tpu.dma_semaphore, #tpu.memory_space<semaphore_mem>>
    tpu.wait_dma2 semaphore(%462 : memref<!tpu.dma_semaphore, #tpu.memory_space<semaphore_mem>>) src(%arg101 : memref<256x256xbf16, #tpu.memory_space<any>>) dst(%arg116 : memref<256x256xbf16, #tpu.memory_space<vmem>>)
    %c6_i32_207 = arith.constant 6 : i32
    %463 = tpu.memref_slice %arg125[%c6_i32_207] : memref<14x!tpu.dma_semaphore, #tpu.memory_space<semaphore_mem>> -> memref<1x!tpu.dma_semaphore, #tpu.memory_space<semaphore_mem>>
    %464 = tpu.memref_squeeze %463 : memref<1x!tpu.dma_semaphore, #tpu.memory_space<semaphore_mem>> -> memref<!tpu.dma_semaphore, #tpu.memory_space<semaphore_mem>>
    tpu.wait_dma2 semaphore(%464 : memref<!tpu.dma_semaphore, #tpu.memory_space<semaphore_mem>>) src(%arg102 : memref<256x128xbf16, #tpu.memory_space<any>>) dst(%arg117 : memref<256x128xbf16, #tpu.memory_space<vmem>>)
    %c7_i32_208 = arith.constant 7 : i32
    %465 = tpu.memref_slice %arg125[%c7_i32_208] : memref<14x!tpu.dma_semaphore, #tpu.memory_space<semaphore_mem>> -> memref<1x!tpu.dma_semaphore, #tpu.memory_space<semaphore_mem>>
    %466 = tpu.memref_squeeze %465 : memref<1x!tpu.dma_semaphore, #tpu.memory_space<semaphore_mem>> -> memref<!tpu.dma_semaphore, #tpu.memory_space<semaphore_mem>>
    tpu.wait_dma2 semaphore(%466 : memref<!tpu.dma_semaphore, #tpu.memory_space<semaphore_mem>>) src(%arg103 : memref<256x128xbf16, #tpu.memory_space<any>>) dst(%arg118 : memref<256x128xbf16, #tpu.memory_space<vmem>>)
    %c8_i32_209 = arith.constant 8 : i32
    %467 = tpu.memref_slice %arg125[%c8_i32_209] : memref<14x!tpu.dma_semaphore, #tpu.memory_space<semaphore_mem>> -> memref<1x!tpu.dma_semaphore, #tpu.memory_space<semaphore_mem>>
    %468 = tpu.memref_squeeze %467 : memref<1x!tpu.dma_semaphore, #tpu.memory_space<semaphore_mem>> -> memref<!tpu.dma_semaphore, #tpu.memory_space<semaphore_mem>>
    tpu.wait_dma2 semaphore(%468 : memref<!tpu.dma_semaphore, #tpu.memory_space<semaphore_mem>>) src(%arg104 : memref<128x128xbf16, #tpu.memory_space<any>>) dst(%arg119 : memref<128x128xbf16, #tpu.memory_space<vmem>>)
    %c9_i32_210 = arith.constant 9 : i32
    %469 = tpu.memref_slice %arg125[%c9_i32_210] : memref<14x!tpu.dma_semaphore, #tpu.memory_space<semaphore_mem>> -> memref<1x!tpu.dma_semaphore, #tpu.memory_space<semaphore_mem>>
    %470 = tpu.memref_squeeze %469 : memref<1x!tpu.dma_semaphore, #tpu.memory_space<semaphore_mem>> -> memref<!tpu.dma_semaphore, #tpu.memory_space<semaphore_mem>>
    tpu.wait_dma2 semaphore(%470 : memref<!tpu.dma_semaphore, #tpu.memory_space<semaphore_mem>>) src(%arg105 : memref<256x128xbf16, #tpu.memory_space<any>>) dst(%arg120 : memref<256x128xbf16, #tpu.memory_space<vmem>>)
    %c10_i32_211 = arith.constant 10 : i32
    %471 = tpu.memref_slice %arg125[%c10_i32_211] : memref<14x!tpu.dma_semaphore, #tpu.memory_space<semaphore_mem>> -> memref<1x!tpu.dma_semaphore, #tpu.memory_space<semaphore_mem>>
    %472 = tpu.memref_squeeze %471 : memref<1x!tpu.dma_semaphore, #tpu.memory_space<semaphore_mem>> -> memref<!tpu.dma_semaphore, #tpu.memory_space<semaphore_mem>>
    tpu.wait_dma2 semaphore(%472 : memref<!tpu.dma_semaphore, #tpu.memory_space<semaphore_mem>>) src(%arg106 : memref<256x128xbf16, #tpu.memory_space<any>>) dst(%arg121 : memref<256x128xbf16, #tpu.memory_space<vmem>>)
    %c11_i32_212 = arith.constant 11 : i32
    %473 = tpu.memref_slice %arg125[%c11_i32_212] : memref<14x!tpu.dma_semaphore, #tpu.memory_space<semaphore_mem>> -> memref<1x!tpu.dma_semaphore, #tpu.memory_space<semaphore_mem>>
    %474 = tpu.memref_squeeze %473 : memref<1x!tpu.dma_semaphore, #tpu.memory_space<semaphore_mem>> -> memref<!tpu.dma_semaphore, #tpu.memory_space<semaphore_mem>>
    tpu.wait_dma2 semaphore(%474 : memref<!tpu.dma_semaphore, #tpu.memory_space<semaphore_mem>>) src(%arg107 : memref<128x128xbf16, #tpu.memory_space<any>>) dst(%arg122 : memref<128x128xbf16, #tpu.memory_space<vmem>>)
    %c12_i32_213 = arith.constant 12 : i32
    %475 = tpu.memref_slice %arg125[%c12_i32_213] : memref<14x!tpu.dma_semaphore, #tpu.memory_space<semaphore_mem>> -> memref<1x!tpu.dma_semaphore, #tpu.memory_space<semaphore_mem>>
    %476 = tpu.memref_squeeze %475 : memref<1x!tpu.dma_semaphore, #tpu.memory_space<semaphore_mem>> -> memref<!tpu.dma_semaphore, #tpu.memory_space<semaphore_mem>>
    tpu.wait_dma2 semaphore(%476 : memref<!tpu.dma_semaphore, #tpu.memory_space<semaphore_mem>>) src(%arg108 : memref<128x128xbf16, #tpu.memory_space<any>>) dst(%arg123 : memref<128x128xbf16, #tpu.memory_space<vmem>>)
    %c13_i32_214 = arith.constant 13 : i32
    %477 = tpu.memref_slice %arg125[%c13_i32_214] : memref<14x!tpu.dma_semaphore, #tpu.memory_space<semaphore_mem>> -> memref<1x!tpu.dma_semaphore, #tpu.memory_space<semaphore_mem>>
    %478 = tpu.memref_squeeze %477 : memref<1x!tpu.dma_semaphore, #tpu.memory_space<semaphore_mem>> -> memref<!tpu.dma_semaphore, #tpu.memory_space<semaphore_mem>>
    tpu.wait_dma2 semaphore(%478 : memref<!tpu.dma_semaphore, #tpu.memory_space<semaphore_mem>>) src(%arg109 : memref<128x256xbf16, #tpu.memory_space<any>>) dst(%arg124 : memref<128x256xbf16, #tpu.memory_space<vmem>>)
    %479 = arith.truncf %450 : vector<8x256xf32> to vector<8x256xbf16>
    %c0_215 = arith.constant 0 : index
    %c0_216 = arith.constant 0 : index
    %480 = vector.load %arg113[%c0_215, %c0_216] : memref<256x256xbf16, #tpu.memory_space<vmem>>, vector<256x256xbf16>
    %cst_217 = arith.constant dense<0.000000e+00> : vector<8x256xf32>
    %481 = tpu.matmul %479, %480, %cst_217 {dimension_numbers = #tpu.dot_dimension_numbers<[1], [0], [0], [1], [0, 0, 1, 1], [], []>} : vector<8x256xbf16>, vector<256x256xbf16>, vector<8x256xf32> -> vector<8x256xf32>
    %c0_218 = arith.constant 0 : index
    %c0_219 = arith.constant 0 : index
    %482 = vector.load %arg58[%c0_218, %c0_219] : memref<1x256xf32, #tpu.memory_space<vmem>>, vector<1x256xf32>
    %483 = vector.broadcast %482 : vector<1x256xf32> to vector<8x256xf32>
    %484 = arith.addf %481, %483 : vector<8x256xf32>
    %485 = arith.mulf %484, %484 : vector<8x256xf32>
    %486 = tpu.concatenate %484, %485 in 0 : vector<8x256xf32>, vector<8x256xf32> -> vector<16x256xf32>
    %487 = arith.truncf %486 : vector<16x256xf32> to vector<16x256xbf16>
    %c0_220 = arith.constant 0 : index
    %c0_221 = arith.constant 0 : index
    %488 = vector.load %arg57[%c0_220, %c0_221] : memref<256x256xbf16, #tpu.memory_space<vmem>>, vector<256x256xbf16>
    %cst_222 = arith.constant dense<0.000000e+00> : vector<16x256xf32>
    %489 = tpu.matmul %487, %488, %cst_222 {dimension_numbers = #tpu.dot_dimension_numbers<[1], [0], [0], [1], [0, 0, 1, 1], [], []>} : vector<16x256xbf16>, vector<256x256xbf16>, vector<16x256xf32> -> vector<16x256xf32>
    %490 = vector.extract_strided_slice %489 {offsets = [0, 0], sizes = [8, 256], strides = [1, 1]} : vector<16x256xf32> to vector<8x256xf32>
    %491 = vector.extract_strided_slice %489 {offsets = [8, 0], sizes = [8, 256], strides = [1, 1]} : vector<16x256xf32> to vector<8x256xf32>
    %492 = arith.mulf %490, %490 : vector<8x256xf32>
    %493 = arith.subf %491, %492 : vector<8x256xf32>
    %494 = arith.subf %484, %490 : vector<8x256xf32>
    %cst_223 = arith.constant 9.99999974E-6 : f32
    %495 = vector.broadcast %cst_223 : f32 to vector<8x256xf32>
    %496 = arith.addf %493, %495 : vector<8x256xf32>
    %497 = math.rsqrt %496 : vector<8x256xf32>
    %498 = arith.mulf %494, %497 : vector<8x256xf32>
    %c0_224 = arith.constant 0 : index
    %c0_225 = arith.constant 0 : index
    %499 = vector.load %arg63[%c0_224, %c0_225] : memref<1x256xf32, #tpu.memory_space<vmem>>, vector<1x256xf32>
    %500 = vector.broadcast %499 : vector<1x256xf32> to vector<8x256xf32>
    %501 = arith.mulf %498, %500 : vector<8x256xf32>
    %c0_226 = arith.constant 0 : index
    %c0_227 = arith.constant 0 : index
    %502 = vector.load %arg60[%c0_226, %c0_227] : memref<1x256xf32, #tpu.memory_space<vmem>>, vector<1x256xf32>
    %503 = vector.broadcast %502 : vector<1x256xf32> to vector<8x256xf32>
    %504 = arith.addf %501, %503 : vector<8x256xf32>
    %cst_228 = arith.constant 2.000000e+01 : f32
    %505 = vector.broadcast %cst_228 : f32 to vector<8x256xf32>
    %506 = arith.minimumf %504, %505 : vector<8x256xf32>
    %507 = math.exp %506 : vector<8x256xf32>
    %cst_229 = arith.constant 2.000000e+00 : f32
    %508 = vector.broadcast %cst_229 : f32 to vector<8x256xf32>
    %509 = arith.addf %507, %508 : vector<8x256xf32>
    %510 = arith.mulf %507, %509 : vector<8x256xf32>
    %511 = arith.mulf %504, %510 : vector<8x256xf32>
    %cst_230 = arith.constant 2.000000e+00 : f32
    %512 = vector.broadcast %cst_230 : f32 to vector<8x256xf32>
    %513 = arith.addf %510, %512 : vector<8x256xf32>
    %514 = tpu.reciprocal %513 {approx = true} : vector<8x256xf32> -> vector<8x256xf32>
    %515 = arith.mulf %511, %514 : vector<8x256xf32>
    %cst_231 = arith.constant 2.000000e+01 : f32
    %516 = vector.broadcast %cst_231 : f32 to vector<8x256xf32>
    %517 = arith.cmpf ogt, %504, %516 : vector<8x256xf32>
    %518 = arith.select %517, %504, %515 : vector<8x256xi1>, vector<8x256xf32>
    %519 = arith.truncf %68 : vector<8x32xf32> to vector<8x32xbf16>
    %c0_232 = arith.constant 0 : index
    %c0_233 = arith.constant 0 : index
    %520 = vector.load %arg65[%c0_232, %c0_233] : memref<32x256xbf16, #tpu.memory_space<vmem>>, vector<32x256xbf16>
    %cst_234 = arith.constant dense<0.000000e+00> : vector<8x256xf32>
    %521 = tpu.matmul %519, %520, %cst_234 {dimension_numbers = #tpu.dot_dimension_numbers<[1], [0], [0], [1], [0, 0, 1, 1], [], []>} : vector<8x32xbf16>, vector<32x256xbf16>, vector<8x256xf32> -> vector<8x256xf32>
    %c0_235 = arith.constant 0 : index
    %c0_236 = arith.constant 0 : index
    %522 = vector.load %arg62[%c0_235, %c0_236] : memref<1x256xf32, #tpu.memory_space<vmem>>, vector<1x256xf32>
    %523 = vector.broadcast %522 : vector<1x256xf32> to vector<8x256xf32>
    %524 = arith.addf %521, %523 : vector<8x256xf32>
    %525 = arith.addf %518, %524 : vector<8x256xf32>
    %526 = arith.truncf %525 : vector<8x256xf32> to vector<8x256xbf16>
    %c0_237 = arith.constant 0 : index
    %c0_238 = arith.constant 0 : index
    %527 = vector.load %arg114[%c0_237, %c0_238] : memref<256x256xbf16, #tpu.memory_space<vmem>>, vector<256x256xbf16>
    %cst_239 = arith.constant dense<0.000000e+00> : vector<8x256xf32>
    %528 = tpu.matmul %526, %527, %cst_239 {dimension_numbers = #tpu.dot_dimension_numbers<[1], [0], [0], [1], [0, 0, 1, 1], [], []>} : vector<8x256xbf16>, vector<256x256xbf16>, vector<8x256xf32> -> vector<8x256xf32>
    %c0_240 = arith.constant 0 : index
    %c0_241 = arith.constant 0 : index
    %529 = vector.load %arg59[%c0_240, %c0_241] : memref<1x256xf32, #tpu.memory_space<vmem>>, vector<1x256xf32>
    %530 = vector.broadcast %529 : vector<1x256xf32> to vector<8x256xf32>
    %531 = arith.addf %528, %530 : vector<8x256xf32>
    %532 = arith.mulf %531, %531 : vector<8x256xf32>
    %533 = tpu.concatenate %531, %532 in 0 : vector<8x256xf32>, vector<8x256xf32> -> vector<16x256xf32>
    %534 = arith.truncf %533 : vector<16x256xf32> to vector<16x256xbf16>
    %c0_242 = arith.constant 0 : index
    %c0_243 = arith.constant 0 : index
    %535 = vector.load %arg57[%c0_242, %c0_243] : memref<256x256xbf16, #tpu.memory_space<vmem>>, vector<256x256xbf16>
    %cst_244 = arith.constant dense<0.000000e+00> : vector<16x256xf32>
    %536 = tpu.matmul %534, %535, %cst_244 {dimension_numbers = #tpu.dot_dimension_numbers<[1], [0], [0], [1], [0, 0, 1, 1], [], []>} : vector<16x256xbf16>, vector<256x256xbf16>, vector<16x256xf32> -> vector<16x256xf32>
    %537 = vector.extract_strided_slice %536 {offsets = [0, 0], sizes = [8, 256], strides = [1, 1]} : vector<16x256xf32> to vector<8x256xf32>
    %538 = vector.extract_strided_slice %536 {offsets = [8, 0], sizes = [8, 256], strides = [1, 1]} : vector<16x256xf32> to vector<8x256xf32>
    %539 = arith.mulf %537, %537 : vector<8x256xf32>
    %540 = arith.subf %538, %539 : vector<8x256xf32>
    %541 = arith.subf %531, %537 : vector<8x256xf32>
    %cst_245 = arith.constant 9.99999974E-6 : f32
    %542 = vector.broadcast %cst_245 : f32 to vector<8x256xf32>
    %543 = arith.addf %540, %542 : vector<8x256xf32>
    %544 = math.rsqrt %543 : vector<8x256xf32>
    %545 = arith.mulf %541, %544 : vector<8x256xf32>
    %c0_246 = arith.constant 0 : index
    %c0_247 = arith.constant 0 : index
    %546 = vector.load %arg64[%c0_246, %c0_247] : memref<1x256xf32, #tpu.memory_space<vmem>>, vector<1x256xf32>
    %547 = vector.broadcast %546 : vector<1x256xf32> to vector<8x256xf32>
    %548 = arith.mulf %545, %547 : vector<8x256xf32>
    %c0_248 = arith.constant 0 : index
    %c0_249 = arith.constant 0 : index
    %549 = vector.load %arg61[%c0_248, %c0_249] : memref<1x256xf32, #tpu.memory_space<vmem>>, vector<1x256xf32>
    %550 = vector.broadcast %549 : vector<1x256xf32> to vector<8x256xf32>
    %551 = arith.addf %548, %550 : vector<8x256xf32>
    %cst_250 = arith.constant 2.000000e+01 : f32
    %552 = vector.broadcast %cst_250 : f32 to vector<8x256xf32>
    %553 = arith.minimumf %551, %552 : vector<8x256xf32>
    %554 = math.exp %553 : vector<8x256xf32>
    %cst_251 = arith.constant 2.000000e+00 : f32
    %555 = vector.broadcast %cst_251 : f32 to vector<8x256xf32>
    %556 = arith.addf %554, %555 : vector<8x256xf32>
    %557 = arith.mulf %554, %556 : vector<8x256xf32>
    %558 = arith.mulf %551, %557 : vector<8x256xf32>
    %cst_252 = arith.constant 2.000000e+00 : f32
    %559 = vector.broadcast %cst_252 : f32 to vector<8x256xf32>
    %560 = arith.addf %557, %559 : vector<8x256xf32>
    %561 = tpu.reciprocal %560 {approx = true} : vector<8x256xf32> -> vector<8x256xf32>
    %562 = arith.mulf %558, %561 : vector<8x256xf32>
    %cst_253 = arith.constant 2.000000e+01 : f32
    %563 = vector.broadcast %cst_253 : f32 to vector<8x256xf32>
    %564 = arith.cmpf ogt, %551, %563 : vector<8x256xf32>
    %565 = arith.select %564, %551, %562 : vector<8x256xi1>, vector<8x256xf32>
    %566 = arith.addf %565, %450 : vector<8x256xf32>
    %567 = arith.truncf %566 : vector<8x256xf32> to vector<8x256xbf16>
    %c0_254 = arith.constant 0 : index
    %c0_255 = arith.constant 0 : index
    %568 = vector.load %arg115[%c0_254, %c0_255] : memref<256x256xbf16, #tpu.memory_space<vmem>>, vector<256x256xbf16>
    %cst_256 = arith.constant dense<0.000000e+00> : vector<8x256xf32>
    %569 = tpu.matmul %567, %568, %cst_256 {dimension_numbers = #tpu.dot_dimension_numbers<[1], [0], [0], [1], [0, 0, 1, 1], [], []>} : vector<8x256xbf16>, vector<256x256xbf16>, vector<8x256xf32> -> vector<8x256xf32>
    %c0_257 = arith.constant 0 : index
    %c0_258 = arith.constant 0 : index
    %570 = vector.load %arg66[%c0_257, %c0_258] : memref<1x256xf32, #tpu.memory_space<vmem>>, vector<1x256xf32>
    %571 = vector.broadcast %570 : vector<1x256xf32> to vector<8x256xf32>
    %572 = arith.addf %569, %571 : vector<8x256xf32>
    %573 = arith.mulf %572, %572 : vector<8x256xf32>
    %574 = tpu.concatenate %572, %573 in 0 : vector<8x256xf32>, vector<8x256xf32> -> vector<16x256xf32>
    %575 = arith.truncf %574 : vector<16x256xf32> to vector<16x256xbf16>
    %c0_259 = arith.constant 0 : index
    %c0_260 = arith.constant 0 : index
    %576 = vector.load %arg57[%c0_259, %c0_260] : memref<256x256xbf16, #tpu.memory_space<vmem>>, vector<256x256xbf16>
    %cst_261 = arith.constant dense<0.000000e+00> : vector<16x256xf32>
    %577 = tpu.matmul %575, %576, %cst_261 {dimension_numbers = #tpu.dot_dimension_numbers<[1], [0], [0], [1], [0, 0, 1, 1], [], []>} : vector<16x256xbf16>, vector<256x256xbf16>, vector<16x256xf32> -> vector<16x256xf32>
    %578 = vector.extract_strided_slice %577 {offsets = [0, 0], sizes = [8, 256], strides = [1, 1]} : vector<16x256xf32> to vector<8x256xf32>
    %579 = vector.extract_strided_slice %577 {offsets = [8, 0], sizes = [8, 256], strides = [1, 1]} : vector<16x256xf32> to vector<8x256xf32>
    %580 = arith.mulf %578, %578 : vector<8x256xf32>
    %581 = arith.subf %579, %580 : vector<8x256xf32>
    %582 = arith.subf %572, %578 : vector<8x256xf32>
    %cst_262 = arith.constant 9.99999974E-6 : f32
    %583 = vector.broadcast %cst_262 : f32 to vector<8x256xf32>
    %584 = arith.addf %581, %583 : vector<8x256xf32>
    %585 = math.rsqrt %584 : vector<8x256xf32>
    %586 = arith.mulf %582, %585 : vector<8x256xf32>
    %c0_263 = arith.constant 0 : index
    %c0_264 = arith.constant 0 : index
    %587 = vector.load %arg71[%c0_263, %c0_264] : memref<1x256xf32, #tpu.memory_space<vmem>>, vector<1x256xf32>
    %588 = vector.broadcast %587 : vector<1x256xf32> to vector<8x256xf32>
    %589 = arith.mulf %586, %588 : vector<8x256xf32>
    %c0_265 = arith.constant 0 : index
    %c0_266 = arith.constant 0 : index
    %590 = vector.load %arg68[%c0_265, %c0_266] : memref<1x256xf32, #tpu.memory_space<vmem>>, vector<1x256xf32>
    %591 = vector.broadcast %590 : vector<1x256xf32> to vector<8x256xf32>
    %592 = arith.addf %589, %591 : vector<8x256xf32>
    %cst_267 = arith.constant 2.000000e+01 : f32
    %593 = vector.broadcast %cst_267 : f32 to vector<8x256xf32>
    %594 = arith.minimumf %592, %593 : vector<8x256xf32>
    %595 = math.exp %594 : vector<8x256xf32>
    %cst_268 = arith.constant 2.000000e+00 : f32
    %596 = vector.broadcast %cst_268 : f32 to vector<8x256xf32>
    %597 = arith.addf %595, %596 : vector<8x256xf32>
    %598 = arith.mulf %595, %597 : vector<8x256xf32>
    %599 = arith.mulf %592, %598 : vector<8x256xf32>
    %cst_269 = arith.constant 2.000000e+00 : f32
    %600 = vector.broadcast %cst_269 : f32 to vector<8x256xf32>
    %601 = arith.addf %598, %600 : vector<8x256xf32>
    %602 = tpu.reciprocal %601 {approx = true} : vector<8x256xf32> -> vector<8x256xf32>
    %603 = arith.mulf %599, %602 : vector<8x256xf32>
    %cst_270 = arith.constant 2.000000e+01 : f32
    %604 = vector.broadcast %cst_270 : f32 to vector<8x256xf32>
    %605 = arith.cmpf ogt, %592, %604 : vector<8x256xf32>
    %606 = arith.select %605, %592, %603 : vector<8x256xi1>, vector<8x256xf32>
    %607 = arith.truncf %68 : vector<8x32xf32> to vector<8x32xbf16>
    %c0_271 = arith.constant 0 : index
    %c0_272 = arith.constant 0 : index
    %608 = vector.load %arg73[%c0_271, %c0_272] : memref<32x256xbf16, #tpu.memory_space<vmem>>, vector<32x256xbf16>
    %cst_273 = arith.constant dense<0.000000e+00> : vector<8x256xf32>
    %609 = tpu.matmul %607, %608, %cst_273 {dimension_numbers = #tpu.dot_dimension_numbers<[1], [0], [0], [1], [0, 0, 1, 1], [], []>} : vector<8x32xbf16>, vector<32x256xbf16>, vector<8x256xf32> -> vector<8x256xf32>
    %c0_274 = arith.constant 0 : index
    %c0_275 = arith.constant 0 : index
    %610 = vector.load %arg70[%c0_274, %c0_275] : memref<1x256xf32, #tpu.memory_space<vmem>>, vector<1x256xf32>
    %611 = vector.broadcast %610 : vector<1x256xf32> to vector<8x256xf32>
    %612 = arith.addf %609, %611 : vector<8x256xf32>
    %613 = arith.addf %606, %612 : vector<8x256xf32>
    %614 = arith.truncf %613 : vector<8x256xf32> to vector<8x256xbf16>
    %c0_276 = arith.constant 0 : index
    %c0_277 = arith.constant 0 : index
    %615 = vector.load %arg116[%c0_276, %c0_277] : memref<256x256xbf16, #tpu.memory_space<vmem>>, vector<256x256xbf16>
    %cst_278 = arith.constant dense<0.000000e+00> : vector<8x256xf32>
    %616 = tpu.matmul %614, %615, %cst_278 {dimension_numbers = #tpu.dot_dimension_numbers<[1], [0], [0], [1], [0, 0, 1, 1], [], []>} : vector<8x256xbf16>, vector<256x256xbf16>, vector<8x256xf32> -> vector<8x256xf32>
    %c0_279 = arith.constant 0 : index
    %c0_280 = arith.constant 0 : index
    %617 = vector.load %arg67[%c0_279, %c0_280] : memref<1x256xf32, #tpu.memory_space<vmem>>, vector<1x256xf32>
    %618 = vector.broadcast %617 : vector<1x256xf32> to vector<8x256xf32>
    %619 = arith.addf %616, %618 : vector<8x256xf32>
    %620 = arith.mulf %619, %619 : vector<8x256xf32>
    %621 = tpu.concatenate %619, %620 in 0 : vector<8x256xf32>, vector<8x256xf32> -> vector<16x256xf32>
    %622 = arith.truncf %621 : vector<16x256xf32> to vector<16x256xbf16>
    %c0_281 = arith.constant 0 : index
    %c0_282 = arith.constant 0 : index
    %623 = vector.load %arg57[%c0_281, %c0_282] : memref<256x256xbf16, #tpu.memory_space<vmem>>, vector<256x256xbf16>
    %cst_283 = arith.constant dense<0.000000e+00> : vector<16x256xf32>
    %624 = tpu.matmul %622, %623, %cst_283 {dimension_numbers = #tpu.dot_dimension_numbers<[1], [0], [0], [1], [0, 0, 1, 1], [], []>} : vector<16x256xbf16>, vector<256x256xbf16>, vector<16x256xf32> -> vector<16x256xf32>
    %625 = vector.extract_strided_slice %624 {offsets = [0, 0], sizes = [8, 256], strides = [1, 1]} : vector<16x256xf32> to vector<8x256xf32>
    %626 = vector.extract_strided_slice %624 {offsets = [8, 0], sizes = [8, 256], strides = [1, 1]} : vector<16x256xf32> to vector<8x256xf32>
    %627 = arith.mulf %625, %625 : vector<8x256xf32>
    %628 = arith.subf %626, %627 : vector<8x256xf32>
    %629 = arith.subf %619, %625 : vector<8x256xf32>
    %cst_284 = arith.constant 9.99999974E-6 : f32
    %630 = vector.broadcast %cst_284 : f32 to vector<8x256xf32>
    %631 = arith.addf %628, %630 : vector<8x256xf32>
    %632 = math.rsqrt %631 : vector<8x256xf32>
    %633 = arith.mulf %629, %632 : vector<8x256xf32>
    %c0_285 = arith.constant 0 : index
    %c0_286 = arith.constant 0 : index
    %634 = vector.load %arg72[%c0_285, %c0_286] : memref<1x256xf32, #tpu.memory_space<vmem>>, vector<1x256xf32>
    %635 = vector.broadcast %634 : vector<1x256xf32> to vector<8x256xf32>
    %636 = arith.mulf %633, %635 : vector<8x256xf32>
    %c0_287 = arith.constant 0 : index
    %c0_288 = arith.constant 0 : index
    %637 = vector.load %arg69[%c0_287, %c0_288] : memref<1x256xf32, #tpu.memory_space<vmem>>, vector<1x256xf32>
    %638 = vector.broadcast %637 : vector<1x256xf32> to vector<8x256xf32>
    %639 = arith.addf %636, %638 : vector<8x256xf32>
    %cst_289 = arith.constant 2.000000e+01 : f32
    %640 = vector.broadcast %cst_289 : f32 to vector<8x256xf32>
    %641 = arith.minimumf %639, %640 : vector<8x256xf32>
    %642 = math.exp %641 : vector<8x256xf32>
    %cst_290 = arith.constant 2.000000e+00 : f32
    %643 = vector.broadcast %cst_290 : f32 to vector<8x256xf32>
    %644 = arith.addf %642, %643 : vector<8x256xf32>
    %645 = arith.mulf %642, %644 : vector<8x256xf32>
    %646 = arith.mulf %639, %645 : vector<8x256xf32>
    %cst_291 = arith.constant 2.000000e+00 : f32
    %647 = vector.broadcast %cst_291 : f32 to vector<8x256xf32>
    %648 = arith.addf %645, %647 : vector<8x256xf32>
    %649 = tpu.reciprocal %648 {approx = true} : vector<8x256xf32> -> vector<8x256xf32>
    %650 = arith.mulf %646, %649 : vector<8x256xf32>
    %cst_292 = arith.constant 2.000000e+01 : f32
    %651 = vector.broadcast %cst_292 : f32 to vector<8x256xf32>
    %652 = arith.cmpf ogt, %639, %651 : vector<8x256xf32>
    %653 = arith.select %652, %639, %650 : vector<8x256xi1>, vector<8x256xf32>
    %654 = arith.addf %653, %566 : vector<8x256xf32>
    %655 = arith.truncf %654 : vector<8x256xf32> to vector<8x256xbf16>
    %c0_293 = arith.constant 0 : index
    %c0_294 = arith.constant 0 : index
    %656 = vector.load %arg117[%c0_293, %c0_294] : memref<256x128xbf16, #tpu.memory_space<vmem>>, vector<256x128xbf16>
    %cst_295 = arith.constant dense<0.000000e+00> : vector<8x128xf32>
    %657 = tpu.matmul %655, %656, %cst_295 {dimension_numbers = #tpu.dot_dimension_numbers<[1], [0], [0], [1], [0, 0, 1, 1], [], []>} : vector<8x256xbf16>, vector<256x128xbf16>, vector<8x128xf32> -> vector<8x128xf32>
    %c0_296 = arith.constant 0 : index
    %c0_297 = arith.constant 0 : index
    %658 = vector.load %arg78[%c0_296, %c0_297] : memref<1x128xf32, #tpu.memory_space<vmem>>, vector<1x128xf32>
    %659 = vector.broadcast %658 : vector<1x128xf32> to vector<8x128xf32>
    %660 = arith.addf %657, %659 : vector<8x128xf32>
    %661 = arith.truncf %450 : vector<8x256xf32> to vector<8x256xbf16>
    %c0_298 = arith.constant 0 : index
    %c0_299 = arith.constant 0 : index
    %662 = vector.load %arg118[%c0_298, %c0_299] : memref<256x128xbf16, #tpu.memory_space<vmem>>, vector<256x128xbf16>
    %cst_300 = arith.constant dense<0.000000e+00> : vector<8x128xf32>
    %663 = tpu.matmul %661, %662, %cst_300 {dimension_numbers = #tpu.dot_dimension_numbers<[1], [0], [0], [1], [0, 0, 1, 1], [], []>} : vector<8x256xbf16>, vector<256x128xbf16>, vector<8x128xf32> -> vector<8x128xf32>
    %664 = arith.addf %660, %663 : vector<8x128xf32>
    %665 = arith.mulf %664, %664 : vector<8x128xf32>
    %666 = tpu.concatenate %664, %665 in 0 : vector<8x128xf32>, vector<8x128xf32> -> vector<16x128xf32>
    %667 = arith.truncf %666 : vector<16x128xf32> to vector<16x128xbf16>
    %c0_301 = arith.constant 0 : index
    %c0_302 = arith.constant 0 : index
    %668 = vector.load %arg56[%c0_301, %c0_302] : memref<128x128xbf16, #tpu.memory_space<vmem>>, vector<128x128xbf16>
    %cst_303 = arith.constant dense<0.000000e+00> : vector<16x128xf32>
    %669 = tpu.matmul %667, %668, %cst_303 {dimension_numbers = #tpu.dot_dimension_numbers<[1], [0], [0], [1], [0, 0, 1, 1], [], []>} : vector<16x128xbf16>, vector<128x128xbf16>, vector<16x128xf32> -> vector<16x128xf32>
    %670 = vector.extract_strided_slice %669 {offsets = [0, 0], sizes = [8, 128], strides = [1, 1]} : vector<16x128xf32> to vector<8x128xf32>
    %671 = vector.extract_strided_slice %669 {offsets = [8, 0], sizes = [8, 128], strides = [1, 1]} : vector<16x128xf32> to vector<8x128xf32>
    %672 = arith.mulf %670, %670 : vector<8x128xf32>
    %673 = arith.subf %671, %672 : vector<8x128xf32>
    %674 = arith.subf %664, %670 : vector<8x128xf32>
    %cst_304 = arith.constant 9.99999974E-6 : f32
    %675 = vector.broadcast %cst_304 : f32 to vector<8x128xf32>
    %676 = arith.addf %673, %675 : vector<8x128xf32>
    %677 = math.rsqrt %676 : vector<8x128xf32>
    %678 = arith.mulf %674, %677 : vector<8x128xf32>
    %c0_305 = arith.constant 0 : index
    %c0_306 = arith.constant 0 : index
    %679 = vector.load %arg84[%c0_305, %c0_306] : memref<1x128xf32, #tpu.memory_space<vmem>>, vector<1x128xf32>
    %680 = vector.broadcast %679 : vector<1x128xf32> to vector<8x128xf32>
    %681 = arith.mulf %678, %680 : vector<8x128xf32>
    %c0_307 = arith.constant 0 : index
    %c0_308 = arith.constant 0 : index
    %682 = vector.load %arg80[%c0_307, %c0_308] : memref<1x128xf32, #tpu.memory_space<vmem>>, vector<1x128xf32>
    %683 = vector.broadcast %682 : vector<1x128xf32> to vector<8x128xf32>
    %684 = arith.addf %681, %683 : vector<8x128xf32>
    %cst_309 = arith.constant 2.000000e+01 : f32
    %685 = vector.broadcast %cst_309 : f32 to vector<8x128xf32>
    %686 = arith.minimumf %684, %685 : vector<8x128xf32>
    %687 = math.exp %686 : vector<8x128xf32>
    %cst_310 = arith.constant 2.000000e+00 : f32
    %688 = vector.broadcast %cst_310 : f32 to vector<8x128xf32>
    %689 = arith.addf %687, %688 : vector<8x128xf32>
    %690 = arith.mulf %687, %689 : vector<8x128xf32>
    %691 = arith.mulf %684, %690 : vector<8x128xf32>
    %cst_311 = arith.constant 2.000000e+00 : f32
    %692 = vector.broadcast %cst_311 : f32 to vector<8x128xf32>
    %693 = arith.addf %690, %692 : vector<8x128xf32>
    %694 = tpu.reciprocal %693 {approx = true} : vector<8x128xf32> -> vector<8x128xf32>
    %695 = arith.mulf %691, %694 : vector<8x128xf32>
    %cst_312 = arith.constant 2.000000e+01 : f32
    %696 = vector.broadcast %cst_312 : f32 to vector<8x128xf32>
    %697 = arith.cmpf ogt, %684, %696 : vector<8x128xf32>
    %698 = arith.select %697, %684, %695 : vector<8x128xi1>, vector<8x128xf32>
    %699 = arith.truncf %68 : vector<8x32xf32> to vector<8x32xbf16>
    %c0_313 = arith.constant 0 : index
    %c0_314 = arith.constant 0 : index
    %700 = vector.load %arg86[%c0_313, %c0_314] : memref<32x128xbf16, #tpu.memory_space<vmem>>, vector<32x128xbf16>
    %cst_315 = arith.constant dense<0.000000e+00> : vector<8x128xf32>
    %701 = tpu.matmul %699, %700, %cst_315 {dimension_numbers = #tpu.dot_dimension_numbers<[1], [0], [0], [1], [0, 0, 1, 1], [], []>} : vector<8x32xbf16>, vector<32x128xbf16>, vector<8x128xf32> -> vector<8x128xf32>
    %c0_316 = arith.constant 0 : index
    %c0_317 = arith.constant 0 : index
    %702 = vector.load %arg83[%c0_316, %c0_317] : memref<1x128xf32, #tpu.memory_space<vmem>>, vector<1x128xf32>
    %703 = vector.broadcast %702 : vector<1x128xf32> to vector<8x128xf32>
    %704 = arith.addf %701, %703 : vector<8x128xf32>
    %705 = arith.addf %698, %704 : vector<8x128xf32>
    %706 = arith.truncf %705 : vector<8x128xf32> to vector<8x128xbf16>
    %c0_318 = arith.constant 0 : index
    %c0_319 = arith.constant 0 : index
    %707 = vector.load %arg119[%c0_318, %c0_319] : memref<128x128xbf16, #tpu.memory_space<vmem>>, vector<128x128xbf16>
    %cst_320 = arith.constant dense<0.000000e+00> : vector<8x128xf32>
    %708 = tpu.matmul %706, %707, %cst_320 {dimension_numbers = #tpu.dot_dimension_numbers<[1], [0], [0], [1], [0, 0, 1, 1], [], []>} : vector<8x128xbf16>, vector<128x128xbf16>, vector<8x128xf32> -> vector<8x128xf32>
    %c0_321 = arith.constant 0 : index
    %c0_322 = arith.constant 0 : index
    %709 = vector.load %arg79[%c0_321, %c0_322] : memref<1x128xf32, #tpu.memory_space<vmem>>, vector<1x128xf32>
    %710 = vector.broadcast %709 : vector<1x128xf32> to vector<8x128xf32>
    %711 = arith.addf %708, %710 : vector<8x128xf32>
    %712 = arith.mulf %711, %711 : vector<8x128xf32>
    %713 = tpu.concatenate %711, %712 in 0 : vector<8x128xf32>, vector<8x128xf32> -> vector<16x128xf32>
    %714 = arith.truncf %713 : vector<16x128xf32> to vector<16x128xbf16>
    %c0_323 = arith.constant 0 : index
    %c0_324 = arith.constant 0 : index
    %715 = vector.load %arg56[%c0_323, %c0_324] : memref<128x128xbf16, #tpu.memory_space<vmem>>, vector<128x128xbf16>
    %cst_325 = arith.constant dense<0.000000e+00> : vector<16x128xf32>
    %716 = tpu.matmul %714, %715, %cst_325 {dimension_numbers = #tpu.dot_dimension_numbers<[1], [0], [0], [1], [0, 0, 1, 1], [], []>} : vector<16x128xbf16>, vector<128x128xbf16>, vector<16x128xf32> -> vector<16x128xf32>
    %717 = vector.extract_strided_slice %716 {offsets = [0, 0], sizes = [8, 128], strides = [1, 1]} : vector<16x128xf32> to vector<8x128xf32>
    %718 = vector.extract_strided_slice %716 {offsets = [8, 0], sizes = [8, 128], strides = [1, 1]} : vector<16x128xf32> to vector<8x128xf32>
    %719 = arith.mulf %717, %717 : vector<8x128xf32>
    %720 = arith.subf %718, %719 : vector<8x128xf32>
    %721 = arith.subf %711, %717 : vector<8x128xf32>
    %cst_326 = arith.constant 9.99999974E-6 : f32
    %722 = vector.broadcast %cst_326 : f32 to vector<8x128xf32>
    %723 = arith.addf %720, %722 : vector<8x128xf32>
    %724 = math.rsqrt %723 : vector<8x128xf32>
    %725 = arith.mulf %721, %724 : vector<8x128xf32>
    %c0_327 = arith.constant 0 : index
    %c0_328 = arith.constant 0 : index
    %726 = vector.load %arg85[%c0_327, %c0_328] : memref<1x128xf32, #tpu.memory_space<vmem>>, vector<1x128xf32>
    %727 = vector.broadcast %726 : vector<1x128xf32> to vector<8x128xf32>
    %728 = arith.mulf %725, %727 : vector<8x128xf32>
    %c0_329 = arith.constant 0 : index
    %c0_330 = arith.constant 0 : index
    %729 = vector.load %arg81[%c0_329, %c0_330] : memref<1x128xf32, #tpu.memory_space<vmem>>, vector<1x128xf32>
    %730 = vector.broadcast %729 : vector<1x128xf32> to vector<8x128xf32>
    %731 = arith.addf %728, %730 : vector<8x128xf32>
    %cst_331 = arith.constant 2.000000e+01 : f32
    %732 = vector.broadcast %cst_331 : f32 to vector<8x128xf32>
    %733 = arith.minimumf %731, %732 : vector<8x128xf32>
    %734 = math.exp %733 : vector<8x128xf32>
    %cst_332 = arith.constant 2.000000e+00 : f32
    %735 = vector.broadcast %cst_332 : f32 to vector<8x128xf32>
    %736 = arith.addf %734, %735 : vector<8x128xf32>
    %737 = arith.mulf %734, %736 : vector<8x128xf32>
    %738 = arith.mulf %731, %737 : vector<8x128xf32>
    %cst_333 = arith.constant 2.000000e+00 : f32
    %739 = vector.broadcast %cst_333 : f32 to vector<8x128xf32>
    %740 = arith.addf %737, %739 : vector<8x128xf32>
    %741 = tpu.reciprocal %740 {approx = true} : vector<8x128xf32> -> vector<8x128xf32>
    %742 = arith.mulf %738, %741 : vector<8x128xf32>
    %cst_334 = arith.constant 2.000000e+01 : f32
    %743 = vector.broadcast %cst_334 : f32 to vector<8x128xf32>
    %744 = arith.cmpf ogt, %731, %743 : vector<8x128xf32>
    %745 = arith.select %744, %731, %742 : vector<8x128xi1>, vector<8x128xf32>
    %746 = arith.truncf %654 : vector<8x256xf32> to vector<8x256xbf16>
    %c0_335 = arith.constant 0 : index
    %c0_336 = arith.constant 0 : index
    %747 = vector.load %arg120[%c0_335, %c0_336] : memref<256x128xbf16, #tpu.memory_space<vmem>>, vector<256x128xbf16>
    %cst_337 = arith.constant dense<0.000000e+00> : vector<8x128xf32>
    %748 = tpu.matmul %746, %747, %cst_337 {dimension_numbers = #tpu.dot_dimension_numbers<[1], [0], [0], [1], [0, 0, 1, 1], [], []>} : vector<8x256xbf16>, vector<256x128xbf16>, vector<8x128xf32> -> vector<8x128xf32>
    %c0_338 = arith.constant 0 : index
    %c0_339 = arith.constant 0 : index
    %749 = vector.load %arg82[%c0_338, %c0_339] : memref<1x128xf32, #tpu.memory_space<vmem>>, vector<1x128xf32>
    %750 = vector.broadcast %749 : vector<1x128xf32> to vector<8x128xf32>
    %751 = arith.addf %748, %750 : vector<8x128xf32>
    %752 = arith.truncf %450 : vector<8x256xf32> to vector<8x256xbf16>
    %c0_340 = arith.constant 0 : index
    %c0_341 = arith.constant 0 : index
    %753 = vector.load %arg121[%c0_340, %c0_341] : memref<256x128xbf16, #tpu.memory_space<vmem>>, vector<256x128xbf16>
    %cst_342 = arith.constant dense<0.000000e+00> : vector<8x128xf32>
    %754 = tpu.matmul %752, %753, %cst_342 {dimension_numbers = #tpu.dot_dimension_numbers<[1], [0], [0], [1], [0, 0, 1, 1], [], []>} : vector<8x256xbf16>, vector<256x128xbf16>, vector<8x128xf32> -> vector<8x128xf32>
    %755 = arith.addf %751, %754 : vector<8x128xf32>
    %756 = arith.addf %745, %755 : vector<8x128xf32>
    %757 = arith.truncf %756 : vector<8x128xf32> to vector<8x128xbf16>
    %c0_343 = arith.constant 0 : index
    %c0_344 = arith.constant 0 : index
    %758 = vector.load %arg122[%c0_343, %c0_344] : memref<128x128xbf16, #tpu.memory_space<vmem>>, vector<128x128xbf16>
    %cst_345 = arith.constant dense<0.000000e+00> : vector<8x128xf32>
    %759 = tpu.matmul %757, %758, %cst_345 {dimension_numbers = #tpu.dot_dimension_numbers<[1], [0], [0], [1], [0, 0, 1, 1], [], []>} : vector<8x128xbf16>, vector<128x128xbf16>, vector<8x128xf32> -> vector<8x128xf32>
    %c0_346 = arith.constant 0 : index
    %c0_347 = arith.constant 0 : index
    %760 = vector.load %arg87[%c0_346, %c0_347] : memref<1x128xf32, #tpu.memory_space<vmem>>, vector<1x128xf32>
    %761 = vector.broadcast %760 : vector<1x128xf32> to vector<8x128xf32>
    %762 = arith.addf %759, %761 : vector<8x128xf32>
    %763 = arith.mulf %762, %762 : vector<8x128xf32>
    %764 = tpu.concatenate %762, %763 in 0 : vector<8x128xf32>, vector<8x128xf32> -> vector<16x128xf32>
    %765 = arith.truncf %764 : vector<16x128xf32> to vector<16x128xbf16>
    %c0_348 = arith.constant 0 : index
    %c0_349 = arith.constant 0 : index
    %766 = vector.load %arg56[%c0_348, %c0_349] : memref<128x128xbf16, #tpu.memory_space<vmem>>, vector<128x128xbf16>
    %cst_350 = arith.constant dense<0.000000e+00> : vector<16x128xf32>
    %767 = tpu.matmul %765, %766, %cst_350 {dimension_numbers = #tpu.dot_dimension_numbers<[1], [0], [0], [1], [0, 0, 1, 1], [], []>} : vector<16x128xbf16>, vector<128x128xbf16>, vector<16x128xf32> -> vector<16x128xf32>
    %768 = vector.extract_strided_slice %767 {offsets = [0, 0], sizes = [8, 128], strides = [1, 1]} : vector<16x128xf32> to vector<8x128xf32>
    %769 = vector.extract_strided_slice %767 {offsets = [8, 0], sizes = [8, 128], strides = [1, 1]} : vector<16x128xf32> to vector<8x128xf32>
    %770 = arith.mulf %768, %768 : vector<8x128xf32>
    %771 = arith.subf %769, %770 : vector<8x128xf32>
    %772 = arith.subf %762, %768 : vector<8x128xf32>
    %cst_351 = arith.constant 9.99999974E-6 : f32
    %773 = vector.broadcast %cst_351 : f32 to vector<8x128xf32>
    %774 = arith.addf %771, %773 : vector<8x128xf32>
    %775 = math.rsqrt %774 : vector<8x128xf32>
    %776 = arith.mulf %772, %775 : vector<8x128xf32>
    %c0_352 = arith.constant 0 : index
    %c0_353 = arith.constant 0 : index
    %777 = vector.load %arg92[%c0_352, %c0_353] : memref<1x128xf32, #tpu.memory_space<vmem>>, vector<1x128xf32>
    %778 = vector.broadcast %777 : vector<1x128xf32> to vector<8x128xf32>
    %779 = arith.mulf %776, %778 : vector<8x128xf32>
    %c0_354 = arith.constant 0 : index
    %c0_355 = arith.constant 0 : index
    %780 = vector.load %arg89[%c0_354, %c0_355] : memref<1x128xf32, #tpu.memory_space<vmem>>, vector<1x128xf32>
    %781 = vector.broadcast %780 : vector<1x128xf32> to vector<8x128xf32>
    %782 = arith.addf %779, %781 : vector<8x128xf32>
    %cst_356 = arith.constant 2.000000e+01 : f32
    %783 = vector.broadcast %cst_356 : f32 to vector<8x128xf32>
    %784 = arith.minimumf %782, %783 : vector<8x128xf32>
    %785 = math.exp %784 : vector<8x128xf32>
    %cst_357 = arith.constant 2.000000e+00 : f32
    %786 = vector.broadcast %cst_357 : f32 to vector<8x128xf32>
    %787 = arith.addf %785, %786 : vector<8x128xf32>
    %788 = arith.mulf %785, %787 : vector<8x128xf32>
    %789 = arith.mulf %782, %788 : vector<8x128xf32>
    %cst_358 = arith.constant 2.000000e+00 : f32
    %790 = vector.broadcast %cst_358 : f32 to vector<8x128xf32>
    %791 = arith.addf %788, %790 : vector<8x128xf32>
    %792 = tpu.reciprocal %791 {approx = true} : vector<8x128xf32> -> vector<8x128xf32>
    %793 = arith.mulf %789, %792 : vector<8x128xf32>
    %cst_359 = arith.constant 2.000000e+01 : f32
    %794 = vector.broadcast %cst_359 : f32 to vector<8x128xf32>
    %795 = arith.cmpf ogt, %782, %794 : vector<8x128xf32>
    %796 = arith.select %795, %782, %793 : vector<8x128xi1>, vector<8x128xf32>
    %797 = arith.truncf %68 : vector<8x32xf32> to vector<8x32xbf16>
    %c0_360 = arith.constant 0 : index
    %c0_361 = arith.constant 0 : index
    %798 = vector.load %arg94[%c0_360, %c0_361] : memref<32x128xbf16, #tpu.memory_space<vmem>>, vector<32x128xbf16>
    %cst_362 = arith.constant dense<0.000000e+00> : vector<8x128xf32>
    %799 = tpu.matmul %797, %798, %cst_362 {dimension_numbers = #tpu.dot_dimension_numbers<[1], [0], [0], [1], [0, 0, 1, 1], [], []>} : vector<8x32xbf16>, vector<32x128xbf16>, vector<8x128xf32> -> vector<8x128xf32>
    %c0_363 = arith.constant 0 : index
    %c0_364 = arith.constant 0 : index
    %800 = vector.load %arg91[%c0_363, %c0_364] : memref<1x128xf32, #tpu.memory_space<vmem>>, vector<1x128xf32>
    %801 = vector.broadcast %800 : vector<1x128xf32> to vector<8x128xf32>
    %802 = arith.addf %799, %801 : vector<8x128xf32>
    %803 = arith.addf %796, %802 : vector<8x128xf32>
    %804 = arith.truncf %803 : vector<8x128xf32> to vector<8x128xbf16>
    %c0_365 = arith.constant 0 : index
    %c0_366 = arith.constant 0 : index
    %805 = vector.load %arg123[%c0_365, %c0_366] : memref<128x128xbf16, #tpu.memory_space<vmem>>, vector<128x128xbf16>
    %cst_367 = arith.constant dense<0.000000e+00> : vector<8x128xf32>
    %806 = tpu.matmul %804, %805, %cst_367 {dimension_numbers = #tpu.dot_dimension_numbers<[1], [0], [0], [1], [0, 0, 1, 1], [], []>} : vector<8x128xbf16>, vector<128x128xbf16>, vector<8x128xf32> -> vector<8x128xf32>
    %c0_368 = arith.constant 0 : index
    %c0_369 = arith.constant 0 : index
    %807 = vector.load %arg88[%c0_368, %c0_369] : memref<1x128xf32, #tpu.memory_space<vmem>>, vector<1x128xf32>
    %808 = vector.broadcast %807 : vector<1x128xf32> to vector<8x128xf32>
    %809 = arith.addf %806, %808 : vector<8x128xf32>
    %810 = arith.mulf %809, %809 : vector<8x128xf32>
    %811 = tpu.concatenate %809, %810 in 0 : vector<8x128xf32>, vector<8x128xf32> -> vector<16x128xf32>
    %812 = arith.truncf %811 : vector<16x128xf32> to vector<16x128xbf16>
    %c0_370 = arith.constant 0 : index
    %c0_371 = arith.constant 0 : index
    %813 = vector.load %arg56[%c0_370, %c0_371] : memref<128x128xbf16, #tpu.memory_space<vmem>>, vector<128x128xbf16>
    %cst_372 = arith.constant dense<0.000000e+00> : vector<16x128xf32>
    %814 = tpu.matmul %812, %813, %cst_372 {dimension_numbers = #tpu.dot_dimension_numbers<[1], [0], [0], [1], [0, 0, 1, 1], [], []>} : vector<16x128xbf16>, vector<128x128xbf16>, vector<16x128xf32> -> vector<16x128xf32>
    %815 = vector.extract_strided_slice %814 {offsets = [0, 0], sizes = [8, 128], strides = [1, 1]} : vector<16x128xf32> to vector<8x128xf32>
    %816 = vector.extract_strided_slice %814 {offsets = [8, 0], sizes = [8, 128], strides = [1, 1]} : vector<16x128xf32> to vector<8x128xf32>
    %817 = arith.mulf %815, %815 : vector<8x128xf32>
    %818 = arith.subf %816, %817 : vector<8x128xf32>
    %819 = arith.subf %809, %815 : vector<8x128xf32>
    %cst_373 = arith.constant 9.99999974E-6 : f32
    %820 = vector.broadcast %cst_373 : f32 to vector<8x128xf32>
    %821 = arith.addf %818, %820 : vector<8x128xf32>
    %822 = math.rsqrt %821 : vector<8x128xf32>
    %823 = arith.mulf %819, %822 : vector<8x128xf32>
    %c0_374 = arith.constant 0 : index
    %c0_375 = arith.constant 0 : index
    %824 = vector.load %arg93[%c0_374, %c0_375] : memref<1x128xf32, #tpu.memory_space<vmem>>, vector<1x128xf32>
    %825 = vector.broadcast %824 : vector<1x128xf32> to vector<8x128xf32>
    %826 = arith.mulf %823, %825 : vector<8x128xf32>
    %c0_376 = arith.constant 0 : index
    %c0_377 = arith.constant 0 : index
    %827 = vector.load %arg90[%c0_376, %c0_377] : memref<1x128xf32, #tpu.memory_space<vmem>>, vector<1x128xf32>
    %828 = vector.broadcast %827 : vector<1x128xf32> to vector<8x128xf32>
    %829 = arith.addf %826, %828 : vector<8x128xf32>
    %cst_378 = arith.constant 2.000000e+01 : f32
    %830 = vector.broadcast %cst_378 : f32 to vector<8x128xf32>
    %831 = arith.minimumf %829, %830 : vector<8x128xf32>
    %832 = math.exp %831 : vector<8x128xf32>
    %cst_379 = arith.constant 2.000000e+00 : f32
    %833 = vector.broadcast %cst_379 : f32 to vector<8x128xf32>
    %834 = arith.addf %832, %833 : vector<8x128xf32>
    %835 = arith.mulf %832, %834 : vector<8x128xf32>
    %836 = arith.mulf %829, %835 : vector<8x128xf32>
    %cst_380 = arith.constant 2.000000e+00 : f32
    %837 = vector.broadcast %cst_380 : f32 to vector<8x128xf32>
    %838 = arith.addf %835, %837 : vector<8x128xf32>
    %839 = tpu.reciprocal %838 {approx = true} : vector<8x128xf32> -> vector<8x128xf32>
    %840 = arith.mulf %836, %839 : vector<8x128xf32>
    %cst_381 = arith.constant 2.000000e+01 : f32
    %841 = vector.broadcast %cst_381 : f32 to vector<8x128xf32>
    %842 = arith.cmpf ogt, %829, %841 : vector<8x128xf32>
    %843 = arith.select %842, %829, %840 : vector<8x128xi1>, vector<8x128xf32>
    %844 = arith.addf %843, %756 : vector<8x128xf32>
    %845 = arith.truncf %844 : vector<8x128xf32> to vector<8x128xbf16>
    %c0_382 = arith.constant 0 : index
    %c0_383 = arith.constant 0 : index
    %846 = vector.load %arg124[%c0_382, %c0_383] : memref<128x256xbf16, #tpu.memory_space<vmem>>, vector<128x256xbf16>
    %cst_384 = arith.constant dense<0.000000e+00> : vector<8x256xf32>
    %847 = tpu.matmul %845, %846, %cst_384 {dimension_numbers = #tpu.dot_dimension_numbers<[1], [0], [0], [1], [0, 0, 1, 1], [], []>} : vector<8x128xbf16>, vector<128x256xbf16>, vector<8x256xf32> -> vector<8x256xf32>
    %c0_385 = arith.constant 0 : index
    %c0_386 = arith.constant 0 : index
    %848 = vector.load %arg95[%c0_385, %c0_386] : memref<1x256xf32, #tpu.memory_space<vmem>>, vector<1x256xf32>
    %849 = vector.broadcast %848 : vector<1x256xf32> to vector<8x256xf32>
    %850 = arith.addf %847, %849 : vector<8x256xf32>
    %851 = arith.truncf %850 : vector<8x256xf32> to vector<8x256xbf16>
    %c0_387 = arith.constant 0 : index
    %c0_388 = arith.constant 0 : index
    %852 = vector.load %arg111[%c0_387, %c0_388] : memref<256x256xbf16, #tpu.memory_space<vmem>>, vector<256x256xbf16>
    %cst_389 = arith.constant dense<0.000000e+00> : vector<8x256xf32>
    %853 = tpu.matmul %851, %852, %cst_389 {dimension_numbers = #tpu.dot_dimension_numbers<[1], [0], [0], [1], [0, 0, 1, 1], [], []>} : vector<8x256xbf16>, vector<256x256xbf16>, vector<8x256xf32> -> vector<8x256xf32>
    %c0_390 = arith.constant 0 : index
    %c0_391 = arith.constant 0 : index
    %854 = vector.load %arg49[%c0_390, %c0_391] : memref<1x256xf32, #tpu.memory_space<vmem>>, vector<1x256xf32>
    %855 = vector.broadcast %854 : vector<1x256xf32> to vector<8x256xf32>
    %856 = arith.addf %853, %855 : vector<8x256xf32>
    %857 = arith.mulf %856, %856 : vector<8x256xf32>
    %858 = tpu.concatenate %856, %857 in 0 : vector<8x256xf32>, vector<8x256xf32> -> vector<16x256xf32>
    %859 = arith.truncf %858 : vector<16x256xf32> to vector<16x256xbf16>
    %c0_392 = arith.constant 0 : index
    %c0_393 = arith.constant 0 : index
    %860 = vector.load %arg57[%c0_392, %c0_393] : memref<256x256xbf16, #tpu.memory_space<vmem>>, vector<256x256xbf16>
    %cst_394 = arith.constant dense<0.000000e+00> : vector<16x256xf32>
    %861 = tpu.matmul %859, %860, %cst_394 {dimension_numbers = #tpu.dot_dimension_numbers<[1], [0], [0], [1], [0, 0, 1, 1], [], []>} : vector<16x256xbf16>, vector<256x256xbf16>, vector<16x256xf32> -> vector<16x256xf32>
    %862 = vector.extract_strided_slice %861 {offsets = [0, 0], sizes = [8, 256], strides = [1, 1]} : vector<16x256xf32> to vector<8x256xf32>
    %863 = vector.extract_strided_slice %861 {offsets = [8, 0], sizes = [8, 256], strides = [1, 1]} : vector<16x256xf32> to vector<8x256xf32>
    %864 = arith.mulf %862, %862 : vector<8x256xf32>
    %865 = arith.subf %863, %864 : vector<8x256xf32>
    %866 = arith.subf %856, %862 : vector<8x256xf32>
    %cst_395 = arith.constant 9.99999974E-6 : f32
    %867 = vector.broadcast %cst_395 : f32 to vector<8x256xf32>
    %868 = arith.addf %865, %867 : vector<8x256xf32>
    %869 = math.rsqrt %868 : vector<8x256xf32>
    %870 = arith.mulf %866, %869 : vector<8x256xf32>
    %c0_396 = arith.constant 0 : index
    %c0_397 = arith.constant 0 : index
    %871 = vector.load %arg51[%c0_396, %c0_397] : memref<1x256xf32, #tpu.memory_space<vmem>>, vector<1x256xf32>
    %872 = vector.broadcast %871 : vector<1x256xf32> to vector<8x256xf32>
    %873 = arith.mulf %870, %872 : vector<8x256xf32>
    %c0_398 = arith.constant 0 : index
    %c0_399 = arith.constant 0 : index
    %874 = vector.load %arg50[%c0_398, %c0_399] : memref<1x256xf32, #tpu.memory_space<vmem>>, vector<1x256xf32>
    %875 = vector.broadcast %874 : vector<1x256xf32> to vector<8x256xf32>
    %876 = arith.addf %873, %875 : vector<8x256xf32>
    %cst_400 = arith.constant 2.000000e+01 : f32
    %877 = vector.broadcast %cst_400 : f32 to vector<8x256xf32>
    %878 = arith.minimumf %876, %877 : vector<8x256xf32>
    %879 = math.exp %878 : vector<8x256xf32>
    %cst_401 = arith.constant 2.000000e+00 : f32
    %880 = vector.broadcast %cst_401 : f32 to vector<8x256xf32>
    %881 = arith.addf %879, %880 : vector<8x256xf32>
    %882 = arith.mulf %879, %881 : vector<8x256xf32>
    %883 = arith.mulf %876, %882 : vector<8x256xf32>
    %cst_402 = arith.constant 2.000000e+00 : f32
    %884 = vector.broadcast %cst_402 : f32 to vector<8x256xf32>
    %885 = arith.addf %882, %884 : vector<8x256xf32>
    %886 = tpu.reciprocal %885 {approx = true} : vector<8x256xf32> -> vector<8x256xf32>
    %887 = arith.mulf %883, %886 : vector<8x256xf32>
    %cst_403 = arith.constant 2.000000e+01 : f32
    %888 = vector.broadcast %cst_403 : f32 to vector<8x256xf32>
    %889 = arith.cmpf ogt, %876, %888 : vector<8x256xf32>
    %890 = arith.select %889, %876, %887 : vector<8x256xi1>, vector<8x256xf32>
    %891 = arith.truncf %890 : vector<8x256xf32> to vector<8x256xbf16>
    %c0_404 = arith.constant 0 : index
    %c0_405 = arith.constant 0 : index
    %892 = vector.load %arg112[%c0_404, %c0_405] : memref<256x64xbf16, #tpu.memory_space<vmem>>, vector<256x64xbf16>
    %cst_406 = arith.constant dense<0.000000e+00> : vector<8x64xf32>
    %893 = tpu.matmul %891, %892, %cst_406 {dimension_numbers = #tpu.dot_dimension_numbers<[1], [0], [0], [1], [0, 0, 1, 1], [], []>} : vector<8x256xbf16>, vector<256x64xbf16>, vector<8x64xf32> -> vector<8x64xf32>
    %c0_407 = arith.constant 0 : index
    %c0_408 = arith.constant 0 : index
    %894 = vector.load %arg52[%c0_407, %c0_408] : memref<1x64xf32, #tpu.memory_space<vmem>>, vector<1x64xf32>
    %895 = vector.broadcast %894 : vector<1x64xf32> to vector<8x64xf32>
    %896 = arith.addf %893, %895 : vector<8x64xf32>
    %c0_409 = arith.constant 0 : index
    %c0_410 = arith.constant 0 : index
    %897 = vector.load %arg110[%c0_409, %c0_410] : memref<8x64xf32, #tpu.memory_space<vmem>>, vector<8x64xf32>
    tpu.vector_store %arg110[%c0_409, %c0_410], %896 {strides = array<i32>} : memref<8x64xf32, #tpu.memory_space<vmem>>, vector<8x64xf32>,
    return
  }
}

</mosaic_0001>

<bundles_post_ra>
// kernel: forward.1
= control target key start
LH: loop header
LB: loop body
LE: loop exit
PB: predicated region body
PF: predicated region fallthrough
CT: control target
= control target key end

     0   :  { %s14861_s6 = smov 1   ;;  %s14862_s10 = smov 2   ;;  %s17046_s0 = inlined_call_operand.smem [shape: u32[111], index: -1, kind: input, shape index: {}] }
   0x1   :  { %s15082_s5 = sld [smem:[%s17046_s0]]   ;;  %s14863_s14 = smov 3  }
   0x2   :  { %s15087_s9 = sld [smem:[%s17046_s0 + %s14861_s6]]   ;;  %s14864_s18 = smov 4  }
   0x3   :  { %s15092_s13 = sld [smem:[%s17046_s0 + %s14862_s10]]   ;;  %s14865_s22 = smov 5  }
   0x4   :  { %s15097_s17 = sld [smem:[%s17046_s0 + %s14863_s14]]   ;;  %s14866_s26 = smov 6  }
   0x5   :  { %s15102_s21 = sld [smem:[%s17046_s0 + %s14864_s18]]   ;;  %s14867_s30 = smov 7  }
   0x6   :  { %s15107_s25 = sld [smem:[%s17046_s0 + %s14865_s22]]   ;;  %s14868_s4 = smov 8  }
   0x7   :  { %17052 = sst [smem:[#allocation227_spill]] %s15082_s5  ;;  %s14869_s10 = smov 9  }
   0x8   :  { %17053 = sst [smem:[#allocation228_spill]] %s15087_s9  ;;  %s14870_s15 = smov 10  }
   0x9   :  { %17054 = sst [smem:[#allocation229_spill]] %s15092_s13  ;;  %s14871_s20 = smov 11  }
   0xa   :  { %17055 = sst [smem:[#allocation230_spill]] %s15097_s17  ;;  %s14873_s1 = smov 13  }
   0xb   :  { %17056 = sst [smem:[#allocation231_spill]] %s15102_s21  ;;  %s14874_s7 = smov 14  }
   0xc   :  { %17057 = sst [smem:[#allocation232_spill]] %s15107_s25  ;;  %s14876_s22 = smov 16  }
   0xd   :  { %s15112_s29 = sld [smem:[%s17046_s0 + %s14866_s26]]   ;;  %s14872_s26 = smov 12  }
   0xe   :  { %s15117_s3 = sld [smem:[%s17046_s0 + %s14867_s30]]   ;;  %s14877_s28 = smov 17  }
   0xf   :  { %s15122_s8 = sld [smem:[%s17046_s0 + %s14868_s4]]  }
  0x10   :  { %s15127_s14 = sld [smem:[%s17046_s0 + %s14869_s10]]  }
  0x11   :  { %s15132_s19 = sld [smem:[%s17046_s0 + %s14870_s15]]   ;;  %s14875_s15 = smov 15  }
  0x12   :  { %s15137_s24 = sld [smem:[%s17046_s0 + %s14871_s20]]  }
  0x13   :  { %17058 = sst [smem:[#allocation233_spill]] %s15112_s29 }
  0x14   :  { %17059 = sst [smem:[#allocation234_spill]] %s15117_s3 }
  0x15   :  { %17060 = sst [smem:[#allocation235_spill]] %s15122_s8 }
  0x16   :  { %17061 = sst [smem:[#allocation236_spill]] %s15127_s14 }
  0x17   :  { %17062 = sst [smem:[#allocation237_spill]] %s15132_s19 }
  0x18   :  { %17063 = sst [smem:[#allocation238_spill]] %s15137_s24 }
  0x19   :  { %s15142_s30 = sld [smem:[%s17046_s0 + %s14872_s26]]  }
  0x1a   :  { %s15147_s6 = sld [smem:[%s17046_s0 + %s14873_s1]]  }
  0x1b   :  { %s15152_s12 = sld [smem:[%s17046_s0 + %s14874_s7]]   ;;  %s14878_s7 = smov 18  }
  0x1c   :  { %s15157_s20 = sld [smem:[%s17046_s0 + %s14875_s15]]   ;;  %s14879_s15 = smov 19  }
  0x1d   :  { %s15162_s27 = sld [smem:[%s17046_s0 + %s14876_s22]]   ;;  %s14880_s22 = smov 20  }
  0x1e   :  { %s15167_s4 = sld [smem:[%s17046_s0 + %s14877_s28]]   ;;  %s14881_s28 = smov 21  }
  0x1f   :  { %s15172_s21 = sld [smem:[%s17046_s0 + %s14878_s7]]   ;;  %s14882_s7 = smov 22  }
  0x20   :  { %17064 = sst [smem:[#allocation239_spill]] %s15147_s6 }
  0x21   :  { %17065 = sst [smem:[#allocation240_spill]] %s15152_s12 }
  0x22   :  { %s15177_s17 = sld [smem:[%s17046_s0 + %s14879_s15]]   ;;  %s14883_s15 = smov 23  }
  0x23   :  { %17066 = sst [smem:[#allocation241_spill]] %s15162_s27 }
  0x24   :  { %s15182_s14 = sld [smem:[%s17046_s0 + %s14880_s22]]   ;;  %s14884_s22 = smov 24  }
  0x25   :  { %17067 = sst [smem:[#allocation242_spill]] %s15172_s21 }
  0x26   :  { %s15187_s8 = sld [smem:[%s17046_s0 + %s14881_s28]]   ;;  %s14885_s28 = smov 25  }
  0x27   :  { %s15192_s29 = sld [smem:[%s17046_s0 + %s14882_s7]]   ;;  %s14886_s7 = smov 26  }
  0x28   :  { %s15197_s19 = sld [smem:[%s17046_s0 + %s14883_s15]]   ;;  %s14887_s15 = smov 27  }
  0x29   :  { %s15202_s3 = sld [smem:[%s17046_s0 + %s14884_s22]]   ;;  %s14888_s22 = smov 28  }
  0x2a   :  { %17068 = sst [smem:[#allocation243_spill]] %s15182_s14 }
  0x2b   :  { %s15207_s12 = sld [smem:[%s17046_s0 + %s14885_s28]]   ;;  %s14889_s28 = smov 29  }
  0x2c   :  { %s15212_s25 = sld [smem:[%s17046_s0 + %s14886_s7]]   ;;  %s14890_s7 = smov 30  }
  0x2d   :  { %17069 = sst [smem:[#allocation244_spill]] %s15192_s29 }
  0x2e   :  { %s15217_s9 = sld [smem:[%s17046_s0 + %s14887_s15]]   ;;  %s14891_s15 = smov 31  }
  0x2f   :  { %17070 = sst [smem:[#allocation245_spill]] %s15202_s3 }
  0x30   :  { %s15222_s5 = sld [smem:[%s17046_s0 + %s14888_s22]]   ;;  %s14892_s22 = smov 32  }
  0x31   :  { %s15227_s13 = sld [smem:[%s17046_s0 + %s14889_s28]]   ;;  %s14893_s28 = smov 33  }
  0x32   :  { %17071 = sst [smem:[#allocation246_spill]] %s15212_s25 }
  0x33   :  { %s15232_s25 = sld [smem:[%s17046_s0 + %s14890_s7]]   ;;  %s14894_s7 = smov 34  }
  0x34   :  { %s15237_s3 = sld [smem:[%s17046_s0 + %s14891_s15]]   ;;  %s14895_s15 = smov 35  }
  0x35   :  { %s15247_s29 = sld [smem:[%s17046_s0 + %s14893_s28]]   ;;  %s14897_s28 = smov 37  }
  0x36   :  { %17072 = sst [smem:[#allocation247_spill]] %s15222_s5 }
  0x37   :  { %s15242_s5 = sld [smem:[%s17046_s0 + %s14892_s22]]   ;;  %s14896_s22 = smov 36  }
  0x38   :  { %s15257_s14 = sld [smem:[%s17046_s0 + %s14895_s15]]   ;;  %s14899_s15 = smov 39  }
  0x39   :  { %17073 = sst [smem:[#allocation248_spill]] %s15232_s25 }
  0x3a   :  { %s15252_s25 = sld [smem:[%s17046_s0 + %s14894_s7]]   ;;  %s14898_s7 = smov 38  }
  0x3b   :  { %s15267_s21 = sld [smem:[%s17046_s0 + %s14897_s28]]   ;;  %s14901_s28 = smov 41  }
  0x3c   :  { %s15277_s27 = sld [smem:[%s17046_s0 + %s14899_s15]]   ;;  %s14903_s15 = smov 43  }
  0x3d   :  { %17074 = sst [smem:[#allocation249_spill]] %s15242_s5 }
  0x3e   :  { %s15262_s5 = sld [smem:[%s17046_s0 + %s14896_s22]]   ;;  %s14900_s22 = smov 40  }
  0x3f   :  { %s15287_s6 = sld [smem:[%s17046_s0 + %s14901_s28]]   ;;  %s14905_s28 = smov 45  }
  0x40   :  { %17075 = sst [smem:[#allocation250_spill]] %s15252_s25 }
  0x41   :  { %s15272_s25 = sld [smem:[%s17046_s0 + %s14898_s7]]   ;;  %s14902_s7 = smov 42  }
  0x42   :  { %s15297_s24 = sld [smem:[%s17046_s0 + %s14903_s15]]   ;;  %s14907_s15 = smov 47  }
  0x44   :  { %17076 = sst [smem:[#allocation251_spill]] %s15262_s5 }
  0x45   :  { %s15282_s5 = sld [smem:[%s17046_s0 + %s14900_s22]]   ;;  %s14904_s22 = smov 44  }
  0x46   :  { %17079 = sst [smem:[#allocation254_spill]] %s15287_s6 }
  0x47   :  { %17077 = sst [smem:[#allocation252_spill]] %s15272_s25 }
  0x48   :  { %s15292_s25 = sld [smem:[%s17046_s0 + %s14902_s7]]   ;;  %s14906_s7 = smov 46  }
  0x49   :  { %17081 = sst [smem:[#allocation256_spill]] %s15297_s24 }
  0x4a   :  { %s15307_s6 = sld [smem:[%s17046_s0 + %s14905_s28]]   ;;  %s14909_s28 = smov 49  }
  0x4b   :  { %17078 = sst [smem:[#allocation253_spill]] %s15282_s5 }
  0x4c   :  { %s15302_s5 = sld [smem:[%s17046_s0 + %s14904_s22]]   ;;  %s14908_s22 = smov 48  }
  0x4d   :  { %s15317_s24 = sld [smem:[%s17046_s0 + %s14907_s15]]   ;;  %s14911_s15 = smov 51  }
  0x4e   :  { %17080 = sst [smem:[#allocation255_spill]] %s15292_s25 }
  0x4f   :  { %s15312_s25 = sld [smem:[%s17046_s0 + %s14906_s7]]   ;;  %s14910_s7 = smov 50  }
  0x50   :  { %17083 = sst [smem:[#allocation258_spill]] %s15307_s6 }
  0x51   :  { %s15327_s6 = sld [smem:[%s17046_s0 + %s14909_s28]]   ;;  %s14913_s28 = smov 53  }
  0x52   :  { %17082 = sst [smem:[#allocation257_spill]] %s15302_s5 }
  0x53   :  { %17085 = sst [smem:[#allocation260_spill]] %s15317_s24 }
  0x54   :  { %s15322_s5 = sld [smem:[%s17046_s0 + %s14908_s22]]   ;;  %s14912_s22 = smov 52  }
  0x55   :  { %17084 = sst [smem:[#allocation259_spill]] %s15312_s25 }
  0x56   :  { %s15332_s25 = sld [smem:[%s17046_s0 + %s14910_s7]]   ;;  %s14914_s7 = smov 54  }
  0x57   :  { %17087 = sst [smem:[#allocation262_spill]] %s15327_s6 }
  0x58   :  { %s15337_s24 = sld [smem:[%s17046_s0 + %s14911_s15]]   ;;  %s14915_s15 = smov 55  }
  0x59   :  { %s15347_s6 = sld [smem:[%s17046_s0 + %s14913_s28]]   ;;  %s14917_s28 = smov 57  }
  0x5a   :  { %17086 = sst [smem:[#allocation261_spill]] %s15322_s5 }
  0x5b   :  { %s15342_s5 = sld [smem:[%s17046_s0 + %s14912_s22]]   ;;  %s14916_s22 = smov 56  }
  0x5c   :  { %17088 = sst [smem:[#allocation263_spill]] %s15332_s25 }
  0x5d   :  { %s15352_s25 = sld [smem:[%s17046_s0 + %s14914_s7]]   ;;  %s14918_s7 = smov 58  }
  0x5e   :  { %17089 = sst [smem:[#allocation264_spill]] %s15337_s24 }
  0x5f   :  { %17091 = sst [smem:[#allocation266_spill]] %s15347_s6 }
  0x60   :  { %s15357_s24 = sld [smem:[%s17046_s0 + %s14915_s15]]   ;;  %s14919_s15 = smov 59  }
  0x61   :  { %17090 = sst [smem:[#allocation265_spill]] %s15342_s5 }
  0x62   :  { %s15362_s5 = sld [smem:[%s17046_s0 + %s14916_s22]]   ;;  %s14920_s22 = smov 60  }
  0x63   :  { %17092 = sst [smem:[#allocation267_spill]] %s15352_s25 }
  0x64   :  { %s15367_s6 = sld [smem:[%s17046_s0 + %s14917_s28]]   ;;  %s14921_s28 = smov 61  }
  0x65   :  { %s15372_s25 = sld [smem:[%s17046_s0 + %s14918_s7]]   ;;  %s14922_s7 = smov 62  }
  0x66   :  { %17093 = sst [smem:[#allocation268_spill]] %s15357_s24 }
  0x67   :  { %s15377_s24 = sld [smem:[%s17046_s0 + %s14919_s15]]   ;;  %s14923_s15 = smov 63  }
  0x68   :  { %17094 = sst [smem:[#allocation269_spill]] %s15362_s5 }
  0x69   :  { %s15382_s5 = sld [smem:[%s17046_s0 + %s14920_s22]]   ;;  %s14924_s22 = smov 64  }
  0x6a   :  { %17095 = sst [smem:[#allocation270_spill]] %s15367_s6 }
  0x6b   :  { %17096 = sst [smem:[#allocation271_spill]] %s15372_s25 }
  0x6c   :  { %s15387_s6 = sld [smem:[%s17046_s0 + %s14921_s28]]   ;;  %s14925_s28 = smov 65  }
  0x6d   :  { %17097 = sst [smem:[#allocation272_spill]] %s15377_s24 }
  0x6e   :  { %s15392_s25 = sld [smem:[%s17046_s0 + %s14922_s7]]   ;;  %s14926_s7 = smov 66  }
  0x6f   :  { %17098 = sst [smem:[#allocation273_spill]] %s15382_s5 }
  0x70   :  { %s15397_s24 = sld [smem:[%s17046_s0 + %s14923_s15]]   ;;  %s14927_s15 = smov 67  }
  0x71   :  { %s15402_s5 = sld [smem:[%s17046_s0 + %s14924_s22]]   ;;  %s14928_s22 = smov 68  }
  0x72   :  { %17099 = sst [smem:[#allocation274_spill]] %s15387_s6 }
  0x73   :  { %s15407_s6 = sld [smem:[%s17046_s0 + %s14925_s28]]   ;;  %s14929_s28 = smov 69  }
  0x74   :  { %17100 = sst [smem:[#allocation275_spill]] %s15392_s25 }
  0x75   :  { %s15412_s25 = sld [smem:[%s17046_s0 + %s14926_s7]]   ;;  %s14930_s7 = smov 70  }
  0x76   :  { %17101 = sst [smem:[#allocation276_spill]] %s15397_s24 }
  0x77   :  { %17102 = sst [smem:[#allocation277_spill]] %s15402_s5 }
  0x78   :  { %s15417_s24 = sld [smem:[%s17046_s0 + %s14927_s15]]   ;;  %s14931_s15 = smov 71  }
  0x79   :  { %17103 = sst [smem:[#allocation278_spill]] %s15407_s6 }
  0x7a   :  { %s15422_s5 = sld [smem:[%s17046_s0 + %s14928_s22]]   ;;  %s14932_s22 = smov 72  }
  0x7b   :  { %17104 = sst [smem:[#allocation279_spill]] %s15412_s25 }
  0x7c   :  { %s15427_s6 = sld [smem:[%s17046_s0 + %s14929_s28]]   ;;  %s14933_s28 = smov 73  }
  0x7d   :  { %s15432_s25 = sld [smem:[%s17046_s0 + %s14930_s7]]   ;;  %s14934_s7 = smov 74  }
  0x7e   :  { %17105 = sst [smem:[#allocation280_spill]] %s15417_s24 }
  0x7f   :  { %s15437_s24 = sld [smem:[%s17046_s0 + %s14931_s15]]   ;;  %s14935_s15 = smov 75  }
  0x80   :  { %17106 = sst [smem:[#allocation281_spill]] %s15422_s5 }
  0x81   :  { %s15442_s5 = sld [smem:[%s17046_s0 + %s14932_s22]]   ;;  %s14936_s22 = smov 76  }
  0x82   :  { %17107 = sst [smem:[#allocation282_spill]] %s15427_s6 }
  0x83   :  { %17108 = sst [smem:[#allocation283_spill]] %s15432_s25 }
  0x84   :  { %s15447_s6 = sld [smem:[%s17046_s0 + %s14933_s28]]   ;;  %s14937_s28 = smov 77  }
  0x85   :  { %17109 = sst [smem:[#allocation284_spill]] %s15437_s24 }
  0x86   :  { %s15452_s25 = sld [smem:[%s17046_s0 + %s14934_s7]]   ;;  %s14938_s7 = smov 78  }
  0x87   :  { %17110 = sst [smem:[#allocation285_spill]] %s15442_s5 }
  0x88   :  { %s15457_s24 = sld [smem:[%s17046_s0 + %s14935_s15]]   ;;  %s14939_s15 = smov 79  }
  0x89   :  { %s15462_s5 = sld [smem:[%s17046_s0 + %s14936_s22]]   ;;  %s14940_s22 = smov 80  }
  0x8a   :  { %17111 = sst [smem:[#allocation286_spill]] %s15447_s6 }
  0x8b   :  { %s15467_s6 = sld [smem:[%s17046_s0 + %s14937_s28]]   ;;  %s14941_s28 = smov 81  }
  0x8c   :  { %17112 = sst [smem:[#allocation287_spill]] %s15452_s25 }
  0x8d   :  { %s15472_s25 = sld [smem:[%s17046_s0 + %s14938_s7]]   ;;  %s14942_s7 = smov 82  }
  0x8e   :  { %17113 = sst [smem:[#allocation288_spill]] %s15457_s24 }
  0x8f   :  { %17114 = sst [smem:[#allocation289_spill]] %s15462_s5 }
  0x90   :  { %s15477_s24 = sld [smem:[%s17046_s0 + %s14939_s15]]   ;;  %s14943_s15 = smov 83  }
  0x91   :  { %17115 = sst [smem:[#allocation290_spill]] %s15467_s6 }
  0x92   :  { %s15482_s5 = sld [smem:[%s17046_s0 + %s14940_s22]]   ;;  %s14944_s22 = smov 84  }
  0x93   :  { %17116 = sst [smem:[#allocation291_spill]] %s15472_s25 }
  0x94   :  { %s15487_s6 = sld [smem:[%s17046_s0 + %s14941_s28]]   ;;  %s14945_s28 = smov 85  }
  0x95   :  { %s15492_s25 = sld [smem:[%s17046_s0 + %s14942_s7]]   ;;  %s14946_s7 = smov 86  }
  0x96   :  { %17117 = sst [smem:[#allocation292_spill]] %s15477_s24 }
  0x97   :  { %s15497_s24 = sld [smem:[%s17046_s0 + %s14943_s15]]   ;;  %s14947_s15 = smov 87  }
  0x98   :  { %17118 = sst [smem:[#allocation293_spill]] %s15482_s5 }
  0x99   :  { %s15502_s5 = sld [smem:[%s17046_s0 + %s14944_s22]]   ;;  %s14948_s22 = smov 88  }
  0x9a   :  { %17119 = sst [smem:[#allocation294_spill]] %s15487_s6 }
  0x9b   :  { %17120 = sst [smem:[#allocation295_spill]] %s15492_s25 }
  0x9c   :  { %s15507_s6 = sld [smem:[%s17046_s0 + %s14945_s28]]   ;;  %s14949_s28 = smov 89  }
  0x9d   :  { %17121 = sst [smem:[#allocation296_spill]] %s15497_s24 }
  0x9e   :  { %s15512_s25 = sld [smem:[%s17046_s0 + %s14946_s7]]   ;;  %s14950_s7 = smov 90  }
  0x9f   :  { %17122 = sst [smem:[#allocation297_spill]] %s15502_s5 }
  0xa0   :  { %s15517_s24 = sld [smem:[%s17046_s0 + %s14947_s15]]   ;;  %s14951_s15 = smov 91  }
  0xa1   :  { %s15522_s5 = sld [smem:[%s17046_s0 + %s14948_s22]]   ;;  %s14952_s22 = smov 92  }
  0xa2   :  { %17123 = sst [smem:[#allocation298_spill]] %s15507_s6 }
  0xa3   :  { %s15527_s6 = sld [smem:[%s17046_s0 + %s14949_s28]]   ;;  %s14953_s28 = smov 93  }
  0xa4   :  { %17124 = sst [smem:[#allocation299_spill]] %s15512_s25 }
  0xa5   :  { %s15532_s25 = sld [smem:[%s17046_s0 + %s14950_s7]]   ;;  %s14954_s7 = smov 94  }
  0xa6   :  { %17125 = sst [smem:[#allocation300_spill]] %s15517_s24 }
  0xa7   :  { %17126 = sst [smem:[#allocation301_spill]] %s15522_s5 }
  0xa8   :  { %s15537_s24 = sld [smem:[%s17046_s0 + %s14951_s15]]   ;;  %s14955_s15 = smov 95  }
  0xa9   :  { %17127 = sst [smem:[#allocation302_spill]] %s15527_s6 }
  0xaa   :  { %s15542_s5 = sld [smem:[%s17046_s0 + %s14952_s22]]   ;;  %s14956_s22 = smov 96  }
  0xab   :  { %17128 = sst [smem:[#allocation303_spill]] %s15532_s25 }
  0xac   :  { %s15547_s6 = sld [smem:[%s17046_s0 + %s14953_s28]]   ;;  %s14957_s28 = smov 97  }
  0xad   :  { %s15552_s25 = sld [smem:[%s17046_s0 + %s14954_s7]]   ;;  %s14958_s7 = smov 98  }
  0xae   :  { %17129 = sst [smem:[#allocation304_spill]] %s15537_s24 }
  0xaf   :  { %s15557_s24 = sld [smem:[%s17046_s0 + %s14955_s15]]   ;;  %s14959_s15 = smov 99  }
  0xb0   :  { %17130 = sst [smem:[#allocation305_spill]] %s15542_s5 }
  0xb1   :  { %s15562_s5 = sld [smem:[%s17046_s0 + %s14956_s22]]   ;;  %s14960_s22 = smov 100  }
  0xb2   :  { %17131 = sst [smem:[#allocation306_spill]] %s15547_s6 }
  0xb3   :  { %17132 = sst [smem:[#allocation307_spill]] %s15552_s25 }
  0xb4   :  { %s15567_s6 = sld [smem:[%s17046_s0 + %s14957_s28]]   ;;  %s14961_s28 = smov 101  }
  0xb5   :  { %17133 = sst [smem:[#allocation308_spill]] %s15557_s24 }
  0xb6   :  { %s15572_s25 = sld [smem:[%s17046_s0 + %s14958_s7]]   ;;  %s14962_s7 = smov 102  }
  0xb7   :  { %17134 = sst [smem:[#allocation309_spill]] %s15562_s5 }
  0xb8   :  { %s15577_s24 = sld [smem:[%s17046_s0 + %s14959_s15]]   ;;  %s14963_s15 = smov 103  }
  0xb9   :  { %s15582_s5 = sld [smem:[%s17046_s0 + %s14960_s22]]   ;;  %s14964_s22 = smov 104  }
  0xba   :  { %17135 = sst [smem:[#allocation310_spill]] %s15567_s6 }
  0xbb   :  { %s15587_s6 = sld [smem:[%s17046_s0 + %s14961_s28]]   ;;  %s14965_s28 = smov 105  }
  0xbc   :  { %17136 = sst [smem:[#allocation311_spill]] %s15572_s25 }
  0xbd   :  { %s15592_s25 = sld [smem:[%s17046_s0 + %s14962_s7]]   ;;  %s14966_s7 = smov 106  }
  0xbe   :  { %17137 = sst [smem:[#allocation312_spill]] %s15577_s24 }
  0xbf   :  { %17138 = sst [smem:[#allocation313_spill]] %s15582_s5 }
  0xc0   :  { %s15597_s24 = sld [smem:[%s17046_s0 + %s14963_s15]]   ;;  %s14967_s15 = smov 107  }
  0xc1   :  { %17139 = sst [smem:[#allocation314_spill]] %s15587_s6 }
  0xc2   :  { %s15602_s5 = sld [smem:[%s17046_s0 + %s14964_s22]]   ;;  %s14968_s22 = smov 108  }
  0xc3   :  { %17140 = sst [smem:[#allocation315_spill]] %s15592_s25 }
  0xc4   :  { %s15607_s6 = sld [smem:[%s17046_s0 + %s14965_s28]]   ;;  %s14969_s28 = smov 109  }
  0xc5   :  { %s15612_s25 = sld [smem:[%s17046_s0 + %s14966_s7]]   ;;  %s14970_s7 = smov 110  }
  0xc6   :  { %17141 = sst [smem:[#allocation316_spill]] %s15597_s24 }
  0xc7   :  { %s15617_s24 = sld [smem:[%s17046_s0 + %s14967_s15]]  }
  0xc8   :  { %17142 = sst [smem:[#allocation317_spill]] %s15602_s5 }
  0xc9   :  { %s15622_s5 = sld [smem:[%s17046_s0 + %s14968_s22]]  }
  0xca   :  { %17143 = sst [smem:[#allocation318_spill]] %s15607_s6 }
  0xcb   :  { %17144 = sst [smem:[#allocation319_spill]] %s15612_s25 }
  0xcc   :  { %s15627_s6 = sld [smem:[%s17046_s0 + %s14969_s28]]  }
  0xcd   :  { %s15632_s25 = sld [smem:[%s17046_s0 + %s14970_s7]]  }
  0xce   :  { %226 = vsyncpa [#allocation18], 0 }
  0xcf   :  { %227 = vsyncpa [#allocation20], 0 }
  0xd0   :  { %228 = vsyncpa [#allocation23], 0 }
  0xd1   :  { %229 = vsyncpa [#allocation26], 0 }
  0xd2   :  { %230 = vsyncpa [#allocation29], 0 }
  0xd3   :  { %231 = vsyncpa [#allocation32], 0 }
  0xd4   :  { %232 = vsyncpa [#allocation35], 0 }
  0xd5   :  { %233 = vsyncpa [#allocation38], 0 }
  0xd6   :  { %234 = vsyncpa [#allocation41], 0 }
  0xd7   :  { %235 = vsyncpa [#allocation44], 0 }
  0xd8   :  { %236 = vsyncpa [#allocation47], 0 }
  0xd9   :  { %237 = vsyncpa [#allocation50], 0 }
  0xda   :  { %238 = vsyncpa [#allocation53], 0 }
  0xdb   :  { %239 = vsyncpa [#allocation56], 0 }
  0xdc   :  { %240 = vsyncpa [#allocation59], 0 }
  0xdd   :  { %241 = vsyncpa [#allocation62], 0 }
  0xde   :  { %242 = vsyncpa [#allocation65], 0 }
  0xdf   :  { %243 = vsyncpa [#allocation68], 0 }
  0xe0   :  { %244 = vsyncpa [#allocation71], 0 }
  0xe1   :  { %245 = vsyncpa [#allocation74], 0 }
  0xe2   :  { %246 = vsyncpa [#allocation77], 0 }
  0xe3   :  { %247 = vsyncpa [#allocation80], 0 }
  0xe4   :  { %248 = vsyncpa [#allocation83], 0 }
  0xe5   :  { %249 = vsyncpa [#allocation86], 0 }
  0xe6   :  { %250 = vsyncpa [#allocation89], 0 }
  0xe7   :  { %251 = vsyncpa [#allocation92], 0 }
  0xe8   :  { %252 = vsyncpa [#allocation95], 0 }
  0xe9   :  { %253 = vsyncpa [#allocation98], 0 }
  0xea   :  { %254 = vsyncpa [#allocation101], 0 }
  0xeb   :  { %255 = vsyncpa [#allocation104], 0 }
  0xec   :  { %256 = vsyncpa [#allocation107], 0 }
  0xed   :  { %257 = vsyncpa [#allocation110], 0 }
  0xee   :  { %258 = vsyncpa [#allocation113], 0 }
  0xef   :  { %259 = vsyncpa [#allocation116], 0 }
  0xf0   :  { %260 = vsyncpa [#allocation119], 0 }
  0xf1   :  { %261 = vsyncpa [#allocation122], 0 }
  0xf2   :  { %262 = vsyncpa [#allocation125], 0 }
  0xf3   :  { %263 = vsyncpa [#allocation128], 0 }
  0xf4   :  { %264 = vsyncpa [#allocation131], 0 }
  0xf5   :  { %265 = vsyncpa [#allocation134], 0 }
  0xf6   :  { %266 = vsyncpa [#allocation137], 0 }
  0xf7   :  { %267 = vsyncpa [#allocation140], 0  ;;  %s14971_s0 = smov [#allocation19]  }
  0xf8   :  { %s306_s15 = sshll.u32 %s14971_s0, 4  ;;  %s307_s15 = int_to_ptr.vmem [resolvable:$true] %s306_s15 }
  0xf9   :  { %s12837_s16 = scalar_lea.vmem %s307_s15, 32  ;;  %p12842_p1 = scmp.lt.s32.totalorder %s307_s15, %s307_s15 }
  0xfa   :  { %p12838_p0 = scmp.ne.s32.totalorder %s307_s15, %s12837_s16  ;;  %p12843_p2 = scmp.lt.s32.totalorder %s12837_s16, %s12837_s16 }
  0xfc   :  { %p12844_p3 = por %p12843_p2, %p12842_p1 }
  0xfe   :  { %p12845_p4 = pnand %p12844_p3, %p12838_p0 }
 0x100   :  { %12848 = shalt.err (!%p12845_p4)
}
 0x101   :  { %309 = dma.hbm_to_vmem [thread:$0]  %s15142_s30, 32, %s307_s15, [#allocation20]  }
 0x102   :  { %s14972_s18 = smov [#allocation22]   ;;  %s14973_s23 = smov [#allocation25]  }
 0x103   :  { %s329_s22 = sshll.u32 %s14972_s18, 4  ;;  %s354_s26 = sshll.u32 %s14973_s23, 4  ;;  %s330_s22 = int_to_ptr.vmem [resolvable:$true] %s329_s22  ;;  %s355_s26 = int_to_ptr.vmem [resolvable:$true] %s354_s26 }
 0x104   :  { %s12857_s28 = scalar_lea.vmem %s330_s22, 2048  ;;  %p12862_p6 = scmp.lt.s32.totalorder %s330_s22, %s330_s22 }
 0x105   :  { %p12858_p5 = scmp.ne.s32.totalorder %s330_s22, %s12857_s28  ;;  %p12863_p7 = scmp.lt.s32.totalorder %s12857_s28, %s12857_s28 }
 0x107   :  { %p12864_p8 = por %p12863_p7, %p12862_p6 }
 0x109   :  { %p12865_p9 = pnand %p12864_p8, %p12858_p5 }
 0x10b   :  { %12868 = shalt.err (!%p12865_p9)
}
 0x10c   :  { %s14974_s1 = smov 128   ;;  %s14975_s2 = smov 8  }
 0x10d   :  { %335 = dma.hbm_to_vmem [thread:$0]  %s15157_s20, 2048, %s330_s22, [#allocation23], %s14974_s1, %s14974_s1, %s14975_s2  }
 0x10e   :  { %s12877_s30 = scalar_lea.vmem %s355_s26, 32  ;;  %p12882_p11 = scmp.lt.s32.totalorder %s355_s26, %s355_s26 }
 0x10f   :  { %p12878_p10 = scmp.ne.s32.totalorder %s355_s26, %s12877_s30  ;;  %p12883_p12 = scmp.lt.s32.totalorder %s12877_s30, %s12877_s30 }
 0x111   :  { %p12884_p13 = por %p12883_p12, %p12882_p11 }
 0x113   :  { %p12885_p0 = pnand %p12884_p13, %p12878_p10 }
 0x115   :  { %12888 = shalt.err (!%p12885_p0)
}
 0x116   :  { %357 = dma.hbm_to_vmem [thread:$0]  %s15167_s4, 32, %s355_s26, [#allocation26]  }
 0x117   :  { %s14976_s7 = smov [#allocation28]   ;;  %s14977_s11 = smov [#allocation31]  }
 0x118   :  { %s374_s10 = sshll.u32 %s14976_s7, 4  ;;  %s394_s0 = sshll.u32 %s14977_s11, 4  ;;  %s375_s10 = int_to_ptr.vmem [resolvable:$true] %s374_s10  ;;  %s395_s0 = int_to_ptr.vmem [resolvable:$true] %s394_s0 }
 0x119   :  { %s12897_s15 = scalar_lea.vmem %s375_s10, 32  ;;  %p12902_p2 = scmp.lt.s32.totalorder %s375_s10, %s375_s10 }
 0x11a   :  { %p12898_p1 = scmp.ne.s32.totalorder %s375_s10, %s12897_s15  ;;  %p12903_p3 = scmp.lt.s32.totalorder %s12897_s15, %s12897_s15 }
 0x11c   :  { %p12904_p4 = por %p12903_p3, %p12902_p2 }
 0x11e   :  { %p12905_p5 = pnand %p12904_p4, %p12898_p1 }
 0x120   :  { %12908 = shalt.err (!%p12905_p5)
}
 0x121   :  { %377 = dma.hbm_to_vmem [thread:$0]  %s15177_s17, 32, %s375_s10, [#allocation29]  }
 0x122   :  { %s12917_s20 = scalar_lea.vmem %s395_s0, 32  ;;  %p12922_p7 = scmp.lt.s32.totalorder %s395_s0, %s395_s0 }
 0x123   :  { %p12918_p6 = scmp.ne.s32.totalorder %s395_s0, %s12917_s20  ;;  %p12923_p8 = scmp.lt.s32.totalorder %s12917_s20, %s12917_s20 }
 0x125   :  { %p12924_p9 = por %p12923_p8, %p12922_p7 }
 0x127   :  { %p12925_p10 = pnand %p12924_p9, %p12918_p6 }
 0x129   :  { %12928 = shalt.err (!%p12925_p10)
}
 0x12a   :  { %397 = dma.hbm_to_vmem [thread:$0]  %s15187_s8, 32, %s395_s0, [#allocation32]  }
 0x12b   :  { %s14978_s4 = smov [#allocation34]   ;;  %s14979_s18 = smov [#allocation37]  }
 0x12c   :  { %s414_s16 = sshll.u32 %s14978_s4, 4  ;;  %s435_s22 = sshll.u32 %s14979_s18, 4  ;;  %s415_s16 = int_to_ptr.vmem [resolvable:$true] %s414_s16  ;;  %s436_s22 = int_to_ptr.vmem [resolvable:$true] %s435_s22 }
 0x12d   :  { %s12937_s23 = scalar_lea.vmem %s415_s16, 32  ;;  %p12942_p12 = scmp.lt.s32.totalorder %s415_s16, %s415_s16 }
 0x12e   :  { %p12938_p11 = scmp.ne.s32.totalorder %s415_s16, %s12937_s23  ;;  %p12943_p13 = scmp.lt.s32.totalorder %s12937_s23, %s12937_s23 }
 0x130   :  { %p12944_p0 = por %p12943_p13, %p12942_p12 }
 0x132   :  { %p12945_p1 = pnand %p12944_p0, %p12938_p11 }
 0x134   :  { %12948 = shalt.err (!%p12945_p1)
}
 0x135   :  { %417 = dma.hbm_to_vmem [thread:$0]  %s15197_s19, 32, %s415_s16, [#allocation35]  }
 0x136   :  { %s12957_s17 = scalar_lea.vmem %s436_s22, 4096  ;;  %p12962_p3 = scmp.lt.s32.totalorder %s436_s22, %s436_s22 }
 0x137   :  { %p12958_p2 = scmp.ne.s32.totalorder %s436_s22, %s12957_s17  ;;  %p12963_p4 = scmp.lt.s32.totalorder %s12957_s17, %s12957_s17 }
 0x139   :  { %p12964_p5 = por %p12963_p4, %p12962_p3 }
 0x13b   :  { %p12965_p6 = pnand %p12964_p5, %p12958_p2 }
 0x13d   :  { %12968 = shalt.err (!%p12965_p6)
}
 0x13e   :  { %441 = dma.hbm_to_vmem [thread:$0]  %s15207_s12, 4096, %s436_s22, [#allocation38], %s14974_s1, %s14974_s1, %s14975_s2  }
 0x13f   :  { %s14980_s8 = smov [#allocation40]   ;;  %s14981_s28 = smov [#allocation43]  }
 0x140   :  { %s460_s26 = sshll.u32 %s14980_s8, 4  ;;  %s480_s30 = sshll.u32 %s14981_s28, 4  ;;  %s461_s26 = int_to_ptr.vmem [resolvable:$true] %s460_s26  ;;  %s481_s30 = int_to_ptr.vmem [resolvable:$true] %s480_s30 }
 0x141   :  { %s12977_s7 = scalar_lea.vmem %s461_s26, 32  ;;  %p12982_p8 = scmp.lt.s32.totalorder %s461_s26, %s461_s26 }
 0x142   :  { %p12978_p7 = scmp.ne.s32.totalorder %s461_s26, %s12977_s7  ;;  %p12983_p9 = scmp.lt.s32.totalorder %s12977_s7, %s12977_s7 }
 0x144   :  { %p12984_p10 = por %p12983_p9, %p12982_p8 }
 0x146   :  { %p12985_p11 = pnand %p12984_p10, %p12978_p7 }
 0x148   :  { %12988 = shalt.err (!%p12985_p11)
}
 0x149   :  { %463 = dma.hbm_to_vmem [thread:$0]  %s15217_s9, 32, %s461_s26, [#allocation41]  }
 0x14a   :  { %s12997_s19 = scalar_lea.vmem %s481_s30, 32  ;;  %p13002_p13 = scmp.lt.s32.totalorder %s481_s30, %s481_s30 }
 0x14b   :  { %p12998_p12 = scmp.ne.s32.totalorder %s481_s30, %s12997_s19  ;;  %p13003_p0 = scmp.lt.s32.totalorder %s12997_s19, %s12997_s19 }
 0x14d   :  { %p13004_p1 = por %p13003_p0, %p13002_p13 }
 0x14f   :  { %p13005_p2 = pnand %p13004_p1, %p12998_p12 }
 0x151   :  { %13008 = shalt.err (!%p13005_p2)
}
 0x152   :  { %483 = dma.hbm_to_vmem [thread:$0]  %s15227_s13, 32, %s481_s30, [#allocation44]  }
 0x153   :  { %s14982_s12 = smov [#allocation46]   ;;  %s14983_s11 = smov [#allocation49]  }
 0x154   :  { %s500_s10 = sshll.u32 %s14982_s12, 4  ;;  %s520_s0 = sshll.u32 %s14983_s11, 4  ;;  %s501_s10 = int_to_ptr.vmem [resolvable:$true] %s500_s10  ;;  %s521_s0 = int_to_ptr.vmem [resolvable:$true] %s520_s0 }
 0x155   :  { %s13017_s15 = scalar_lea.vmem %s501_s10, 32  ;;  %p13022_p4 = scmp.lt.s32.totalorder %s501_s10, %s501_s10 }
 0x156   :  { %p13018_p3 = scmp.ne.s32.totalorder %s501_s10, %s13017_s15  ;;  %p13023_p5 = scmp.lt.s32.totalorder %s13017_s15, %s13017_s15 }
 0x158   :  { %p13024_p6 = por %p13023_p5, %p13022_p4 }
 0x15a   :  { %p13025_p7 = pnand %p13024_p6, %p13018_p3 }
 0x15c   :  { %13028 = shalt.err (!%p13025_p7)
}
 0x15d   :  { %503 = dma.hbm_to_vmem [thread:$0]  %s15237_s3, 32, %s501_s10, [#allocation47]  }
 0x15e   :  { %s13037_s9 = scalar_lea.vmem %s521_s0, 32  ;;  %p13042_p9 = scmp.lt.s32.totalorder %s521_s0, %s521_s0 }
 0x15f   :  { %p13038_p8 = scmp.ne.s32.totalorder %s521_s0, %s13037_s9  ;;  %p13043_p10 = scmp.lt.s32.totalorder %s13037_s9, %s13037_s9 }
 0x161   :  { %p13044_p11 = por %p13043_p10, %p13042_p9 }
 0x163   :  { %p13045_p12 = pnand %p13044_p11, %p13038_p8 }
 0x165   :  { %13048 = shalt.err (!%p13045_p12)
}
 0x166   :  { %523 = dma.hbm_to_vmem [thread:$0]  %s15247_s29, 32, %s521_s0, [#allocation50]  }
 0x167   :  { %s14984_s13 = smov [#allocation52]   ;;  %s14985_s4 = smov [#allocation55]  }
 0x168   :  { %s539_s20 = sshll.u32 %s14984_s13, 4  ;;  %s563_s16 = sshll.u32 %s14985_s4, 4  ;;  %s540_s20 = int_to_ptr.vmem [resolvable:$true] %s539_s20  ;;  %s564_s16 = int_to_ptr.vmem [resolvable:$true] %s563_s16 }
 0x169   :  { %s13057_s18 = scalar_lea.vmem %s540_s20, 2048  ;;  %p13062_p0 = scmp.lt.s32.totalorder %s540_s20, %s540_s20 }
 0x16a   :  { %p13058_p13 = scmp.ne.s32.totalorder %s540_s20, %s13057_s18  ;;  %p13063_p1 = scmp.lt.s32.totalorder %s13057_s18, %s13057_s18 }
 0x16c   :  { %p13064_p2 = por %p13063_p1, %p13062_p0 }
 0x16e   :  { %p13065_p3 = pnand %p13064_p2, %p13058_p13 }
 0x170   :  { %13068 = shalt.err (!%p13065_p3)
}
 0x171   :  { %545 = dma.hbm_to_vmem [thread:$0]  %s15257_s14, 2048, %s540_s20, [#allocation53], %s14974_s1, %s14974_s1, %s14975_s2  }
 0x172   :  { %s13077_s3 = scalar_lea.vmem %s564_s16, 2048  ;;  %p13082_p5 = scmp.lt.s32.totalorder %s564_s16, %s564_s16 }
 0x173   :  { %p13078_p4 = scmp.ne.s32.totalorder %s564_s16, %s13077_s3  ;;  %p13083_p6 = scmp.lt.s32.totalorder %s13077_s3, %s13077_s3 }
 0x175   :  { %p13084_p7 = por %p13083_p6, %p13082_p5 }
 0x177   :  { %p13085_p8 = pnand %p13084_p7, %p13078_p4 }
 0x179   :  { %13088 = shalt.err (!%p13085_p8)
}
 0x17a   :  { %569 = dma.hbm_to_vmem [thread:$0]  %s15267_s21, 2048, %s564_s16, [#allocation56], %s14974_s1, %s14974_s1, %s14975_s2  }
 0x17b   :  { %s14986_s29 = smov [#allocation58]   ;;  %s14987_s23 = smov [#allocation61]  }
 0x17c   :  { %s588_s22 = sshll.u32 %s14986_s29, 4  ;;  %s608_s17 = sshll.u32 %s14987_s23, 4  ;;  %s589_s22 = int_to_ptr.vmem [resolvable:$true] %s588_s22  ;;  %s609_s17 = int_to_ptr.vmem [resolvable:$true] %s608_s17 }
 0x17d   :  { %s13097_s8 = scalar_lea.vmem %s589_s22, 32  ;;  %p13102_p10 = scmp.lt.s32.totalorder %s589_s22, %s589_s22 }
 0x17e   :  { %p13098_p9 = scmp.ne.s32.totalorder %s589_s22, %s13097_s8  ;;  %p13103_p11 = scmp.lt.s32.totalorder %s13097_s8, %s13097_s8 }
 0x180   :  { %p13104_p12 = por %p13103_p11, %p13102_p10 }
 0x182   :  { %p13105_p13 = pnand %p13104_p12, %p13098_p9 }
 0x184   :  { %13108 = shalt.err (!%p13105_p13)
}
 0x185   :  { %591 = dma.hbm_to_vmem [thread:$0]  %s15277_s27, 32, %s589_s22, [#allocation59]  }
 0x186   :  { %s13117_s14 = scalar_lea.vmem %s609_s17, 32  ;;  %p13122_p1 = scmp.lt.s32.totalorder %s609_s17, %s609_s17 }
 0x187   :  { %p13118_p0 = scmp.ne.s32.totalorder %s609_s17, %s13117_s14  ;;  %p13123_p2 = scmp.lt.s32.totalorder %s13117_s14, %s13117_s14 }
 0x189   :  { %p13124_p3 = por %p13123_p2, %p13122_p1 }
 0x18b   :  { %p13125_p4 = pnand %p13124_p3, %p13118_p0 }
 0x18d   :  { %13128 = shalt.err (!%p13125_p4)
}
 0x18e   :  { %s17145_s21 = sld [smem:[#allocation254_spill]]  ;;  %s14988_s26 = smov [#allocation64]  }
 0x18f   :  { %s628_s28 = sshll.u32 %s14988_s26, 4  ;;  %s14989_s30 = smov [#allocation67]   ;;  %s629_s28 = int_to_ptr.vmem [resolvable:$true] %s628_s28 }
 0x190   :  { %s648_s7 = sshll.u32 %s14989_s30, 4  ;;  %s13137_s19 = scalar_lea.vmem %s629_s28, 32  ;;  %s649_s7 = int_to_ptr.vmem [resolvable:$true] %s648_s7 }
 0x191   :  { %p13138_p5 = scmp.ne.s32.totalorder %s629_s28, %s13137_s19  ;;  %p13142_p6 = scmp.lt.s32.totalorder %s629_s28, %s629_s28 }
 0x192   :  { %p13143_p7 = scmp.lt.s32.totalorder %s13137_s19, %s13137_s19 }
 0x194   :  { %611 = dma.hbm_to_vmem [thread:$0]  %s17145_s21, 32, %s609_s17, [#allocation62]  }
 0x195   :  { %p13144_p8 = por %p13143_p7, %p13142_p6 }
 0x197   :  { %p13145_p9 = pnand %p13144_p8, %p13138_p5 }
 0x199   :  { %13148 = shalt.err (!%p13145_p9)
}
 0x19a   :  { %s17146_s27 = sld [smem:[#allocation256_spill]]  ;;  %s13157_s12 = scalar_lea.vmem %s649_s7, 32 }
 0x19b   :  { %p13158_p10 = scmp.ne.s32.totalorder %s649_s7, %s13157_s12  ;;  %p13162_p11 = scmp.lt.s32.totalorder %s649_s7, %s649_s7 }
 0x19c   :  { %p13163_p12 = scmp.lt.s32.totalorder %s13157_s12, %s13157_s12 }
 0x19e   :  { %p13164_p13 = por %p13163_p12, %p13162_p11 }
 0x1a0   :  { %631 = dma.hbm_to_vmem [thread:$0]  %s17146_s27, 32, %s629_s28, [#allocation65]  }
 0x1a1   :  { %p13165_p0 = pnand %p13164_p13, %p13158_p10 }
 0x1a3   :  { %13168 = shalt.err (!%p13165_p0)
}
 0x1a4   :  { %s17147_s10 = sld [smem:[#allocation258_spill]]  ;;  %s14990_s11 = smov [#allocation70]  }
 0x1a5   :  { %s669_s0 = sshll.u32 %s14990_s11, 4  ;;  %s14991_s15 = smov [#allocation73]   ;;  %s670_s0 = int_to_ptr.vmem [resolvable:$true] %s669_s0 }
 0x1a6   :  { %s694_s9 = sshll.u32 %s14991_s15, 4  ;;  %s13177_s13 = scalar_lea.vmem %s670_s0, 4096  ;;  %s695_s9 = int_to_ptr.vmem [resolvable:$true] %s694_s9 }
 0x1a7   :  { %p13178_p1 = scmp.ne.s32.totalorder %s670_s0, %s13177_s13  ;;  %p13182_p2 = scmp.lt.s32.totalorder %s670_s0, %s670_s0 }
 0x1a8   :  { %p13183_p3 = scmp.lt.s32.totalorder %s13177_s13, %s13177_s13 }
 0x1aa   :  { %651 = dma.hbm_to_vmem [thread:$0]  %s17147_s10, 32, %s649_s7, [#allocation68]  }
 0x1ab   :  { %p13184_p4 = por %p13183_p3, %p13182_p2 }
 0x1ad   :  { %p13185_p5 = pnand %p13184_p4, %p13178_p1 }
 0x1af   :  { %13188 = shalt.err (!%p13185_p5)
}
 0x1b0   :  { %s17148_s20 = sld [smem:[#allocation260_spill]]  ;;  %s13197_s4 = scalar_lea.vmem %s695_s9, 32 }
 0x1b1   :  { %p13198_p6 = scmp.ne.s32.totalorder %s695_s9, %s13197_s4  ;;  %p13202_p7 = scmp.lt.s32.totalorder %s695_s9, %s695_s9 }
 0x1b2   :  { %p13203_p8 = scmp.lt.s32.totalorder %s13197_s4, %s13197_s4 }
 0x1b4   :  { %p13204_p9 = por %p13203_p8, %p13202_p7 }
 0x1b6   :  { %675 = dma.hbm_to_vmem [thread:$0]  %s17148_s20, 4096, %s670_s0, [#allocation71], %s14974_s1, %s14974_s1, %s14975_s2  }
 0x1b7   :  { %p13205_p10 = pnand %p13204_p9, %p13198_p6 }
 0x1b9   :  { %13208 = shalt.err (!%p13205_p10)
}
 0x1ba   :  { %s17149_s16 = sld [smem:[#allocation262_spill]]  ;;  %s14992_s18 = smov [#allocation76]  }
 0x1bb   :  { %s714_s3 = sshll.u32 %s14992_s18, 4  ;;  %s14993_s29 = smov [#allocation79]   ;;  %s715_s3 = int_to_ptr.vmem [resolvable:$true] %s714_s3 }
 0x1bc   :  { %s734_s22 = sshll.u32 %s14993_s29, 4  ;;  %s13217_s23 = scalar_lea.vmem %s715_s3, 32  ;;  %s735_s22 = int_to_ptr.vmem [resolvable:$true] %s734_s22 }
 0x1bd   :  { %p13218_p11 = scmp.ne.s32.totalorder %s715_s3, %s13217_s23  ;;  %p13222_p12 = scmp.lt.s32.totalorder %s715_s3, %s715_s3 }
 0x1be   :  { %p13223_p13 = scmp.lt.s32.totalorder %s13217_s23, %s13217_s23 }
 0x1c0   :  { %697 = dma.hbm_to_vmem [thread:$0]  %s17149_s16, 32, %s695_s9, [#allocation74]  }
 0x1c1   :  { %p13224_p0 = por %p13223_p13, %p13222_p12 }
 0x1c3   :  { %p13225_p1 = pnand %p13224_p0, %p13218_p11 }
 0x1c5   :  { %13228 = shalt.err (!%p13225_p1)
}
 0x1c6   :  { %s17150_s17 = sld [smem:[#allocation264_spill]]  ;;  %s13237_s8 = scalar_lea.vmem %s735_s22, 16 }
 0x1c7   :  { %p13238_p2 = scmp.ne.s32.totalorder %s735_s22, %s13237_s8  ;;  %s13241_s14 = scalar_lea.vmem %s735_s22, 32 }
 0x1c8   :  { %p13242_p3 = scmp.lt.s32.totalorder %s735_s22, %s735_s22  ;;  %p13243_p4 = scmp.lt.s32.totalorder %s13241_s14, %s13237_s8 }
 0x1ca   :  { %p13244_p5 = por %p13243_p4, %p13242_p3 }
 0x1cc   :  { %717 = dma.hbm_to_vmem [thread:$0]  %s17150_s17, 32, %s715_s3, [#allocation77]  }
 0x1cd   :  { %p13245_p6 = pnand %p13244_p5, %p13238_p2 }
 0x1cf   :  { %13248 = shalt.err (!%p13245_p6)
}
 0x1d0   :  { %s17151_s21 = sld [smem:[#allocation266_spill]]  ;;  %s14994_s26 = smov [#allocation82]  }
 0x1d1   :  { %s757_s28 = sshll.u32 %s14994_s26, 4  ;;  %s14995_s30 = smov [#allocation85]   ;;  %s758_s28 = int_to_ptr.vmem [resolvable:$true] %s757_s28 }
 0x1d2   :  { %s782_s7 = sshll.u32 %s14995_s30, 4  ;;  %s13257_s19 = scalar_lea.vmem %s758_s28, 1024  ;;  %s783_s7 = int_to_ptr.vmem [resolvable:$true] %s782_s7 }
 0x1d3   :  { %p13258_p7 = scmp.ne.s32.totalorder %s758_s28, %s13257_s19  ;;  %p13262_p8 = scmp.lt.s32.totalorder %s758_s28, %s758_s28 }
 0x1d4   :  { %p13263_p9 = scmp.lt.s32.totalorder %s13257_s19, %s13257_s19 }
 0x1d6   :  { %737 = dma.hbm_to_vmem [thread:$0]  %s17151_s21, 16, %s735_s22, [#allocation80]  }
 0x1d7   :  { %p13264_p10 = por %p13263_p9, %p13262_p8 }
 0x1d9   :  { %p13265_p11 = pnand %p13264_p10, %p13258_p7 }
 0x1db   :  { %13268 = shalt.err (!%p13265_p11)
}
 0x1dc   :  { %s14996_s27 = smov 64   ;;  %s17152_s12 = sld [smem:[#allocation269_spill]] }
 0x1dd   :  { %s14997_s10 = smov 4   ;;  %s13277_s11 = scalar_lea.vmem %s783_s7, 32 }
 0x1de   :  { %p13278_p12 = scmp.ne.s32.totalorder %s783_s7, %s13277_s11  ;;  %p13282_p13 = scmp.lt.s32.totalorder %s783_s7, %s783_s7 }
 0x1df   :  { %p13283_p0 = scmp.lt.s32.totalorder %s13277_s11, %s13277_s11 }
 0x1e1   :  { %p13284_p1 = por %p13283_p0, %p13282_p13 }
 0x1e2   :  { %763 = dma.hbm_to_vmem [thread:$0]  %s17152_s12, 1024, %s758_s28, [#allocation83], %s14996_s27, %s14996_s27, %s14997_s10  }
 0x1e3   :  { %p13285_p2 = pnand %p13284_p1, %p13278_p12 }
 0x1e5   :  { %13288 = shalt.err (!%p13285_p2)
}
 0x1e6   :  { %s17153_s0 = sld [smem:[#allocation271_spill]]  ;;  %s14998_s15 = smov [#allocation88]  }
 0x1e7   :  { %s802_s9 = sshll.u32 %s14998_s15, 4  ;;  %s14999_s13 = smov [#allocation91]   ;;  %s803_s9 = int_to_ptr.vmem [resolvable:$true] %s802_s9 }
 0x1e8   :  { %s822_s20 = sshll.u32 %s14999_s13, 4  ;;  %s13297_s4 = scalar_lea.vmem %s803_s9, 32  ;;  %s823_s20 = int_to_ptr.vmem [resolvable:$true] %s822_s20 }
 0x1e9   :  { %p13298_p3 = scmp.ne.s32.totalorder %s803_s9, %s13297_s4  ;;  %p13302_p4 = scmp.lt.s32.totalorder %s803_s9, %s803_s9 }
 0x1ea   :  { %p13303_p5 = scmp.lt.s32.totalorder %s13297_s4, %s13297_s4 }
 0x1ec   :  { %785 = dma.hbm_to_vmem [thread:$0]  %s17153_s0, 32, %s783_s7, [#allocation86]  }
 0x1ed   :  { %p13304_p6 = por %p13303_p5, %p13302_p4 }
 0x1ef   :  { %p13305_p7 = pnand %p13304_p6, %p13298_p3 }
 0x1f1   :  { %13308 = shalt.err (!%p13305_p7)
}
 0x1f2   :  { %s17154_s16 = sld [smem:[#allocation273_spill]]  ;;  %s13317_s18 = scalar_lea.vmem %s823_s20, 32 }
 0x1f3   :  { %p13318_p8 = scmp.ne.s32.totalorder %s823_s20, %s13317_s18  ;;  %p13322_p9 = scmp.lt.s32.totalorder %s823_s20, %s823_s20 }
 0x1f4   :  { %p13323_p10 = scmp.lt.s32.totalorder %s13317_s18, %s13317_s18 }
 0x1f6   :  { %p13324_p11 = por %p13323_p10, %p13322_p9 }
 0x1f8   :  { %805 = dma.hbm_to_vmem [thread:$0]  %s17154_s16, 32, %s803_s9, [#allocation89]  }
 0x1f9   :  { %p13325_p12 = pnand %p13324_p11, %p13318_p8 }
 0x1fb   :  { %13328 = shalt.err (!%p13325_p12)
}
 0x1fc   :  { %s17155_s3 = sld [smem:[#allocation275_spill]]  ;;  %s15000_s29 = smov [#allocation94]  }
 0x1fd   :  { %s842_s22 = sshll.u32 %s15000_s29, 4  ;;  %s15001_s23 = smov [#allocation97]   ;;  %s843_s22 = int_to_ptr.vmem [resolvable:$true] %s842_s22 }
 0x1fe   :  { %s864_s17 = sshll.u32 %s15001_s23, 4  ;;  %s13337_s8 = scalar_lea.vmem %s843_s22, 32  ;;  %s865_s17 = int_to_ptr.vmem [resolvable:$true] %s864_s17 }
 0x1ff   :  { %p13338_p13 = scmp.ne.s32.totalorder %s843_s22, %s13337_s8  ;;  %p13342_p0 = scmp.lt.s32.totalorder %s843_s22, %s843_s22 }
 0x200   :  { %p13343_p1 = scmp.lt.s32.totalorder %s13337_s8, %s13337_s8 }
 0x202   :  { %825 = dma.hbm_to_vmem [thread:$0]  %s17155_s3, 32, %s823_s20, [#allocation92]  }
 0x203   :  { %p13344_p2 = por %p13343_p1, %p13342_p0 }
 0x205   :  { %p13345_p3 = pnand %p13344_p2, %p13338_p13 }
 0x207   :  { %13348 = shalt.err (!%p13345_p3)
}
 0x208   :  { %s17156_s14 = sld [smem:[#allocation277_spill]]  ;;  %s13357_s21 = scalar_lea.vmem %s865_s17, 32 }
 0x209   :  { %p13358_p4 = scmp.ne.s32.totalorder %s865_s17, %s13357_s21  ;;  %p13362_p5 = scmp.lt.s32.totalorder %s865_s17, %s865_s17 }
 0x20a   :  { %p13363_p6 = scmp.lt.s32.totalorder %s13357_s21, %s13357_s21 }
 0x20c   :  { %p13364_p7 = por %p13363_p6, %p13362_p5 }
 0x20e   :  { %845 = dma.hbm_to_vmem [thread:$0]  %s17156_s14, 32, %s843_s22, [#allocation95]  }
 0x20f   :  { %p13365_p8 = pnand %p13364_p7, %p13358_p4 }
 0x211   :  { %13368 = shalt.err (!%p13365_p8)
}
 0x212   :  { %s17157_s26 = sld [smem:[#allocation279_spill]]  ;;  %s15002_s28 = smov [#allocation100]  }
 0x213   :  { %s884_s30 = sshll.u32 %s15002_s28, 4  ;;  %s15003_s7 = smov [#allocation103]   ;;  %s885_s30 = int_to_ptr.vmem [resolvable:$true] %s884_s30 }
 0x214   :  { %s904_s19 = sshll.u32 %s15003_s7, 4  ;;  %s13377_s12 = scalar_lea.vmem %s885_s30, 32  ;;  %s905_s19 = int_to_ptr.vmem [resolvable:$true] %s904_s19 }
 0x215   :  { %p13378_p9 = scmp.ne.s32.totalorder %s885_s30, %s13377_s12  ;;  %p13382_p10 = scmp.lt.s32.totalorder %s885_s30, %s885_s30 }
 0x216   :  { %p13383_p11 = scmp.lt.s32.totalorder %s13377_s12, %s13377_s12 }
 0x218   :  { %867 = dma.hbm_to_vmem [thread:$0]  %s17157_s26, 32, %s865_s17, [#allocation98]  }
 0x219   :  { %p13384_p12 = por %p13383_p11, %p13382_p10 }
 0x21b   :  { %p13385_p13 = pnand %p13384_p12, %p13378_p9 }
 0x21d   :  { %13388 = shalt.err (!%p13385_p13)
}
 0x21e   :  { %s17158_s11 = sld [smem:[#allocation281_spill]]  ;;  %s13397_s0 = scalar_lea.vmem %s905_s19, 32 }
 0x21f   :  { %p13398_p0 = scmp.ne.s32.totalorder %s905_s19, %s13397_s0  ;;  %p13402_p1 = scmp.lt.s32.totalorder %s905_s19, %s905_s19 }
 0x220   :  { %p13403_p2 = scmp.lt.s32.totalorder %s13397_s0, %s13397_s0 }
 0x222   :  { %p13404_p3 = por %p13403_p2, %p13402_p1 }
 0x224   :  { %887 = dma.hbm_to_vmem [thread:$0]  %s17158_s11, 32, %s885_s30, [#allocation101]  }
 0x225   :  { %p13405_p4 = pnand %p13404_p3, %p13398_p0 }
 0x227   :  { %13408 = shalt.err (!%p13405_p4)
}
 0x228   :  { %s17159_s15 = sld [smem:[#allocation283_spill]]  ;;  %s15004_s9 = smov [#allocation106]  }
 0x229   :  { %s924_s13 = sshll.u32 %s15004_s9, 4  ;;  %s15005_s20 = smov [#allocation109]   ;;  %s925_s13 = int_to_ptr.vmem [resolvable:$true] %s924_s13 }
 0x22a   :  { %s948_s4 = sshll.u32 %s15005_s20, 4  ;;  %s13417_s16 = scalar_lea.vmem %s925_s13, 32  ;;  %s949_s4 = int_to_ptr.vmem [resolvable:$true] %s948_s4 }
 0x22b   :  { %p13418_p5 = scmp.ne.s32.totalorder %s925_s13, %s13417_s16  ;;  %p13422_p6 = scmp.lt.s32.totalorder %s925_s13, %s925_s13 }
 0x22c   :  { %p13423_p7 = scmp.lt.s32.totalorder %s13417_s16, %s13417_s16 }
 0x22e   :  { %907 = dma.hbm_to_vmem [thread:$0]  %s17159_s15, 32, %s905_s19, [#allocation104]  }
 0x22f   :  { %p13424_p8 = por %p13423_p7, %p13422_p6 }
 0x231   :  { %p13425_p9 = pnand %p13424_p8, %p13418_p5 }
 0x233   :  { %13428 = shalt.err (!%p13425_p9)
}
 0x234   :  { %s17160_s18 = sld [smem:[#allocation285_spill]]  ;;  %s13437_s3 = scalar_lea.vmem %s949_s4, 16 }
 0x235   :  { %p13438_p10 = scmp.ne.s32.totalorder %s949_s4, %s13437_s3  ;;  %s13441_s29 = scalar_lea.vmem %s949_s4, 32 }
 0x236   :  { %p13442_p11 = scmp.lt.s32.totalorder %s949_s4, %s949_s4  ;;  %p13443_p12 = scmp.lt.s32.totalorder %s13441_s29, %s13437_s3 }
 0x238   :  { %p13444_p13 = por %p13443_p12, %p13442_p11 }
 0x23a   :  { %927 = dma.hbm_to_vmem [thread:$0]  %s17160_s18, 32, %s925_s13, [#allocation107]  }
 0x23b   :  { %p13445_p0 = pnand %p13444_p13, %p13438_p10 }
 0x23d   :  { %13448 = shalt.err (!%p13445_p0)
}
 0x23e   :  { %s17161_s22 = sld [smem:[#allocation288_spill]]  ;;  %s15006_s23 = smov [#allocation112]  }
 0x23f   :  { %s970_s17 = sshll.u32 %s15006_s23, 4  ;;  %s15007_s8 = smov [#allocation115]   ;;  %s971_s17 = int_to_ptr.vmem [resolvable:$true] %s970_s17 }
 0x240   :  { %s990_s14 = sshll.u32 %s15007_s8, 4  ;;  %s13457_s21 = scalar_lea.vmem %s971_s17, 16  ;;  %s991_s14 = int_to_ptr.vmem [resolvable:$true] %s990_s14 }
 0x241   :  { %p13458_p1 = scmp.ne.s32.totalorder %s971_s17, %s13457_s21  ;;  %s13461_s26 = scalar_lea.vmem %s971_s17, 32 }
 0x242   :  { %p13462_p2 = scmp.lt.s32.totalorder %s971_s17, %s971_s17  ;;  %p13463_p3 = scmp.lt.s32.totalorder %s13461_s26, %s13457_s21 }
 0x244   :  { %951 = dma.hbm_to_vmem [thread:$0]  %s17161_s22, 16, %s949_s4, [#allocation110]  }
 0x245   :  { %p13464_p4 = por %p13463_p3, %p13462_p2 }
 0x247   :  { %p13465_p5 = pnand %p13464_p4, %p13458_p1 }
 0x249   :  { %13468 = shalt.err (!%p13465_p5)
}
 0x24a   :  { %s17162_s28 = sld [smem:[#allocation290_spill]]  ;;  %s13477_s30 = scalar_lea.vmem %s991_s14, 16 }
 0x24b   :  { %p13478_p6 = scmp.ne.s32.totalorder %s991_s14, %s13477_s30  ;;  %s13481_s7 = scalar_lea.vmem %s991_s14, 32 }
 0x24c   :  { %p13482_p7 = scmp.lt.s32.totalorder %s991_s14, %s991_s14  ;;  %p13483_p8 = scmp.lt.s32.totalorder %s13481_s7, %s13477_s30 }
 0x24e   :  { %p13484_p9 = por %p13483_p8, %p13482_p7 }
 0x250   :  { %973 = dma.hbm_to_vmem [thread:$0]  %s17162_s28, 16, %s971_s17, [#allocation113]  }
 0x251   :  { %p13485_p10 = pnand %p13484_p9, %p13478_p6 }
 0x253   :  { %13488 = shalt.err (!%p13485_p10)
}
 0x254   :  { %s17163_s19 = sld [smem:[#allocation292_spill]]  ;;  %s15008_s12 = smov [#allocation118]  }
 0x255   :  { %s1010_s11 = sshll.u32 %s15008_s12, 4  ;;  %s15009_s0 = smov [#allocation121]   ;;  %s1011_s11 = int_to_ptr.vmem [resolvable:$true] %s1010_s11 }
 0x256   :  { %s1030_s15 = sshll.u32 %s15009_s0, 4  ;;  %s13497_s9 = scalar_lea.vmem %s1011_s11, 16  ;;  %s1031_s15 = int_to_ptr.vmem [resolvable:$true] %s1030_s15 }
 0x257   :  { %p13498_p11 = scmp.ne.s32.totalorder %s1011_s11, %s13497_s9  ;;  %s13501_s13 = scalar_lea.vmem %s1011_s11, 32 }
 0x258   :  { %p13502_p12 = scmp.lt.s32.totalorder %s1011_s11, %s1011_s11  ;;  %p13503_p13 = scmp.lt.s32.totalorder %s13501_s13, %s13497_s9 }
 0x25a   :  { %993 = dma.hbm_to_vmem [thread:$0]  %s17163_s19, 16, %s991_s14, [#allocation116]  }
 0x25b   :  { %p13504_p0 = por %p13503_p13, %p13502_p12 }
 0x25d   :  { %p13505_p1 = pnand %p13504_p0, %p13498_p11 }
 0x25f   :  { %13508 = shalt.err (!%p13505_p1)
}
 0x260   :  { %s17164_s20 = sld [smem:[#allocation294_spill]]  ;;  %s13517_s4 = scalar_lea.vmem %s1031_s15, 16 }
 0x261   :  { %p13518_p2 = scmp.ne.s32.totalorder %s1031_s15, %s13517_s4  ;;  %s13521_s16 = scalar_lea.vmem %s1031_s15, 32 }
 0x262   :  { %p13522_p3 = scmp.lt.s32.totalorder %s1031_s15, %s1031_s15  ;;  %p13523_p4 = scmp.lt.s32.totalorder %s13521_s16, %s13517_s4 }
 0x264   :  { %p13524_p5 = por %p13523_p4, %p13522_p3 }
 0x266   :  { %1013 = dma.hbm_to_vmem [thread:$0]  %s17164_s20, 16, %s1011_s11, [#allocation119]  }
 0x267   :  { %p13525_p6 = pnand %p13524_p5, %p13518_p2 }
 0x269   :  { %13528 = shalt.err (!%p13525_p6)
}
 0x26a   :  { %s17165_s18 = sld [smem:[#allocation296_spill]]  ;;  %s15010_s3 = smov [#allocation124]  }
 0x26b   :  { %s1050_s29 = sshll.u32 %s15010_s3, 4  ;;  %s15011_s22 = smov [#allocation127]   ;;  %s1051_s29 = int_to_ptr.vmem [resolvable:$true] %s1050_s29 }
 0x26c   :  { %s1072_s23 = sshll.u32 %s15011_s22, 4  ;;  %s13537_s17 = scalar_lea.vmem %s1051_s29, 16  ;;  %s1073_s23 = int_to_ptr.vmem [resolvable:$true] %s1072_s23 }
 0x26d   :  { %p13538_p7 = scmp.ne.s32.totalorder %s1051_s29, %s13537_s17  ;;  %s13541_s8 = scalar_lea.vmem %s1051_s29, 32 }
 0x26e   :  { %p13542_p8 = scmp.lt.s32.totalorder %s1051_s29, %s1051_s29  ;;  %p13543_p9 = scmp.lt.s32.totalorder %s13541_s8, %s13537_s17 }
 0x270   :  { %1033 = dma.hbm_to_vmem [thread:$0]  %s17165_s18, 16, %s1031_s15, [#allocation122]  }
 0x271   :  { %p13544_p10 = por %p13543_p9, %p13542_p8 }
 0x273   :  { %p13545_p11 = pnand %p13544_p10, %p13538_p7 }
 0x275   :  { %13548 = shalt.err (!%p13545_p11)
}
 0x276   :  { %s17166_s14 = sld [smem:[#allocation298_spill]]  ;;  %s13557_s21 = scalar_lea.vmem %s1073_s23, 16 }
 0x277   :  { %p13558_p12 = scmp.ne.s32.totalorder %s1073_s23, %s13557_s21  ;;  %s13561_s26 = scalar_lea.vmem %s1073_s23, 32 }
 0x278   :  { %p13562_p13 = scmp.lt.s32.totalorder %s1073_s23, %s1073_s23  ;;  %p13563_p0 = scmp.lt.s32.totalorder %s13561_s26, %s13557_s21 }
 0x27a   :  { %p13564_p1 = por %p13563_p0, %p13562_p13 }
 0x27c   :  { %1053 = dma.hbm_to_vmem [thread:$0]  %s17166_s14, 16, %s1051_s29, [#allocation125]  }
 0x27d   :  { %p13565_p2 = pnand %p13564_p1, %p13558_p12 }
 0x27f   :  { %13568 = shalt.err (!%p13565_p2)
}
 0x280   :  { %s17167_s28 = sld [smem:[#allocation300_spill]]  ;;  %s15012_s30 = smov [#allocation130]  }
 0x281   :  { %s1092_s7 = sshll.u32 %s15012_s30, 4  ;;  %s15013_s19 = smov [#allocation133]   ;;  %s1093_s7 = int_to_ptr.vmem [resolvable:$true] %s1092_s7 }
 0x282   :  { %s1112_s12 = sshll.u32 %s15013_s19, 4  ;;  %s13577_s11 = scalar_lea.vmem %s1093_s7, 16  ;;  %s1113_s12 = int_to_ptr.vmem [resolvable:$true] %s1112_s12 }
 0x283   :  { %p13578_p3 = scmp.ne.s32.totalorder %s1093_s7, %s13577_s11  ;;  %s13581_s0 = scalar_lea.vmem %s1093_s7, 32 }
 0x284   :  { %p13582_p4 = scmp.lt.s32.totalorder %s1093_s7, %s1093_s7  ;;  %p13583_p5 = scmp.lt.s32.totalorder %s13581_s0, %s13577_s11 }
 0x286   :  { %1075 = dma.hbm_to_vmem [thread:$0]  %s17167_s28, 16, %s1073_s23, [#allocation128]  }
 0x287   :  { %p13584_p6 = por %p13583_p5, %p13582_p4 }
 0x289   :  { %p13585_p7 = pnand %p13584_p6, %p13578_p3 }
 0x28b   :  { %13588 = shalt.err (!%p13585_p7)
}
 0x28c   :  { %s17168_s15 = sld [smem:[#allocation302_spill]]  ;;  %s13597_s9 = scalar_lea.vmem %s1113_s12, 16 }
 0x28d   :  { %p13598_p8 = scmp.ne.s32.totalorder %s1113_s12, %s13597_s9  ;;  %s13601_s13 = scalar_lea.vmem %s1113_s12, 32 }
 0x28e   :  { %p13602_p9 = scmp.lt.s32.totalorder %s1113_s12, %s1113_s12  ;;  %p13603_p10 = scmp.lt.s32.totalorder %s13601_s13, %s13597_s9 }
 0x290   :  { %p13604_p11 = por %p13603_p10, %p13602_p9 }
 0x292   :  { %1095 = dma.hbm_to_vmem [thread:$0]  %s17168_s15, 16, %s1093_s7, [#allocation131]  }
 0x293   :  { %p13605_p12 = pnand %p13604_p11, %p13598_p8 }
 0x295   :  { %13608 = shalt.err (!%p13605_p12)
}
 0x296   :  { %s17169_s20 = sld [smem:[#allocation304_spill]]  ;;  %s15014_s4 = smov [#allocation136]  }
 0x297   :  { %s1132_s16 = sshll.u32 %s15014_s4, 4  ;;  %s15015_s18 = smov [#allocation17]   ;;  %s1133_s16 = int_to_ptr.vmem [resolvable:$true] %s1132_s16 }
 0x298   :  { %s296_s3 = sshll.u32 %s15015_s18, 4  ;;  %s13617_s29 = scalar_lea.vmem %s1133_s16, 16  ;;  %s297_s3 = int_to_ptr.vmem [resolvable:$true] %s296_s3 }
 0x299   :  { %p13618_p13 = scmp.ne.s32.totalorder %s1133_s16, %s13617_s29  ;;  %s13621_s22 = scalar_lea.vmem %s1133_s16, 32 }
 0x29a   :  { %p13622_p0 = scmp.lt.s32.totalorder %s1133_s16, %s1133_s16  ;;  %p13623_p1 = scmp.lt.s32.totalorder %s13621_s22, %s13617_s29 }
 0x29c   :  { %1115 = dma.hbm_to_vmem [thread:$0]  %s17169_s20, 16, %s1113_s12, [#allocation134]  }
 0x29d   :  { %p13624_p2 = por %p13623_p1, %p13622_p0 }
 0x29f   :  { %p13625_p3 = pnand %p13624_p2, %p13618_p13 }
 0x2a1   :  { %13628 = shalt.err (!%p13625_p3)
}
 0x2a2   :  { %s17170_s23 = sld [smem:[#allocation306_spill]]  ;;  %s13637_s17 = scalar_lea.vmem %s297_s3, 32 }
 0x2a3   :  { %p13638_p4 = scmp.ne.s32.totalorder %s297_s3, %s13637_s17  ;;  %p13642_p5 = scmp.lt.s32.totalorder %s297_s3, %s297_s3 }
 0x2a4   :  { %p13643_p6 = scmp.lt.s32.totalorder %s13637_s17, %s13637_s17 }
 0x2a6   :  { %p13644_p7 = por %p13643_p6, %p13642_p5 }
 0x2a8   :  { %1135 = dma.hbm_to_vmem [thread:$0]  %s17170_s23, 16, %s1133_s16, [#allocation137]  }
 0x2a9   :  { %p13645_p8 = pnand %p13644_p7, %p13638_p4 }
 0x2ab   :  { %13648 = shalt.err (!%p13645_p8)
}
 0x2ac   :  { %s17171_s8 = sld [smem:[#allocation238_spill]]  ;;  %s15016_s14 = smov [#allocation21]  }
 0x2ad   :  { %s315_s21 = sshll.u32 %s15016_s14, 4  ;;  %s15017_s26 = smov [#allocation24]   ;;  %s316_s21 = int_to_ptr.vmem [resolvable:$true] %s315_s21 }
 0x2ae   :  { %s341_s28 = sshll.u32 %s15017_s26, 4  ;;  %s13657_s30 = scalar_lea.vmem %s316_s21, 2048  ;;  %s342_s28 = int_to_ptr.vmem [resolvable:$true] %s341_s28 }
 0x2af   :  { %p13658_p9 = scmp.ne.s32.totalorder %s316_s21, %s13657_s30  ;;  %p13662_p10 = scmp.lt.s32.totalorder %s316_s21, %s316_s21 }
 0x2b0   :  { %p13663_p11 = scmp.lt.s32.totalorder %s13657_s30, %s13657_s30 }
 0x2b2   :  { %299 = dma.hbm_to_vmem [thread:$0]  %s17171_s8, 32, %s297_s3, [#allocation18]  }
 0x2b3   :  { %p13664_p12 = por %p13663_p11, %p13662_p10 }
 0x2b5   :  { %p13665_p13 = pnand %p13664_p12, %p13658_p9 }
 0x2b7   :  { %13668 = shalt.err (!%p13665_p13)
}
 0x2b8   :  { %s17172_s7 = sld [smem:[#allocation239_spill]]  ;;  %s13677_s19 = scalar_lea.vmem %s342_s28, 512 }
 0x2b9   :  { %p13678_p0 = scmp.ne.s32.totalorder %s342_s28, %s13677_s19  ;;  %p13682_p1 = scmp.lt.s32.totalorder %s342_s28, %s342_s28 }
 0x2ba   :  { %p13683_p2 = scmp.lt.s32.totalorder %s13677_s19, %s13677_s19 }
 0x2bc   :  { %p13684_p3 = por %p13683_p2, %p13682_p1 }
 0x2be   :  { %321 = dma.hbm_to_vmem [thread:$0]  %s17172_s7, 2048, %s316_s21, [#allocation20], %s14974_s1, %s14974_s1, %s14975_s2  }
 0x2bf   :  { %p13685_p4 = pnand %p13684_p3, %p13678_p0 }
 0x2c1   :  { %13688 = shalt.err (!%p13685_p4)
}
 0x2c2   :  { %s17173_s12 = sld [smem:[#allocation241_spill]]  ;;  %s15018_s11 = smov [#allocation27]  }
 0x2c3   :  { %s364_s0 = sshll.u32 %s15018_s11, 4  ;;  %s15019_s15 = smov [#allocation30]   ;;  %s365_s0 = int_to_ptr.vmem [resolvable:$true] %s364_s0 }
 0x2c4   :  { %s384_s9 = sshll.u32 %s15019_s15, 4  ;;  %s13697_s13 = scalar_lea.vmem %s365_s0, 32  ;;  %s385_s9 = int_to_ptr.vmem [resolvable:$true] %s384_s9 }
 0x2c5   :  { %p13698_p5 = scmp.ne.s32.totalorder %s365_s0, %s13697_s13  ;;  %p13702_p6 = scmp.lt.s32.totalorder %s365_s0, %s365_s0 }
 0x2c6   :  { %p13703_p7 = scmp.lt.s32.totalorder %s13697_s13, %s13697_s13 }
 0x2c8   :  { %347 = dma.hbm_to_vmem [thread:$0]  %s17173_s12, 512, %s342_s28, [#allocation23], %s14974_s1, %s14974_s1, %s14975_s2  }
 0x2c9   :  { %p13704_p8 = por %p13703_p7, %p13702_p6 }
 0x2cb   :  { %p13705_p9 = pnand %p13704_p8, %p13698_p5 }
 0x2cd   :  { %13708 = shalt.err (!%p13705_p9)
}
 0x2ce   :  { %s17174_s20 = sld [smem:[#allocation242_spill]]  ;;  %s13717_s4 = scalar_lea.vmem %s385_s9, 32 }
 0x2cf   :  { %p13718_p10 = scmp.ne.s32.totalorder %s385_s9, %s13717_s4  ;;  %p13722_p11 = scmp.lt.s32.totalorder %s385_s9, %s385_s9 }
 0x2d0   :  { %p13723_p12 = scmp.lt.s32.totalorder %s13717_s4, %s13717_s4 }
 0x2d2   :  { %p13724_p13 = por %p13723_p12, %p13722_p11 }
 0x2d4   :  { %367 = dma.hbm_to_vmem [thread:$0]  %s17174_s20, 32, %s365_s0, [#allocation26]  }
 0x2d5   :  { %p13725_p0 = pnand %p13724_p13, %p13718_p10 }
 0x2d7   :  { %13728 = shalt.err (!%p13725_p0)
}
 0x2d8   :  { %s17175_s16 = sld [smem:[#allocation243_spill]]  ;;  %s15020_s18 = smov [#allocation33]  }
 0x2d9   :  { %s404_s3 = sshll.u32 %s15020_s18, 4  ;;  %s15021_s29 = smov [#allocation36]   ;;  %s405_s3 = int_to_ptr.vmem [resolvable:$true] %s404_s3 }
 0x2da   :  { %s423_s22 = sshll.u32 %s15021_s29, 4  ;;  %s13737_s23 = scalar_lea.vmem %s405_s3, 32  ;;  %s424_s22 = int_to_ptr.vmem [resolvable:$true] %s423_s22 }
 0x2db   :  { %p13738_p1 = scmp.ne.s32.totalorder %s405_s3, %s13737_s23  ;;  %p13742_p2 = scmp.lt.s32.totalorder %s405_s3, %s405_s3 }
 0x2dc   :  { %p13743_p3 = scmp.lt.s32.totalorder %s13737_s23, %s13737_s23 }
 0x2de   :  { %387 = dma.hbm_to_vmem [thread:$0]  %s17175_s16, 32, %s385_s9, [#allocation29]  }
 0x2df   :  { %p13744_p4 = por %p13743_p3, %p13742_p2 }
 0x2e1   :  { %p13745_p5 = pnand %p13744_p4, %p13738_p1 }
 0x2e3   :  { %13748 = shalt.err (!%p13745_p5)
}
 0x2e4   :  { %s17176_s17 = sld [smem:[#allocation244_spill]]  ;;  %s13757_s8 = scalar_lea.vmem %s424_s22, 4096 }
 0x2e5   :  { %p13758_p6 = scmp.ne.s32.totalorder %s424_s22, %s13757_s8  ;;  %p13762_p7 = scmp.lt.s32.totalorder %s424_s22, %s424_s22 }
 0x2e6   :  { %p13763_p8 = scmp.lt.s32.totalorder %s13757_s8, %s13757_s8 }
 0x2e8   :  { %p13764_p9 = por %p13763_p8, %p13762_p7 }
 0x2ea   :  { %407 = dma.hbm_to_vmem [thread:$0]  %s17176_s17, 32, %s405_s3, [#allocation32]  }
 0x2eb   :  { %p13765_p10 = pnand %p13764_p9, %p13758_p6 }
 0x2ed   :  { %13768 = shalt.err (!%p13765_p10)
}
 0x2ee   :  { %s17177_s14 = sld [smem:[#allocation245_spill]]  ;;  %s15022_s21 = smov [#allocation39]  }
 0x2ef   :  { %s447_s26 = sshll.u32 %s15022_s21, 4  ;;  %s15023_s28 = smov [#allocation42]   ;;  %s448_s26 = int_to_ptr.vmem [resolvable:$true] %s447_s26 }
 0x2f0   :  { %s470_s30 = sshll.u32 %s15023_s28, 4  ;;  %s13777_s7 = scalar_lea.vmem %s448_s26, 512  ;;  %s471_s30 = int_to_ptr.vmem [resolvable:$true] %s470_s30 }
 0x2f1   :  { %p13778_p11 = scmp.ne.s32.totalorder %s448_s26, %s13777_s7  ;;  %p13782_p12 = scmp.lt.s32.totalorder %s448_s26, %s448_s26 }
 0x2f2   :  { %p13783_p13 = scmp.lt.s32.totalorder %s13777_s7, %s13777_s7 }
 0x2f4   :  { %429 = dma.hbm_to_vmem [thread:$0]  %s17177_s14, 4096, %s424_s22, [#allocation35], %s14974_s1, %s14974_s1, %s14975_s2  }
 0x2f5   :  { %p13784_p0 = por %p13783_p13, %p13782_p12 }
 0x2f7   :  { %p13785_p1 = pnand %p13784_p0, %p13778_p11 }
 0x2f9   :  { %13788 = shalt.err (!%p13785_p1)
}
 0x2fa   :  { %s17178_s19 = sld [smem:[#allocation246_spill]]  ;;  %s13797_s12 = scalar_lea.vmem %s471_s30, 32 }
 0x2fb   :  { %p13798_p2 = scmp.ne.s32.totalorder %s471_s30, %s13797_s12  ;;  %p13802_p3 = scmp.lt.s32.totalorder %s471_s30, %s471_s30 }
 0x2fc   :  { %p13803_p4 = scmp.lt.s32.totalorder %s13797_s12, %s13797_s12 }
 0x2fe   :  { %p13804_p5 = por %p13803_p4, %p13802_p3 }
 0x300   :  { %453 = dma.hbm_to_vmem [thread:$0]  %s17178_s19, 512, %s448_s26, [#allocation38], %s14974_s1, %s14974_s1, %s14975_s2  }
 0x301   :  { %p13805_p6 = pnand %p13804_p5, %p13798_p2 }
 0x303   :  { %13808 = shalt.err (!%p13805_p6)
}
 0x304   :  { %s17179_s11 = sld [smem:[#allocation247_spill]]  ;;  %s15024_s0 = smov [#allocation45]  }
 0x305   :  { %s490_s15 = sshll.u32 %s15024_s0, 4  ;;  %s15025_s9 = smov [#allocation48]   ;;  %s491_s15 = int_to_ptr.vmem [resolvable:$true] %s490_s15 }
 0x306   :  { %s510_s13 = sshll.u32 %s15025_s9, 4  ;;  %s13817_s20 = scalar_lea.vmem %s491_s15, 32  ;;  %s511_s13 = int_to_ptr.vmem [resolvable:$true] %s510_s13 }
 0x307   :  { %p13818_p7 = scmp.ne.s32.totalorder %s491_s15, %s13817_s20  ;;  %p13822_p8 = scmp.lt.s32.totalorder %s491_s15, %s491_s15 }
 0x308   :  { %p13823_p9 = scmp.lt.s32.totalorder %s13817_s20, %s13817_s20 }
 0x30a   :  { %473 = dma.hbm_to_vmem [thread:$0]  %s17179_s11, 32, %s471_s30, [#allocation41]  }
 0x30b   :  { %p13824_p10 = por %p13823_p9, %p13822_p8 }
 0x30d   :  { %p13825_p11 = pnand %p13824_p10, %p13818_p7 }
 0x30f   :  { %13828 = shalt.err (!%p13825_p11)
}
 0x310   :  { %s17180_s4 = sld [smem:[#allocation248_spill]]  ;;  %s13837_s16 = scalar_lea.vmem %s511_s13, 32 }
 0x311   :  { %p13838_p12 = scmp.ne.s32.totalorder %s511_s13, %s13837_s16  ;;  %p13842_p13 = scmp.lt.s32.totalorder %s511_s13, %s511_s13 }
 0x312   :  { %p13843_p0 = scmp.lt.s32.totalorder %s13837_s16, %s13837_s16 }
 0x314   :  { %p13844_p1 = por %p13843_p0, %p13842_p13 }
 0x316   :  { %493 = dma.hbm_to_vmem [thread:$0]  %s17180_s4, 32, %s491_s15, [#allocation44]  }
 0x317   :  { %p13845_p2 = pnand %p13844_p1, %p13838_p12 }
 0x319   :  { %13848 = shalt.err (!%p13845_p2)
}
 0x31a   :  { %s17181_s18 = sld [smem:[#allocation249_spill]]  ;;  %s15026_s3 = smov [#allocation51]  }
 0x31b   :  { %s530_s29 = sshll.u32 %s15026_s3, 4  ;;  %s15027_s22 = smov [#allocation54]   ;;  %s531_s29 = int_to_ptr.vmem [resolvable:$true] %s530_s29 }
 0x31c   :  { %s551_s23 = sshll.u32 %s15027_s22, 4  ;;  %s13857_s17 = scalar_lea.vmem %s531_s29, 32  ;;  %s552_s23 = int_to_ptr.vmem [resolvable:$true] %s551_s23 }
 0x31d   :  { %p13858_p3 = scmp.ne.s32.totalorder %s531_s29, %s13857_s17  ;;  %p13862_p4 = scmp.lt.s32.totalorder %s531_s29, %s531_s29 }
 0x31e   :  { %p13863_p5 = scmp.lt.s32.totalorder %s13857_s17, %s13857_s17 }
 0x320   :  { %513 = dma.hbm_to_vmem [thread:$0]  %s17181_s18, 32, %s511_s13, [#allocation47]  }
 0x321   :  { %p13864_p6 = por %p13863_p5, %p13862_p4 }
 0x323   :  { %p13865_p7 = pnand %p13864_p6, %p13858_p3 }
 0x325   :  { %13868 = shalt.err (!%p13865_p7)
}
 0x326   :  { %s17182_s8 = sld [smem:[#allocation250_spill]]  ;;  %s13877_s14 = scalar_lea.vmem %s552_s23, 4096 }
 0x327   :  { %p13878_p8 = scmp.ne.s32.totalorder %s552_s23, %s13877_s14  ;;  %p13882_p9 = scmp.lt.s32.totalorder %s552_s23, %s552_s23 }
 0x328   :  { %p13883_p10 = scmp.lt.s32.totalorder %s13877_s14, %s13877_s14 }
 0x32a   :  { %p13884_p11 = por %p13883_p10, %p13882_p9 }
 0x32c   :  { %533 = dma.hbm_to_vmem [thread:$0]  %s17182_s8, 32, %s531_s29, [#allocation50]  }
 0x32d   :  { %p13885_p12 = pnand %p13884_p11, %p13878_p8 }
 0x32f   :  { %13888 = shalt.err (!%p13885_p12)
}
 0x330   :  { %s17183_s21 = sld [smem:[#allocation251_spill]]  ;;  %s15028_s26 = smov [#allocation57]  }
 0x331   :  { %s575_s28 = sshll.u32 %s15028_s26, 4  ;;  %s15029_s30 = smov [#allocation60]   ;;  %s576_s28 = int_to_ptr.vmem [resolvable:$true] %s575_s28 }
 0x332   :  { %s598_s7 = sshll.u32 %s15029_s30, 4  ;;  %s13897_s19 = scalar_lea.vmem %s576_s28, 512  ;;  %s599_s7 = int_to_ptr.vmem [resolvable:$true] %s598_s7 }
 0x333   :  { %p13898_p13 = scmp.ne.s32.totalorder %s576_s28, %s13897_s19  ;;  %p13902_p0 = scmp.lt.s32.totalorder %s576_s28, %s576_s28 }
 0x334   :  { %p13903_p1 = scmp.lt.s32.totalorder %s13897_s19, %s13897_s19 }
 0x336   :  { %557 = dma.hbm_to_vmem [thread:$0]  %s17183_s21, 4096, %s552_s23, [#allocation53], %s14974_s1, %s14974_s1, %s14975_s2  }
 0x337   :  { %p13904_p2 = por %p13903_p1, %p13902_p0 }
 0x339   :  { %p13905_p3 = pnand %p13904_p2, %p13898_p13 }
 0x33b   :  { %13908 = shalt.err (!%p13905_p3)
}
 0x33c   :  { %s17184_s12 = sld [smem:[#allocation252_spill]]  ;;  %s13917_s11 = scalar_lea.vmem %s599_s7, 32 }
 0x33d   :  { %p13918_p4 = scmp.ne.s32.totalorder %s599_s7, %s13917_s11  ;;  %p13922_p5 = scmp.lt.s32.totalorder %s599_s7, %s599_s7 }
 0x33e   :  { %p13923_p6 = scmp.lt.s32.totalorder %s13917_s11, %s13917_s11 }
 0x340   :  { %p13924_p7 = por %p13923_p6, %p13922_p5 }
 0x342   :  { %581 = dma.hbm_to_vmem [thread:$0]  %s17184_s12, 512, %s576_s28, [#allocation56], %s14974_s1, %s14974_s1, %s14975_s2  }
 0x343   :  { %p13925_p8 = pnand %p13924_p7, %p13918_p4 }
 0x345   :  { %13928 = shalt.err (!%p13925_p8)
}
 0x346   :  { %s17185_s0 = sld [smem:[#allocation253_spill]]  ;;  %s15030_s15 = smov [#allocation63]  }
 0x347   :  { %s618_s9 = sshll.u32 %s15030_s15, 4  ;;  %s15031_s13 = smov [#allocation66]   ;;  %s619_s9 = int_to_ptr.vmem [resolvable:$true] %s618_s9 }
 0x348   :  { %s638_s20 = sshll.u32 %s15031_s13, 4  ;;  %s13937_s4 = scalar_lea.vmem %s619_s9, 32  ;;  %s639_s20 = int_to_ptr.vmem [resolvable:$true] %s638_s20 }
 0x349   :  { %p13938_p9 = scmp.ne.s32.totalorder %s619_s9, %s13937_s4  ;;  %p13942_p10 = scmp.lt.s32.totalorder %s619_s9, %s619_s9 }
 0x34a   :  { %p13943_p11 = scmp.lt.s32.totalorder %s13937_s4, %s13937_s4 }
 0x34c   :  { %601 = dma.hbm_to_vmem [thread:$0]  %s17185_s0, 32, %s599_s7, [#allocation59]  }
 0x34d   :  { %p13944_p12 = por %p13943_p11, %p13942_p10 }
 0x34f   :  { %p13945_p13 = pnand %p13944_p12, %p13938_p9 }
 0x351   :  { %13948 = shalt.err (!%p13945_p13)
}
 0x352   :  { %s17186_s16 = sld [smem:[#allocation255_spill]]  ;;  %s13957_s18 = scalar_lea.vmem %s639_s20, 32 }
 0x353   :  { %p13958_p0 = scmp.ne.s32.totalorder %s639_s20, %s13957_s18  ;;  %p13962_p1 = scmp.lt.s32.totalorder %s639_s20, %s639_s20 }
 0x354   :  { %p13963_p2 = scmp.lt.s32.totalorder %s13957_s18, %s13957_s18 }
 0x356   :  { %p13964_p3 = por %p13963_p2, %p13962_p1 }
 0x358   :  { %621 = dma.hbm_to_vmem [thread:$0]  %s17186_s16, 32, %s619_s9, [#allocation62]  }
 0x359   :  { %p13965_p4 = pnand %p13964_p3, %p13958_p0 }
 0x35b   :  { %13968 = shalt.err (!%p13965_p4)
}
 0x35c   :  { %s17187_s3 = sld [smem:[#allocation257_spill]]  ;;  %s15032_s29 = smov [#allocation69]  }
 0x35d   :  { %s657_s22 = sshll.u32 %s15032_s29, 4  ;;  %s15033_s23 = smov [#allocation72]   ;;  %s658_s22 = int_to_ptr.vmem [resolvable:$true] %s657_s22 }
 0x35e   :  { %s681_s17 = sshll.u32 %s15033_s23, 4  ;;  %s13977_s8 = scalar_lea.vmem %s658_s22, 4096  ;;  %s682_s17 = int_to_ptr.vmem [resolvable:$true] %s681_s17 }
 0x35f   :  { %p13978_p5 = scmp.ne.s32.totalorder %s658_s22, %s13977_s8  ;;  %p13982_p6 = scmp.lt.s32.totalorder %s658_s22, %s658_s22 }
 0x360   :  { %p13983_p7 = scmp.lt.s32.totalorder %s13977_s8, %s13977_s8 }
 0x362   :  { %641 = dma.hbm_to_vmem [thread:$0]  %s17187_s3, 32, %s639_s20, [#allocation65]  }
 0x363   :  { %p13984_p8 = por %p13983_p7, %p13982_p6 }
 0x365   :  { %p13985_p9 = pnand %p13984_p8, %p13978_p5 }
 0x367   :  { %13988 = shalt.err (!%p13985_p9)
}
 0x368   :  { %s17188_s14 = sld [smem:[#allocation259_spill]]  ;;  %s13997_s21 = scalar_lea.vmem %s682_s17, 512 }
 0x369   :  { %p13998_p10 = scmp.ne.s32.totalorder %s682_s17, %s13997_s21  ;;  %p14002_p11 = scmp.lt.s32.totalorder %s682_s17, %s682_s17 }
 0x36a   :  { %p14003_p12 = scmp.lt.s32.totalorder %s13997_s21, %s13997_s21 }
 0x36c   :  { %p14004_p13 = por %p14003_p12, %p14002_p11 }
 0x36e   :  { %663 = dma.hbm_to_vmem [thread:$0]  %s17188_s14, 4096, %s658_s22, [#allocation68], %s14974_s1, %s14974_s1, %s14975_s2  }
 0x36f   :  { %p14005_p0 = pnand %p14004_p13, %p13998_p10 }
 0x371   :  { %14008 = shalt.err (!%p14005_p0)
}
 0x372   :  { %s17189_s26 = sld [smem:[#allocation261_spill]]  ;;  %s15034_s28 = smov [#allocation75]  }
 0x373   :  { %s704_s30 = sshll.u32 %s15034_s28, 4  ;;  %s15035_s7 = smov [#allocation78]   ;;  %s705_s30 = int_to_ptr.vmem [resolvable:$true] %s704_s30 }
 0x374   :  { %s724_s19 = sshll.u32 %s15035_s7, 4  ;;  %s14017_s12 = scalar_lea.vmem %s705_s30, 32  ;;  %s725_s19 = int_to_ptr.vmem [resolvable:$true] %s724_s19 }
 0x375   :  { %p14018_p1 = scmp.ne.s32.totalorder %s705_s30, %s14017_s12  ;;  %p14022_p2 = scmp.lt.s32.totalorder %s705_s30, %s705_s30 }
 0x376   :  { %p14023_p3 = scmp.lt.s32.totalorder %s14017_s12, %s14017_s12 }
 0x378   :  { %687 = dma.hbm_to_vmem [thread:$0]  %s17189_s26, 512, %s682_s17, [#allocation71], %s14974_s1, %s14974_s1, %s14975_s2  }
 0x379   :  { %p14024_p4 = por %p14023_p3, %p14022_p2 }
 0x37b   :  { %p14025_p5 = pnand %p14024_p4, %p14018_p1 }
 0x37d   :  { %14028 = shalt.err (!%p14025_p5)
}
 0x37e   :  { %s17190_s11 = sld [smem:[#allocation263_spill]]  ;;  %s14037_s0 = scalar_lea.vmem %s725_s19, 16 }
 0x37f   :  { %p14038_p6 = scmp.ne.s32.totalorder %s725_s19, %s14037_s0  ;;  %s14041_s15 = scalar_lea.vmem %s725_s19, 32 }
 0x380   :  { %p14042_p7 = scmp.lt.s32.totalorder %s725_s19, %s725_s19  ;;  %p14043_p8 = scmp.lt.s32.totalorder %s14041_s15, %s14037_s0 }
 0x382   :  { %p14044_p9 = por %p14043_p8, %p14042_p7 }
 0x384   :  { %707 = dma.hbm_to_vmem [thread:$0]  %s17190_s11, 32, %s705_s30, [#allocation74]  }
 0x385   :  { %p14045_p10 = pnand %p14044_p9, %p14038_p6 }
 0x387   :  { %14048 = shalt.err (!%p14045_p10)
}
 0x388   :  { %s17191_s9 = sld [smem:[#allocation265_spill]]  ;;  %s15036_s13 = smov [#allocation81]  }
 0x389   :  { %s743_s20 = sshll.u32 %s15036_s13, 4  ;;  %s15037_s4 = smov [#allocation84]   ;;  %s744_s20 = int_to_ptr.vmem [resolvable:$true] %s743_s20 }
 0x38a   :  { %s769_s16 = sshll.u32 %s15037_s4, 4  ;;  %s14057_s18 = scalar_lea.vmem %s744_s20, 4096  ;;  %s770_s16 = int_to_ptr.vmem [resolvable:$true] %s769_s16 }
 0x38b   :  { %p14058_p11 = scmp.ne.s32.totalorder %s744_s20, %s14057_s18  ;;  %p14062_p12 = scmp.lt.s32.totalorder %s744_s20, %s744_s20 }
 0x38c   :  { %p14063_p13 = scmp.lt.s32.totalorder %s14057_s18, %s14057_s18 }
 0x38e   :  { %727 = dma.hbm_to_vmem [thread:$0]  %s17191_s9, 16, %s725_s19, [#allocation77]  }
 0x38f   :  { %p14064_p0 = por %p14063_p13, %p14062_p12 }
 0x391   :  { %p14065_p1 = pnand %p14064_p0, %p14058_p11 }
 0x393   :  { %14068 = shalt.err (!%p14065_p1)
}
 0x394   :  { %s17192_s3 = sld [smem:[#allocation267_spill]]  ;;  %s14077_s29 = scalar_lea.vmem %s770_s16, 4096 }
 0x395   :  { %p14078_p2 = scmp.ne.s32.totalorder %s770_s16, %s14077_s29  ;;  %p14082_p3 = scmp.lt.s32.totalorder %s770_s16, %s770_s16 }
 0x396   :  { %p14083_p4 = scmp.lt.s32.totalorder %s14077_s29, %s14077_s29 }
 0x398   :  { %p14084_p5 = por %p14083_p4, %p14082_p3 }
 0x39a   :  { %749 = dma.hbm_to_vmem [thread:$0]  %s17192_s3, 4096, %s744_s20, [#allocation80], %s14996_s27, %s14996_s27, %s14997_s10  }
 0x39b   :  { %p14085_p6 = pnand %p14084_p5, %p14078_p2 }
 0x39d   :  { %14088 = shalt.err (!%p14085_p6)
}
 0x39e   :  { %s17193_s22 = sld [smem:[#allocation270_spill]]  ;;  %s15038_s23 = smov [#allocation87]  }
 0x39f   :  { %s792_s17 = sshll.u32 %s15038_s23, 4  ;;  %s15039_s8 = smov [#allocation90]   ;;  %s793_s17 = int_to_ptr.vmem [resolvable:$true] %s792_s17 }
 0x3a0   :  { %s812_s14 = sshll.u32 %s15039_s8, 4  ;;  %s14097_s21 = scalar_lea.vmem %s793_s17, 32  ;;  %s813_s14 = int_to_ptr.vmem [resolvable:$true] %s812_s14 }
 0x3a1   :  { %p14098_p7 = scmp.ne.s32.totalorder %s793_s17, %s14097_s21  ;;  %p14102_p8 = scmp.lt.s32.totalorder %s793_s17, %s793_s17 }
 0x3a2   :  { %p14103_p9 = scmp.lt.s32.totalorder %s14097_s21, %s14097_s21 }
 0x3a4   :  { %775 = dma.hbm_to_vmem [thread:$0]  %s17193_s22, 4096, %s770_s16, [#allocation83], %s14974_s1, %s14974_s1, %s14975_s2  }
 0x3a5   :  { %p14104_p10 = por %p14103_p9, %p14102_p8 }
 0x3a7   :  { %p14105_p11 = pnand %p14104_p10, %p14098_p7 }
 0x3a9   :  { %14108 = shalt.err (!%p14105_p11)
}
 0x3aa   :  { %s17194_s26 = sld [smem:[#allocation272_spill]]  ;;  %s14117_s28 = scalar_lea.vmem %s813_s14, 32 }
 0x3ab   :  { %p14118_p12 = scmp.ne.s32.totalorder %s813_s14, %s14117_s28  ;;  %p14122_p13 = scmp.lt.s32.totalorder %s813_s14, %s813_s14 }
 0x3ac   :  { %p14123_p0 = scmp.lt.s32.totalorder %s14117_s28, %s14117_s28 }
 0x3ae   :  { %p14124_p1 = por %p14123_p0, %p14122_p13 }
 0x3b0   :  { %795 = dma.hbm_to_vmem [thread:$0]  %s17194_s26, 32, %s793_s17, [#allocation86]  }
 0x3b1   :  { %p14125_p2 = pnand %p14124_p1, %p14118_p12 }
 0x3b3   :  { %14128 = shalt.err (!%p14125_p2)
}
 0x3b4   :  { %s17195_s30 = sld [smem:[#allocation274_spill]]  ;;  %s15040_s7 = smov [#allocation93]  }
 0x3b5   :  { %s832_s19 = sshll.u32 %s15040_s7, 4  ;;  %s15041_s12 = smov [#allocation96]   ;;  %s833_s19 = int_to_ptr.vmem [resolvable:$true] %s832_s19 }
 0x3b6   :  { %s851_s11 = sshll.u32 %s15041_s12, 4  ;;  %s14137_s0 = scalar_lea.vmem %s833_s19, 32  ;;  %s852_s11 = int_to_ptr.vmem [resolvable:$true] %s851_s11 }
 0x3b7   :  { %p14138_p3 = scmp.ne.s32.totalorder %s833_s19, %s14137_s0  ;;  %p14142_p4 = scmp.lt.s32.totalorder %s833_s19, %s833_s19 }
 0x3b8   :  { %p14143_p5 = scmp.lt.s32.totalorder %s14137_s0, %s14137_s0 }
 0x3ba   :  { %815 = dma.hbm_to_vmem [thread:$0]  %s17195_s30, 32, %s813_s14, [#allocation89]  }
 0x3bb   :  { %p14144_p6 = por %p14143_p5, %p14142_p4 }
 0x3bd   :  { %p14145_p7 = pnand %p14144_p6, %p14138_p3 }
 0x3bf   :  { %14148 = shalt.err (!%p14145_p7)
}
 0x3c0   :  { %s17196_s15 = sld [smem:[#allocation276_spill]]  ;;  %s14157_s9 = scalar_lea.vmem %s852_s11, 512 }
 0x3c1   :  { %p14158_p8 = scmp.ne.s32.totalorder %s852_s11, %s14157_s9  ;;  %p14162_p9 = scmp.lt.s32.totalorder %s852_s11, %s852_s11 }
 0x3c2   :  { %p14163_p10 = scmp.lt.s32.totalorder %s14157_s9, %s14157_s9 }
 0x3c4   :  { %p14164_p11 = por %p14163_p10, %p14162_p9 }
 0x3c6   :  { %835 = dma.hbm_to_vmem [thread:$0]  %s17196_s15, 32, %s833_s19, [#allocation92]  }
 0x3c7   :  { %p14165_p12 = pnand %p14164_p11, %p14158_p8 }
 0x3c9   :  { %14168 = shalt.err (!%p14165_p12)
}
 0x3ca   :  { %s17197_s13 = sld [smem:[#allocation278_spill]]  ;;  %s15042_s20 = smov [#allocation99]  }
 0x3cb   :  { %s874_s4 = sshll.u32 %s15042_s20, 4  ;;  %s15043_s16 = smov [#allocation102]   ;;  %s875_s4 = int_to_ptr.vmem [resolvable:$true] %s874_s4 }
 0x3cc   :  { %s894_s18 = sshll.u32 %s15043_s16, 4  ;;  %s14177_s3 = scalar_lea.vmem %s875_s4, 32  ;;  %s895_s18 = int_to_ptr.vmem [resolvable:$true] %s894_s18 }
 0x3cd   :  { %p14178_p13 = scmp.ne.s32.totalorder %s875_s4, %s14177_s3  ;;  %p14182_p0 = scmp.lt.s32.totalorder %s875_s4, %s875_s4 }
 0x3ce   :  { %p14183_p1 = scmp.lt.s32.totalorder %s14177_s3, %s14177_s3 }
 0x3d0   :  { %857 = dma.hbm_to_vmem [thread:$0]  %s17197_s13, 512, %s852_s11, [#allocation95], %s14974_s1, %s14974_s1, %s14975_s2  }
 0x3d1   :  { %p14184_p2 = por %p14183_p1, %p14182_p0 }
 0x3d3   :  { %p14185_p3 = pnand %p14184_p2, %p14178_p13 }
 0x3d5   :  { %14188 = shalt.err (!%p14185_p3)
}
 0x3d6   :  { %s17198_s29 = sld [smem:[#allocation280_spill]]  ;;  %s14197_s22 = scalar_lea.vmem %s895_s18, 32 }
 0x3d7   :  { %p14198_p4 = scmp.ne.s32.totalorder %s895_s18, %s14197_s22  ;;  %p14202_p5 = scmp.lt.s32.totalorder %s895_s18, %s895_s18 }
 0x3d8   :  { %p14203_p6 = scmp.lt.s32.totalorder %s14197_s22, %s14197_s22 }
 0x3da   :  { %p14204_p7 = por %p14203_p6, %p14202_p5 }
 0x3dc   :  { %877 = dma.hbm_to_vmem [thread:$0]  %s17198_s29, 32, %s875_s4, [#allocation98]  }
 0x3dd   :  { %p14205_p8 = pnand %p14204_p7, %p14198_p4 }
 0x3df   :  { %14208 = shalt.err (!%p14205_p8)
}
 0x3e0   :  { %s17199_s23 = sld [smem:[#allocation282_spill]]  ;;  %s15044_s17 = smov [#allocation105]  }
 0x3e1   :  { %s914_s8 = sshll.u32 %s15044_s17, 4  ;;  %s15045_s14 = smov [#allocation108]   ;;  %s915_s8 = int_to_ptr.vmem [resolvable:$true] %s914_s8 }
 0x3e2   :  { %s933_s21 = sshll.u32 %s15045_s14, 4  ;;  %s14217_s26 = scalar_lea.vmem %s915_s8, 32  ;;  %s934_s21 = int_to_ptr.vmem [resolvable:$true] %s933_s21 }
 0x3e3   :  { %p14218_p9 = scmp.ne.s32.totalorder %s915_s8, %s14217_s26  ;;  %p14222_p10 = scmp.lt.s32.totalorder %s915_s8, %s915_s8 }
 0x3e4   :  { %p14223_p11 = scmp.lt.s32.totalorder %s14217_s26, %s14217_s26 }
 0x3e6   :  { %897 = dma.hbm_to_vmem [thread:$0]  %s17199_s23, 32, %s895_s18, [#allocation101]  }
 0x3e7   :  { %p14224_p12 = por %p14223_p11, %p14222_p10 }
 0x3e9   :  { %p14225_p13 = pnand %p14224_p12, %p14218_p9 }
 0x3eb   :  { %14228 = shalt.err (!%p14225_p13)
}
 0x3ec   :  { %s17200_s28 = sld [smem:[#allocation284_spill]]  ;;  %s14237_s30 = scalar_lea.vmem %s934_s21, 512 }
 0x3ed   :  { %p14238_p0 = scmp.ne.s32.totalorder %s934_s21, %s14237_s30  ;;  %p14242_p1 = scmp.lt.s32.totalorder %s934_s21, %s934_s21 }
 0x3ee   :  { %p14243_p2 = scmp.lt.s32.totalorder %s14237_s30, %s14237_s30 }
 0x3f0   :  { %p14244_p3 = por %p14243_p2, %p14242_p1 }
 0x3f2   :  { %917 = dma.hbm_to_vmem [thread:$0]  %s17200_s28, 32, %s915_s8, [#allocation104]  }
 0x3f3   :  { %p14245_p4 = pnand %p14244_p3, %p14238_p0 }
 0x3f5   :  { %14248 = shalt.err (!%p14245_p4)
}
 0x3f6   :  { %s17201_s7 = sld [smem:[#allocation286_spill]]  ;;  %s15046_s19 = smov [#allocation111]  }
 0x3f7   :  { %s957_s12 = sshll.u32 %s15046_s19, 4  ;;  %s15047_s11 = smov [#allocation114]   ;;  %s958_s12 = int_to_ptr.vmem [resolvable:$true] %s957_s12 }
 0x3f8   :  { %s980_s0 = sshll.u32 %s15047_s11, 4  ;;  %s14257_s15 = scalar_lea.vmem %s958_s12, 1024  ;;  %s981_s0 = int_to_ptr.vmem [resolvable:$true] %s980_s0 }
 0x3f9   :  { %p14258_p5 = scmp.ne.s32.totalorder %s958_s12, %s14257_s15  ;;  %p14262_p6 = scmp.lt.s32.totalorder %s958_s12, %s958_s12 }
 0x3fa   :  { %p14263_p7 = scmp.lt.s32.totalorder %s14257_s15, %s14257_s15 }
 0x3fc   :  { %939 = dma.hbm_to_vmem [thread:$0]  %s17201_s7, 512, %s934_s21, [#allocation107], %s14974_s1, %s14974_s1, %s14975_s2  }
 0x3fd   :  { %p14264_p8 = por %p14263_p7, %p14262_p6 }
 0x3ff   :  { %p14265_p9 = pnand %p14264_p8, %p14258_p5 }
 0x401   :  { %14268 = shalt.err (!%p14265_p9)
}
 0x402   :  { %s17202_s9 = sld [smem:[#allocation289_spill]]  ;;  %s14277_s13 = scalar_lea.vmem %s981_s0, 16 }
 0x403   :  { %p14278_p10 = scmp.ne.s32.totalorder %s981_s0, %s14277_s13  ;;  %s14281_s1 = scalar_lea.vmem %s981_s0, 32 }
 0x404   :  { %p14282_p11 = scmp.lt.s32.totalorder %s981_s0, %s981_s0  ;;  %p14283_p12 = scmp.lt.s32.totalorder %s14281_s1, %s14277_s13 }
 0x406   :  { %p14284_p13 = por %p14283_p12, %p14282_p11 }
 0x408   :  { %963 = dma.hbm_to_vmem [thread:$0]  %s17202_s9, 1024, %s958_s12, [#allocation110], %s14996_s27, %s14996_s27, %s14997_s10  }
 0x409   :  { %p14285_p0 = pnand %p14284_p13, %p14278_p10 }
 0x40b   :  { %14288 = shalt.err (!%p14285_p0)
}
 0x40c   :  { %s17203_s2 = sld [smem:[#allocation291_spill]]  ;;  %s15048_s20 = smov [#allocation117]  }
 0x40d   :  { %s1000_s4 = sshll.u32 %s15048_s20, 4  ;;  %s15049_s16 = smov [#allocation120]   ;;  %s1001_s4 = int_to_ptr.vmem [resolvable:$true] %s1000_s4 }
 0x40e   :  { %s1020_s18 = sshll.u32 %s15049_s16, 4  ;;  %s14297_s3 = scalar_lea.vmem %s1001_s4, 16  ;;  %s1021_s18 = int_to_ptr.vmem [resolvable:$true] %s1020_s18 }
 0x40f   :  { %p14298_p1 = scmp.ne.s32.totalorder %s1001_s4, %s14297_s3  ;;  %s14301_s29 = scalar_lea.vmem %s1001_s4, 32 }
 0x410   :  { %p14302_p2 = scmp.lt.s32.totalorder %s1001_s4, %s1001_s4  ;;  %p14303_p3 = scmp.lt.s32.totalorder %s14301_s29, %s14297_s3 }
 0x412   :  { %983 = dma.hbm_to_vmem [thread:$0]  %s17203_s2, 16, %s981_s0, [#allocation113]  }
 0x413   :  { %p14304_p4 = por %p14303_p3, %p14302_p2 }
 0x415   :  { %p14305_p5 = pnand %p14304_p4, %p14298_p1 }
 0x417   :  { %14308 = shalt.err (!%p14305_p5)
}
 0x418   :  { %s17204_s22 = sld [smem:[#allocation293_spill]]  ;;  %s14317_s23 = scalar_lea.vmem %s1021_s18, 16 }
 0x419   :  { %p14318_p6 = scmp.ne.s32.totalorder %s1021_s18, %s14317_s23  ;;  %s14321_s17 = scalar_lea.vmem %s1021_s18, 32 }
 0x41a   :  { %p14322_p7 = scmp.lt.s32.totalorder %s1021_s18, %s1021_s18  ;;  %p14323_p8 = scmp.lt.s32.totalorder %s14321_s17, %s14317_s23 }
 0x41c   :  { %p14324_p9 = por %p14323_p8, %p14322_p7 }
 0x41e   :  { %1003 = dma.hbm_to_vmem [thread:$0]  %s17204_s22, 16, %s1001_s4, [#allocation116]  }
 0x41f   :  { %p14325_p10 = pnand %p14324_p9, %p14318_p6 }
 0x421   :  { %14328 = shalt.err (!%p14325_p10)
}
 0x422   :  { %s17205_s8 = sld [smem:[#allocation295_spill]]  ;;  %s15050_s14 = smov [#allocation123]  }
 0x423   :  { %s1040_s21 = sshll.u32 %s15050_s14, 4  ;;  %s15051_s26 = smov [#allocation126]   ;;  %s1041_s21 = int_to_ptr.vmem [resolvable:$true] %s1040_s21 }
 0x424   :  { %s1059_s28 = sshll.u32 %s15051_s26, 4  ;;  %s14337_s30 = scalar_lea.vmem %s1041_s21, 16  ;;  %s1060_s28 = int_to_ptr.vmem [resolvable:$true] %s1059_s28 }
 0x425   :  { %p14338_p11 = scmp.ne.s32.totalorder %s1041_s21, %s14337_s30  ;;  %s14341_s7 = scalar_lea.vmem %s1041_s21, 32 }
 0x426   :  { %p14342_p12 = scmp.lt.s32.totalorder %s1041_s21, %s1041_s21  ;;  %p14343_p13 = scmp.lt.s32.totalorder %s14341_s7, %s14337_s30 }
 0x428   :  { %1023 = dma.hbm_to_vmem [thread:$0]  %s17205_s8, 16, %s1021_s18, [#allocation119]  }
 0x429   :  { %p14344_p0 = por %p14343_p13, %p14342_p12 }
 0x42b   :  { %p14345_p1 = pnand %p14344_p0, %p14338_p11 }
 0x42d   :  { %14348 = shalt.err (!%p14345_p1)
}
 0x42e   :  { %s17206_s19 = sld [smem:[#allocation297_spill]]  ;;  %s14357_s12 = scalar_lea.vmem %s1060_s28, 256 }
 0x42f   :  { %p14358_p2 = scmp.ne.s32.totalorder %s1060_s28, %s14357_s12  ;;  %p14362_p3 = scmp.lt.s32.totalorder %s1060_s28, %s1060_s28 }
 0x430   :  { %p14363_p4 = scmp.lt.s32.totalorder %s14357_s12, %s14357_s12 }
 0x432   :  { %p14364_p5 = por %p14363_p4, %p14362_p3 }
 0x434   :  { %1043 = dma.hbm_to_vmem [thread:$0]  %s17206_s19, 16, %s1041_s21, [#allocation122]  }
 0x435   :  { %p14365_p6 = pnand %p14364_p5, %p14358_p2 }
 0x437   :  { %14368 = shalt.err (!%p14365_p6)
}
 0x438   :  { %s17207_s11 = sld [smem:[#allocation299_spill]]  ;;  %s15052_s0 = smov [#allocation129]  }
 0x439   :  { %s1082_s15 = sshll.u32 %s15052_s0, 4  ;;  %s15053_s9 = smov [#allocation132]   ;;  %s1083_s15 = int_to_ptr.vmem [resolvable:$true] %s1082_s15 }
 0x43a   :  { %s1102_s13 = sshll.u32 %s15053_s9, 4  ;;  %s14377_s1 = scalar_lea.vmem %s1083_s15, 16  ;;  %s1103_s13 = int_to_ptr.vmem [resolvable:$true] %s1102_s13 }
 0x43b   :  { %p14378_p7 = scmp.ne.s32.totalorder %s1083_s15, %s14377_s1  ;;  %s14381_s2 = scalar_lea.vmem %s1083_s15, 32 }
 0x43c   :  { %p14382_p8 = scmp.lt.s32.totalorder %s1083_s15, %s1083_s15  ;;  %p14383_p9 = scmp.lt.s32.totalorder %s14381_s2, %s14377_s1 }
 0x43e   :  { %1065 = dma.hbm_to_vmem [thread:$0]  %s17207_s11, 256, %s1060_s28, [#allocation125], %s14996_s27, %s14996_s27, %s14997_s10  }
 0x43f   :  { %p14384_p10 = por %p14383_p9, %p14382_p8 }
 0x441   :  { %p14385_p11 = pnand %p14384_p10, %p14378_p7 }
 0x443   :  { %14388 = shalt.err (!%p14385_p11)
}
 0x444   :  { %s17208_s20 = sld [smem:[#allocation301_spill]]  ;;  %s14397_s4 = scalar_lea.vmem %s1103_s13, 16 }
 0x445   :  { %p14398_p12 = scmp.ne.s32.totalorder %s1103_s13, %s14397_s4  ;;  %s14401_s16 = scalar_lea.vmem %s1103_s13, 32 }
 0x446   :  { %p14402_p13 = scmp.lt.s32.totalorder %s1103_s13, %s1103_s13  ;;  %p14403_p0 = scmp.lt.s32.totalorder %s14401_s16, %s14397_s4 }
 0x448   :  { %p14404_p1 = por %p14403_p0, %p14402_p13 }
 0x44a   :  { %1085 = dma.hbm_to_vmem [thread:$0]  %s17208_s20, 16, %s1083_s15, [#allocation128]  }
 0x44b   :  { %p14405_p2 = pnand %p14404_p1, %p14398_p12 }
 0x44d   :  { %14408 = shalt.err (!%p14405_p2)
}
 0x44e   :  { %s17209_s18 = sld [smem:[#allocation303_spill]]  ;;  %s15054_s3 = smov [#allocation135]  }
 0x44f   :  { %s1122_s29 = sshll.u32 %s15054_s3, 4  ;;  %s15055_s22 = smov [#allocation138]   ;;  %s1123_s29 = int_to_ptr.vmem [resolvable:$true] %s1122_s29 }
 0x450   :  { %s1141_s23 = sshll.u32 %s15055_s22, 4  ;;  %s14417_s17 = scalar_lea.vmem %s1123_s29, 16  ;;  %s1142_s23 = int_to_ptr.vmem [resolvable:$true] %s1141_s23 }
 0x451   :  { %p14418_p3 = scmp.ne.s32.totalorder %s1123_s29, %s14417_s17  ;;  %s14421_s8 = scalar_lea.vmem %s1123_s29, 32 }
 0x452   :  { %p14422_p4 = scmp.lt.s32.totalorder %s1123_s29, %s1123_s29  ;;  %p14423_p5 = scmp.lt.s32.totalorder %s14421_s8, %s14417_s17 }
 0x454   :  { %1105 = dma.hbm_to_vmem [thread:$0]  %s17209_s18, 16, %s1103_s13, [#allocation131]  }
 0x455   :  { %p14424_p6 = por %p14423_p5, %p14422_p4 }
 0x457   :  { %p14425_p7 = pnand %p14424_p6, %p14418_p3 }
 0x459   :  { %14428 = shalt.err (!%p14425_p7)
}
 0x45a   :  { %s17210_s14 = sld [smem:[#allocation305_spill]]  ;;  %s14437_s21 = scalar_lea.vmem %s1142_s23, 256 }
 0x45b   :  { %p14438_p8 = scmp.ne.s32.totalorder %s1142_s23, %s14437_s21  ;;  %p14442_p9 = scmp.lt.s32.totalorder %s1142_s23, %s1142_s23 }
 0x45c   :  { %p14443_p10 = scmp.lt.s32.totalorder %s14437_s21, %s14437_s21 }
 0x45e   :  { %p14444_p11 = por %p14443_p10, %p14442_p9 }
 0x460   :  { %1125 = dma.hbm_to_vmem [thread:$0]  %s17210_s14, 16, %s1123_s29, [#allocation134]  }
 0x461   :  { %p14445_p12 = pnand %p14444_p11, %p14438_p8 }
 0x463   :  { %14448 = shalt.err (!%p14445_p12)
}
 0x464   :  { %s17211_s26 = sld [smem:[#allocation307_spill]]  ;;  %s15056_s28 = smov [#allocation139]  }
 0x465   :  { %s1154_s30 = sshll.u32 %s15056_s28, 4  ;;  %s1155_s30 = int_to_ptr.vmem [resolvable:$true] %s1154_s30 }
 0x466   :  { %s14457_s7 = scalar_lea.vmem %s1155_s30, 32  ;;  %p14462_p0 = scmp.lt.s32.totalorder %s1155_s30, %s1155_s30 }
 0x467   :  { %p14458_p13 = scmp.ne.s32.totalorder %s1155_s30, %s14457_s7  ;;  %p14463_p1 = scmp.lt.s32.totalorder %s14457_s7, %s14457_s7 }
 0x469   :  { %p14464_p2 = por %p14463_p1, %p14462_p0 }
 0x46a   :  { %1147 = dma.hbm_to_vmem [thread:$0]  %s17211_s26, 256, %s1142_s23, [#allocation137], %s14996_s27, %s14996_s27, %s14997_s10  }
 0x46b   :  { %p14465_p3 = pnand %p14464_p2, %p14458_p13 }
 0x46d   :  { %14468 = shalt.err (!%p14465_p3)
}
 0x46e   :  { %s17212_s19 = sld [smem:[#allocation308_spill]] }
 0x474   :  { %1157 = dma.hbm_to_vmem [thread:$0]  %s17212_s19, 32, %s1155_s30, [#allocation140]  }
 0x475   :  { %14749 = dma.done.wait [#allocation18], 32  }
 0x476   :  { %14750 = vsyncadd [#allocation18], 4294967264 }
 0x477   :  { %14751 = dma.done.wait [#allocation20], 2080  }
 0x478   :  { %14752 = vsyncadd [#allocation20], 4294965216 }
 0x479   :  { %14753 = dma.done.wait [#allocation23], 2560  }
 0x47a   :  { %14754 = vsyncadd [#allocation23], 4294964736 }
 0x47b   :  { %14755 = dma.done.wait [#allocation26], 64  }
 0x47c   :  { %14756 = vsyncadd [#allocation26], 4294967232 }
 0x47d   :  { %14757 = dma.done.wait [#allocation29], 64  }
 0x47e   :  { %14758 = vsyncadd [#allocation29], 4294967232 }
 0x47f   :  { %14759 = dma.done.wait [#allocation32], 64  }
 0x480   :  { %14760 = vsyncadd [#allocation32], 4294967232 }
 0x481   :  { %14761 = dma.done.wait [#allocation35], 4128  }
 0x482   :  { %14762 = vsyncadd [#allocation35], 4294963168 }
 0x483   :  { %14763 = dma.done.wait [#allocation38], 4608  }
 0x484   :  { %14764 = vsyncadd [#allocation38], 4294962688 }
 0x485   :  { %14765 = dma.done.wait [#allocation41], 64  }
 0x486   :  { %14766 = vsyncadd [#allocation41], 4294967232 }
 0x487   :  { %14767 = dma.done.wait [#allocation44], 64  }
 0x488   :  { %14768 = vsyncadd [#allocation44], 4294967232 }
 0x489   :  { %14769 = dma.done.wait [#allocation47], 64  }
 0x48a   :  { %14770 = vsyncadd [#allocation47], 4294967232 }
 0x48b   :  { %14771 = dma.done.wait [#allocation50], 64  }
 0x48c   :  { %14772 = vsyncadd [#allocation50], 4294967232 }
 0x48d   :  { %14773 = dma.done.wait [#allocation53], 6144  }
 0x48e   :  { %14774 = vsyncadd [#allocation53], 4294961152 }
 0x48f   :  { %14775 = dma.done.wait [#allocation56], 2560  }
 0x490   :  { %14776 = vsyncadd [#allocation56], 4294964736 }
 0x491   :  { %14777 = dma.done.wait [#allocation59], 64  }
 0x492   :  { %14778 = vsyncadd [#allocation59], 4294967232 }
 0x493   :  { %14779 = dma.done.wait [#allocation62], 64  }
 0x494   :  { %14780 = vsyncadd [#allocation62], 4294967232 }
 0x495   :  { %14781 = dma.done.wait [#allocation65], 64  }
 0x496   :  { %14782 = vsyncadd [#allocation65], 4294967232 }
 0x497   :  { %14783 = dma.done.wait [#allocation68], 4128  }
 0x498   :  { %14784 = vsyncadd [#allocation68], 4294963168 }
 0x499   :  { %14785 = dma.done.wait [#allocation71], 4608  }
 0x49a   :  { %14786 = vsyncadd [#allocation71], 4294962688 }
 0x49b   :  { %14787 = dma.done.wait [#allocation74], 64  }
 0x49c   :  { %14788 = vsyncadd [#allocation74], 4294967232 }
 0x49d   :  { %14789 = dma.done.wait [#allocation77], 48  }
 0x49e   :  { %14790 = vsyncadd [#allocation77], 4294967248 }
 0x49f   :  { %14791 = dma.done.wait [#allocation80], 4112  }
 0x4a0   :  { %14792 = vsyncadd [#allocation80], 4294963184 }
 0x4a1   :  { %14793 = dma.done.wait [#allocation83], 5120  }
 0x4a2   :  { %14794 = vsyncadd [#allocation83], 4294962176 }
 0x4a3   :  { %14795 = dma.done.wait [#allocation86], 64  }
 0x4a4   :  { %14796 = vsyncadd [#allocation86], 4294967232 }
 0x4a5   :  { %14797 = dma.done.wait [#allocation89], 64  }
 0x4a6   :  { %14798 = vsyncadd [#allocation89], 4294967232 }
 0x4a7   :  { %14799 = dma.done.wait [#allocation92], 64  }
 0x4a8   :  { %14800 = vsyncadd [#allocation92], 4294967232 }
 0x4a9   :  { %14801 = dma.done.wait [#allocation95], 544  }
 0x4aa   :  { %14802 = vsyncadd [#allocation95], 4294966752 }
 0x4ab   :  { %14803 = dma.done.wait [#allocation98], 64  }
 0x4ac   :  { %14804 = vsyncadd [#allocation98], 4294967232 }
 0x4ad   :  { %14805 = dma.done.wait [#allocation101], 64  }
 0x4ae   :  { %14806 = vsyncadd [#allocation101], 4294967232 }
 0x4af   :  { %14807 = dma.done.wait [#allocation104], 64  }
 0x4b0   :  { %14808 = vsyncadd [#allocation104], 4294967232 }
 0x4b1   :  { %14809 = dma.done.wait [#allocation107], 544  }
 0x4b2   :  { %14810 = vsyncadd [#allocation107], 4294966752 }
 0x4b3   :  { %14811 = dma.done.wait [#allocation110], 1040  }
 0x4b4   :  { %14812 = vsyncadd [#allocation110], 4294966256 }
 0x4b5   :  { %14813 = dma.done.wait [#allocation113], 32  }
 0x4b6   :  { %14814 = vsyncadd [#allocation113], 4294967264 }
 0x4b7   :  { %14815 = dma.done.wait [#allocation116], 32  }
 0x4b8   :  { %14816 = vsyncadd [#allocation116], 4294967264 }
 0x4b9   :  { %14817 = dma.done.wait [#allocation119], 32  }
 0x4ba   :  { %14818 = vsyncadd [#allocation119], 4294967264 }
 0x4bb   :  { %14819 = dma.done.wait [#allocation122], 32  }
 0x4bc   :  { %14820 = vsyncadd [#allocation122], 4294967264 }
 0x4bd   :  { %14821 = dma.done.wait [#allocation125], 272  }
 0x4be   :  { %14822 = vsyncadd [#allocation125], 4294967024 }
 0x4bf   :  { %14823 = dma.done.wait [#allocation128], 32  }
 0x4c0   :  { %14824 = vsyncadd [#allocation128], 4294967264 }
 0x4c1   :  { %14825 = dma.done.wait [#allocation131], 32  }
 0x4c2   :  { %14826 = vsyncadd [#allocation131], 4294967264 }
 0x4c3   :  { %14827 = dma.done.wait [#allocation134], 32  }
 0x4c4   :  { %14828 = vsyncadd [#allocation134], 4294967264 }
 0x4c5   :  { %14829 = dma.done.wait [#allocation137], 272  }
 0x4c6   :  { %14830 = vsyncadd [#allocation137], 4294967024 }
 0x4c7   :  { %14831 = dma.done.wait [#allocation140], 32  }
 0x4c8   :  { %14832 = vsyncadd [#allocation140], 4294967264  ;;  %s17213_s27 = sld [smem:[#allocation287_spill]]  ;;  %v15057_v0 = vmov 0.0   ;;  %vm15058_vm0 = vmmov 0   ;;  %vm1597_vm1 = vcmask 261120  }
 0x4c9   :  { %s17214_s10 = sld [smem:[#allocation229_spill]]  ;;  %11167 = vmatprep.subr.bf16.mxu0 %v15057_v0  ;;  %11171 = vmatprep.mubr.msk.bf16.mxu0 %vm15058_vm0, %v15057_v0  ;;  %v11588_v7 = vld [vmem:[#allocation111 + $0x38] sm:$0xff]   ;;  %v11590_v9 = vld [vmem:[#allocation111 + $0x30] sm:$0xff]   ;;  %v11592_v11 = vld [vmem:[#allocation111 + $0x28] sm:$0xff]   ;;  %s15060_s3 = smov [#allocation2]  }
 0x4ca   :  { %s17215_s12 = sld [smem:[#allocation268_spill]]  ;;  %11175 = vmatprep.subr.bf16.mxu1 %v15057_v0  ;;  %11191 = vmatprep.mubr.msk.bf16.mxu1 %vm15058_vm0, %v15057_v0  ;;  %v11594_v13 = vld [vmem:[#allocation111 + $0x20] sm:$0xff]   ;;  %v11596_v15 = vld [vmem:[#allocation111 + $0x18] sm:$0xff]   ;;  %v11598_v17 = vld [vmem:[#allocation111 + $0x10] sm:$0xff]   ;;  %s1412_s29 = sshll.u32 %s15060_s3, 4  ;;  %s1413_s29 = int_to_ptr.vmem [resolvable:$true] %s1412_s29 }
 0x4cb   :  { %11176 = vmatpush3.bf16.msra.mxu1 %v11588_v7  ;;  %s17216_s11 = sld [smem:[#allocation227_spill]]  ;;  %v11601_v20 = vld [vmem:[#allocation81 + $0xf8] sm:$0xff]   ;;  %v11600_v21 = vld [vmem:[#allocation111 + $0x8] sm:$0xff]   ;;  %v11604_v24 = vld [vmem:[#allocation81 + $0xf0] sm:$0xff]   ;;  %s15061_s22 = smov [#allocation3]  }
 0x4cc   :  { %11177 = vmatprep.subr.bf16.mxu1 %v15057_v0  ;;  %v11602_v22 = vld [vmem:[#allocation81 + $0xb8] sm:$0xff]   ;;  %v11605_v27 = vld [vmem:[#allocation81 + $0xb0] sm:$0xff]   ;;  %v11608_v28 = vld [vmem:[#allocation81 + $0xe8] sm:$0xff]   ;;  %s17217_s0 = sld [smem:[#allocation228_spill]]  ;;  %s1424_s23 = sshll.u32 %s15061_s22, 4  ;;  %s1425_s23 = int_to_ptr.vmem [resolvable:$true] %s1424_s23 }
 0x4cd   :  { %v11603_v25 = vld [vmem:[#allocation111] sm:$0xff]   ;;  %v11609_v29 = vld [vmem:[#allocation81 + $0xa8] sm:$0xff]   ;;  %v11620_v34 = vld [vmem:[#allocation81 + $0xd0] sm:$0xff]   ;;  %s17218_s15 = sld [smem:[#allocation232_spill]]  ;;  %s14477_s17 = scalar_lea.vmem %s1413_s29, 4096 }
 0x4ce   :  { %v11584_v1 = vld [vmem:[%s17213_s27 + $0x8] sm:$0xff]   ;;  %v11585_v2 = vld [vmem:[%s17213_s27] sm:$0xff]   ;;  %v11606_v26 = vld [vmem:[#allocation81 + $0x78] sm:$0xff]   ;;  %s17219_s9 = sld [smem:[#allocation240_spill]]  ;;  %p14478_p4 = scmp.ne.s32.totalorder %s1413_s29, %s14477_s17 }
 0x4cf   :  { %11168 = vmatpush3.bf16.msra.mxu0 %v11584_v1  ;;  %v1572_v3 = vld [vmem:[%s17214_s10] sm:$0xff]  ;;  %11178 = vmatpush3.bf16.msra.mxu1 %v11590_v9  ;;  %v11616_v32 = vld [vmem:[#allocation81 + $0xd8] sm:$0xff]   ;;  %v11621_v35 = vld [vmem:[#allocation81 + $0x90] sm:$0xff]   ;;  %s17220_s13 = sld [smem:[#allocation234_spill]]  ;;  %p14482_p5 = scmp.lt.s32.totalorder %s1413_s29, %s1413_s29 }
 0x4d0   :  { %11169 = vmatprep.subr.bf16.mxu0 %v15057_v0  ;;  %v1573_v4 = vpack.c.bf16 %v1572_v3, %v1572_v3  ;;  %v11586_v5 = vld [vmem:[%s17215_s12 + $0x38] sm:$0xff]   ;;  %v11587_v6 = vld [vmem:[%s17215_s12 + $0x30] sm:$0xff]   ;;  %v11589_v8 = vld [vmem:[%s17215_s12 + $0x28] sm:$0xff]   ;;  %11179 = vmatprep.subr.bf16.mxu1 %v15057_v0  ;;  %s17221_s1 = sld [smem:[#allocation237_spill]]  ;;  %p14483_p6 = scmp.lt.s32.totalorder %s14477_s17, %s14477_s17 }
 0x4d1   :  { %v11591_v10 = vld [vmem:[%s17215_s12 + $0x20] sm:$0xff]   ;;  %v11593_v12 = vld [vmem:[%s17215_s12 + $0x18] sm:$0xff]   ;;  %v11595_v14 = vld [vmem:[%s17215_s12 + $0x10] sm:$0xff]   ;;  %s17222_s2 = sld [smem:[#allocation233_spill]] }
 0x4d2   :  { %v11597_v16 = vld [vmem:[%s17215_s12 + $0x8] sm:$0xff]   ;;  %v11599_v18 = vld [vmem:[%s17215_s12] sm:$0xff]   ;;  %v11617_v33 = vld [vmem:[#allocation81 + $0x98] sm:$0xff]   ;;  %s17223_s20 = sld [smem:[#allocation235_spill]]  ;;  %p14484_p7 = por %p14483_p6, %p14482_p5 }
 0x4d3   :  { %11170 = vmatpush3.bf16.msra.mxu0 %v11585_v2  ;;  %11180 = vmatpush3.bf16.msra.mxu1 %v11592_v11  ;;  %v1775_v19 = vld [vmem:[%s17216_s11] sm:$0xff]  ;;  %v1891_v40 = vld [vmem:[%s17217_s0 + $0x18] sm:$0xff]  ;;  %v1890_v42 = vld [vmem:[%s17217_s0 + $0x10] sm:$0xff]  ;;  %s17224_s4 = sld [smem:[#allocation236_spill]] }
 0x4d4   :  { %11195 = vmatprep.subr.bf16.mxu0 %v15057_v0  ;;  %11181 = vmatprep.subr.bf16.mxu1 %v15057_v0  ;;  %v1776_v23 = vpack.c.bf16 %v1775_v19, %v1775_v19  ;;  %v11612_v30 = vld [vmem:[#allocation81 + $0xe0] sm:$0xff]   ;;  %v11624_v36 = vld [vmem:[#allocation81 + $0xc8] sm:$0xff]   ;;  %v1895_v41 = vpack.c.bf16 %v1891_v40, %v1891_v40  ;;  %v1894_v43 = vpack.c.bf16 %v1890_v42, %v1890_v42  ;;  %v10156_v44 = vld [vmem:[#allocation109] ss:$0 sm:$0xff]  ;;  %s17225_s16 = sld [smem:[#allocation230_spill]]  ;;  %p14485_p8 = pnand %p14484_p7, %p14478_p4 }
 0x4d5   :  { %v11613_v31 = vld [vmem:[#allocation81 + $0xa0] sm:$0xff]   ;;  %v11625_v37 = vld [vmem:[#allocation81 + $0x88] sm:$0xff]   ;;  %v11607_v61 = vld [vmem:[#allocation81 + $0x38] sm:$0xff]   ;;  %s17226_s18 = sld [smem:[#allocation231_spill]] }
 0x4d6   :  { %11172 = vmatmul.mubr.msk.bf16.vlgmr.msra.gmra.mxu0 %vm1597_vm1, %v1573_v4  ;;  %v11628_v38 = vld [vmem:[#allocation81 + $0xc0] sm:$0xff]   ;;  %v1889_v58 = vld [vmem:[%s17217_s0 + $0x8] sm:$0xff]  ;;  %v11622_v7 = vld [vmem:[#allocation81 + $0x58] sm:$0xff]  }
 0x4d7   :  { %11211 = vmatprep.mubr.msk.bf16.mxu0 %vm15058_vm0, %v15057_v0  ;;  %11196 = vmatpush3.bf16.msra.mxu0 %v11586_v5  ;;  %v11629_v39 = vld [vmem:[#allocation81 + $0x80] sm:$0xff]   ;;  %v1893_v62 = vpack.c.bf16 %v1889_v58, %v1889_v58  ;;  %v11610_v1 = vld [vmem:[#allocation81 + $0x70] sm:$0xff]   ;;  %v11614_v3 = vld [vmem:[#allocation81 + $0x68] sm:$0xff]  }
 0x4d8   :  { %11197 = vmatprep.subr.bf16.mxu0 %v15057_v0  ;;  %11182 = vmatpush3.bf16.msra.mxu1 %v11594_v13  ;;  %v11611_v2 = vld [vmem:[#allocation81 + $0x30] sm:$0xff]   ;;  %v11615_v4 = vld [vmem:[#allocation81 + $0x28] sm:$0xff]   ;;  %v11618_v5 = vld [vmem:[#allocation81 + $0x60] sm:$0xff]  }
 0x4d9   :  { %11183 = vmatprep.subr.bf16.mxu1 %v15057_v0  ;;  %v11626_v9 = vld [vmem:[#allocation81 + $0x50] sm:$0xff]   ;;  %v11630_v11 = vld [vmem:[#allocation81 + $0x48] sm:$0xff]   ;;  %v11632_v13 = vld [vmem:[#allocation81 + $0x40] sm:$0xff]  }
 0x4da   :  { %v11657_v40 = vld [vmem:[#allocation21 + $0x4] ss:$8 sps:$4 sm:$0xff]   ;;  %v11660_v42 = vld [vmem:[#allocation24 + $0x14] ss:$8 sps:$4 sm:$0xff]  }
 0x4db   :  { %11198 = vmatpush3.bf16.msra.mxu0 %v11587_v6  ;;  %v11619_v6 = vld [vmem:[#allocation81 + $0x20] sm:$0xff]  }
 0x4dc   :  { %11199 = vmatprep.subr.bf16.mxu0 %v15057_v0  ;;  %11184 = vmatpush3.bf16.msra.mxu1 %v11596_v15  ;;  %v1888_v15 = vld [vmem:[%s17217_s0] sm:$0xff] }
 0x4dd   :  { %11185 = vmatprep.subr.bf16.mxu1 %v15057_v0  ;;  %v15866_v58 = vld [vmem:[#allocation84 + $0x4] ss:$8 sps:$4 sm:$0xff]  }
 0x4df   :  { %11200 = vmatpush3.bf16.msra.mxu0 %v11589_v8  ;;  %v11623_v8 = vld [vmem:[#allocation81 + $0x18] sm:$0xff]  }
 0x4e0   :  { %11201 = vmatprep.subr.bf16.mxu0 %v15057_v0  ;;  %11186 = vmatpush3.bf16.msra.mxu1 %v11598_v17 }
 0x4e1   :  { %11187 = vmatprep.subr.bf16.mxu1 %v15057_v0 }
 0x4e3   :  { %11202 = vmatpush3.bf16.msra.mxu0 %v11591_v10  ;;  %v11627_v10 = vld [vmem:[#allocation81 + $0x10] sm:$0xff]  }
 0x4e4   :  { %11203 = vmatprep.subr.bf16.mxu0 %v15057_v0  ;;  %11188 = vmatpush3.bf16.msra.mxu1 %v11600_v21  ;;  %v11636_v21 = vld [vmem:[#allocation21 + $0x74] ss:$8 sps:$4 sm:$0xff]  }
 0x4e5   :  { %11189 = vmatprep.subr.bf16.mxu1 %v15057_v0 }
 0x4e7   :  { %11204 = vmatpush3.bf16.msra.mxu0 %v11593_v12  ;;  %v11631_v12 = vld [vmem:[#allocation81 + $0x8] sm:$0xff]  }
 0x4e8   :  { %11205 = vmatprep.subr.bf16.mxu0 %v15057_v0  ;;  %11190 = vmatpush3.bf16.msra.mxu1 %v11603_v25  ;;  %v11642_v25 = vld [vmem:[#allocation21 + $0x54] ss:$8 sps:$4 sm:$0xff]  }
 0x4e9   :  { %10922 = vmatprep.subr.bf16.mxu1 %v11606_v26  ;;  %v11640_v26 = vld [vmem:[#allocation21 + $0x50] ss:$8 sps:$4 sm:$0xff]  }
 0x4eb   :  { %11206 = vmatpush3.bf16.msra.mxu0 %v11595_v14  ;;  %v11633_v14 = vld [vmem:[#allocation81] sm:$0xff]  }
 0x4ec   :  { %11207 = vmatprep.subr.bf16.mxu0 %v15057_v0 }
 0x4ef   :  { %11208 = vmatpush3.bf16.msra.mxu0 %v11597_v16  ;;  %v1892_v16 = vpack.c.bf16 %v1888_v15, %v1888_v15 }
 0x4f0   :  { %11209 = vmatprep.subr.bf16.mxu0 %v15057_v0 }
 0x4f3   :  { %11210 = vmatpush3.bf16.msra.mxu0 %v11599_v18 }
 0x4f4   :  { %10944 = vmatprep.subr.bf16.mxu0 %v11601_v20 }
 0x4f6   :  { %11212 = vmatmul.mubr.bf16.vlgmr.msra.gmra.mxu0 %v1776_v23  ;;  %v11639_v23 = vld [vmem:[#allocation21 + $0x64] ss:$8 sps:$4 sm:$0xff]  }
 0x4f7   :  { %10945 = vmatpush3.bf16.msra.mxu0 %v11602_v22  ;;  %2224 = vmatprep.mubr.bf16.mxu0 %v1895_v41  ;;  %v11634_v22 = vld [vmem:[#allocation21 + $0x70] ss:$8 sps:$4 sm:$0xff]   ;;  %v11655_v41 = vld [vmem:[#allocation21] ss:$8 sps:$4 sm:$0xff]  }
 0x4f8   :  { %10946 = vmatprep.subr.bf16.mxu0 %v11604_v24  ;;  %v11637_v24 = vld [vmem:[#allocation21 + $0x60] ss:$8 sps:$4 sm:$0xff]  }
 0x4fb   :  { %10947 = vmatpush3.bf16.msra.mxu0 %v11605_v27  ;;  %v11645_v27 = vld [vmem:[#allocation21 + $0x44] ss:$8 sps:$4 sm:$0xff]  }
 0x4fc   :  { %10948 = vmatprep.subr.bf16.mxu0 %v11608_v28  ;;  %v11643_v28 = vld [vmem:[#allocation21 + $0x40] ss:$8 sps:$4 sm:$0xff]  }
 0x4ff   :  { %10949 = vmatpush3.bf16.msra.mxu0 %v11609_v29  ;;  %v11648_v29 = vld [vmem:[#allocation21 + $0x34] ss:$8 sps:$4 sm:$0xff]  }
 0x500   :  { %10950 = vmatprep.subr.bf16.mxu0 %v11612_v30 }
 0x503   :  { %10951 = vmatpush3.bf16.msra.mxu0 %v11613_v31  ;;  %v11646_v31 = vld [vmem:[#allocation21 + $0x30] ss:$8 sps:$4 sm:$0xff]  }
 0x504   :  { %10952 = vmatprep.subr.bf16.mxu0 %v11616_v32 }
 0x507   :  { %10953 = vmatpush3.bf16.msra.mxu0 %v11617_v33  ;;  %v11651_v33 = vld [vmem:[#allocation21 + $0x24] ss:$8 sps:$4 sm:$0xff]  }
 0x508   :  { %10954 = vmatprep.subr.bf16.mxu0 %v11620_v34 }
 0x50b   :  { %10955 = vmatpush3.bf16.msra.mxu0 %v11621_v35  ;;  %v11649_v35 = vld [vmem:[#allocation21 + $0x20] ss:$8 sps:$4 sm:$0xff]  }
 0x50c   :  { %10956 = vmatprep.subr.bf16.mxu0 %v11624_v36 }
 0x50f   :  { %10957 = vmatpush3.bf16.msra.mxu0 %v11625_v37 }
 0x510   :  { %10958 = vmatprep.subr.bf16.mxu0 %v11628_v38  ;;  %v11654_v38 = vld [vmem:[#allocation21 + $0x14] ss:$8 sps:$4 sm:$0xff]  }
 0x513   :  { %10959 = vmatpush3.bf16.msra.mxu0 %v11629_v39  ;;  %v11652_v39 = vld [vmem:[#allocation21 + $0x10] ss:$8 sps:$4 sm:$0xff]  }
 0x516   :  { %2225 = vmatmul.mubr.bf16.vlgmr.msra.gmra.mxu0 %v1894_v43  ;;  %v15059_v43 = vmov 0  }
 0x596   :  { %v1635_v45 = vpop.f32.mrf.mxu0 }
 0x597   :  { %v1636_v46 = vadd.f32 %v10156_v44, %v1635_v45  ;;  %v15825_v44 = vld [vmem:[#allocation84 + $0x74] ss:$8 sps:$4 sm:$0xff]   ;;  %v15827_v45 = vld [vmem:[#allocation84 + $0x70] ss:$8 sps:$4 sm:$0xff]  }
 0x598   :  { %v11173_v47 = vpop.f32.mrf.mxu0  ;;  %2579 = vmatprep.subr.bf16.mxu0 %v15825_v44 }
 0x599   :  { %v1641_v48 = vmin.f32 %v1636_v46, 20.0  ;;  %vm1650_vm2 = vcmp.gt.f32.partialorder %v1636_v46, 20.0  ;;  %2580 = vmatpush1.bf16.msra.mxu0 %v15827_v45  ;;  %v15833_v47 = vld [vmem:[#allocation84 + $0x60] ss:$8 sps:$4 sm:$0xff]  }
 0x59a   :  { %v1638_v49 = vpop.f32.mrf.mxu0 }
 0x59b   :  { %v1642_v50 = vmul.f32 1.442695, %v1641_v48  ;;  %v15836_v48 = vld [vmem:[#allocation84 + $0x54] ss:$8 sps:$4 sm:$0xff]   ;;  %v15839_v49 = vld [vmem:[#allocation84 + $0x50] ss:$8 sps:$4 sm:$0xff]  }
 0x59c   :  { %v11174_v51 = vpop.f32.mrf.mxu0 }
 0x59d   :  { %12106 = vpow2.f32 %v1642_v50  ;;  %v15842_v50 = vld [vmem:[#allocation84 + $0x44] ss:$8 sps:$4 sm:$0xff]   ;;  %v15845_v51 = vld [vmem:[#allocation84 + $0x40] ss:$8 sps:$4 sm:$0xff]  }
 0x5aa   :  { %v12107_v52 = vpop.eup %12106 }
 0x5ab   :  { %v1644_v53 = vadd.f32 2.0, %v12107_v52 }
 0x5ad   :  { %v1645_v54 = vmul.f32 %v12107_v52, %v1644_v53  ;;  %v15848_v52 = vld [vmem:[#allocation84 + $0x34] ss:$8 sps:$4 sm:$0xff]   ;;  %v15851_v53 = vld [vmem:[#allocation84 + $0x30] ss:$8 sps:$4 sm:$0xff]  }
 0x5af   :  { %v1647_v55 = vadd.f32 2.0, %v1645_v54  ;;  %v1646_v56 = vmul.f32 %v1645_v54, %v1636_v46  ;;  %v15854_v54 = vld [vmem:[#allocation84 + $0x24] ss:$8 sps:$4 sm:$0xff]  }
 0x5b1   :  { %12108 = vrcp.f32 %v1647_v55  ;;  %v15857_v55 = vld [vmem:[#allocation84 + $0x20] ss:$8 sps:$4 sm:$0xff]  }
 0x5b6   :  { %v15820_v17 = vpop.f32.mrf.mxu0 }
 0x5b8   :  { %v11213_v18 = vpop.f32.mrf.mxu0 }
 0x5ba   :  { %v1885_v19 = vpop.f32.mrf.mxu0 }
 0x5bc   :  { %v11214_v20 = vpop.f32.mrf.mxu0 }
 0x5be   :  { %v12109_v57 = vpop.eup %12108 }
 0x5bf   :  { %v1649_v59 = vmul.f32 %v12109_v57, %v1646_v56  ;;  %v15860_v56 = vld [vmem:[#allocation84 + $0x14] ss:$8 sps:$4 sm:$0xff]   ;;  %v15863_v57 = vld [vmem:[#allocation84 + $0x10] ss:$8 sps:$4 sm:$0xff]  }
 0x5c1   :  { %v1651_v60 = vsel %vm1650_vm2, %v1636_v46, %v1649_v59  ;;  %v15829_v46 = vld [vmem:[#allocation84 + $0x64] ss:$8 sps:$4 sm:$0xff]   ;;  %v15869_v59 = vld [vmem:[#allocation84] ss:$8 sps:$4 sm:$0xff]  }
 0x5c2   :  { %v1652_v63 = vpack.c.bf16 %v1651_v60, %v1651_v60  ;;  %2581 = vmatprep.subr.bf16.mxu0 %v15829_v46  ;;  %v15872_v60 = vld [vmem:[#allocation84 + $0xf4] ss:$8 sps:$4 sm:$0xff]  }
 0x5c3   :  { %2582 = vmatpush1.bf16.msra.mxu0 %v15833_v47 }
 0x5c4   :  { %11192 = vmatmul.mubr.bf16.vlgmr.msra.gmra.mxu1 %v1652_v63  ;;  %2583 = vmatprep.subr.bf16.mxu0 %v15836_v48  ;;  %v15881_v63 = vld [vmem:[#allocation84 + $0xe0] ss:$8 sps:$4 sm:$0xff]  }
 0x5c5   :  { %10923 = vmatpush3.bf16.msra.mxu1 %v11607_v61  ;;  %2184 = vmatprep.mubr.bf16.mxu1 %v1893_v62  ;;  %v15875_v61 = vld [vmem:[#allocation84 + $0xf0] ss:$8 sps:$4 sm:$0xff]   ;;  %v15878_v62 = vld [vmem:[#allocation84 + $0xe4] ss:$8 sps:$4 sm:$0xff]  }
 0x5c6   :  { %10924 = vmatprep.subr.bf16.mxu1 %v11610_v1  ;;  %v15884_v1 = vld [vmem:[#allocation84 + $0xd4] ss:$8 sps:$4 sm:$0xff]  }
 0x5c7   :  { %2584 = vmatpush1.bf16.msra.mxu0 %v15839_v49 }
 0x5c8   :  { %2585 = vmatprep.subr.bf16.mxu0 %v15842_v50 }
 0x5c9   :  { %10925 = vmatpush3.bf16.msra.mxu1 %v11611_v2  ;;  %v15887_v2 = vld [vmem:[#allocation84 + $0xd0] ss:$8 sps:$4 sm:$0xff]  }
 0x5ca   :  { %10926 = vmatprep.subr.bf16.mxu1 %v11614_v3  ;;  %v15890_v3 = vld [vmem:[#allocation84 + $0xc4] ss:$8 sps:$4 sm:$0xff]  }
 0x5cb   :  { %2586 = vmatpush1.bf16.msra.mxu0 %v15845_v51 }
 0x5cc   :  { %2587 = vmatprep.subr.bf16.mxu0 %v15848_v52 }
 0x5cd   :  { %10927 = vmatpush3.bf16.msra.mxu1 %v11615_v4  ;;  %v15893_v4 = vld [vmem:[#allocation84 + $0xc0] ss:$8 sps:$4 sm:$0xff]  }
 0x5ce   :  { %10928 = vmatprep.subr.bf16.mxu1 %v11618_v5  ;;  %v15896_v5 = vld [vmem:[#allocation84 + $0xb4] ss:$8 sps:$4 sm:$0xff]  }
 0x5cf   :  { %2588 = vmatpush1.bf16.msra.mxu0 %v15851_v53 }
 0x5d0   :  { %2589 = vmatprep.subr.bf16.mxu0 %v15854_v54 }
 0x5d1   :  { %10929 = vmatpush3.bf16.msra.mxu1 %v11619_v6  ;;  %v15899_v6 = vld [vmem:[#allocation84 + $0xb0] ss:$8 sps:$4 sm:$0xff]  }
 0x5d2   :  { %10930 = vmatprep.subr.bf16.mxu1 %v11622_v7  ;;  %v15902_v7 = vld [vmem:[#allocation84 + $0xa4] ss:$8 sps:$4 sm:$0xff]  }
 0x5d3   :  { %2590 = vmatpush1.bf16.msra.mxu0 %v15857_v55 }
 0x5d4   :  { %2591 = vmatprep.subr.bf16.mxu0 %v15860_v56 }
 0x5d5   :  { %10931 = vmatpush3.bf16.msra.mxu1 %v11623_v8  ;;  %v15905_v8 = vld [vmem:[#allocation84 + $0xa0] ss:$8 sps:$4 sm:$0xff]  }
 0x5d6   :  { %10932 = vmatprep.subr.bf16.mxu1 %v11626_v9  ;;  %v10960_v30 = vpop.f32.mrf.mxu0  ;;  %v10160_v9 = vld [vmem:[#allocation112] ss:$0 sm:$0xff] }
 0x5d7   :  { %2592 = vmatpush1.bf16.msra.mxu0 %v15863_v57 }
 0x5d8   :  { %v10961_v32 = vpop.f32.mrf.mxu0  ;;  %2593 = vmatprep.subr.bf16.mxu0 %v15866_v58 }
 0x5d9   :  { %10933 = vmatpush3.bf16.msra.mxu1 %v11627_v10  ;;  %v15822_v37 = vadd.f32 %v10961_v32, %v10960_v30 }
 0x5da   :  { %10934 = vmatprep.subr.bf16.mxu1 %v11630_v11  ;;  %v10963_v34 = vpop.f32.mrf.mxu0 }
 0x5db   :  { %2594 = vmatpush1.bf16.msra.mxu0 %v15869_v59 }
 0x5dc   :  { %v10964_v36 = vpop.f32.mrf.mxu0  ;;  %2595 = vmatprep.subr.bf16.mxu0 %v15872_v60 }
 0x5dd   :  { %10935 = vmatpush3.bf16.msra.mxu1 %v11631_v12 }
 0x5de   :  { %10936 = vmatprep.subr.bf16.mxu1 %v11632_v13 }
 0x5df   :  { %2596 = vmatpush2.bf16.msra.mxu0 %v15875_v61 }
 0x5e0   :  { %2597 = vmatprep.subr.bf16.mxu0 %v15878_v62 }
 0x5e1   :  { %10937 = vmatpush3.bf16.msra.mxu1 %v11633_v14 }
 0x5e2   :  { %2342 = vmatprep.subr.bf16.mxu1 %v11636_v21 }
 0x5e3   :  { %2598 = vmatpush2.bf16.msra.mxu0 %v15881_v63 }
 0x5e4   :  { %2185 = vmatmul.mubr.bf16.vlgmr.msra.gmra.mxu1 %v1892_v16  ;;  %2599 = vmatprep.subr.bf16.mxu0 %v15884_v1 }
 0x5e5   :  { %2343 = vmatpush1.bf16.msra.mxu1 %v11634_v22  ;;  %2374 = vmatprep.mubr.bf16.mxu1 %v15059_v43 }
 0x5e6   :  { %2344 = vmatprep.subr.bf16.mxu1 %v11639_v23  ;;  %v10169_v23 = vld [vmem:[#allocation79] ss:$0 sm:$0xff] }
 0x5e7   :  { %2600 = vmatpush2.bf16.msra.mxu0 %v15887_v2 }
 0x5e8   :  { %2601 = vmatprep.subr.bf16.mxu0 %v15890_v3 }
 0x5e9   :  { %2345 = vmatpush1.bf16.msra.mxu1 %v11637_v24 }
 0x5ea   :  { %2346 = vmatprep.subr.bf16.mxu1 %v11642_v25 }
 0x5eb   :  { %2602 = vmatpush2.bf16.msra.mxu0 %v15893_v4 }
 0x5ec   :  { %2603 = vmatprep.subr.bf16.mxu0 %v15896_v5 }
 0x5ed   :  { %2347 = vmatpush1.bf16.msra.mxu1 %v11640_v26 }
 0x5ee   :  { %2348 = vmatprep.subr.bf16.mxu1 %v11645_v27  ;;  %v1883_v27 = vadd.f32 %v10169_v23, %v15820_v17 }
 0x5ef   :  { %2604 = vmatpush2.bf16.msra.mxu0 %v15899_v6 }
 0x5f0   :  { %2605 = vmatprep.subr.bf16.mxu0 %v15902_v7 }
 0x5f1   :  { %2349 = vmatpush1.bf16.msra.mxu1 %v11643_v28 }
 0x5f2   :  { %2350 = vmatprep.subr.bf16.mxu1 %v11648_v29 }
 0x5f3   :  { %2606 = vmatpush2.bf16.msra.mxu0 %v15905_v8 }
 0x5f5   :  { %2351 = vmatpush1.bf16.msra.mxu1 %v11646_v31 }
 0x5f6   :  { %2352 = vmatprep.subr.bf16.mxu1 %v11651_v33  ;;  %v11658_v33 = vld [vmem:[#allocation24 + $0x10] ss:$8 sps:$4 sm:$0xff]  }
 0x5f9   :  { %2353 = vmatpush1.bf16.msra.mxu1 %v11649_v35  ;;  %v11663_v35 = vld [vmem:[#allocation24 + $0x4] ss:$8 sps:$4 sm:$0xff]  }
 0x5fa   :  { %2354 = vmatprep.subr.bf16.mxu1 %v11654_v38  ;;  %v11661_v38 = vld [vmem:[#allocation24] ss:$8 sps:$4 sm:$0xff]  }
 0x5fd   :  { %2355 = vmatpush1.bf16.msra.mxu1 %v11652_v39  ;;  %v15919_v39 = vld [vmem:[#allocation84 + $0x94] ss:$8 sps:$4 sm:$0xff]  }
 0x5fe   :  { %2356 = vmatprep.subr.bf16.mxu1 %v11657_v40  ;;  %v15921_v40 = vld [vmem:[#allocation84 + $0x90] ss:$8 sps:$4 sm:$0xff]   ;;  %2607 = vmatprep.subr.bf16.mxu0 %v15919_v39 }
 0x5ff   :  { %2608 = vmatpush2.bf16.msra.mxu0 %v15921_v40 }
 0x601   :  { %2357 = vmatpush1.bf16.msra.mxu1 %v11655_v41  ;;  %v15925_v41 = vld [vmem:[#allocation84 + $0x84] ss:$8 sps:$4 sm:$0xff]  }
 0x602   :  { %2736 = vmatprep.subr.bf16.mxu1 %v11660_v42  ;;  %v15927_v42 = vld [vmem:[#allocation84 + $0x80] ss:$8 sps:$4 sm:$0xff]   ;;  %2609 = vmatprep.subr.bf16.mxu0 %v15925_v41 }
 0x603   :  { %2610 = vmatpush2.bf16.msra.mxu0 %v15927_v42 }
 0x604   :  { %3018 = vmatprep.subr.bf16.mxu0 %v15825_v44 }
 0x684   :  { %v1758_v10 = vpop.f32.mrf.mxu1 }
 0x685   :  { %v1759_v11 = vadd.f32 %v10160_v9, %v1758_v10  ;;  %v2252_v9 = vlaneseq }
 0x686   :  { %v11193_v12 = vpop.f32.mrf.mxu1 }
 0x687   :  { %v1764_v13 = vmin.f32 %v1759_v11, 20.0  ;;  %vm1773_vm3 = vcmp.gt.f32.partialorder %v1759_v11, 20.0  ;;  %v2253_v10 = vshrl.u32 %v2252_v9, 7  ;;  %v2250_v12 = vld [vmem:[%s17218_s15] sm:$0x3] }
 0x688   :  { %v1761_v14 = vpop.f32.mrf.mxu1  ;;  %v11721_v9 = vld [vmem:[%s17219_s9 + $0x40] ss:$8 sps:$4 sm:$0xff]  }
 0x689   :  { %v1765_v15 = vmul.f32 1.442695, %v1764_v13  ;;  %v15935_v13 = vsub.s32 1, %v2253_v10 }
 0x68a   :  { %v11194_v16 = vpop.f32.mrf.mxu1 }
 0x68b   :  { %12110 = vpow2.f32 %v1765_v15  ;;  %v2259_v15 = vrot.slane %v2250_v12, %v15935_v13 }
 0x698   :  { %v12111_v18 = vpop.eup %12110 }
 0x699   :  { %v1767_v19 = vadd.f32 2.0, %v12111_v18 }
 0x69b   :  { %v1768_v20 = vmul.f32 %v12111_v18, %v1767_v19 }
 0x69d   :  { %v1770_v21 = vadd.f32 2.0, %v1768_v20  ;;  %v1769_v32 = vmul.f32 %v1768_v20, %v1759_v11 }
 0x69f   :  { %12112 = vrcp.f32 %v1770_v21 }
 0x6a4   :  { %v10938_v22 = vpop.f32.mrf.mxu1 }
 0x6a6   :  { %v10939_v24 = vpop.f32.mrf.mxu1 }
 0x6a7   :  { %v10940_v25 = vadd.f32 %v10939_v24, %v10938_v22 }
 0x6a8   :  { %v10941_v26 = vpop.f32.mrf.mxu1 }
 0x6a9   :  { %v2227_v28 = vadd.f32 %v15822_v37, %v10940_v25 }
 0x6aa   :  { %v10942_v29 = vpop.f32.mrf.mxu1 }
 0x6ab   :  { %v2232_v30 = vadd.f32 %v2227_v28, %v1883_v27 }
 0x6ac   :  { %v12113_v31 = vpop.eup %12112 }
 0x6ad   :  { %v15911_v34 = vpack.c.bf16 %v2232_v30, %v2232_v30  ;;  %v1772_v36 = vmul.f32 %v12113_v31, %v1769_v32  ;;  %v11714_v31 = vld [vmem:[%s17219_s9 + $0x74] ss:$8 sps:$4 sm:$0xff]   ;;  %v11712_v32 = vld [vmem:[%s17219_s9 + $0x70] ss:$8 sps:$4 sm:$0xff]  }
 0x6af   :  { %2375 = vmatmul.mubr.bf16.vlgmr.msra.gmra.mxu1 %v15911_v34  ;;  %v1774_v17 = vsel %vm1773_vm3, %v1759_v11, %v1772_v36  ;;  %v15932_v11 = vsub.s32 0, %v2253_v10  ;;  %v11720_v36 = vld [vmem:[%s17219_s9 + $0x54] ss:$8 sps:$4 sm:$0xff]   ;;  %v11724_v10 = vld [vmem:[%s17219_s9 + $0x30] ss:$8 sps:$4 sm:$0xff]  }
 0x6b0   :  { %2737 = vmatpush1.bf16.msra.mxu1 %v11658_v33  ;;  %2756 = vmatprep.mubr.bf16.mxu1 %v15059_v43  ;;  %v15915_v37 = vpack.c.bf16 %v1774_v17, %v1774_v17  ;;  %v11717_v33 = vld [vmem:[%s17219_s9 + $0x64] ss:$8 sps:$4 sm:$0xff]  }
 0x6b1   :  { %2738 = vmatprep.subr.bf16.mxu1 %v11663_v35  ;;  %v2255_v14 = vrot.slane %v2250_v12, %v15932_v11  ;;  %v11715_v35 = vld [vmem:[%s17219_s9 + $0x60] ss:$8 sps:$4 sm:$0xff]   ;;  %v11723_v17 = vld [vmem:[%s17219_s9 + $0x44] ss:$8 sps:$4 sm:$0xff]   ;;  %v11726_v12 = vld [vmem:[%s17219_s9 + $0x34] ss:$8 sps:$4 sm:$0xff]  }
 0x6b4   :  { %2739 = vmatpush1.bf16.msra.mxu1 %v11661_v38  ;;  %v11718_v38 = vld [vmem:[%s17219_s9 + $0x50] ss:$8 sps:$4 sm:$0xff]  }
 0x6b5   :  { %2973 = vmatprep.subr.bf16.mxu1 %v11714_v31  ;;  %v11747_v31 = vld [vmem:[%s17219_s9 + $0xc4] ss:$8 sps:$4 sm:$0xff]  }
 0x6b7   :  { %10262 = vmatmul.mubr.msk.bf16.vlgmr.msra.gmra.mxu1 %vm1597_vm1, %v15915_v37 }
 0x6b8   :  { %2974 = vmatpush1.bf16.msra.mxu1 %v11712_v32  ;;  %v11745_v32 = vld [vmem:[%s17219_s9 + $0xc0] ss:$8 sps:$4 sm:$0xff]  }
 0x6b9   :  { %2975 = vmatprep.subr.bf16.mxu1 %v11717_v33  ;;  %v11750_v33 = vld [vmem:[%s17219_s9 + $0xb4] ss:$8 sps:$4 sm:$0xff]  }
 0x6bc   :  { %2976 = vmatpush1.bf16.msra.mxu1 %v11715_v35  ;;  %v11748_v35 = vld [vmem:[%s17219_s9 + $0xb0] ss:$8 sps:$4 sm:$0xff]  }
 0x6bd   :  { %2977 = vmatprep.subr.bf16.mxu1 %v11720_v36  ;;  %v11753_v36 = vld [vmem:[%s17219_s9 + $0xa4] ss:$8 sps:$4 sm:$0xff]  }
 0x6c0   :  { %2978 = vmatpush1.bf16.msra.mxu1 %v11718_v38  ;;  %v11751_v38 = vld [vmem:[%s17219_s9 + $0xa0] ss:$8 sps:$4 sm:$0xff]  }
 0x6c1   :  { %2979 = vmatprep.subr.bf16.mxu1 %v11723_v17  ;;  %v11756_v17 = vld [vmem:[%s17219_s9 + $0x94] ss:$8 sps:$4 sm:$0xff]  }
 0x6c4   :  { %2980 = vmatpush1.bf16.msra.mxu1 %v11721_v9  ;;  %v11754_v9 = vld [vmem:[%s17219_s9 + $0x90] ss:$8 sps:$4 sm:$0xff]  }
 0x6c5   :  { %2981 = vmatprep.subr.bf16.mxu1 %v11726_v12  ;;  %v11757_v12 = vld [vmem:[%s17219_s9 + $0x80] ss:$8 sps:$4 sm:$0xff]  }
 0x6c8   :  { %2982 = vmatpush1.bf16.msra.mxu1 %v11724_v10  ;;  %v11759_v10 = vld [vmem:[%s17219_s9 + $0x84] ss:$8 sps:$4 sm:$0xff]  }
 0x76f   :  { %v2376_v16 = vpop.f32.mrf.mxu1 }
 0x770   :  { %v15939_v18 = vadd.f32 %v2376_v16, %v2255_v14  ;;  %v11729_v14 = vld [vmem:[%s17219_s9 + $0x24] ss:$8 sps:$4 sm:$0xff]   ;;  %v11732_v16 = vld [vmem:[%s17219_s9 + $0x14] ss:$8 sps:$4 sm:$0xff]  }
 0x771   :  { %v2378_v19 = vpop.f32.mrf.mxu1  ;;  %2983 = vmatprep.subr.bf16.mxu1 %v11729_v14  ;;  %v11762_v14 = vld [vmem:[#allocation22 + $0x74] ss:$8 sps:$4 sm:$0xff]  }
 0x772   :  { %v15941_v20 = vadd.f32 %v2378_v19, %v2259_v15  ;;  %v2383_v21 = vmul.f32 %v15939_v18, %v15939_v18  ;;  %v11727_v15 = vld [vmem:[%s17219_s9 + $0x20] ss:$8 sps:$4 sm:$0xff]   ;;  %v11730_v19 = vld [vmem:[%s17219_s9 + $0x10] ss:$8 sps:$4 sm:$0xff]  }
 0x773   :  { %v2380_v22 = vpop.f32.mrf.mxu1  ;;  %2984 = vmatpush1.bf16.msra.mxu1 %v11727_v15 }
 0x774   :  { %v2384_v23 = vmul.f32 %v15941_v20, %v15941_v20  ;;  %v2385_v26 = vpack.c.bf16 %v2383_v21, %v15939_v18  ;;  %2985 = vmatprep.subr.bf16.mxu1 %v11732_v16  ;;  %v11735_v21 = vld [vmem:[%s17219_s9 + $0x4] ss:$8 sps:$4 sm:$0xff]   ;;  %v11733_v22 = vld [vmem:[%s17219_s9] ss:$8 sps:$4 sm:$0xff]  }
 0x775   :  { %v2381_v24 = vpop.f32.mrf.mxu1 }
 0x776   :  { %v2386_v25 = vpack.c.bf16 %v2384_v23, %v15941_v20  ;;  %v11738_v23 = vld [vmem:[%s17219_s9 + $0xf4] ss:$8 sps:$4 sm:$0xff]   ;;  %v11736_v24 = vld [vmem:[%s17219_s9 + $0xf0] ss:$8 sps:$4 sm:$0xff]  }
 0x777   :  { %v15949_v27 = vpop.f32.mrf.mxu1  ;;  %2986 = vmatpush1.bf16.msra.mxu1 %v11730_v19 }
 0x778   :  { %2611 = vmatprep.mubr.bf16.mxu0 %v2386_v25  ;;  %2987 = vmatprep.subr.bf16.mxu1 %v11735_v21  ;;  %v11741_v25 = vld [vmem:[%s17219_s9 + $0xe4] ss:$8 sps:$4 sm:$0xff]  }
 0x779   :  { %2612 = vmatmul.mubr.bf16.vlgmr.msra.gmra.mxu0 %v2385_v26  ;;  %v15951_v28 = vpop.f32.mrf.mxu1  ;;  %v11739_v26 = vld [vmem:[%s17219_s9 + $0xe0] ss:$8 sps:$4 sm:$0xff]  }
 0x77a   :  { %3019 = vmatpush1.bf16.msra.mxu0 %v15827_v45 }
 0x77b   :  { %v2762_v29 = vpop.f32.mrf.mxu1  ;;  %3020 = vmatprep.subr.bf16.mxu0 %v15829_v46  ;;  %2988 = vmatpush1.bf16.msra.mxu1 %v11733_v22 }
 0x77c   :  { %2989 = vmatprep.subr.bf16.mxu1 %v11738_v23  ;;  %v11744_v29 = vld [vmem:[%s17219_s9 + $0xd4] ss:$8 sps:$4 sm:$0xff]  }
 0x77d   :  { %v2763_v30 = vpop.f32.mrf.mxu1 }
 0x77e   :  { %3021 = vmatpush1.bf16.msra.mxu0 %v15833_v47  ;;  %v11742_v30 = vld [vmem:[%s17219_s9 + $0xd0] ss:$8 sps:$4 sm:$0xff]  }
 0x77f   :  { %3022 = vmatprep.subr.bf16.mxu0 %v15836_v48  ;;  %2990 = vmatpush2.bf16.msra.mxu1 %v11736_v24 }
 0x780   :  { %2991 = vmatprep.subr.bf16.mxu1 %v11741_v25 }
 0x782   :  { %3023 = vmatpush1.bf16.msra.mxu0 %v15839_v49 }
 0x783   :  { %3024 = vmatprep.subr.bf16.mxu0 %v15842_v50  ;;  %2992 = vmatpush2.bf16.msra.mxu1 %v11739_v26 }
 0x784   :  { %2993 = vmatprep.subr.bf16.mxu1 %v11744_v29 }
 0x786   :  { %3025 = vmatpush1.bf16.msra.mxu0 %v15845_v51 }
 0x787   :  { %3026 = vmatprep.subr.bf16.mxu0 %v15848_v52  ;;  %2994 = vmatpush2.bf16.msra.mxu1 %v11742_v30  ;;  %v2634_v30 = vld [vmem:[#allocation17] sm:$0x3] }
 0x788   :  { %2995 = vmatprep.subr.bf16.mxu1 %v11747_v31  ;;  %v2648_v31 = vld [vmem:[%s17220_s13] sm:$0x3] }
 0x78a   :  { %3027 = vmatpush1.bf16.msra.mxu0 %v15851_v53 }
 0x78b   :  { %3028 = vmatprep.subr.bf16.mxu0 %v15854_v54  ;;  %2996 = vmatpush2.bf16.msra.mxu1 %v11745_v32 }
 0x78c   :  { %2997 = vmatprep.subr.bf16.mxu1 %v11750_v33  ;;  %v2639_v33 = vrot.slane %v2634_v30, %v15932_v11 }
 0x78e   :  { %3029 = vmatpush1.bf16.msra.mxu0 %v15857_v55 }
 0x78f   :  { %3030 = vmatprep.subr.bf16.mxu0 %v15860_v56  ;;  %2998 = vmatpush2.bf16.msra.mxu1 %v11748_v35 }
 0x790   :  { %2999 = vmatprep.subr.bf16.mxu1 %v11753_v36 }
 0x792   :  { %3031 = vmatpush1.bf16.msra.mxu0 %v15863_v57 }
 0x793   :  { %3032 = vmatprep.subr.bf16.mxu0 %v15866_v58  ;;  %3000 = vmatpush2.bf16.msra.mxu1 %v11751_v38 }
 0x794   :  { %3001 = vmatprep.subr.bf16.mxu1 %v11756_v17  ;;  %v2643_v17 = vrot.slane %v2634_v30, %v15935_v13 }
 0x796   :  { %3033 = vmatpush1.bf16.msra.mxu0 %v15869_v59 }
 0x797   :  { %3034 = vmatprep.subr.bf16.mxu0 %v15872_v60  ;;  %3002 = vmatpush2.bf16.msra.mxu1 %v11754_v9  ;;  %v2653_v9 = vrot.slane %v2648_v31, %v15932_v11 }
 0x798   :  { %3003 = vmatprep.subr.bf16.mxu1 %v11759_v10 }
 0x79a   :  { %3035 = vmatpush2.bf16.msra.mxu0 %v15875_v61 }
 0x79b   :  { %3036 = vmatprep.subr.bf16.mxu0 %v15878_v62  ;;  %3004 = vmatpush2.bf16.msra.mxu1 %v11757_v12 }
 0x79c   :  { %3231 = vmatprep.subr.bf16.mxu1 %v11762_v14 }
 0x79e   :  { %3037 = vmatpush2.bf16.msra.mxu0 %v15881_v63 }
 0x79f   :  { %3038 = vmatprep.subr.bf16.mxu0 %v15884_v1 }
 0x7a2   :  { %3039 = vmatpush2.bf16.msra.mxu0 %v15887_v2 }
 0x7a3   :  { %3040 = vmatprep.subr.bf16.mxu0 %v15890_v3 }
 0x7a6   :  { %3041 = vmatpush2.bf16.msra.mxu0 %v15893_v4 }
 0x7a7   :  { %3042 = vmatprep.subr.bf16.mxu0 %v15896_v5 }
 0x7aa   :  { %3043 = vmatpush2.bf16.msra.mxu0 %v15899_v6 }
 0x7ab   :  { %3044 = vmatprep.subr.bf16.mxu0 %v15902_v7 }
 0x7ae   :  { %3045 = vmatpush2.bf16.msra.mxu0 %v15905_v8 }
 0x7af   :  { %3046 = vmatprep.subr.bf16.mxu0 %v15919_v39 }
 0x7b2   :  { %3047 = vmatpush2.bf16.msra.mxu0 %v15921_v40 }
 0x7b3   :  { %3048 = vmatprep.subr.bf16.mxu0 %v15925_v41 }
 0x7b6   :  { %3049 = vmatpush2.bf16.msra.mxu0 %v15927_v42 }
 0x839   :  { %v2613_v15 = vpop.f32.mrf.mxu0 }
 0x83a   :  { %v2622_v19 = vmul.f32 %v2613_v15, %v2613_v15  ;;  %v2626_v32 = vsub.f32 %v15939_v18, %v2613_v15 }
 0x83b   :  { %v2615_v16 = vpop.f32.mrf.mxu0 }
 0x83c   :  { %v2623_v22 = vmul.f32 %v2615_v16, %v2615_v16  ;;  %v2627_v36 = vsub.f32 %v15941_v20, %v2615_v16 }
 0x83d   :  { %v2617_v21 = vpop.f32.mrf.mxu0 }
 0x83e   :  { %v2624_v23 = vsub.f32 %v2617_v21, %v2622_v19  ;;  %v2657_v19 = vrot.slane %v2648_v31, %v15935_v13  ;;  %v2689_v31 = vld [vmem:[%s17221_s1] sm:$0x3] }
 0x83f   :  { %v2619_v24 = vpop.f32.mrf.mxu0 }
 0x840   :  { %v2628_v25 = vadd.f32 1e-05, %v2624_v23  ;;  %v2625_v26 = vsub.f32 %v2619_v24, %v2623_v22 }
 0x842   :  { %12114 = vrsqrt.f32 %v2628_v25  ;;  %v2629_v29 = vadd.f32 1e-05, %v2625_v26 }
 0x844   :  { %12116 = vrsqrt.f32 %v2629_v29 }
 0x84f   :  { %v12115_v35 = vpop.eup %12114 }
 0x850   :  { %v2632_v38 = vmul.f32 %v12115_v35, %v2626_v32 }
 0x851   :  { %v12117_v10 = vpop.eup %12116 }
 0x852   :  { %v2646_v12 = vmul.f32 %v2639_v33, %v2632_v38  ;;  %v2633_v14 = vmul.f32 %v12117_v10, %v2627_v36  ;;  %v2694_v36 = vrot.slane %v2689_v31, %v15932_v11 }
 0x854   :  { %v2647_v21 = vmul.f32 %v2643_v17, %v2633_v14  ;;  %v2660_v22 = vadd.f32 %v2653_v9, %v2646_v12  ;;  %v2698_v9 = vrot.slane %v2689_v31, %v15935_v13  ;;  %v11777_v31 = vld [vmem:[#allocation22 + $0x24] ss:$8 sps:$4 sm:$0xff]  }
 0x856   :  { %v2661_v23 = vadd.f32 %v2657_v19, %v2647_v21  ;;  %v2662_v24 = vmin.f32 %v2660_v22, 20.0  ;;  %vm2680_vm4 = vcmp.gt.f32.partialorder %v2660_v22, 20.0  ;;  %v2759_v19 = vadd.f32 %v15949_v27, %v2694_v36  ;;  %v11768_v27 = vld [vmem:[#allocation22 + $0x54] ss:$8 sps:$4 sm:$0xff]   ;;  %v11775_v36 = vld [vmem:[#allocation22 + $0x20] ss:$8 sps:$4 sm:$0xff]  }
 0x858   :  { %v2663_v18 = vmin.f32 %v2661_v23, 20.0  ;;  %v2664_v15 = vmul.f32 1.442695, %v2662_v24  ;;  %vm2681_vm5 = vcmp.gt.f32.partialorder %v2661_v23, 20.0 }
 0x85a   :  { %v2666_v25 = vmul.f32 1.442695, %v2663_v18  ;;  %12118 = vpow2.f32 %v2664_v15  ;;  %v2761_v18 = vadd.f32 %v15951_v28, %v2698_v9  ;;  %v11771_v28 = vld [vmem:[#allocation22 + $0x44] ss:$8 sps:$4 sm:$0xff]  }
 0x85b   :  { %v11783_v9 = vld [vmem:[#allocation22 + $0x4] ss:$8 sps:$4 sm:$0xff]  }
 0x85c   :  { %12120 = vpow2.f32 %v2666_v25 }
 0x867   :  { %v12119_v20 = vpop.eup %12118 }
 0x868   :  { %v2668_v16 = vadd.f32 2.0, %v12119_v20 }
 0x869   :  { %v12121_v26 = vpop.eup %12120 }
 0x86a   :  { %v2669_v29 = vadd.f32 2.0, %v12121_v26  ;;  %v2670_v30 = vmul.f32 %v12119_v20, %v2668_v16 }
 0x86c   :  { %v2671_v32 = vmul.f32 %v12121_v26, %v2669_v29  ;;  %v2674_v33 = vadd.f32 2.0, %v2670_v30  ;;  %v2672_v38 = vmul.f32 %v2670_v30, %v2660_v22  ;;  %v11760_v26 = vld [vmem:[#allocation22 + $0x70] ss:$8 sps:$4 sm:$0xff]   ;;  %v11765_v30 = vld [vmem:[#allocation22 + $0x64] ss:$8 sps:$4 sm:$0xff]  }
 0x86e   :  { %v2675_v35 = vadd.f32 2.0, %v2671_v32  ;;  %12122 = vrcp.f32 %v2674_v33  ;;  %v2673_v10 = vmul.f32 %v2671_v32, %v2661_v23  ;;  %v11763_v32 = vld [vmem:[#allocation22 + $0x60] ss:$8 sps:$4 sm:$0xff]   ;;  %v11774_v33 = vld [vmem:[#allocation22 + $0x34] ss:$8 sps:$4 sm:$0xff]  }
 0x870   :  { %12124 = vrcp.f32 %v2675_v35  ;;  %v11772_v35 = vld [vmem:[#allocation22 + $0x30] ss:$8 sps:$4 sm:$0xff]  }
 0x87b   :  { %v12123_v17 = vpop.eup %12122 }
 0x87c   :  { %v2678_v12 = vmul.f32 %v12123_v17, %v2672_v38  ;;  %v11780_v38 = vld [vmem:[#allocation22 + $0x14] ss:$8 sps:$4 sm:$0xff]   ;;  %v11778_v17 = vld [vmem:[#allocation22 + $0x10] ss:$8 sps:$4 sm:$0xff]  }
 0x87d   :  { %v12125_v14 = vpop.eup %12124 }
 0x87e   :  { %v2679_v21 = vmul.f32 %v12125_v14, %v2673_v10  ;;  %v2682_v24 = vsel %vm2680_vm4, %v2660_v22, %v2678_v12  ;;  %v11766_v22 = vld [vmem:[#allocation22 + $0x50] ss:$8 sps:$4 sm:$0xff]   ;;  %v11781_v10 = vld [vmem:[#allocation22] ss:$8 sps:$4 sm:$0xff]  }
 0x87f   :  { %v2765_v25 = vadd.f32 %v2759_v19, %v2682_v24 }
 0x880   :  { %v2683_v15 = vsel %vm2681_vm5, %v2661_v23, %v2679_v21  ;;  %v11769_v23 = vld [vmem:[#allocation22 + $0x40] ss:$8 sps:$4 sm:$0xff]  }
 0x881   :  { %v2766_v20 = vadd.f32 %v2761_v18, %v2683_v15  ;;  %v2767_v29 = vpack.c.bf16 %v2765_v25, %v2765_v25 }
 0x883   :  { %v2768_v16 = vpack.c.bf16 %v2766_v20, %v2766_v20 }
 0x885   :  { %3005 = vmatprep.mubr.bf16.mxu1 %v2768_v16 }
 0x886   :  { %3006 = vmatmul.mubr.bf16.vlgmr.msra.gmra.mxu1 %v2767_v29 }
 0x887   :  { %3232 = vmatpush1.bf16.msra.mxu1 %v11760_v26  ;;  %3263 = vmatprep.mubr.bf16.mxu1 %v15059_v43 }
 0x888   :  { %3233 = vmatprep.subr.bf16.mxu1 %v11765_v30 }
 0x88b   :  { %3234 = vmatpush1.bf16.msra.mxu1 %v11763_v32 }
 0x88c   :  { %3235 = vmatprep.subr.bf16.mxu1 %v11768_v27 }
 0x88f   :  { %3236 = vmatpush1.bf16.msra.mxu1 %v11766_v22 }
 0x890   :  { %3237 = vmatprep.subr.bf16.mxu1 %v11771_v28  ;;  %v11786_v28 = vld [vmem:[#allocation36 + $0x74] ss:$8 sps:$4 sm:$0xff]  }
 0x891   :  { %3480 = vmatprep.subr.bf16.mxu0 %v11786_v28  ;;  %v11817_v28 = vld [vmem:[#allocation36 + $0xc0] ss:$8 sps:$4 sm:$0xff]  }
 0x893   :  { %3238 = vmatpush1.bf16.msra.mxu1 %v11769_v23  ;;  %v11784_v23 = vld [vmem:[#allocation36 + $0x70] ss:$8 sps:$4 sm:$0xff]  }
 0x894   :  { %3239 = vmatprep.subr.bf16.mxu1 %v11774_v33  ;;  %v11789_v33 = vld [vmem:[#allocation36 + $0x64] ss:$8 sps:$4 sm:$0xff]  }
 0x897   :  { %3240 = vmatpush1.bf16.msra.mxu1 %v11772_v35  ;;  %v11787_v35 = vld [vmem:[#allocation36 + $0x60] ss:$8 sps:$4 sm:$0xff]  }
 0x898   :  { %3241 = vmatprep.subr.bf16.mxu1 %v11777_v31  ;;  %v11792_v31 = vld [vmem:[#allocation36 + $0x54] ss:$8 sps:$4 sm:$0xff]  }
 0x89b   :  { %3242 = vmatpush1.bf16.msra.mxu1 %v11775_v36  ;;  %v11790_v36 = vld [vmem:[#allocation36 + $0x50] ss:$8 sps:$4 sm:$0xff]  }
 0x89c   :  { %3243 = vmatprep.subr.bf16.mxu1 %v11780_v38  ;;  %v11795_v38 = vld [vmem:[#allocation36 + $0x44] ss:$8 sps:$4 sm:$0xff]  }
 0x89f   :  { %3244 = vmatpush1.bf16.msra.mxu1 %v11778_v17  ;;  %v11793_v17 = vld [vmem:[#allocation36 + $0x40] ss:$8 sps:$4 sm:$0xff]  }
 0x8a0   :  { %3245 = vmatprep.subr.bf16.mxu1 %v11783_v9  ;;  %v11798_v9 = vld [vmem:[#allocation36 + $0x34] ss:$8 sps:$4 sm:$0xff]  }
 0x8a3   :  { %3246 = vmatpush1.bf16.msra.mxu1 %v11781_v10  ;;  %v11796_v10 = vld [vmem:[#allocation36 + $0x30] ss:$8 sps:$4 sm:$0xff]  }
 0x8a4   :  { %3525 = vmatprep.subr.bf16.mxu1 %v15825_v44 }
 0x8a6   :  { %3264 = vmatmul.mubr.bf16.vlgmr.msra.gmra.mxu1 %v15911_v34  ;;  %v2801_v34 = vld [vmem:[%s17222_s2] sm:$0x3] }
 0x8a7   :  { %3526 = vmatpush1.bf16.msra.mxu1 %v15827_v45  ;;  %v2806_v12 = vrot.slane %v2801_v34, %v15932_v11  ;;  %v2810_v14 = vrot.slane %v2801_v34, %v15935_v13  ;;  %v11801_v34 = vld [vmem:[#allocation36 + $0x24] ss:$8 sps:$4 sm:$0xff]  }
 0x8a8   :  { %3527 = vmatprep.subr.bf16.mxu1 %v15829_v46 }
 0x8ab   :  { %3528 = vmatpush1.bf16.msra.mxu1 %v15833_v47 }
 0x8ac   :  { %3529 = vmatprep.subr.bf16.mxu1 %v15836_v48 }
 0x8af   :  { %3530 = vmatpush1.bf16.msra.mxu1 %v15839_v49 }
 0x8b0   :  { %3531 = vmatprep.subr.bf16.mxu1 %v15842_v50 }
 0x8b3   :  { %3532 = vmatpush1.bf16.msra.mxu1 %v15845_v51 }
 0x8b4   :  { %3533 = vmatprep.subr.bf16.mxu1 %v15848_v52 }
 0x8b7   :  { %3534 = vmatpush1.bf16.msra.mxu1 %v15851_v53 }
 0x8b8   :  { %3535 = vmatprep.subr.bf16.mxu1 %v15854_v54 }
 0x8bb   :  { %3536 = vmatpush1.bf16.msra.mxu1 %v15857_v55 }
 0x8bc   :  { %3537 = vmatprep.subr.bf16.mxu1 %v15860_v56 }
 0x8bf   :  { %3538 = vmatpush1.bf16.msra.mxu1 %v15863_v57 }
 0x8c0   :  { %3539 = vmatprep.subr.bf16.mxu1 %v15866_v58 }
 0x8c3   :  { %3540 = vmatpush1.bf16.msra.mxu1 %v15869_v59 }
 0x8c4   :  { %3541 = vmatprep.subr.bf16.mxu1 %v15872_v60 }
 0x8c7   :  { %3542 = vmatpush2.bf16.msra.mxu1 %v15875_v61 }
 0x8c8   :  { %3543 = vmatprep.subr.bf16.mxu1 %v15878_v62 }
 0x8cb   :  { %3544 = vmatpush2.bf16.msra.mxu1 %v15881_v63 }
 0x8cc   :  { %3545 = vmatprep.subr.bf16.mxu1 %v15884_v1 }
 0x8cf   :  { %3546 = vmatpush2.bf16.msra.mxu1 %v15887_v2 }
 0x8d0   :  { %3547 = vmatprep.subr.bf16.mxu1 %v15890_v3 }
 0x8d3   :  { %3548 = vmatpush2.bf16.msra.mxu1 %v15893_v4 }
 0x8d4   :  { %3549 = vmatprep.subr.bf16.mxu1 %v15896_v5 }
 0x8d7   :  { %3550 = vmatpush2.bf16.msra.mxu1 %v15899_v6 }
 0x8d8   :  { %3551 = vmatprep.subr.bf16.mxu1 %v15902_v7 }
 0x8db   :  { %3552 = vmatpush2.bf16.msra.mxu1 %v15905_v8 }
 0x8dc   :  { %3553 = vmatprep.subr.bf16.mxu1 %v15919_v39 }
 0x8df   :  { %3554 = vmatpush2.bf16.msra.mxu1 %v15921_v40 }
 0x8e0   :  { %3555 = vmatprep.subr.bf16.mxu1 %v15925_v41 }
 0x8e3   :  { %3556 = vmatpush2.bf16.msra.mxu1 %v15927_v42 }
 0x946   :  { %v3007_v19 = vpop.f32.mrf.mxu1 }
 0x947   :  { %v16065_v21 = vadd.f32 %v3007_v19, %v2806_v12  ;;  %v11799_v12 = vld [vmem:[#allocation36 + $0x20] ss:$8 sps:$4 sm:$0xff]   ;;  %v11802_v19 = vld [vmem:[#allocation36 + $0x10] ss:$8 sps:$4 sm:$0xff]  }
 0x948   :  { %v3009_v24 = vpop.f32.mrf.mxu1 }
 0x949   :  { %v16067_v18 = vadd.f32 %v3009_v24, %v2810_v14  ;;  %v3014_v15 = vmul.f32 %v16065_v21, %v16065_v21  ;;  %v11804_v14 = vld [vmem:[#allocation36 + $0x14] ss:$8 sps:$4 sm:$0xff]   ;;  %v11807_v24 = vld [vmem:[#allocation36 + $0x4] ss:$8 sps:$4 sm:$0xff]  }
 0x94a   :  { %v3011_v25 = vpop.f32.mrf.mxu1 }
 0x94b   :  { %v3015_v20 = vmul.f32 %v16067_v18, %v16067_v18  ;;  %v3016_v29 = vpack.c.bf16 %v3014_v15, %v16065_v21  ;;  %v11805_v15 = vld [vmem:[#allocation36] ss:$8 sps:$4 sm:$0xff]   ;;  %v11810_v25 = vld [vmem:[#allocation36 + $0xf4] ss:$8 sps:$4 sm:$0xff]  }
 0x94c   :  { %v3012_v16 = vpop.f32.mrf.mxu1 }
 0x94d   :  { %v3017_v26 = vpack.c.bf16 %v3015_v20, %v16067_v18  ;;  %v11808_v20 = vld [vmem:[#allocation36 + $0xf0] ss:$8 sps:$4 sm:$0xff]   ;;  %v11813_v16 = vld [vmem:[#allocation36 + $0xe4] ss:$8 sps:$4 sm:$0xff]  }
 0x94f   :  { %3050 = vmatprep.mubr.bf16.mxu0 %v3017_v26  ;;  %v11811_v26 = vld [vmem:[#allocation36 + $0xe0] ss:$8 sps:$4 sm:$0xff]  }
 0x950   :  { %3051 = vmatmul.mubr.bf16.vlgmr.msra.gmra.mxu0 %v3016_v29  ;;  %v11816_v29 = vld [vmem:[#allocation36 + $0xd4] ss:$8 sps:$4 sm:$0xff]  }
 0x951   :  { %3481 = vmatpush1.bf16.msra.mxu0 %v11784_v23  ;;  %v11822_v23 = vld [vmem:[#allocation36 + $0xb4] ss:$8 sps:$4 sm:$0xff]  }
 0x952   :  { %3482 = vmatprep.subr.bf16.mxu0 %v11789_v33  ;;  %v11820_v33 = vld [vmem:[#allocation36 + $0xb0] ss:$8 sps:$4 sm:$0xff]  }
 0x955   :  { %3483 = vmatpush1.bf16.msra.mxu0 %v11787_v35  ;;  %v11825_v35 = vld [vmem:[#allocation36 + $0xa4] ss:$8 sps:$4 sm:$0xff]  }
 0x956   :  { %3484 = vmatprep.subr.bf16.mxu0 %v11792_v31  ;;  %v11823_v31 = vld [vmem:[#allocation36 + $0xa0] ss:$8 sps:$4 sm:$0xff]  }
 0x959   :  { %3485 = vmatpush1.bf16.msra.mxu0 %v11790_v36  ;;  %v11828_v36 = vld [vmem:[#allocation36 + $0x94] ss:$8 sps:$4 sm:$0xff]  }
 0x95a   :  { %3486 = vmatprep.subr.bf16.mxu0 %v11795_v38  ;;  %v11826_v38 = vld [vmem:[#allocation36 + $0x90] ss:$8 sps:$4 sm:$0xff]  }
 0x95d   :  { %3487 = vmatpush1.bf16.msra.mxu0 %v11793_v17  ;;  %v11831_v17 = vld [vmem:[#allocation36 + $0x84] ss:$8 sps:$4 sm:$0xff]  }
 0x95e   :  { %3488 = vmatprep.subr.bf16.mxu0 %v11798_v9  ;;  %v11829_v9 = vld [vmem:[#allocation36 + $0x80] ss:$8 sps:$4 sm:$0xff]  }
 0x961   :  { %3489 = vmatpush1.bf16.msra.mxu0 %v11796_v10  ;;  %v11834_v10 = vld [vmem:[#allocation39 + $0x14] ss:$8 sps:$4 sm:$0xff]  }
 0x962   :  { %3490 = vmatprep.subr.bf16.mxu0 %v11801_v34 }
 0x965   :  { %3491 = vmatpush1.bf16.msra.mxu0 %v11799_v12 }
 0x966   :  { %v16075_v30 = vpop.f32.mrf.mxu1  ;;  %3492 = vmatprep.subr.bf16.mxu0 %v11804_v14 }
 0x968   :  { %v16077_v32 = vpop.f32.mrf.mxu1 }
 0x969   :  { %3493 = vmatpush1.bf16.msra.mxu0 %v11802_v19 }
 0x96a   :  { %v3269_v27 = vpop.f32.mrf.mxu1  ;;  %3494 = vmatprep.subr.bf16.mxu0 %v11807_v24 }
 0x96b   :  { %v11814_v27 = vld [vmem:[#allocation36 + $0xd0] ss:$8 sps:$4 sm:$0xff]  }
 0x96c   :  { %v3270_v22 = vpop.f32.mrf.mxu1 }
 0x96d   :  { %3495 = vmatpush1.bf16.msra.mxu0 %v11805_v15  ;;  %v11819_v22 = vld [vmem:[#allocation36 + $0xc4] ss:$8 sps:$4 sm:$0xff]  }
 0x96e   :  { %3496 = vmatprep.subr.bf16.mxu0 %v11810_v25 }
 0x971   :  { %3497 = vmatpush2.bf16.msra.mxu0 %v11808_v20 }
 0x972   :  { %3498 = vmatprep.subr.bf16.mxu0 %v11813_v16 }
 0x975   :  { %3499 = vmatpush2.bf16.msra.mxu0 %v11811_v26 }
 0x976   :  { %3500 = vmatprep.subr.bf16.mxu0 %v11816_v29  ;;  %v3073_v29 = vld [vmem:[#allocation19] sm:$0x3] }
 0x979   :  { %3501 = vmatpush2.bf16.msra.mxu0 %v11814_v27  ;;  %v3087_v27 = vld [vmem:[%s17223_s20] sm:$0x3] }
 0x97a   :  { %3502 = vmatprep.subr.bf16.mxu0 %v11819_v22 }
 0x97d   :  { %3503 = vmatpush2.bf16.msra.mxu0 %v11817_v28  ;;  %v3078_v28 = vrot.slane %v3073_v29, %v15932_v11 }
 0x97e   :  { %3504 = vmatprep.subr.bf16.mxu0 %v11822_v23 }
 0x981   :  { %3505 = vmatpush2.bf16.msra.mxu0 %v11820_v33 }
 0x982   :  { %3506 = vmatprep.subr.bf16.mxu0 %v11825_v35 }
 0x985   :  { %3507 = vmatpush2.bf16.msra.mxu0 %v11823_v31  ;;  %v3082_v31 = vrot.slane %v3073_v29, %v15935_v13 }
 0x986   :  { %3508 = vmatprep.subr.bf16.mxu0 %v11828_v36  ;;  %v3092_v36 = vrot.slane %v3087_v27, %v15932_v11 }
 0x989   :  { %3509 = vmatpush2.bf16.msra.mxu0 %v11826_v38 }
 0x98a   :  { %3510 = vmatprep.subr.bf16.mxu0 %v11831_v17 }
 0x98d   :  { %3511 = vmatpush2.bf16.msra.mxu0 %v11829_v9 }
 0x98e   :  { %3678 = vmatprep.subr.bf16.mxu0 %v11834_v10  ;;  %v3096_v10 = vrot.slane %v3087_v27, %v15935_v13  ;;  %v3139_v27 = vld [vmem:[%s17224_s4] sm:$0x3] }
 0xa10   :  { %v3052_v34 = vpop.f32.mrf.mxu0 }
 0xa11   :  { %v3061_v14 = vmul.f32 %v3052_v34, %v3052_v34  ;;  %v3065_v22 = vsub.f32 %v16065_v21, %v3052_v34 }
 0xa12   :  { %v3054_v12 = vpop.f32.mrf.mxu0 }
 0xa13   :  { %v3062_v24 = vmul.f32 %v3054_v12, %v3054_v12  ;;  %v3066_v33 = vsub.f32 %v16067_v18, %v3054_v12 }
 0xa14   :  { %v3056_v19 = vpop.f32.mrf.mxu0 }
 0xa15   :  { %v3063_v15 = vsub.f32 %v3056_v19, %v3061_v14 }
 0xa16   :  { %v3058_v25 = vpop.f32.mrf.mxu0 }
 0xa17   :  { %v3067_v20 = vadd.f32 1e-05, %v3063_v15  ;;  %v3064_v16 = vsub.f32 %v3058_v25, %v3062_v24 }
 0xa19   :  { %12126 = vrsqrt.f32 %v3067_v20  ;;  %v3068_v26 = vadd.f32 1e-05, %v3064_v16 }
 0xa1b   :  { %12128 = vrsqrt.f32 %v3068_v26 }
 0xa26   :  { %v12127_v23 = vpop.eup %12126 }
 0xa27   :  { %v3071_v35 = vmul.f32 %v12127_v23, %v3065_v22  ;;  %v3144_v23 = vrot.slane %v3139_v27, %v15932_v11 }
 0xa28   :  { %v12129_v38 = vpop.eup %12128 }
 0xa29   :  { %v3085_v17 = vmul.f32 %v3078_v28, %v3071_v35  ;;  %v3072_v9 = vmul.f32 %v12129_v38, %v3066_v33 }
 0xa2b   :  { %v3086_v14 = vmul.f32 %v3082_v31, %v3072_v9  ;;  %v3099_v19 = vadd.f32 %v3092_v36, %v3085_v17  ;;  %v3148_v31 = vrot.slane %v3139_v27, %v15935_v13  ;;  %v3266_v9 = vadd.f32 %v16075_v30, %v3144_v23  ;;  %v11835_v30 = vld [vmem:[#allocation39] ss:$8 sps:$4 sm:$0xff]   ;;  %v11873_v27 = vld [vmem:[#allocation37 + $0xc4] ss:$8 sps:$4 sm:$0xff]  }
 0xa2c   :  { %v11871_v23 = vld [vmem:[#allocation37 + $0xc0] ss:$8 sps:$4 sm:$0xff]  }
 0xa2d   :  { %v3100_v24 = vadd.f32 %v3096_v10, %v3086_v14  ;;  %v3101_v15 = vmin.f32 %v3099_v19, 20.0  ;;  %vm3119_vm6 = vcmp.gt.f32.partialorder %v3099_v19, 20.0 }
 0xa2f   :  { %v3102_v21 = vmin.f32 %v3100_v24, 20.0  ;;  %v3103_v34 = vmul.f32 1.442695, %v3101_v15  ;;  %v3268_v15 = vadd.f32 %v16077_v32, %v3148_v31  ;;  %vm3120_vm7 = vcmp.gt.f32.partialorder %v3100_v24, 20.0  ;;  %v11859_v32 = vld [vmem:[#allocation37] ss:$8 sps:$4 sm:$0xff]  }
 0xa30   :  { %v11879_v31 = vld [vmem:[#allocation37 + $0xa4] ss:$8 sps:$4 sm:$0xff]  }
 0xa31   :  { %v3105_v25 = vmul.f32 1.442695, %v3102_v21  ;;  %12130 = vpow2.f32 %v3103_v34 }
 0xa33   :  { %12132 = vpow2.f32 %v3105_v25 }
 0xa3e   :  { %v12131_v18 = vpop.eup %12130 }
 0xa3f   :  { %v3107_v12 = vadd.f32 2.0, %v12131_v18 }
 0xa40   :  { %v12133_v20 = vpop.eup %12132 }
 0xa41   :  { %v3108_v16 = vadd.f32 2.0, %v12133_v20  ;;  %v3109_v26 = vmul.f32 %v12131_v18, %v3107_v12  ;;  %v11832_v12 = vld [vmem:[#allocation39 + $0x10] ss:$8 sps:$4 sm:$0xff]  }
 0xa43   :  { %v3110_v29 = vmul.f32 %v12133_v20, %v3108_v16  ;;  %v3113_v22 = vadd.f32 2.0, %v3109_v26  ;;  %v3111_v33 = vmul.f32 %v3109_v26, %v3099_v19  ;;  %v11837_v16 = vld [vmem:[#allocation39 + $0x4] ss:$8 sps:$4 sm:$0xff]  }
 0xa44   :  { %v11867_v26 = vld [vmem:[#allocation37 + $0xe4] ss:$8 sps:$4 sm:$0xff]  }
 0xa45   :  { %v3114_v28 = vadd.f32 2.0, %v3110_v29  ;;  %12134 = vrcp.f32 %v3113_v22  ;;  %v3112_v36 = vmul.f32 %v3110_v29, %v3100_v24  ;;  %v11865_v29 = vld [vmem:[#allocation37 + $0xe0] ss:$8 sps:$4 sm:$0xff]   ;;  %v11870_v22 = vld [vmem:[#allocation37 + $0xd4] ss:$8 sps:$4 sm:$0xff]  }
 0xa47   :  { %12136 = vrcp.f32 %v3114_v28  ;;  %v11868_v28 = vld [vmem:[#allocation37 + $0xd0] ss:$8 sps:$4 sm:$0xff]  }
 0xa52   :  { %v12135_v35 = vpop.eup %12134 }
 0xa53   :  { %v3117_v38 = vmul.f32 %v12135_v35, %v3111_v33  ;;  %v11876_v33 = vld [vmem:[#allocation37 + $0xb4] ss:$8 sps:$4 sm:$0xff]   ;;  %v11874_v35 = vld [vmem:[#allocation37 + $0xb0] ss:$8 sps:$4 sm:$0xff]  }
 0xa54   :  { %v12137_v17 = vpop.eup %12136 }
 0xa55   :  { %v3118_v10 = vmul.f32 %v12137_v17, %v3112_v36  ;;  %v3121_v14 = vsel %vm3119_vm6, %v3099_v19, %v3117_v38  ;;  %v11864_v19 = vld [vmem:[#allocation37 + $0xf4] ss:$8 sps:$4 sm:$0xff]   ;;  %v11877_v36 = vld [vmem:[#allocation37 + $0xa0] ss:$8 sps:$4 sm:$0xff]   ;;  %v11880_v17 = vld [vmem:[#allocation37 + $0x90] ss:$8 sps:$4 sm:$0xff]  }
 0xa56   :  { %v16091_v34 = vadd.f32 %v3266_v9, %v3121_v14  ;;  %v11882_v38 = vld [vmem:[#allocation37 + $0x94] ss:$8 sps:$4 sm:$0xff]   ;;  %v11885_v9 = vld [vmem:[#allocation37 + $0x84] ss:$8 sps:$4 sm:$0xff]  }
 0xa57   :  { %v3122_v21 = vsel %vm3120_vm7, %v3100_v24, %v3118_v10  ;;  %v11862_v24 = vld [vmem:[#allocation37 + $0xf0] ss:$8 sps:$4 sm:$0xff]   ;;  %v11883_v10 = vld [vmem:[#allocation37 + $0x80] ss:$8 sps:$4 sm:$0xff]  }
 0xa58   :  { %v16093_v25 = vadd.f32 %v3268_v15, %v3122_v21  ;;  %v3274_v20 = vpack.c.bf16 %v16091_v34, %v16091_v34 }
 0xa5a   :  { %v3275_v18 = vpack.c.bf16 %v16093_v25, %v16093_v25 }
 0xa5c   :  { %3512 = vmatprep.mubr.bf16.mxu0 %v3275_v18 }
 0xa5d   :  { %3513 = vmatmul.mubr.bf16.vlgmr.msra.gmra.mxu0 %v3274_v20 }
 0xa5e   :  { %3679 = vmatpush1.bf16.msra.mxu0 %v11832_v12  ;;  %3698 = vmatprep.mubr.bf16.mxu0 %v15059_v43 }
 0xa5f   :  { %3680 = vmatprep.subr.bf16.mxu0 %v11837_v16 }
 0xa62   :  { %3681 = vmatpush1.bf16.msra.mxu0 %v11835_v30 }
 0xa63   :  { %3960 = vmatprep.subr.bf16.mxu0 %v15825_v44  ;;  %v3308_v44 = vld [vmem:[#allocation25] sm:$0x3] }
 0xa65   :  { %10347 = vmatmul.mubr.msk.bf16.vlgmr.msra.gmra.mxu0 %vm1597_vm1, %v15915_v37 }
 0xa66   :  { %3961 = vmatpush1.bf16.msra.mxu0 %v15827_v45  ;;  %v3313_v45 = vrot.slane %v3308_v44, %v15932_v11 }
 0xa67   :  { %3962 = vmatprep.subr.bf16.mxu0 %v15829_v46  ;;  %v3317_v46 = vrot.slane %v3308_v44, %v15935_v13 }
 0xa6a   :  { %3963 = vmatpush1.bf16.msra.mxu0 %v15833_v47 }
 0xa6b   :  { %3964 = vmatprep.subr.bf16.mxu0 %v15836_v48 }
 0xa6e   :  { %3965 = vmatpush1.bf16.msra.mxu0 %v15839_v49 }
 0xa6f   :  { %3966 = vmatprep.subr.bf16.mxu0 %v15842_v50 }
 0xa72   :  { %3967 = vmatpush1.bf16.msra.mxu0 %v15845_v51 }
 0xa73   :  { %3968 = vmatprep.subr.bf16.mxu0 %v15848_v52 }
 0xa76   :  { %3969 = vmatpush1.bf16.msra.mxu0 %v15851_v53 }
 0xa77   :  { %3970 = vmatprep.subr.bf16.mxu0 %v15854_v54 }
 0xa7a   :  { %3971 = vmatpush1.bf16.msra.mxu0 %v15857_v55 }
 0xa7b   :  { %3972 = vmatprep.subr.bf16.mxu0 %v15860_v56 }
 0xa7e   :  { %3973 = vmatpush1.bf16.msra.mxu0 %v15863_v57 }
 0xa7f   :  { %3974 = vmatprep.subr.bf16.mxu0 %v15866_v58 }
 0xa82   :  { %3975 = vmatpush1.bf16.msra.mxu0 %v15869_v59 }
 0xa83   :  { %3976 = vmatprep.subr.bf16.mxu0 %v15872_v60 }
 0xa86   :  { %3977 = vmatpush2.bf16.msra.mxu0 %v15875_v61  ;;  %v11840_v61 = vld [vmem:[#allocation37 + $0x74] ss:$8 sps:$4 sm:$0xff]  }
 0xa87   :  { %3978 = vmatprep.subr.bf16.mxu0 %v15878_v62  ;;  %v11838_v62 = vld [vmem:[#allocation37 + $0x70] ss:$8 sps:$4 sm:$0xff]   ;;  %3915 = vmatprep.subr.bf16.mxu1 %v11840_v61 }
 0xa8a   :  { %3979 = vmatpush2.bf16.msra.mxu0 %v15881_v63  ;;  %v11843_v63 = vld [vmem:[#allocation37 + $0x64] ss:$8 sps:$4 sm:$0xff]  }
 0xa8b   :  { %3980 = vmatprep.subr.bf16.mxu0 %v15884_v1  ;;  %v11841_v1 = vld [vmem:[#allocation37 + $0x60] ss:$8 sps:$4 sm:$0xff]  }
 0xa8e   :  { %3981 = vmatpush2.bf16.msra.mxu0 %v15887_v2  ;;  %v11846_v2 = vld [vmem:[#allocation37 + $0x54] ss:$8 sps:$4 sm:$0xff]  }
 0xa8f   :  { %3982 = vmatprep.subr.bf16.mxu0 %v15890_v3  ;;  %v11844_v3 = vld [vmem:[#allocation37 + $0x50] ss:$8 sps:$4 sm:$0xff]  }
 0xa92   :  { %3983 = vmatpush2.bf16.msra.mxu0 %v15893_v4  ;;  %v11849_v4 = vld [vmem:[#allocation37 + $0x44] ss:$8 sps:$4 sm:$0xff]  }
 0xa93   :  { %3984 = vmatprep.subr.bf16.mxu0 %v15896_v5  ;;  %v11847_v5 = vld [vmem:[#allocation37 + $0x40] ss:$8 sps:$4 sm:$0xff]  }
 0xa96   :  { %3985 = vmatpush2.bf16.msra.mxu0 %v15899_v6  ;;  %v11852_v6 = vld [vmem:[#allocation37 + $0x34] ss:$8 sps:$4 sm:$0xff]  }
 0xa97   :  { %3986 = vmatprep.subr.bf16.mxu0 %v15902_v7  ;;  %v11850_v7 = vld [vmem:[#allocation37 + $0x30] ss:$8 sps:$4 sm:$0xff]  }
 0xa9a   :  { %3987 = vmatpush2.bf16.msra.mxu0 %v15905_v8  ;;  %v11855_v8 = vld [vmem:[#allocation37 + $0x24] ss:$8 sps:$4 sm:$0xff]  }
 0xa9b   :  { %3988 = vmatprep.subr.bf16.mxu0 %v15919_v39  ;;  %v11853_v39 = vld [vmem:[#allocation37 + $0x20] ss:$8 sps:$4 sm:$0xff]  }
 0xa9e   :  { %3989 = vmatpush2.bf16.msra.mxu0 %v15921_v40  ;;  %v11858_v40 = vld [vmem:[#allocation37 + $0x14] ss:$8 sps:$4 sm:$0xff]  }
 0xa9f   :  { %3990 = vmatprep.subr.bf16.mxu0 %v15925_v41  ;;  %v11856_v41 = vld [vmem:[#allocation37 + $0x10] ss:$8 sps:$4 sm:$0xff]  }
 0xaa2   :  { %3991 = vmatpush2.bf16.msra.mxu0 %v15927_v42  ;;  %v11861_v42 = vld [vmem:[#allocation37 + $0x4] ss:$8 sps:$4 sm:$0xff]  }
 0xb1d   :  { %v3514_v47 = vpop.f32.mrf.mxu0 }
 0xb1e   :  { %v16136_v48 = vadd.f32 %v3514_v47, %v3313_v45  ;;  %v3594_v47 = vld [vmem:[#allocation28] sm:$0x3] }
 0xb1f   :  { %v3516_v49 = vpop.f32.mrf.mxu0 }
 0xb20   :  { %v16138_v50 = vadd.f32 %v3516_v49, %v3317_v46  ;;  %v3521_v51 = vmul.f32 %v16136_v48, %v16136_v48  ;;  %v3580_v46 = vld [vmem:[#allocation33] sm:$0x3] }
 0xb21   :  { %v3518_v52 = vpop.f32.mrf.mxu0 }
 0xb22   :  { %v3522_v53 = vmul.f32 %v16138_v50, %v16138_v50  ;;  %v3523_v56 = vpack.c.bf16 %v3521_v51, %v16136_v48  ;;  %v3585_v51 = vrot.slane %v3580_v46, %v15932_v11 }
 0xb23   :  { %v3519_v54 = vpop.f32.mrf.mxu0 }
 0xb24   :  { %v3524_v55 = vpack.c.bf16 %v3522_v53, %v16138_v50 }
 0xb25   :  { %v16146_v57 = vpop.f32.mrf.mxu0 }
 0xb26   :  { %3557 = vmatprep.mubr.bf16.mxu1 %v3524_v55  ;;  %v3589_v55 = vrot.slane %v3580_v46, %v15935_v13 }
 0xb27   :  { %3558 = vmatmul.mubr.bf16.vlgmr.msra.gmra.mxu1 %v3523_v56  ;;  %v16148_v58 = vpop.f32.mrf.mxu0  ;;  %v3599_v56 = vrot.slane %v3594_v47, %v15932_v11 }
 0xb28   :  { %3916 = vmatpush1.bf16.msra.mxu1 %v11838_v62  ;;  %v3603_v62 = vrot.slane %v3594_v47, %v15935_v13  ;;  %v11886_v47 = vld [vmem:[%s17225_s16 + $0x78] sm:$0xff]  }
 0xb29   :  { %v3704_v59 = vpop.f32.mrf.mxu0  ;;  %3917 = vmatprep.subr.bf16.mxu1 %v11843_v63 }
 0xb2b   :  { %v3705_v60 = vpop.f32.mrf.mxu0 }
 0xb2c   :  { %3918 = vmatpush1.bf16.msra.mxu1 %v11841_v1 }
 0xb2d   :  { %3919 = vmatprep.subr.bf16.mxu1 %v11846_v2 }
 0xb30   :  { %3920 = vmatpush1.bf16.msra.mxu1 %v11844_v3 }
 0xb31   :  { %3921 = vmatprep.subr.bf16.mxu1 %v11849_v4 }
 0xb34   :  { %3922 = vmatpush1.bf16.msra.mxu1 %v11847_v5 }
 0xb35   :  { %3923 = vmatprep.subr.bf16.mxu1 %v11852_v6 }
 0xb38   :  { %3924 = vmatpush1.bf16.msra.mxu1 %v11850_v7 }
 0xb39   :  { %3925 = vmatprep.subr.bf16.mxu1 %v11855_v8 }
 0xb3c   :  { %3926 = vmatpush1.bf16.msra.mxu1 %v11853_v39 }
 0xb3d   :  { %3927 = vmatprep.subr.bf16.mxu1 %v11858_v40 }
 0xb40   :  { %3928 = vmatpush1.bf16.msra.mxu1 %v11856_v41 }
 0xb41   :  { %3929 = vmatprep.subr.bf16.mxu1 %v11861_v42 }
 0xb44   :  { %3930 = vmatpush1.bf16.msra.mxu1 %v11859_v32  ;;  %v3634_v32 = vld [vmem:[#allocation31] sm:$0x3] }
 0xb45   :  { %3931 = vmatprep.subr.bf16.mxu1 %v11864_v19  ;;  %v3639_v19 = vrot.slane %v3634_v32, %v15932_v11 }
 0xb48   :  { %3932 = vmatpush2.bf16.msra.mxu1 %v11862_v24 }
 0xb49   :  { %3933 = vmatprep.subr.bf16.mxu1 %v11867_v26 }
 0xb4c   :  { %3934 = vmatpush2.bf16.msra.mxu1 %v11865_v29  ;;  %v3643_v29 = vrot.slane %v3634_v32, %v15935_v13  ;;  %v11919_v32 = vld [vmem:[#allocation52 + $0x24] ss:$8 sps:$4 sm:$0xff]  }
 0xb4d   :  { %3935 = vmatprep.subr.bf16.mxu1 %v11870_v22 }
 0xb50   :  { %3936 = vmatpush2.bf16.msra.mxu1 %v11868_v28 }
 0xb51   :  { %3937 = vmatprep.subr.bf16.mxu1 %v11873_v27 }
 0xb54   :  { %3938 = vmatpush2.bf16.msra.mxu1 %v11871_v23  ;;  %v3701_v23 = vadd.f32 %v16146_v57, %v3639_v19  ;;  %v11917_v19 = vld [vmem:[#allocation52 + $0x20] ss:$8 sps:$4 sm:$0xff]  }
 0xb55   :  { %3939 = vmatprep.subr.bf16.mxu1 %v11876_v33 }
 0xb58   :  { %3940 = vmatpush2.bf16.msra.mxu1 %v11874_v35 }
 0xb59   :  { %3941 = vmatprep.subr.bf16.mxu1 %v11879_v31  ;;  %v3703_v31 = vadd.f32 %v16148_v58, %v3643_v29 }
 0xb5c   :  { %3942 = vmatpush2.bf16.msra.mxu1 %v11877_v36 }
 0xb5d   :  { %3943 = vmatprep.subr.bf16.mxu1 %v11882_v38 }
 0xb60   :  { %3944 = vmatpush2.bf16.msra.mxu1 %v11880_v17 }
 0xb61   :  { %3945 = vmatprep.subr.bf16.mxu1 %v11885_v9 }
 0xb64   :  { %3946 = vmatpush2.bf16.msra.mxu1 %v11883_v10 }
 0xb65   :  { %10966 = vmatprep.subr.bf16.mxu1 %v11886_v47 }
 0xbe7   :  { %v3559_v14 = vpop.f32.mrf.mxu1 }
 0xbe8   :  { %v3568_v21 = vmul.f32 %v3559_v14, %v3559_v14  ;;  %v3572_v49 = vsub.f32 %v16136_v48, %v3559_v14  ;;  %v3743_v14 = vld [vmem:[#allocation27] sm:$0x3] }
 0xbe9   :  { %v3561_v15 = vpop.f32.mrf.mxu1 }
 0xbea   :  { %v3569_v12 = vmul.f32 %v3561_v15, %v3561_v15  ;;  %v3573_v53 = vsub.f32 %v16138_v50, %v3561_v15  ;;  %v3748_v15 = vrot.slane %v3743_v14, %v15932_v11 }
 0xbeb   :  { %v3563_v18 = vpop.f32.mrf.mxu1 }
 0xbec   :  { %v3570_v20 = vsub.f32 %v3563_v18, %v3568_v21  ;;  %v3752_v21 = vrot.slane %v3743_v14, %v15935_v13 }
 0xbed   :  { %v3565_v16 = vpop.f32.mrf.mxu1 }
 0xbee   :  { %v3574_v30 = vadd.f32 1e-05, %v3570_v20  ;;  %v3571_v44 = vsub.f32 %v3565_v16, %v3569_v12 }
 0xbf0   :  { %12138 = vrsqrt.f32 %v3574_v30  ;;  %v3575_v45 = vadd.f32 1e-05, %v3571_v44 }
 0xbf2   :  { %12140 = vrsqrt.f32 %v3575_v45 }
 0xbfd   :  { %v12139_v52 = vpop.eup %12138 }
 0xbfe   :  { %v3578_v54 = vmul.f32 %v12139_v52, %v3572_v49  ;;  %v11887_v49 = vld [vmem:[%s17225_s16 + $0x38] sm:$0xff]   ;;  %v11889_v52 = vld [vmem:[%s17225_s16 + $0x30] sm:$0xff]  }
 0xbff   :  { %v12141_v59 = vpop.eup %12140 }
 0xc00   :  { %v3592_v60 = vmul.f32 %v3585_v51, %v3578_v54  ;;  %v3579_v61 = vmul.f32 %v12141_v59, %v3573_v53  ;;  %v11888_v51 = vld [vmem:[%s17225_s16 + $0x70] sm:$0xff]   ;;  %v11890_v53 = vld [vmem:[%s17225_s16 + $0x68] sm:$0xff]   ;;  %v11894_v59 = vld [vmem:[%s17225_s16 + $0x58] sm:$0xff]  }
 0xc01   :  { %v11891_v54 = vld [vmem:[%s17225_s16 + $0x28] sm:$0xff]  }
 0xc02   :  { %v3593_v63 = vmul.f32 %v3589_v55, %v3579_v61  ;;  %v3606_v1 = vadd.f32 %v3599_v56, %v3592_v60  ;;  %v11892_v55 = vld [vmem:[%s17225_s16 + $0x60] sm:$0xff]   ;;  %v11895_v60 = vld [vmem:[%s17225_s16 + $0x18] sm:$0xff]   ;;  %v11896_v61 = vld [vmem:[%s17225_s16 + $0x50] sm:$0xff]  }
 0xc03   :  { %v11893_v56 = vld [vmem:[%s17225_s16 + $0x20] sm:$0xff]  }
 0xc04   :  { %v3607_v2 = vadd.f32 %v3603_v62, %v3593_v63  ;;  %v3608_v3 = vmin.f32 %v3606_v1, 20.0  ;;  %vm3626_vm8 = vcmp.gt.f32.partialorder %v3606_v1, 20.0  ;;  %v11897_v62 = vld [vmem:[%s17225_s16 + $0x10] sm:$0xff]   ;;  %v11898_v63 = vld [vmem:[%s17225_s16 + $0x48] sm:$0xff]  }
 0xc06   :  { %v3609_v48 = vmin.f32 %v3607_v2, 20.0  ;;  %v3610_v4 = vmul.f32 1.442695, %v3608_v3  ;;  %vm3627_vm9 = vcmp.gt.f32.partialorder %v3607_v2, 20.0  ;;  %v11901_v3 = vld [vmem:[%s17225_s16] sm:$0xff]  }
 0xc08   :  { %v3612_v5 = vmul.f32 1.442695, %v3609_v48  ;;  %12142 = vpow2.f32 %v3610_v4  ;;  %v16189_v48 = vld [vmem:[#allocation84 + $0x74] ss:$8 sps:$4 sm:$0xff]   ;;  %v11902_v4 = vld [vmem:[#allocation52 + $0x70] ss:$8 sps:$4 sm:$0xff]  }
 0xc0a   :  { %12144 = vpow2.f32 %v3612_v5  ;;  %v11904_v5 = vld [vmem:[#allocation52 + $0x74] ss:$8 sps:$4 sm:$0xff]  }
 0xc0b   :  { %4353 = vmatprep.subr.bf16.mxu0 %v11904_v5 }
 0xc15   :  { %v12143_v50 = vpop.eup %12142 }
 0xc16   :  { %v3614_v6 = vadd.f32 2.0, %v12143_v50 }
 0xc17   :  { %v12145_v7 = vpop.eup %12144 }
 0xc18   :  { %v3615_v8 = vadd.f32 2.0, %v12145_v7  ;;  %v3616_v39 = vmul.f32 %v12143_v50, %v3614_v6  ;;  %v11907_v50 = vld [vmem:[#allocation52 + $0x64] ss:$8 sps:$4 sm:$0xff]   ;;  %v11905_v6 = vld [vmem:[#allocation52 + $0x60] ss:$8 sps:$4 sm:$0xff]  }
 0xc1a   :  { %v3617_v40 = vmul.f32 %v12145_v7, %v3615_v8  ;;  %v3620_v41 = vadd.f32 2.0, %v3616_v39  ;;  %v3618_v24 = vmul.f32 %v3616_v39, %v3606_v1  ;;  %v11910_v7 = vld [vmem:[#allocation52 + $0x54] ss:$8 sps:$4 sm:$0xff]   ;;  %v11908_v8 = vld [vmem:[#allocation52 + $0x50] ss:$8 sps:$4 sm:$0xff]  }
 0xc1b   :  { %v11913_v39 = vld [vmem:[#allocation52 + $0x44] ss:$8 sps:$4 sm:$0xff]  }
 0xc1c   :  { %v3621_v42 = vadd.f32 2.0, %v3617_v40  ;;  %12146 = vrcp.f32 %v3620_v41  ;;  %v3619_v22 = vmul.f32 %v3617_v40, %v3607_v2  ;;  %v11911_v40 = vld [vmem:[#allocation52 + $0x40] ss:$8 sps:$4 sm:$0xff]   ;;  %v11916_v41 = vld [vmem:[#allocation52 + $0x34] ss:$8 sps:$4 sm:$0xff]  }
 0xc1e   :  { %12148 = vrcp.f32 %v3621_v42  ;;  %v11914_v42 = vld [vmem:[#allocation52 + $0x30] ss:$8 sps:$4 sm:$0xff]  }
 0xc29   :  { %v12147_v26 = vpop.eup %12146 }
 0xc2a   :  { %v3624_v28 = vmul.f32 %v12147_v26, %v3618_v24 }
 0xc2b   :  { %v12149_v27 = vpop.eup %12148 }
 0xc2c   :  { %v3625_v33 = vmul.f32 %v12149_v27, %v3619_v22  ;;  %v3628_v35 = vsel %vm3626_vm8, %v3606_v1, %v3624_v28  ;;  %v11899_v1 = vld [vmem:[%s17225_s16 + $0x8] sm:$0xff]  }
 0xc2d   :  { %v3707_v38 = vadd.f32 %v3701_v23, %v3628_v35 }
 0xc2e   :  { %v3629_v36 = vsel %vm3627_vm9, %v3607_v2, %v3625_v33  ;;  %v11900_v2 = vld [vmem:[%s17225_s16 + $0x40] sm:$0xff]  }
 0xc2f   :  { %v3708_v17 = vadd.f32 %v3703_v31, %v3629_v36  ;;  %v3709_v10 = vpack.c.bf16 %v3707_v38, %v3707_v38  ;;  %v4015_v36 = vld [vmem:[#allocation34] sm:$0x3]  ;;  %v4029_v38 = vld [vmem:[#allocation30] sm:$0x3] }
 0xc31   :  { %v3710_v9 = vpack.c.bf16 %v3708_v17, %v3708_v17 }
 0xc33   :  { %3947 = vmatprep.mubr.bf16.mxu1 %v3710_v9  ;;  %v4020_v9 = vrot.slane %v4015_v36, %v15932_v11 }
 0xc34   :  { %3948 = vmatmul.mubr.bf16.vlgmr.msra.gmra.mxu1 %v3709_v10 }
 0xc35   :  { %10967 = vmatpush3.bf16.msra.mxu1 %v11887_v49 }
 0xc36   :  { %10968 = vmatprep.subr.bf16.mxu1 %v11888_v51 }
 0xc39   :  { %10969 = vmatpush3.bf16.msra.mxu1 %v11889_v52 }
 0xc3a   :  { %10970 = vmatprep.subr.bf16.mxu1 %v11890_v53 }
 0xc3d   :  { %10971 = vmatpush3.bf16.msra.mxu1 %v11891_v54 }
 0xc3e   :  { %10972 = vmatprep.subr.bf16.mxu1 %v11892_v55 }
 0xc41   :  { %10973 = vmatpush3.bf16.msra.mxu1 %v11893_v56 }
 0xc42   :  { %10974 = vmatprep.subr.bf16.mxu1 %v11894_v59 }
 0xc45   :  { %10975 = vmatpush3.bf16.msra.mxu1 %v11895_v60 }
 0xc46   :  { %10976 = vmatprep.subr.bf16.mxu1 %v11896_v61 }
 0xc49   :  { %10977 = vmatpush3.bf16.msra.mxu1 %v11897_v62 }
 0xc4a   :  { %10978 = vmatprep.subr.bf16.mxu1 %v11898_v63 }
 0xc4d   :  { %10979 = vmatpush3.bf16.msra.mxu1 %v11899_v1 }
 0xc4e   :  { %10980 = vmatprep.subr.bf16.mxu1 %v11900_v2 }
 0xc51   :  { %10981 = vmatpush3.bf16.msra.mxu1 %v11901_v3 }
 0xc52   :  { %4398 = vmatprep.subr.bf16.mxu1 %v16189_v48 }
 0xcf4   :  { %v3949_v57 = vpop.f32.mrf.mxu1 }
 0xcf5   :  { %v16162_v18 = vadd.f32 %v3949_v57, %v3748_v15  ;;  %v4034_v57 = vrot.slane %v4029_v38, %v15932_v11 }
 0xcf6   :  { %v3951_v58 = vpop.f32.mrf.mxu1 }
 0xcf7   :  { %v16164_v12 = vadd.f32 %v3951_v58, %v3752_v21  ;;  %v3956_v20 = vmul.f32 %v16162_v18, %v16162_v18  ;;  %v4024_v21 = vrot.slane %v4015_v36, %v15935_v13  ;;  %v16254_v36 = vld [vmem:[#allocation84 + $0xe0] ss:$8 sps:$4 sm:$0xff]  }
 0xcf8   :  { %v3953_v16 = vpop.f32.mrf.mxu1 }
 0xcf9   :  { %v3957_v30 = vmul.f32 %v16164_v12, %v16164_v12  ;;  %v3958_v46 = vpack.c.bf16 %v3956_v20, %v16162_v18 }
 0xcfa   :  { %v3954_v44 = vpop.f32.mrf.mxu1 }
 0xcfb   :  { %v3959_v45 = vpack.c.bf16 %v3957_v30, %v16164_v12  ;;  %v4038_v30 = vrot.slane %v4029_v38, %v15935_v13  ;;  %v16257_v38 = vld [vmem:[#allocation84 + $0xd4] ss:$8 sps:$4 sm:$0xff]  }
 0xcfd   :  { %3992 = vmatprep.mubr.bf16.mxu0 %v3959_v45 }
 0xcfe   :  { %3993 = vmatmul.mubr.bf16.vlgmr.msra.gmra.mxu0 %v3958_v46 }
 0xcff   :  { %4385 = vmatprep.mubr.bf16.mxu0 %v15059_v43  ;;  %4354 = vmatpush1.bf16.msra.mxu0 %v11902_v4 }
 0xd00   :  { %4355 = vmatprep.subr.bf16.mxu0 %v11907_v50 }
 0xd03   :  { %4356 = vmatpush1.bf16.msra.mxu0 %v11905_v6 }
 0xd04   :  { %4357 = vmatprep.subr.bf16.mxu0 %v11910_v7 }
 0xd07   :  { %4358 = vmatpush1.bf16.msra.mxu0 %v11908_v8 }
 0xd08   :  { %4359 = vmatprep.subr.bf16.mxu0 %v11913_v39  ;;  %v16200_v39 = vld [vmem:[#allocation84 + $0x70] ss:$8 sps:$4 sm:$0xff]  }
 0xd0b   :  { %4360 = vmatpush1.bf16.msra.mxu0 %v11911_v40  ;;  %v16203_v40 = vld [vmem:[#allocation84 + $0x64] ss:$8 sps:$4 sm:$0xff]  }
 0xd0c   :  { %4361 = vmatprep.subr.bf16.mxu0 %v11916_v41  ;;  %v16206_v41 = vld [vmem:[#allocation84 + $0x60] ss:$8 sps:$4 sm:$0xff]  }
 0xd0f   :  { %4362 = vmatpush1.bf16.msra.mxu0 %v11914_v42  ;;  %v16209_v42 = vld [vmem:[#allocation84 + $0x54] ss:$8 sps:$4 sm:$0xff]  }
 0xd10   :  { %4363 = vmatprep.subr.bf16.mxu0 %v11919_v32  ;;  %v16218_v32 = vld [vmem:[#allocation84 + $0x40] ss:$8 sps:$4 sm:$0xff]  }
 0xd13   :  { %4364 = vmatpush1.bf16.msra.mxu0 %v11917_v19  ;;  %v16221_v19 = vld [vmem:[#allocation84 + $0x34] ss:$8 sps:$4 sm:$0xff]  }
 0xdbe   :  { %v3994_v24 = vpop.f32.mrf.mxu0 }
 0xdbf   :  { %v4003_v29 = vmul.f32 %v3994_v24, %v3994_v24  ;;  %v4007_v17 = vsub.f32 %v16162_v18, %v3994_v24  ;;  %v16224_v24 = vld [vmem:[#allocation84 + $0x30] ss:$8 sps:$4 sm:$0xff]  }
 0xdc0   :  { %v3996_v26 = vpop.f32.mrf.mxu0 }
 0xdc1   :  { %v4004_v28 = vmul.f32 %v3996_v26, %v3996_v26  ;;  %v4008_v14 = vsub.f32 %v16164_v12, %v3996_v26  ;;  %v16227_v26 = vld [vmem:[#allocation84 + $0x24] ss:$8 sps:$4 sm:$0xff]  }
 0xdc2   :  { %v3998_v22 = vpop.f32.mrf.mxu0 }
 0xdc3   :  { %v4005_v27 = vsub.f32 %v3998_v22, %v4003_v29  ;;  %v16230_v29 = vld [vmem:[#allocation84 + $0x20] ss:$8 sps:$4 sm:$0xff]   ;;  %v16233_v22 = vld [vmem:[#allocation84 + $0x14] ss:$8 sps:$4 sm:$0xff]  }
 0xdc4   :  { %v4000_v23 = vpop.f32.mrf.mxu0 }
 0xdc5   :  { %v4009_v33 = vadd.f32 1e-05, %v4005_v27  ;;  %v4006_v35 = vsub.f32 %v4000_v23, %v4004_v28  ;;  %v16236_v28 = vld [vmem:[#allocation84 + $0x10] ss:$8 sps:$4 sm:$0xff]   ;;  %v16239_v27 = vld [vmem:[#allocation84 + $0x4] ss:$8 sps:$4 sm:$0xff]  }
 0xdc6   :  { %v16242_v23 = vld [vmem:[#allocation84] ss:$8 sps:$4 sm:$0xff]  }
 0xdc7   :  { %12150 = vrsqrt.f32 %v4009_v33  ;;  %v4010_v31 = vadd.f32 1e-05, %v4006_v35  ;;  %v16245_v33 = vld [vmem:[#allocation84 + $0xf4] ss:$8 sps:$4 sm:$0xff]   ;;  %v16248_v35 = vld [vmem:[#allocation84 + $0xf0] ss:$8 sps:$4 sm:$0xff]  }
 0xdc9   :  { %12152 = vrsqrt.f32 %v4010_v31  ;;  %v16251_v31 = vld [vmem:[#allocation84 + $0xe4] ss:$8 sps:$4 sm:$0xff]  }
 0xdd4   :  { %v12151_v10 = vpop.eup %12150 }
 0xdd5   :  { %v4013_v15 = vmul.f32 %v12151_v10, %v4007_v17  ;;  %v16260_v17 = vld [vmem:[#allocation84 + $0xd0] ss:$8 sps:$4 sm:$0xff]   ;;  %v16266_v10 = vld [vmem:[#allocation84 + $0xc0] ss:$8 sps:$4 sm:$0xff]  }
 0xdd6   :  { %v12153_v58 = vpop.eup %12152 }
 0xdd7   :  { %v4027_v20 = vmul.f32 %v4020_v9, %v4013_v15  ;;  %v4014_v16 = vmul.f32 %v12153_v58, %v4008_v14  ;;  %v16263_v9 = vld [vmem:[#allocation84 + $0xc4] ss:$8 sps:$4 sm:$0xff]   ;;  %v16269_v14 = vld [vmem:[#allocation84 + $0xb4] ss:$8 sps:$4 sm:$0xff]   ;;  %v16272_v15 = vld [vmem:[#allocation84 + $0xb0] ss:$8 sps:$4 sm:$0xff]  }
 0xdd8   :  { %v16281_v58 = vld [vmem:[#allocation84 + $0x94] ss:$8 sps:$4 sm:$0xff]  }
 0xdd9   :  { %v4028_v44 = vmul.f32 %v4024_v21, %v4014_v16  ;;  %v4041_v45 = vadd.f32 %v4034_v57, %v4027_v20  ;;  %v16275_v21 = vld [vmem:[#allocation84 + $0xa4] ss:$8 sps:$4 sm:$0xff]   ;;  %v16278_v57 = vld [vmem:[#allocation84 + $0xa0] ss:$8 sps:$4 sm:$0xff]   ;;  %v16284_v20 = vld [vmem:[#allocation84 + $0x90] ss:$8 sps:$4 sm:$0xff]  }
 0xdda   :  { %v16287_v16 = vld [vmem:[#allocation84 + $0x84] ss:$8 sps:$4 sm:$0xff]  }
 0xddb   :  { %v4042_v46 = vadd.f32 %v4038_v30, %v4028_v44  ;;  %v4043_v47 = vmin.f32 %v4041_v45, 20.0  ;;  %vm4061_vm10 = vcmp.gt.f32.partialorder %v4041_v45, 20.0  ;;  %v16290_v30 = vld [vmem:[#allocation84 + $0x80] ss:$8 sps:$4 sm:$0xff]  }
 0xddc   :  { %v11920_v44 = vld [vmem:[#allocation52 + $0x10] ss:$8 sps:$4 sm:$0xff]  }
 0xddd   :  { %v4044_v18 = vmin.f32 %v4042_v46, 20.0  ;;  %v4045_v49 = vmul.f32 1.442695, %v4043_v47  ;;  %vm4062_vm11 = vcmp.gt.f32.partialorder %v4042_v46, 20.0  ;;  %v11923_v47 = vld [vmem:[#allocation52] ss:$8 sps:$4 sm:$0xff]  }
 0xddf   :  { %v4047_v51 = vmul.f32 1.442695, %v4044_v18  ;;  %12154 = vpow2.f32 %v4045_v49  ;;  %v11928_v18 = vld [vmem:[#allocation57 + $0x14] ss:$8 sps:$4 sm:$0xff]  }
 0xde1   :  { %12156 = vpow2.f32 %v4047_v51  ;;  %v10380_v51 = vld [vmem:[%s17226_s18] ss:$0 sm:$0xff] }
 0xdec   :  { %v12155_v12 = vpop.eup %12154 }
 0xded   :  { %v4049_v52 = vadd.f32 2.0, %v12155_v12 }
 0xdee   :  { %v12157_v53 = vpop.eup %12156 }
 0xdef   :  { %v4050_v54 = vadd.f32 2.0, %v12157_v53  ;;  %v4051_v55 = vmul.f32 %v12155_v12, %v4049_v52 }
 0xdf1   :  { %v4052_v56 = vmul.f32 %v12157_v53, %v4050_v54  ;;  %v4055_v59 = vadd.f32 2.0, %v4051_v55  ;;  %v4053_v61 = vmul.f32 %v4051_v55, %v4041_v45 }
 0xdf3   :  { %v4056_v60 = vadd.f32 2.0, %v4052_v56  ;;  %12158 = vrcp.f32 %v4055_v59  ;;  %v4054_v63 = vmul.f32 %v4052_v56, %v4042_v46  ;;  %v11926_v56 = vld [vmem:[#allocation57 + $0x10] ss:$8 sps:$4 sm:$0xff]  }
 0xdf5   :  { %12160 = vrcp.f32 %v4056_v60  ;;  %v11931_v60 = vld [vmem:[#allocation57 + $0x4] ss:$8 sps:$4 sm:$0xff]  }
 0xe00   :  { %v12159_v62 = vpop.eup %12158 }
 0xe01   :  { %v4059_v1 = vmul.f32 %v12159_v62, %v4053_v61  ;;  %v11929_v61 = vld [vmem:[#allocation57] ss:$8 sps:$4 sm:$0xff]   ;;  %v4261_v62 = vld [vmem:[#allocation40] sm:$0x3] }
 0xe02   :  { %v12161_v2 = vpop.eup %12160 }
 0xe03   :  { %v4060_v3 = vmul.f32 %v12161_v2, %v4054_v63  ;;  %v4063_v4 = vsel %vm4061_vm10, %v4041_v45, %v4059_v1  ;;  %v11922_v45 = vld [vmem:[#allocation52 + $0x14] ss:$8 sps:$4 sm:$0xff]   ;;  %v4266_v63 = vrot.slane %v4261_v62, %v15932_v11  ;;  %v4270_v1 = vrot.slane %v4261_v62, %v15935_v13  ;;  %v11944_v62 = vld [vmem:[#allocation54 + $0x30] ss:$8 sps:$4 sm:$0xff]  }
 0xe04   :  { %v4065_v50 = vadd.f32 %v4063_v4, %v16091_v34  ;;  %v16212_v34 = vld [vmem:[#allocation84 + $0x50] ss:$8 sps:$4 sm:$0xff]   ;;  %4365 = vmatprep.subr.bf16.mxu0 %v11922_v45 }
 0xe05   :  { %v4064_v5 = vsel %vm4062_vm11, %v4042_v46, %v4060_v3  ;;  %4366 = vmatpush1.bf16.msra.mxu0 %v11920_v44  ;;  %v11925_v46 = vld [vmem:[#allocation52 + $0x4] ss:$8 sps:$4 sm:$0xff]  }
 0xe06   :  { %v4066_v6 = vadd.f32 %v4064_v5, %v16093_v25  ;;  %v4067_v8 = vpack.c.bf16 %v4065_v50, %v4065_v50  ;;  %v16215_v25 = vld [vmem:[#allocation84 + $0x44] ss:$8 sps:$4 sm:$0xff]   ;;  %4367 = vmatprep.subr.bf16.mxu0 %v11925_v46 }
 0xe08   :  { %v4068_v7 = vpack.c.bf16 %v4066_v6, %v4066_v6 }
 0xe09   :  { %4368 = vmatpush1.bf16.msra.mxu0 %v11923_v47 }
 0xe0a   :  { %4236 = vmatprep.mubr.bf16.mxu1 %v4068_v7  ;;  %4551 = vmatprep.subr.bf16.mxu0 %v11928_v18 }
 0xe0b   :  { %4237 = vmatmul.mubr.bf16.vlgmr.msra.gmra.mxu1 %v4067_v8 }
 0xe0c   :  { %4399 = vmatpush1.bf16.msra.mxu1 %v16200_v39 }
 0xe0d   :  { %4400 = vmatprep.subr.bf16.mxu1 %v16203_v40 }
 0xe10   :  { %4401 = vmatpush1.bf16.msra.mxu1 %v16206_v41 }
 0xe11   :  { %4402 = vmatprep.subr.bf16.mxu1 %v16209_v42 }
 0xe14   :  { %4403 = vmatpush1.bf16.msra.mxu1 %v16212_v34 }
 0xe15   :  { %4404 = vmatprep.subr.bf16.mxu1 %v16215_v25 }
 0xe18   :  { %4405 = vmatpush1.bf16.msra.mxu1 %v16218_v32 }
 0xe19   :  { %4406 = vmatprep.subr.bf16.mxu1 %v16221_v19 }
 0xe1c   :  { %4407 = vmatpush1.bf16.msra.mxu1 %v16224_v24 }
 0xe1d   :  { %4408 = vmatprep.subr.bf16.mxu1 %v16227_v26 }
 0xe20   :  { %4409 = vmatpush1.bf16.msra.mxu1 %v16230_v29 }
 0xe21   :  { %4410 = vmatprep.subr.bf16.mxu1 %v16233_v22 }
 0xe24   :  { %4411 = vmatpush1.bf16.msra.mxu1 %v16236_v28 }
 0xe25   :  { %4412 = vmatprep.subr.bf16.mxu1 %v16239_v27 }
 0xe28   :  { %4413 = vmatpush1.bf16.msra.mxu1 %v16242_v23 }
 0xe29   :  { %4414 = vmatprep.subr.bf16.mxu1 %v16245_v33 }
 0xe2c   :  { %4415 = vmatpush2.bf16.msra.mxu1 %v16248_v35 }
 0xe2d   :  { %4416 = vmatprep.subr.bf16.mxu1 %v16251_v31 }
 0xe30   :  { %4417 = vmatpush2.bf16.msra.mxu1 %v16254_v36 }
 0xe31   :  { %4418 = vmatprep.subr.bf16.mxu1 %v16257_v38 }
 0xe34   :  { %4419 = vmatpush2.bf16.msra.mxu1 %v16260_v17 }
 0xe35   :  { %4420 = vmatprep.subr.bf16.mxu1 %v16263_v9 }
 0xe38   :  { %4421 = vmatpush2.bf16.msra.mxu1 %v16266_v10 }
 0xe39   :  { %4422 = vmatprep.subr.bf16.mxu1 %v16269_v14 }
 0xe3c   :  { %4423 = vmatpush2.bf16.msra.mxu1 %v16272_v15 }
 0xe3d   :  { %4424 = vmatprep.subr.bf16.mxu1 %v16275_v21 }
 0xe40   :  { %4425 = vmatpush2.bf16.msra.mxu1 %v16278_v57 }
 0xe41   :  { %4426 = vmatprep.subr.bf16.mxu1 %v16281_v58 }
 0xe44   :  { %4427 = vmatpush2.bf16.msra.mxu1 %v16284_v20 }
 0xe45   :  { %4428 = vmatprep.subr.bf16.mxu1 %v16287_v16 }
 0xe48   :  { %4429 = vmatpush2.bf16.msra.mxu1 %v16290_v30 }
 0xe49   :  { %4833 = vmatprep.subr.bf16.mxu1 %v16189_v48 }
 0xecb   :  { %v10982_v49 = vpop.f32.mrf.mxu1 }
 0xecd   :  { %v10983_v12 = vpop.f32.mrf.mxu1 }
 0xece   :  { %v10984_v52 = vadd.f32 %v10983_v12, %v10982_v49  ;;  %v11932_v12 = vld [vmem:[#allocation54 + $0x70] ss:$8 sps:$4 sm:$0xff]  }
 0xecf   :  { %v10985_v53 = vpop.f32.mrf.mxu1 }
 0xed0   :  { %v4239_v54 = vadd.f32 %v10984_v52, %v10380_v51  ;;  %v11934_v51 = vld [vmem:[#allocation54 + $0x74] ss:$8 sps:$4 sm:$0xff]   ;;  %v11937_v52 = vld [vmem:[#allocation54 + $0x64] ss:$8 sps:$4 sm:$0xff]   ;;  %v11935_v53 = vld [vmem:[#allocation54 + $0x60] ss:$8 sps:$4 sm:$0xff]  }
 0xed1   :  { %v10986_v55 = vpop.f32.mrf.mxu1 }
 0xed2   :  { %v16295_v59 = vpack.c.bf16 %v4239_v54, %v4239_v54  ;;  %v11940_v54 = vld [vmem:[#allocation54 + $0x54] ss:$8 sps:$4 sm:$0xff]   ;;  %v11938_v55 = vld [vmem:[#allocation54 + $0x50] ss:$8 sps:$4 sm:$0xff]  }
 0xed4   :  { %4386 = vmatmul.mubr.bf16.vlgmr.msra.gmra.mxu0 %v16295_v59 }
 0xed5   :  { %4552 = vmatpush1.bf16.msra.mxu0 %v11926_v56  ;;  %4571 = vmatprep.mubr.bf16.mxu0 %v15059_v43  ;;  %v11943_v56 = vld [vmem:[#allocation54 + $0x44] ss:$8 sps:$4 sm:$0xff]  }
 0xed6   :  { %4553 = vmatprep.subr.bf16.mxu0 %v11931_v60  ;;  %v11941_v60 = vld [vmem:[#allocation54 + $0x40] ss:$8 sps:$4 sm:$0xff]  }
 0xed9   :  { %4554 = vmatpush1.bf16.msra.mxu0 %v11929_v61  ;;  %v11946_v61 = vld [vmem:[#allocation54 + $0x34] ss:$8 sps:$4 sm:$0xff]  }
 0xeda   :  { %4788 = vmatprep.subr.bf16.mxu0 %v11934_v51  ;;  %v11967_v51 = vld [vmem:[#allocation54 + $0xc4] ss:$8 sps:$4 sm:$0xff]  }
 0xedc   :  { %10417 = vmatmul.mubr.msk.bf16.vlgmr.msra.gmra.mxu0 %vm1597_vm1, %v15915_v37 }
 0xedd   :  { %4789 = vmatpush1.bf16.msra.mxu0 %v11932_v12  ;;  %v11965_v12 = vld [vmem:[#allocation54 + $0xc0] ss:$8 sps:$4 sm:$0xff]  }
 0xede   :  { %4790 = vmatprep.subr.bf16.mxu0 %v11937_v52  ;;  %v11970_v52 = vld [vmem:[#allocation54 + $0xb4] ss:$8 sps:$4 sm:$0xff]  }
 0xee1   :  { %4791 = vmatpush1.bf16.msra.mxu0 %v11935_v53  ;;  %v11968_v53 = vld [vmem:[#allocation54 + $0xb0] ss:$8 sps:$4 sm:$0xff]  }
 0xee2   :  { %4792 = vmatprep.subr.bf16.mxu0 %v11940_v54  ;;  %v11973_v54 = vld [vmem:[#allocation54 + $0xa4] ss:$8 sps:$4 sm:$0xff]  }
 0xee5   :  { %4793 = vmatpush1.bf16.msra.mxu0 %v11938_v55  ;;  %v11971_v55 = vld [vmem:[#allocation54 + $0xa0] ss:$8 sps:$4 sm:$0xff]  }
 0xee6   :  { %4794 = vmatprep.subr.bf16.mxu0 %v11943_v56  ;;  %v11976_v56 = vld [vmem:[#allocation54 + $0x94] ss:$8 sps:$4 sm:$0xff]  }
 0xee9   :  { %4795 = vmatpush1.bf16.msra.mxu0 %v11941_v60  ;;  %v11974_v60 = vld [vmem:[#allocation54 + $0x90] ss:$8 sps:$4 sm:$0xff]  }
 0xeea   :  { %4796 = vmatprep.subr.bf16.mxu0 %v11946_v61  ;;  %v11979_v61 = vld [vmem:[#allocation54 + $0x84] ss:$8 sps:$4 sm:$0xff]  }
 0xeed   :  { %4797 = vmatpush1.bf16.msra.mxu0 %v11944_v62  ;;  %v11977_v62 = vld [vmem:[#allocation54 + $0x80] ss:$8 sps:$4 sm:$0xff]  }
 0xf94   :  { %v4387_v2 = vpop.f32.mrf.mxu0 }
 0xf95   :  { %v16303_v3 = vadd.f32 %v4387_v2, %v4266_v63  ;;  %v11949_v63 = vld [vmem:[#allocation54 + $0x24] ss:$8 sps:$4 sm:$0xff]   ;;  %v11952_v2 = vld [vmem:[#allocation54 + $0x14] ss:$8 sps:$4 sm:$0xff]  }
 0xf96   :  { %v4389_v4 = vpop.f32.mrf.mxu0  ;;  %4798 = vmatprep.subr.bf16.mxu0 %v11949_v63  ;;  %v11982_v63 = vld [vmem:[#allocation55 + $0x74] ss:$8 sps:$4 sm:$0xff]  }
 0xf97   :  { %v16305_v5 = vadd.f32 %v4389_v4, %v4270_v1  ;;  %v4394_v50 = vmul.f32 %v16303_v3, %v16303_v3  ;;  %v11947_v1 = vld [vmem:[#allocation54 + $0x20] ss:$8 sps:$4 sm:$0xff]   ;;  %v11950_v4 = vld [vmem:[#allocation54 + $0x10] ss:$8 sps:$4 sm:$0xff]  }
 0xf98   :  { %v4391_v6 = vpop.f32.mrf.mxu0  ;;  %4799 = vmatpush1.bf16.msra.mxu0 %v11947_v1 }
 0xf99   :  { %v4395_v7 = vmul.f32 %v16305_v5, %v16305_v5  ;;  %v4396_v45 = vpack.c.bf16 %v4394_v50, %v16303_v3  ;;  %4800 = vmatprep.subr.bf16.mxu0 %v11952_v2  ;;  %v11955_v50 = vld [vmem:[#allocation54 + $0x4] ss:$8 sps:$4 sm:$0xff]   ;;  %v11953_v6 = vld [vmem:[#allocation54] ss:$8 sps:$4 sm:$0xff]  }
 0xf9a   :  { %v4392_v8 = vpop.f32.mrf.mxu0 }
 0xf9b   :  { %v4397_v44 = vpack.c.bf16 %v4395_v7, %v16305_v5  ;;  %v11958_v7 = vld [vmem:[#allocation54 + $0xf4] ss:$8 sps:$4 sm:$0xff]   ;;  %v11956_v8 = vld [vmem:[#allocation54 + $0xf0] ss:$8 sps:$4 sm:$0xff]  }
 0xf9c   :  { %v16313_v46 = vpop.f32.mrf.mxu0  ;;  %4801 = vmatpush1.bf16.msra.mxu0 %v11950_v4 }
 0xf9d   :  { %4430 = vmatprep.mubr.bf16.mxu1 %v4397_v44  ;;  %4802 = vmatprep.subr.bf16.mxu0 %v11955_v50  ;;  %v11961_v44 = vld [vmem:[#allocation54 + $0xe4] ss:$8 sps:$4 sm:$0xff]  }
 0xf9e   :  { %4431 = vmatmul.mubr.bf16.vlgmr.msra.gmra.mxu1 %v4396_v45  ;;  %v16315_v47 = vpop.f32.mrf.mxu0  ;;  %v11959_v45 = vld [vmem:[#allocation54 + $0xe0] ss:$8 sps:$4 sm:$0xff]  }
 0xf9f   :  { %4834 = vmatpush1.bf16.msra.mxu1 %v16200_v39 }
 0xfa0   :  { %v4577_v18 = vpop.f32.mrf.mxu0  ;;  %4835 = vmatprep.subr.bf16.mxu1 %v16203_v40  ;;  %4803 = vmatpush1.bf16.msra.mxu0 %v11953_v6 }
 0xfa1   :  { %4804 = vmatprep.subr.bf16.mxu0 %v11958_v7  ;;  %v11964_v18 = vld [vmem:[#allocation54 + $0xd4] ss:$8 sps:$4 sm:$0xff]  }
 0xfa2   :  { %v4578_v49 = vpop.f32.mrf.mxu0 }
 0xfa3   :  { %4836 = vmatpush1.bf16.msra.mxu1 %v16206_v41  ;;  %v11962_v49 = vld [vmem:[#allocation54 + $0xd0] ss:$8 sps:$4 sm:$0xff]  }
 0xfa4   :  { %4837 = vmatprep.subr.bf16.mxu1 %v16209_v42  ;;  %4805 = vmatpush2.bf16.msra.mxu0 %v11956_v8 }
 0xfa5   :  { %4806 = vmatprep.subr.bf16.mxu0 %v11961_v44 }
 0xfa7   :  { %4838 = vmatpush1.bf16.msra.mxu1 %v16212_v34 }
 0xfa8   :  { %4839 = vmatprep.subr.bf16.mxu1 %v16215_v25  ;;  %4807 = vmatpush2.bf16.msra.mxu0 %v11959_v45 }
 0xfa9   :  { %4808 = vmatprep.subr.bf16.mxu0 %v11964_v18 }
 0xfab   :  { %4840 = vmatpush1.bf16.msra.mxu1 %v16218_v32 }
 0xfac   :  { %4841 = vmatprep.subr.bf16.mxu1 %v16221_v19  ;;  %4809 = vmatpush2.bf16.msra.mxu0 %v11962_v49  ;;  %v4453_v49 = vld [vmem:[#allocation49] sm:$0x3] }
 0xfad   :  { %4810 = vmatprep.subr.bf16.mxu0 %v11967_v51  ;;  %v4467_v51 = vld [vmem:[#allocation43] sm:$0x3] }
 0xfaf   :  { %4842 = vmatpush1.bf16.msra.mxu1 %v16224_v24 }
 0xfb0   :  { %4843 = vmatprep.subr.bf16.mxu1 %v16227_v26  ;;  %4811 = vmatpush2.bf16.msra.mxu0 %v11965_v12 }
 0xfb1   :  { %4812 = vmatprep.subr.bf16.mxu0 %v11970_v52  ;;  %v4458_v52 = vrot.slane %v4453_v49, %v15932_v11 }
 0xfb3   :  { %4844 = vmatpush1.bf16.msra.mxu1 %v16230_v29 }
 0xfb4   :  { %4845 = vmatprep.subr.bf16.mxu1 %v16233_v22  ;;  %4813 = vmatpush2.bf16.msra.mxu0 %v11968_v53 }
 0xfb5   :  { %4814 = vmatprep.subr.bf16.mxu0 %v11973_v54 }
 0xfb7   :  { %4846 = vmatpush1.bf16.msra.mxu1 %v16236_v28 }
 0xfb8   :  { %4847 = vmatprep.subr.bf16.mxu1 %v16239_v27  ;;  %4815 = vmatpush2.bf16.msra.mxu0 %v11971_v55 }
 0xfb9   :  { %4816 = vmatprep.subr.bf16.mxu0 %v11976_v56  ;;  %v4462_v56 = vrot.slane %v4453_v49, %v15935_v13 }
 0xfbb   :  { %4848 = vmatpush1.bf16.msra.mxu1 %v16242_v23 }
 0xfbc   :  { %4849 = vmatprep.subr.bf16.mxu1 %v16245_v33  ;;  %4817 = vmatpush2.bf16.msra.mxu0 %v11974_v60  ;;  %v4472_v60 = vrot.slane %v4467_v51, %v15932_v11 }
 0xfbd   :  { %4818 = vmatprep.subr.bf16.mxu0 %v11979_v61 }
 0xfbf   :  { %4850 = vmatpush2.bf16.msra.mxu1 %v16248_v35 }
 0xfc0   :  { %4851 = vmatprep.subr.bf16.mxu1 %v16251_v31  ;;  %4819 = vmatpush2.bf16.msra.mxu0 %v11977_v62 }
 0xfc1   :  { %5046 = vmatprep.subr.bf16.mxu0 %v11982_v63 }
 0xfc3   :  { %4852 = vmatpush2.bf16.msra.mxu1 %v16254_v36 }
 0xfc4   :  { %4853 = vmatprep.subr.bf16.mxu1 %v16257_v38 }
 0xfc7   :  { %4854 = vmatpush2.bf16.msra.mxu1 %v16260_v17 }
 0xfc8   :  { %4855 = vmatprep.subr.bf16.mxu1 %v16263_v9 }
 0xfcb   :  { %4856 = vmatpush2.bf16.msra.mxu1 %v16266_v10 }
 0xfcc   :  { %4857 = vmatprep.subr.bf16.mxu1 %v16269_v14 }
 0xfcf   :  { %4858 = vmatpush2.bf16.msra.mxu1 %v16272_v15 }
 0xfd0   :  { %4859 = vmatprep.subr.bf16.mxu1 %v16275_v21 }
 0xfd3   :  { %4860 = vmatpush2.bf16.msra.mxu1 %v16278_v57 }
 0xfd4   :  { %4861 = vmatprep.subr.bf16.mxu1 %v16281_v58 }
 0xfd7   :  { %4862 = vmatpush2.bf16.msra.mxu1 %v16284_v20 }
 0xfd8   :  { %4863 = vmatprep.subr.bf16.mxu1 %v16287_v16 }
 0xfdb   :  { %4864 = vmatpush2.bf16.msra.mxu1 %v16290_v30 }
 0xfdc   :  { %5340 = vmatprep.subr.bf16.mxu1 %v16189_v48 }
0x105e   :  { %v4432_v1 = vpop.f32.mrf.mxu1 }
0x105f   :  { %v4441_v4 = vmul.f32 %v4432_v1, %v4432_v1  ;;  %v4445_v12 = vsub.f32 %v16303_v3, %v4432_v1 }
0x1060   :  { %v4434_v2 = vpop.f32.mrf.mxu1 }
0x1061   :  { %v4442_v6 = vmul.f32 %v4434_v2, %v4434_v2  ;;  %v4446_v54 = vsub.f32 %v16305_v5, %v4434_v2 }
0x1062   :  { %v4436_v50 = vpop.f32.mrf.mxu1 }
0x1063   :  { %v4443_v7 = vsub.f32 %v4436_v50, %v4441_v4  ;;  %v4476_v4 = vrot.slane %v4467_v51, %v15935_v13  ;;  %v4507_v51 = vld [vmem:[#allocation48] sm:$0x3] }
0x1064   :  { %v4438_v8 = vpop.f32.mrf.mxu1 }
0x1065   :  { %v4447_v44 = vadd.f32 1e-05, %v4443_v7  ;;  %v4444_v45 = vsub.f32 %v4438_v8, %v4442_v6 }
0x1067   :  { %12162 = vrsqrt.f32 %v4447_v44  ;;  %v4448_v18 = vadd.f32 1e-05, %v4444_v45 }
0x1069   :  { %12164 = vrsqrt.f32 %v4448_v18 }
0x1074   :  { %v12163_v53 = vpop.eup %12162 }
0x1075   :  { %v4451_v55 = vmul.f32 %v12163_v53, %v4445_v12 }
0x1076   :  { %v12165_v61 = vpop.eup %12164 }
0x1077   :  { %v4465_v62 = vmul.f32 %v4458_v52, %v4451_v55  ;;  %v4452_v63 = vmul.f32 %v12165_v61, %v4446_v54  ;;  %v4512_v54 = vrot.slane %v4507_v51, %v15932_v11 }
0x1079   :  { %v4466_v50 = vmul.f32 %v4462_v56, %v4452_v63  ;;  %v4479_v6 = vadd.f32 %v4472_v60, %v4465_v62  ;;  %v4516_v60 = vrot.slane %v4507_v51, %v15935_v13  ;;  %v11997_v51 = vld [vmem:[#allocation55 + $0x24] ss:$8 sps:$4 sm:$0xff]  }
0x107b   :  { %v4480_v7 = vadd.f32 %v4476_v4, %v4466_v50  ;;  %v4481_v8 = vmin.f32 %v4479_v6, 20.0  ;;  %vm4499_vm12 = vcmp.gt.f32.partialorder %v4479_v6, 20.0  ;;  %v4574_v4 = vadd.f32 %v16313_v46, %v4512_v54  ;;  %v11988_v46 = vld [vmem:[#allocation55 + $0x54] ss:$8 sps:$4 sm:$0xff]   ;;  %v11995_v54 = vld [vmem:[#allocation55 + $0x20] ss:$8 sps:$4 sm:$0xff]  }
0x107d   :  { %v4482_v3 = vmin.f32 %v4480_v7, 20.0  ;;  %v4483_v1 = vmul.f32 1.442695, %v4481_v8  ;;  %vm4500_vm13 = vcmp.gt.f32.partialorder %v4480_v7, 20.0 }
0x107f   :  { %v4485_v44 = vmul.f32 1.442695, %v4482_v3  ;;  %12166 = vpow2.f32 %v4483_v1  ;;  %v4576_v3 = vadd.f32 %v16315_v47, %v4516_v60  ;;  %v11991_v47 = vld [vmem:[#allocation55 + $0x44] ss:$8 sps:$4 sm:$0xff]  }
0x1080   :  { %v12003_v60 = vld [vmem:[#allocation55 + $0x4] ss:$8 sps:$4 sm:$0xff]  }
0x1081   :  { %12168 = vpow2.f32 %v4485_v44 }
0x108c   :  { %v12167_v5 = vpop.eup %12166 }
0x108d   :  { %v4487_v2 = vadd.f32 2.0, %v12167_v5 }
0x108e   :  { %v12169_v45 = vpop.eup %12168 }
0x108f   :  { %v4488_v18 = vadd.f32 2.0, %v12169_v45  ;;  %v4489_v49 = vmul.f32 %v12167_v5, %v4487_v2 }
0x1091   :  { %v4490_v12 = vmul.f32 %v12169_v45, %v4488_v18  ;;  %v4493_v53 = vadd.f32 2.0, %v4489_v49  ;;  %v4491_v55 = vmul.f32 %v4489_v49, %v4479_v6  ;;  %v11980_v45 = vld [vmem:[#allocation55 + $0x70] ss:$8 sps:$4 sm:$0xff]   ;;  %v11985_v49 = vld [vmem:[#allocation55 + $0x64] ss:$8 sps:$4 sm:$0xff]  }
0x1093   :  { %v4494_v52 = vadd.f32 2.0, %v4490_v12  ;;  %12170 = vrcp.f32 %v4493_v53  ;;  %v4492_v61 = vmul.f32 %v4490_v12, %v4480_v7  ;;  %v11983_v12 = vld [vmem:[#allocation55 + $0x60] ss:$8 sps:$4 sm:$0xff]   ;;  %v11994_v53 = vld [vmem:[#allocation55 + $0x34] ss:$8 sps:$4 sm:$0xff]  }
0x1095   :  { %12172 = vrcp.f32 %v4494_v52  ;;  %v11992_v52 = vld [vmem:[#allocation55 + $0x30] ss:$8 sps:$4 sm:$0xff]  }
0x10a0   :  { %v12171_v56 = vpop.eup %12170 }
0x10a1   :  { %v4497_v62 = vmul.f32 %v12171_v56, %v4491_v55  ;;  %v12000_v55 = vld [vmem:[#allocation55 + $0x14] ss:$8 sps:$4 sm:$0xff]   ;;  %v11998_v56 = vld [vmem:[#allocation55 + $0x10] ss:$8 sps:$4 sm:$0xff]  }
0x10a2   :  { %v12173_v63 = vpop.eup %12172 }
0x10a3   :  { %v4498_v50 = vmul.f32 %v12173_v63, %v4492_v61  ;;  %v4501_v8 = vsel %vm4499_vm12, %v4479_v6, %v4497_v62  ;;  %v11986_v6 = vld [vmem:[#allocation55 + $0x50] ss:$8 sps:$4 sm:$0xff]   ;;  %v12001_v61 = vld [vmem:[#allocation55] ss:$8 sps:$4 sm:$0xff]  }
0x10a4   :  { %v4580_v44 = vadd.f32 %v4574_v4, %v4501_v8  ;;  %v4616_v62 = vld [vmem:[#allocation42] sm:$0x3] }
0x10a5   :  { %v4502_v1 = vsel %vm4500_vm13, %v4480_v7, %v4498_v50  ;;  %v11989_v7 = vld [vmem:[#allocation55 + $0x40] ss:$8 sps:$4 sm:$0xff]   ;;  %v4621_v63 = vrot.slane %v4616_v62, %v15932_v11  ;;  %v4625_v4 = vrot.slane %v4616_v62, %v15935_v13  ;;  %v12019_v62 = vld [vmem:[#allocation69 + $0x20] ss:$8 sps:$4 sm:$0xff]  }
0x10a6   :  { %v4581_v5 = vadd.f32 %v4576_v3, %v4502_v1  ;;  %v4582_v18 = vpack.c.bf16 %v4580_v44, %v4580_v44 }
0x10a8   :  { %v4583_v2 = vpack.c.bf16 %v4581_v5, %v4581_v5 }
0x10aa   :  { %4820 = vmatprep.mubr.bf16.mxu0 %v4583_v2 }
0x10ab   :  { %4821 = vmatmul.mubr.bf16.vlgmr.msra.gmra.mxu0 %v4582_v18 }
0x10ac   :  { %5047 = vmatpush1.bf16.msra.mxu0 %v11980_v45  ;;  %5078 = vmatprep.mubr.bf16.mxu0 %v15059_v43 }
0x10ad   :  { %5048 = vmatprep.subr.bf16.mxu0 %v11985_v49 }
0x10b0   :  { %5049 = vmatpush1.bf16.msra.mxu0 %v11983_v12 }
0x10b1   :  { %5050 = vmatprep.subr.bf16.mxu0 %v11988_v46 }
0x10b4   :  { %5051 = vmatpush1.bf16.msra.mxu0 %v11986_v6 }
0x10b5   :  { %5052 = vmatprep.subr.bf16.mxu0 %v11991_v47  ;;  %v12006_v47 = vld [vmem:[#allocation69 + $0x74] ss:$8 sps:$4 sm:$0xff]  }
0x10b8   :  { %5053 = vmatpush1.bf16.msra.mxu0 %v11989_v7  ;;  %v12004_v7 = vld [vmem:[#allocation69 + $0x70] ss:$8 sps:$4 sm:$0xff]  }
0x10b9   :  { %5054 = vmatprep.subr.bf16.mxu0 %v11994_v53  ;;  %v12009_v53 = vld [vmem:[#allocation69 + $0x64] ss:$8 sps:$4 sm:$0xff]  }
0x10bc   :  { %5055 = vmatpush1.bf16.msra.mxu0 %v11992_v52  ;;  %v12007_v52 = vld [vmem:[#allocation69 + $0x60] ss:$8 sps:$4 sm:$0xff]  }
0x10bd   :  { %5056 = vmatprep.subr.bf16.mxu0 %v11997_v51  ;;  %v12012_v51 = vld [vmem:[#allocation69 + $0x54] ss:$8 sps:$4 sm:$0xff]  }
0x10c0   :  { %5057 = vmatpush1.bf16.msra.mxu0 %v11995_v54  ;;  %v12010_v54 = vld [vmem:[#allocation69 + $0x50] ss:$8 sps:$4 sm:$0xff]  }
0x10c1   :  { %5058 = vmatprep.subr.bf16.mxu0 %v12000_v55  ;;  %v12015_v55 = vld [vmem:[#allocation69 + $0x44] ss:$8 sps:$4 sm:$0xff]  }
0x10c4   :  { %5059 = vmatpush1.bf16.msra.mxu0 %v11998_v56  ;;  %v12013_v56 = vld [vmem:[#allocation69 + $0x40] ss:$8 sps:$4 sm:$0xff]  }
0x10c5   :  { %5060 = vmatprep.subr.bf16.mxu0 %v12003_v60  ;;  %v12018_v60 = vld [vmem:[#allocation69 + $0x34] ss:$8 sps:$4 sm:$0xff]  }
0x10c8   :  { %5061 = vmatpush1.bf16.msra.mxu0 %v12001_v61  ;;  %v12016_v61 = vld [vmem:[#allocation69 + $0x30] ss:$8 sps:$4 sm:$0xff]  }
0x10c9   :  { %5295 = vmatprep.subr.bf16.mxu0 %v12006_v47  ;;  %v12042_v47 = vld [vmem:[#allocation69 + $0xb4] ss:$8 sps:$4 sm:$0xff]  }
0x10cb   :  { %5079 = vmatmul.mubr.bf16.vlgmr.msra.gmra.mxu0 %v16295_v59 }
0x10cc   :  { %5296 = vmatpush1.bf16.msra.mxu0 %v12004_v7  ;;  %v12040_v7 = vld [vmem:[#allocation69 + $0xb0] ss:$8 sps:$4 sm:$0xff]  }
0x10cd   :  { %5297 = vmatprep.subr.bf16.mxu0 %v12009_v53  ;;  %v12045_v53 = vld [vmem:[#allocation69 + $0xa4] ss:$8 sps:$4 sm:$0xff]  }
0x10d0   :  { %5298 = vmatpush1.bf16.msra.mxu0 %v12007_v52  ;;  %v12043_v52 = vld [vmem:[#allocation69 + $0xa0] ss:$8 sps:$4 sm:$0xff]  }
0x10d1   :  { %5299 = vmatprep.subr.bf16.mxu0 %v12012_v51  ;;  %v12048_v51 = vld [vmem:[#allocation69 + $0x94] ss:$8 sps:$4 sm:$0xff]  }
0x10d4   :  { %5300 = vmatpush1.bf16.msra.mxu0 %v12010_v54  ;;  %v12046_v54 = vld [vmem:[#allocation69 + $0x90] ss:$8 sps:$4 sm:$0xff]  }
0x10d5   :  { %5301 = vmatprep.subr.bf16.mxu0 %v12015_v55  ;;  %v12051_v55 = vld [vmem:[#allocation69 + $0x84] ss:$8 sps:$4 sm:$0xff]  }
0x10d8   :  { %5302 = vmatpush1.bf16.msra.mxu0 %v12013_v56  ;;  %v12049_v56 = vld [vmem:[#allocation69 + $0x80] ss:$8 sps:$4 sm:$0xff]  }
0x10d9   :  { %5303 = vmatprep.subr.bf16.mxu0 %v12018_v60  ;;  %v12054_v60 = vld [vmem:[#allocation72 + $0x14] ss:$8 sps:$4 sm:$0xff]  }
0x10dc   :  { %5304 = vmatpush1.bf16.msra.mxu0 %v12016_v61 }
0x116b   :  { %v4822_v50 = vpop.f32.mrf.mxu0 }
0x116c   :  { %v16363_v8 = vadd.f32 %v4822_v50, %v4621_v63  ;;  %v12024_v63 = vld [vmem:[#allocation69 + $0x14] ss:$8 sps:$4 sm:$0xff]   ;;  %v12027_v50 = vld [vmem:[#allocation69 + $0x4] ss:$8 sps:$4 sm:$0xff]  }
0x116d   :  { %v4824_v3 = vpop.f32.mrf.mxu0 }
0x116e   :  { %v16365_v1 = vadd.f32 %v4824_v3, %v4625_v4  ;;  %v4829_v44 = vmul.f32 %v16363_v8, %v16363_v8  ;;  %v12022_v4 = vld [vmem:[#allocation69 + $0x10] ss:$8 sps:$4 sm:$0xff]   ;;  %v12025_v3 = vld [vmem:[#allocation69] ss:$8 sps:$4 sm:$0xff]  }
0x116f   :  { %v4826_v5 = vpop.f32.mrf.mxu0 }
0x1170   :  { %v4830_v2 = vmul.f32 %v16365_v1, %v16365_v1  ;;  %v4831_v18 = vpack.c.bf16 %v4829_v44, %v16363_v8  ;;  %v12030_v44 = vld [vmem:[#allocation69 + $0xf4] ss:$8 sps:$4 sm:$0xff]   ;;  %v12028_v5 = vld [vmem:[#allocation69 + $0xf0] ss:$8 sps:$4 sm:$0xff]  }
0x1171   :  { %v4827_v45 = vpop.f32.mrf.mxu0 }
0x1172   :  { %v4832_v59 = vpack.c.bf16 %v4830_v2, %v16365_v1  ;;  %v12033_v2 = vld [vmem:[#allocation69 + $0xe4] ss:$8 sps:$4 sm:$0xff]   ;;  %v12031_v45 = vld [vmem:[#allocation69 + $0xe0] ss:$8 sps:$4 sm:$0xff]  }
0x1174   :  { %4865 = vmatprep.mubr.bf16.mxu1 %v4832_v59  ;;  %v12036_v59 = vld [vmem:[#allocation69 + $0xd4] ss:$8 sps:$4 sm:$0xff]  }
0x1175   :  { %4866 = vmatmul.mubr.bf16.vlgmr.msra.gmra.mxu1 %v4831_v18  ;;  %v12034_v18 = vld [vmem:[#allocation69 + $0xd0] ss:$8 sps:$4 sm:$0xff]  }
0x1176   :  { %5341 = vmatpush1.bf16.msra.mxu1 %v16200_v39 }
0x1177   :  { %5342 = vmatprep.subr.bf16.mxu1 %v16203_v40 }
0x117a   :  { %5343 = vmatpush1.bf16.msra.mxu1 %v16206_v41 }
0x117b   :  { %5344 = vmatprep.subr.bf16.mxu1 %v16209_v42 }
0x117e   :  { %5345 = vmatpush1.bf16.msra.mxu1 %v16212_v34 }
0x117f   :  { %5346 = vmatprep.subr.bf16.mxu1 %v16215_v25 }
0x1182   :  { %5347 = vmatpush1.bf16.msra.mxu1 %v16218_v32 }
0x1183   :  { %5348 = vmatprep.subr.bf16.mxu1 %v16221_v19 }
0x1186   :  { %5349 = vmatpush1.bf16.msra.mxu1 %v16224_v24 }
0x1187   :  { %5350 = vmatprep.subr.bf16.mxu1 %v16227_v26 }
0x118a   :  { %5351 = vmatpush1.bf16.msra.mxu1 %v16230_v29 }
0x118b   :  { %v16384_v49 = vpop.f32.mrf.mxu0  ;;  %5352 = vmatprep.subr.bf16.mxu1 %v16233_v22 }
0x118d   :  { %v16387_v12 = vpop.f32.mrf.mxu0 }
0x118e   :  { %5353 = vmatpush1.bf16.msra.mxu1 %v16236_v28 }
0x118f   :  { %v5084_v46 = vpop.f32.mrf.mxu0  ;;  %5354 = vmatprep.subr.bf16.mxu1 %v16239_v27 }
0x1190   :  { %v12039_v46 = vld [vmem:[#allocation69 + $0xc4] ss:$8 sps:$4 sm:$0xff]  }
0x1191   :  { %v5085_v6 = vpop.f32.mrf.mxu0 }
0x1192   :  { %5355 = vmatpush1.bf16.msra.mxu1 %v16242_v23  ;;  %v12037_v6 = vld [vmem:[#allocation69 + $0xc0] ss:$8 sps:$4 sm:$0xff]  }
0x1193   :  { %5356 = vmatprep.subr.bf16.mxu1 %v16245_v33 }
0x1196   :  { %5357 = vmatpush2.bf16.msra.mxu1 %v16248_v35 }
0x1197   :  { %5358 = vmatprep.subr.bf16.mxu1 %v16251_v31 }
0x119a   :  { %5359 = vmatpush2.bf16.msra.mxu1 %v16254_v36 }
0x119b   :  { %5360 = vmatprep.subr.bf16.mxu1 %v16257_v38 }
0x119e   :  { %5361 = vmatpush2.bf16.msra.mxu1 %v16260_v17 }
0x119f   :  { %5362 = vmatprep.subr.bf16.mxu1 %v16263_v9 }
0x11a2   :  { %5363 = vmatpush2.bf16.msra.mxu1 %v16266_v10 }
0x11a3   :  { %5364 = vmatprep.subr.bf16.mxu1 %v16269_v14 }
0x11a6   :  { %5365 = vmatpush2.bf16.msra.mxu1 %v16272_v15 }
0x11a7   :  { %5366 = vmatprep.subr.bf16.mxu1 %v16275_v21 }
0x11aa   :  { %5367 = vmatpush2.bf16.msra.mxu1 %v16278_v57 }
0x11ab   :  { %5368 = vmatprep.subr.bf16.mxu1 %v16281_v58 }
0x11ae   :  { %5369 = vmatpush2.bf16.msra.mxu1 %v16284_v20 }
0x11af   :  { %5370 = vmatprep.subr.bf16.mxu1 %v16287_v16 }
0x11b2   :  { %5371 = vmatpush2.bf16.msra.mxu1 %v16290_v30 }
0x11b3   :  { %5775 = vmatprep.subr.bf16.mxu1 %v16189_v48  ;;  %v12021_v48 = vld [vmem:[#allocation69 + $0x24] ss:$8 sps:$4 sm:$0xff]  }
0x11b4   :  { %5305 = vmatprep.subr.bf16.mxu0 %v12021_v48 }
0x11b5   :  { %5306 = vmatpush1.bf16.msra.mxu0 %v12019_v62 }
0x11b6   :  { %5307 = vmatprep.subr.bf16.mxu0 %v12024_v63 }
0x11b9   :  { %5308 = vmatpush1.bf16.msra.mxu0 %v12022_v4 }
0x11ba   :  { %5309 = vmatprep.subr.bf16.mxu0 %v12027_v50 }
0x11bd   :  { %5310 = vmatpush1.bf16.msra.mxu0 %v12025_v3 }
0x11be   :  { %5311 = vmatprep.subr.bf16.mxu0 %v12030_v44 }
0x11c1   :  { %5312 = vmatpush2.bf16.msra.mxu0 %v12028_v5 }
0x11c2   :  { %5313 = vmatprep.subr.bf16.mxu0 %v12033_v2 }
0x11c5   :  { %5314 = vmatpush2.bf16.msra.mxu0 %v12031_v45  ;;  %v4888_v45 = vld [vmem:[#allocation51] sm:$0x3] }
0x11c6   :  { %5315 = vmatprep.subr.bf16.mxu0 %v12036_v59  ;;  %v4902_v59 = vld [vmem:[#allocation45] sm:$0x3] }
0x11c9   :  { %5316 = vmatpush2.bf16.msra.mxu0 %v12034_v18 }
0x11ca   :  { %5317 = vmatprep.subr.bf16.mxu0 %v12039_v46  ;;  %v4893_v46 = vrot.slane %v4888_v45, %v15932_v11 }
0x11cd   :  { %5318 = vmatpush2.bf16.msra.mxu0 %v12037_v6 }
0x11ce   :  { %5319 = vmatprep.subr.bf16.mxu0 %v12042_v47 }
0x11d1   :  { %5320 = vmatpush2.bf16.msra.mxu0 %v12040_v7 }
0x11d2   :  { %5321 = vmatprep.subr.bf16.mxu0 %v12045_v53  ;;  %v4897_v53 = vrot.slane %v4888_v45, %v15935_v13 }
0x11d5   :  { %5322 = vmatpush2.bf16.msra.mxu0 %v12043_v52  ;;  %v4907_v52 = vrot.slane %v4902_v59, %v15932_v11 }
0x11d6   :  { %5323 = vmatprep.subr.bf16.mxu0 %v12048_v51 }
0x11d9   :  { %5324 = vmatpush2.bf16.msra.mxu0 %v12046_v54 }
0x11da   :  { %5325 = vmatprep.subr.bf16.mxu0 %v12051_v55 }
0x11dd   :  { %5326 = vmatpush2.bf16.msra.mxu0 %v12049_v56  ;;  %v4911_v56 = vrot.slane %v4902_v59, %v15935_v13  ;;  %v4954_v59 = vld [vmem:[#allocation46] sm:$0x3] }
0x11de   :  { %5493 = vmatprep.subr.bf16.mxu0 %v12054_v60 }
0x1235   :  { %v4867_v61 = vpop.f32.mrf.mxu1 }
0x1236   :  { %v4876_v62 = vmul.f32 %v4867_v61, %v4867_v61  ;;  %v4880_v18 = vsub.f32 %v16363_v8, %v4867_v61 }
0x1237   :  { %v4869_v48 = vpop.f32.mrf.mxu1 }
0x1238   :  { %v4877_v4 = vmul.f32 %v4869_v48, %v4869_v48  ;;  %v4881_v47 = vsub.f32 %v16365_v1, %v4869_v48 }
0x1239   :  { %v4871_v63 = vpop.f32.mrf.mxu1 }
0x123a   :  { %v4878_v50 = vsub.f32 %v4871_v63, %v4876_v62 }
0x123b   :  { %v4873_v3 = vpop.f32.mrf.mxu1 }
0x123c   :  { %v4882_v44 = vadd.f32 1e-05, %v4878_v50  ;;  %v4879_v5 = vsub.f32 %v4873_v3, %v4877_v4 }
0x123e   :  { %12174 = vrsqrt.f32 %v4882_v44  ;;  %v4883_v2 = vadd.f32 1e-05, %v4879_v5 }
0x1240   :  { %12176 = vrsqrt.f32 %v4883_v2 }
0x124b   :  { %v12175_v6 = vpop.eup %12174 }
0x124c   :  { %v4886_v7 = vmul.f32 %v12175_v6, %v4880_v18 }
0x124d   :  { %v12177_v51 = vpop.eup %12176 }
0x124e   :  { %v4900_v54 = vmul.f32 %v4893_v46, %v4886_v7  ;;  %v4887_v55 = vmul.f32 %v12177_v51, %v4881_v47  ;;  %v4959_v46 = vrot.slane %v4954_v59, %v15932_v11  ;;  %v4963_v7 = vrot.slane %v4954_v59, %v15935_v13 }
0x1250   :  { %v4901_v60 = vmul.f32 %v4897_v53, %v4887_v55  ;;  %v4914_v62 = vadd.f32 %v4907_v52, %v4900_v54  ;;  %v5081_v54 = vadd.f32 %v16384_v49, %v4959_v46  ;;  %v12055_v49 = vld [vmem:[#allocation72] ss:$8 sps:$4 sm:$0xff]  }
0x1252   :  { %v4915_v63 = vadd.f32 %v4911_v56, %v4901_v60  ;;  %v4916_v4 = vmin.f32 %v4914_v62, 20.0  ;;  %vm4934_vm14 = vcmp.gt.f32.partialorder %v4914_v62, 20.0  ;;  %v5083_v60 = vadd.f32 %v16387_v12, %v4963_v7  ;;  %v5123_v12 = vld [vmem:[#allocation58] sm:$0x3] }
0x1254   :  { %v4917_v8 = vmin.f32 %v4915_v63, 20.0  ;;  %v4918_v61 = vmul.f32 1.442695, %v4916_v4  ;;  %vm4935_vm15 = vcmp.gt.f32.partialorder %v4915_v63, 20.0 }
0x1256   :  { %v4920_v50 = vmul.f32 1.442695, %v4917_v8  ;;  %12178 = vpow2.f32 %v4918_v61 }
0x1258   :  { %12180 = vpow2.f32 %v4920_v50 }
0x1263   :  { %v12179_v1 = vpop.eup %12178 }
0x1264   :  { %v4922_v48 = vadd.f32 2.0, %v12179_v1 }
0x1265   :  { %v12181_v3 = vpop.eup %12180 }
0x1266   :  { %v4923_v44 = vadd.f32 2.0, %v12181_v3  ;;  %v4924_v5 = vmul.f32 %v12179_v1, %v4922_v48  ;;  %v12052_v1 = vld [vmem:[#allocation72 + $0x10] ss:$8 sps:$4 sm:$0xff]  }
0x1268   :  { %v4925_v2 = vmul.f32 %v12181_v3, %v4923_v44  ;;  %v4928_v45 = vadd.f32 2.0, %v4924_v5  ;;  %v4926_v6 = vmul.f32 %v4924_v5, %v4914_v62  ;;  %v12057_v3 = vld [vmem:[#allocation72 + $0x4] ss:$8 sps:$4 sm:$0xff]  }
0x126a   :  { %v4929_v18 = vadd.f32 2.0, %v4925_v2  ;;  %12182 = vrcp.f32 %v4928_v45  ;;  %v4927_v53 = vmul.f32 %v4925_v2, %v4915_v63 }
0x126c   :  { %12184 = vrcp.f32 %v4929_v18 }
0x1277   :  { %v12183_v47 = vpop.eup %12182 }
0x1278   :  { %v4932_v52 = vmul.f32 %v12183_v47, %v4926_v6 }
0x1279   :  { %v12185_v51 = vpop.eup %12184 }
0x127a   :  { %v4933_v55 = vmul.f32 %v12185_v51, %v4927_v53  ;;  %v4936_v56 = vsel %vm4934_vm14, %v4914_v62, %v4932_v52  ;;  %v5128_v62 = vrot.slane %v5123_v12, %v15932_v11 }
0x127b   :  { %v16419_v8 = vadd.f32 %v5081_v54, %v4936_v56 }
0x127c   :  { %v4937_v4 = vsel %vm4935_vm15, %v4915_v63, %v4933_v55  ;;  %v5132_v63 = vrot.slane %v5123_v12, %v15935_v13  ;;  %v12103_v55 = vld [vmem:[#allocation70 + $0x80] ss:$8 sps:$4 sm:$0xff]  }
0x127d   :  { %v16421_v61 = vadd.f32 %v5083_v60, %v4937_v4  ;;  %v5089_v48 = vpack.c.bf16 %v16419_v8, %v16419_v8 }
0x127f   :  { %v5090_v50 = vpack.c.bf16 %v16421_v61, %v16421_v61 }
0x1281   :  { %5327 = vmatprep.mubr.bf16.mxu0 %v5090_v50 }
0x1282   :  { %5328 = vmatmul.mubr.bf16.vlgmr.msra.gmra.mxu0 %v5089_v48 }
0x1283   :  { %5494 = vmatpush1.bf16.msra.mxu0 %v12052_v1  ;;  %5513 = vmatprep.mubr.bf16.mxu0 %v15059_v43 }
0x1284   :  { %5495 = vmatprep.subr.bf16.mxu0 %v12057_v3 }
0x1287   :  { %5496 = vmatpush1.bf16.msra.mxu0 %v12055_v49 }
0x128a   :  { %10502 = vmatmul.mubr.msk.bf16.vlgmr.msra.gmra.mxu0 %vm1597_vm1, %v15915_v37 }
0x1342   :  { %v5329_v44 = vpop.f32.mrf.mxu0 }
0x1343   :  { %v16432_v5 = vadd.f32 %v5329_v44, %v5128_v62  ;;  %v5409_v44 = vld [vmem:[#allocation61] sm:$0x3] }
0x1344   :  { %v5331_v2 = vpop.f32.mrf.mxu0 }
0x1345   :  { %v16434_v45 = vadd.f32 %v5331_v2, %v5132_v63  ;;  %v5336_v18 = vmul.f32 %v16432_v5, %v16432_v5  ;;  %v5395_v63 = vld [vmem:[#allocation66] sm:$0x3] }
0x1346   :  { %v5333_v59 = vpop.f32.mrf.mxu0 }
0x1347   :  { %v5337_v46 = vmul.f32 %v16434_v45, %v16434_v45  ;;  %v5338_v7 = vpack.c.bf16 %v5336_v18, %v16432_v5  ;;  %v5400_v18 = vrot.slane %v5395_v63, %v15932_v11 }
0x1348   :  { %v5334_v6 = vpop.f32.mrf.mxu0 }
0x1349   :  { %v5339_v47 = vpack.c.bf16 %v5337_v46, %v16434_v45 }
0x134a   :  { %v16442_v53 = vpop.f32.mrf.mxu0 }
0x134b   :  { %5372 = vmatprep.mubr.bf16.mxu1 %v5339_v47  ;;  %v5404_v47 = vrot.slane %v5395_v63, %v15935_v13 }
0x134c   :  { %5373 = vmatmul.mubr.bf16.vlgmr.msra.gmra.mxu1 %v5338_v7  ;;  %v16444_v52 = vpop.f32.mrf.mxu0  ;;  %v5414_v7 = vrot.slane %v5409_v44, %v15932_v11 }
0x134d   :  { %5776 = vmatpush1.bf16.msra.mxu1 %v16200_v39  ;;  %v12060_v39 = vld [vmem:[#allocation70 + $0x74] ss:$8 sps:$4 sm:$0xff]  }
0x134e   :  { %v5519_v51 = vpop.f32.mrf.mxu0  ;;  %5777 = vmatprep.subr.bf16.mxu1 %v16203_v40  ;;  %v12058_v40 = vld [vmem:[#allocation70 + $0x70] ss:$8 sps:$4 sm:$0xff]   ;;  %5730 = vmatprep.subr.bf16.mxu0 %v12060_v39 }
0x134f   :  { %5731 = vmatpush1.bf16.msra.mxu0 %v12058_v40  ;;  %v5418_v40 = vrot.slane %v5409_v44, %v15935_v13 }
0x1350   :  { %v5520_v54 = vpop.f32.mrf.mxu0 }
0x1351   :  { %5778 = vmatpush1.bf16.msra.mxu1 %v16206_v41  ;;  %v12063_v41 = vld [vmem:[#allocation70 + $0x64] ss:$8 sps:$4 sm:$0xff]  }
0x1352   :  { %5779 = vmatprep.subr.bf16.mxu1 %v16209_v42  ;;  %v12061_v42 = vld [vmem:[#allocation70 + $0x60] ss:$8 sps:$4 sm:$0xff]   ;;  %5732 = vmatprep.subr.bf16.mxu0 %v12063_v41 }
0x1353   :  { %5733 = vmatpush1.bf16.msra.mxu0 %v12061_v42 }
0x1355   :  { %5780 = vmatpush1.bf16.msra.mxu1 %v16212_v34  ;;  %v12066_v34 = vld [vmem:[#allocation70 + $0x54] ss:$8 sps:$4 sm:$0xff]  }
0x1356   :  { %5781 = vmatprep.subr.bf16.mxu1 %v16215_v25  ;;  %v12064_v25 = vld [vmem:[#allocation70 + $0x50] ss:$8 sps:$4 sm:$0xff]   ;;  %5734 = vmatprep.subr.bf16.mxu0 %v12066_v34 }
0x1357   :  { %5735 = vmatpush1.bf16.msra.mxu0 %v12064_v25 }
0x1359   :  { %5782 = vmatpush1.bf16.msra.mxu1 %v16218_v32  ;;  %v12069_v32 = vld [vmem:[#allocation70 + $0x44] ss:$8 sps:$4 sm:$0xff]  }
0x135a   :  { %5783 = vmatprep.subr.bf16.mxu1 %v16221_v19  ;;  %v12067_v19 = vld [vmem:[#allocation70 + $0x40] ss:$8 sps:$4 sm:$0xff]   ;;  %5736 = vmatprep.subr.bf16.mxu0 %v12069_v32 }
0x135b   :  { %5737 = vmatpush1.bf16.msra.mxu0 %v12067_v19 }
0x135d   :  { %5784 = vmatpush1.bf16.msra.mxu1 %v16224_v24  ;;  %v12072_v24 = vld [vmem:[#allocation70 + $0x34] ss:$8 sps:$4 sm:$0xff]  }
0x135e   :  { %5785 = vmatprep.subr.bf16.mxu1 %v16227_v26  ;;  %v12070_v26 = vld [vmem:[#allocation70 + $0x30] ss:$8 sps:$4 sm:$0xff]   ;;  %5738 = vmatprep.subr.bf16.mxu0 %v12072_v24 }
0x135f   :  { %5739 = vmatpush1.bf16.msra.mxu0 %v12070_v26 }
0x1361   :  { %5786 = vmatpush1.bf16.msra.mxu1 %v16230_v29  ;;  %v12075_v29 = vld [vmem:[#allocation70 + $0x24] ss:$8 sps:$4 sm:$0xff]  }
0x1362   :  { %5787 = vmatprep.subr.bf16.mxu1 %v16233_v22  ;;  %v12073_v22 = vld [vmem:[#allocation70 + $0x20] ss:$8 sps:$4 sm:$0xff]   ;;  %5740 = vmatprep.subr.bf16.mxu0 %v12075_v29 }
0x1363   :  { %5741 = vmatpush1.bf16.msra.mxu0 %v12073_v22 }
0x1365   :  { %5788 = vmatpush1.bf16.msra.mxu1 %v16236_v28  ;;  %v12078_v28 = vld [vmem:[#allocation70 + $0x14] ss:$8 sps:$4 sm:$0xff]  }
0x1366   :  { %5789 = vmatprep.subr.bf16.mxu1 %v16239_v27  ;;  %v12076_v27 = vld [vmem:[#allocation70 + $0x10] ss:$8 sps:$4 sm:$0xff]   ;;  %5742 = vmatprep.subr.bf16.mxu0 %v12078_v28 }
0x1367   :  { %5743 = vmatpush1.bf16.msra.mxu0 %v12076_v27 }
0x1369   :  { %5790 = vmatpush1.bf16.msra.mxu1 %v16242_v23  ;;  %v12081_v23 = vld [vmem:[#allocation70 + $0x4] ss:$8 sps:$4 sm:$0xff]  }
0x136a   :  { %5791 = vmatprep.subr.bf16.mxu1 %v16245_v33  ;;  %v12079_v33 = vld [vmem:[#allocation70] ss:$8 sps:$4 sm:$0xff]   ;;  %5744 = vmatprep.subr.bf16.mxu0 %v12081_v23 }
0x136b   :  { %5745 = vmatpush1.bf16.msra.mxu0 %v12079_v33  ;;  %v5449_v33 = vld [vmem:[#allocation64] sm:$0x3] }
0x136d   :  { %5792 = vmatpush2.bf16.msra.mxu1 %v16248_v35  ;;  %v12084_v35 = vld [vmem:[#allocation70 + $0xf4] ss:$8 sps:$4 sm:$0xff]  }
0x136e   :  { %5793 = vmatprep.subr.bf16.mxu1 %v16251_v31  ;;  %v12082_v31 = vld [vmem:[#allocation70 + $0xf0] ss:$8 sps:$4 sm:$0xff]   ;;  %5746 = vmatprep.subr.bf16.mxu0 %v12084_v35  ;;  %v5454_v35 = vrot.slane %v5449_v33, %v15932_v11 }
0x136f   :  { %5747 = vmatpush2.bf16.msra.mxu0 %v12082_v31 }
0x1371   :  { %5794 = vmatpush2.bf16.msra.mxu1 %v16254_v36  ;;  %v12087_v36 = vld [vmem:[#allocation70 + $0xe4] ss:$8 sps:$4 sm:$0xff]  }
0x1372   :  { %5795 = vmatprep.subr.bf16.mxu1 %v16257_v38  ;;  %v12085_v38 = vld [vmem:[#allocation70 + $0xe0] ss:$8 sps:$4 sm:$0xff]   ;;  %5748 = vmatprep.subr.bf16.mxu0 %v12087_v36 }
0x1373   :  { %5749 = vmatpush2.bf16.msra.mxu0 %v12085_v38  ;;  %v5458_v38 = vrot.slane %v5449_v33, %v15935_v13 }
0x1375   :  { %5796 = vmatpush2.bf16.msra.mxu1 %v16260_v17  ;;  %v12090_v17 = vld [vmem:[#allocation70 + $0xd4] ss:$8 sps:$4 sm:$0xff]  }
0x1376   :  { %5797 = vmatprep.subr.bf16.mxu1 %v16263_v9  ;;  %v12088_v9 = vld [vmem:[#allocation70 + $0xd0] ss:$8 sps:$4 sm:$0xff]   ;;  %5750 = vmatprep.subr.bf16.mxu0 %v12090_v17 }
0x1377   :  { %5751 = vmatpush2.bf16.msra.mxu0 %v12088_v9 }
0x1379   :  { %5798 = vmatpush2.bf16.msra.mxu1 %v16266_v10  ;;  %v12093_v10 = vld [vmem:[#allocation70 + $0xc4] ss:$8 sps:$4 sm:$0xff]  }
0x137a   :  { %5799 = vmatprep.subr.bf16.mxu1 %v16269_v14  ;;  %v12091_v14 = vld [vmem:[#allocation70 + $0xc0] ss:$8 sps:$4 sm:$0xff]   ;;  %5752 = vmatprep.subr.bf16.mxu0 %v12093_v10 }
0x137b   :  { %5753 = vmatpush2.bf16.msra.mxu0 %v12091_v14  ;;  %v5516_v14 = vadd.f32 %v16442_v53, %v5454_v35 }
0x137d   :  { %5800 = vmatpush2.bf16.msra.mxu1 %v16272_v15  ;;  %v12096_v15 = vld [vmem:[#allocation70 + $0xb4] ss:$8 sps:$4 sm:$0xff]  }
0x137e   :  { %5801 = vmatprep.subr.bf16.mxu1 %v16275_v21  ;;  %v12094_v21 = vld [vmem:[#allocation70 + $0xb0] ss:$8 sps:$4 sm:$0xff]   ;;  %5754 = vmatprep.subr.bf16.mxu0 %v12096_v15 }
0x137f   :  { %5755 = vmatpush2.bf16.msra.mxu0 %v12094_v21 }
0x1381   :  { %5802 = vmatpush2.bf16.msra.mxu1 %v16278_v57  ;;  %v12099_v57 = vld [vmem:[#allocation70 + $0xa4] ss:$8 sps:$4 sm:$0xff]  }
0x1382   :  { %5803 = vmatprep.subr.bf16.mxu1 %v16281_v58  ;;  %v12097_v58 = vld [vmem:[#allocation70 + $0xa0] ss:$8 sps:$4 sm:$0xff]   ;;  %5756 = vmatprep.subr.bf16.mxu0 %v12099_v57  ;;  %v5518_v57 = vadd.f32 %v16444_v52, %v5458_v38 }
0x1383   :  { %5757 = vmatpush2.bf16.msra.mxu0 %v12097_v58 }
0x1385   :  { %5804 = vmatpush2.bf16.msra.mxu1 %v16284_v20  ;;  %v12102_v20 = vld [vmem:[#allocation70 + $0x94] ss:$8 sps:$4 sm:$0xff]  }
0x1386   :  { %5805 = vmatprep.subr.bf16.mxu1 %v16287_v16  ;;  %v12100_v16 = vld [vmem:[#allocation70 + $0x90] ss:$8 sps:$4 sm:$0xff]   ;;  %5758 = vmatprep.subr.bf16.mxu0 %v12102_v20 }
0x1387   :  { %5759 = vmatpush2.bf16.msra.mxu0 %v12100_v16 }
0x1389   :  { %5806 = vmatpush2.bf16.msra.mxu1 %v16290_v30  ;;  %v12105_v30 = vld [vmem:[#allocation70 + $0x84] ss:$8 sps:$4 sm:$0xff]  }
0x138a   :  { %5760 = vmatprep.subr.bf16.mxu0 %v12105_v30 }
0x138b   :  { %5761 = vmatpush2.bf16.msra.mxu0 %v12103_v55 }
0x140c   :  { %v5374_v56 = vpop.f32.mrf.mxu1 }
0x140d   :  { %v5383_v4 = vmul.f32 %v5374_v56, %v5374_v56  ;;  %v5387_v2 = vsub.f32 %v16432_v5, %v5374_v56  ;;  %v5558_v56 = vld [vmem:[#allocation60] sm:$0x3] }
0x140e   :  { %v5376_v60 = vpop.f32.mrf.mxu1 }
0x140f   :  { %v5384_v1 = vmul.f32 %v5376_v60, %v5376_v60  ;;  %v5388_v46 = vsub.f32 %v16434_v45, %v5376_v60  ;;  %v5563_v60 = vrot.slane %v5558_v56, %v15932_v11 }
0x1410   :  { %v5378_v50 = vpop.f32.mrf.mxu1 }
0x1411   :  { %v5385_v48 = vsub.f32 %v5378_v50, %v5383_v4  ;;  %v5567_v4 = vrot.slane %v5558_v56, %v15935_v13 }
0x1412   :  { %v5380_v3 = vpop.f32.mrf.mxu1 }
0x1413   :  { %v5389_v49 = vadd.f32 1e-05, %v5385_v48  ;;  %v5386_v12 = vsub.f32 %v5380_v3, %v5384_v1 }
0x1415   :  { %12186 = vrsqrt.f32 %v5389_v49  ;;  %v5390_v62 = vadd.f32 1e-05, %v5386_v12 }
0x1417   :  { %12188 = vrsqrt.f32 %v5390_v62 }
0x1422   :  { %v12187_v59 = vpop.eup %12186 }
0x1423   :  { %v5393_v6 = vmul.f32 %v12187_v59, %v5387_v2 }
0x1424   :  { %v12189_v51 = vpop.eup %12188 }
0x1425   :  { %v5407_v54 = vmul.f32 %v5400_v18, %v5393_v6  ;;  %v5394_v39 = vmul.f32 %v12189_v51, %v5388_v46 }
0x1427   :  { %v5408_v41 = vmul.f32 %v5404_v47, %v5394_v39  ;;  %v5421_v42 = vadd.f32 %v5414_v7, %v5407_v54 }
0x1429   :  { %v5422_v34 = vadd.f32 %v5418_v40, %v5408_v41  ;;  %v5423_v25 = vmin.f32 %v5421_v42, 20.0  ;;  %vm5441_vm2 = vcmp.gt.f32.partialorder %v5421_v42, 20.0 }
0x142b   :  { %v5424_v5 = vmin.f32 %v5422_v34, 20.0  ;;  %v5425_v32 = vmul.f32 1.442695, %v5423_v25  ;;  %vm5442_vm3 = vcmp.gt.f32.partialorder %v5422_v34, 20.0 }
0x142d   :  { %v5427_v19 = vmul.f32 1.442695, %v5424_v5  ;;  %12190 = vpow2.f32 %v5425_v32 }
0x142f   :  { %12192 = vpow2.f32 %v5427_v19 }
0x143a   :  { %v12191_v45 = vpop.eup %12190 }
0x143b   :  { %v5429_v24 = vadd.f32 2.0, %v12191_v45 }
0x143c   :  { %v12193_v26 = vpop.eup %12192 }
0x143d   :  { %v5430_v29 = vadd.f32 2.0, %v12193_v26  ;;  %v5431_v22 = vmul.f32 %v12191_v45, %v5429_v24 }
0x143f   :  { %v5432_v28 = vmul.f32 %v12193_v26, %v5430_v29  ;;  %v5435_v27 = vadd.f32 2.0, %v5431_v22  ;;  %v5433_v31 = vmul.f32 %v5431_v22, %v5421_v42 }
0x1441   :  { %v5436_v23 = vadd.f32 2.0, %v5432_v28  ;;  %12194 = vrcp.f32 %v5435_v27  ;;  %v5434_v17 = vmul.f32 %v5432_v28, %v5422_v34 }
0x1443   :  { %12196 = vrcp.f32 %v5436_v23 }
0x144e   :  { %v12195_v36 = vpop.eup %12194 }
0x144f   :  { %v5439_v9 = vmul.f32 %v12195_v36, %v5433_v31 }
0x1450   :  { %v12197_v10 = vpop.eup %12196 }
0x1451   :  { %v5440_v15 = vmul.f32 %v12197_v10, %v5434_v17  ;;  %v5443_v21 = vsel %vm5441_vm2, %v5421_v42, %v5439_v9 }
0x1452   :  { %v5522_v20 = vadd.f32 %v5516_v14, %v5443_v21 }
0x1453   :  { %v5444_v58 = vsel %vm5442_vm3, %v5422_v34, %v5440_v15 }
0x1454   :  { %v5523_v16 = vadd.f32 %v5518_v57, %v5444_v58  ;;  %v5524_v55 = vpack.c.bf16 %v5522_v20, %v5522_v20 }
0x1456   :  { %v5525_v30 = vpack.c.bf16 %v5523_v16, %v5523_v16 }
0x1458   :  { %5762 = vmatprep.mubr.bf16.mxu0 %v5525_v30 }
0x1459   :  { %5763 = vmatmul.mubr.bf16.vlgmr.msra.gmra.mxu0 %v5524_v55 }
0x1519   :  { %v5764_v50 = vpop.f32.mrf.mxu0 }
0x151a   :  { %v16489_v1 = vadd.f32 %v5764_v50, %v5563_v60 }
0x151b   :  { %v5766_v53 = vpop.f32.mrf.mxu0 }
0x151c   :  { %v16491_v48 = vadd.f32 %v5766_v53, %v5567_v4  ;;  %v5771_v52 = vmul.f32 %v16489_v1, %v16489_v1 }
0x151d   :  { %v5768_v3 = vpop.f32.mrf.mxu0 }
0x151e   :  { %v5772_v49 = vmul.f32 %v16491_v48, %v16491_v48  ;;  %v5773_v63 = vpack.c.bf16 %v5771_v52, %v16489_v1 }
0x151f   :  { %v5769_v12 = vpop.f32.mrf.mxu0 }
0x1520   :  { %v5774_v62 = vpack.c.bf16 %v5772_v49, %v16491_v48 }
0x1522   :  { %5807 = vmatprep.mubr.bf16.mxu1 %v5774_v62 }
0x1523   :  { %5808 = vmatmul.mubr.bf16.vlgmr.msra.gmra.mxu1 %v5773_v63 }
0x1524   :  { %14488 = shalt.err (!%p14485_p8)  }
0x1525   :  { %s17227_s8 = sld [smem:[#allocation309_spill]]  ;;  %s14497_s14 = scalar_lea.vmem %s1425_s23, 2048 }
0x1526   :  { %p14498_p9 = scmp.ne.s32.totalorder %s1425_s23, %s14497_s14  ;;  %p14502_p10 = scmp.lt.s32.totalorder %s1425_s23, %s1425_s23 }
0x1527   :  { %p14503_p11 = scmp.lt.s32.totalorder %s14497_s14, %s14497_s14 }
0x1529   :  { %p14504_p12 = por %p14503_p11, %p14502_p10 }
0x152b   :  { %1415 = dma.hbm_to_vmem [thread:$0]  %s17227_s8, 4096, %s1413_s29, [#allocation16] }
0x152c   :  { %p14505_p13 = pnand %p14504_p12, %p14498_p9 }
0x152e   :  { %14508 = shalt.err (!%p14505_p13)  }
0x152f   :  { %s17228_s21 = sld [smem:[#allocation310_spill]]  ;;  %s15062_s26 = smov [#allocation4]  }
0x1530   :  { %s1436_s28 = sshll.u32 %s15062_s26, 4  ;;  %s15063_s30 = smov [#allocation5]   ;;  %s1437_s28 = int_to_ptr.vmem [resolvable:$true] %s1436_s28 }
0x1531   :  { %s1448_s7 = sshll.u32 %s15063_s30, 4  ;;  %s14517_s19 = scalar_lea.vmem %s1437_s28, 4096  ;;  %s1449_s7 = int_to_ptr.vmem [resolvable:$true] %s1448_s7 }
0x1532   :  { %p14518_p0 = scmp.ne.s32.totalorder %s1437_s28, %s14517_s19  ;;  %p14522_p1 = scmp.lt.s32.totalorder %s1437_s28, %s1437_s28 }
0x1533   :  { %p14523_p2 = scmp.lt.s32.totalorder %s14517_s19, %s14517_s19 }
0x1535   :  { %1427 = dma.hbm_to_vmem [thread:$0]  %s17228_s21, 2048, %s1425_s23, [#allocation16 + $0x1] }
0x1536   :  { %p14524_p3 = por %p14523_p2, %p14522_p1 }
0x1538   :  { %p14525_p4 = pnand %p14524_p3, %p14518_p0 }
0x153a   :  { %14528 = shalt.err (!%p14525_p4)  }
0x153b   :  { %s17229_s27 = sld [smem:[#allocation311_spill]]  ;;  %s14537_s10 = scalar_lea.vmem %s1449_s7, 4096 }
0x153c   :  { %p14538_p5 = scmp.ne.s32.totalorder %s1449_s7, %s14537_s10  ;;  %p14542_p6 = scmp.lt.s32.totalorder %s1449_s7, %s1449_s7 }
0x153d   :  { %p14543_p7 = scmp.lt.s32.totalorder %s14537_s10, %s14537_s10 }
0x153f   :  { %p14544_p8 = por %p14543_p7, %p14542_p6 }
0x1541   :  { %1439 = dma.hbm_to_vmem [thread:$0]  %s17229_s27, 4096, %s1437_s28, [#allocation16 + $0x2] }
0x1542   :  { %p14545_p9 = pnand %p14544_p8, %p14538_p5 }
0x1544   :  { %14548 = shalt.err (!%p14545_p9)  }
0x1545   :  { %s17230_s12 = sld [smem:[#allocation312_spill]]  ;;  %s15064_s11 = smov [#allocation6]  }
0x1546   :  { %s1460_s0 = sshll.u32 %s15064_s11, 4  ;;  %s15065_s15 = smov [#allocation7]   ;;  %s1461_s0 = int_to_ptr.vmem [resolvable:$true] %s1460_s0 }
0x1547   :  { %s1472_s9 = sshll.u32 %s15065_s15, 4  ;;  %s14557_s13 = scalar_lea.vmem %s1461_s0, 4096  ;;  %s1473_s9 = int_to_ptr.vmem [resolvable:$true] %s1472_s9 }
0x1548   :  { %p14558_p10 = scmp.ne.s32.totalorder %s1461_s0, %s14557_s13  ;;  %p14562_p11 = scmp.lt.s32.totalorder %s1461_s0, %s1461_s0 }
0x1549   :  { %p14563_p12 = scmp.lt.s32.totalorder %s14557_s13, %s14557_s13 }
0x154b   :  { %1451 = dma.hbm_to_vmem [thread:$0]  %s17230_s12, 4096, %s1449_s7, [#allocation16 + $0x3] }
0x154c   :  { %p14564_p13 = por %p14563_p12, %p14562_p11 }
0x154e   :  { %p14565_p0 = pnand %p14564_p13, %p14558_p10 }
0x1550   :  { %14568 = shalt.err (!%p14565_p0)  }
0x1551   :  { %s17231_s1 = sld [smem:[#allocation313_spill]]  ;;  %s14577_s2 = scalar_lea.vmem %s1473_s9, 4096 }
0x1552   :  { %p14578_p1 = scmp.ne.s32.totalorder %s1473_s9, %s14577_s2  ;;  %p14582_p2 = scmp.lt.s32.totalorder %s1473_s9, %s1473_s9 }
0x1553   :  { %p14583_p3 = scmp.lt.s32.totalorder %s14577_s2, %s14577_s2 }
0x1555   :  { %p14584_p4 = por %p14583_p3, %p14582_p2 }
0x1557   :  { %1463 = dma.hbm_to_vmem [thread:$0]  %s17231_s1, 4096, %s1461_s0, [#allocation16 + $0x4] }
0x1558   :  { %p14585_p5 = pnand %p14584_p4, %p14578_p1 }
0x155a   :  { %14588 = shalt.err (!%p14585_p5)  }
0x155b   :  { %s17232_s20 = sld [smem:[#allocation314_spill]]  ;;  %s15066_s4 = smov [#allocation8]  }
0x155c   :  { %s1484_s16 = sshll.u32 %s15066_s4, 4  ;;  %s15067_s18 = smov [#allocation9]   ;;  %s1485_s16 = int_to_ptr.vmem [resolvable:$true] %s1484_s16 }
0x155d   :  { %s1496_s3 = sshll.u32 %s15067_s18, 4  ;;  %s14597_s29 = scalar_lea.vmem %s1485_s16, 2048  ;;  %s1497_s3 = int_to_ptr.vmem [resolvable:$true] %s1496_s3 }
0x155e   :  { %p14598_p6 = scmp.ne.s32.totalorder %s1485_s16, %s14597_s29  ;;  %p14602_p7 = scmp.lt.s32.totalorder %s1485_s16, %s1485_s16 }
0x155f   :  { %p14603_p8 = scmp.lt.s32.totalorder %s14597_s29, %s14597_s29 }
0x1561   :  { %1475 = dma.hbm_to_vmem [thread:$0]  %s17232_s20, 4096, %s1473_s9, [#allocation16 + $0x5] }
0x1562   :  { %p14604_p9 = por %p14603_p8, %p14602_p7 }
0x1564   :  { %p14605_p10 = pnand %p14604_p9, %p14598_p6 }
0x1566   :  { %14608 = shalt.err (!%p14605_p10)  }
0x1567   :  { %s17233_s22 = sld [smem:[#allocation315_spill]]  ;;  %s14617_s23 = scalar_lea.vmem %s1497_s3, 2048 }
0x1568   :  { %p14618_p11 = scmp.ne.s32.totalorder %s1497_s3, %s14617_s23  ;;  %p14622_p12 = scmp.lt.s32.totalorder %s1497_s3, %s1497_s3 }
0x1569   :  { %p14623_p13 = scmp.lt.s32.totalorder %s14617_s23, %s14617_s23 }
0x156b   :  { %p14624_p0 = por %p14623_p13, %p14622_p12 }
0x156d   :  { %1487 = dma.hbm_to_vmem [thread:$0]  %s17233_s22, 2048, %s1485_s16, [#allocation16 + $0x6] }
0x156e   :  { %p14625_p1 = pnand %p14624_p0, %p14618_p11 }
0x1570   :  { %14628 = shalt.err (!%p14625_p1)  }
0x1571   :  { %s17234_s17 = sld [smem:[#allocation316_spill]]  ;;  %s15068_s8 = smov [#allocation10]  }
0x1572   :  { %s1508_s14 = sshll.u32 %s15068_s8, 4  ;;  %s15069_s21 = smov [#allocation11]   ;;  %s1509_s14 = int_to_ptr.vmem [resolvable:$true] %s1508_s14 }
0x1573   :  { %s1520_s26 = sshll.u32 %s15069_s21, 4  ;;  %s14637_s28 = scalar_lea.vmem %s1509_s14, 1024  ;;  %s1521_s26 = int_to_ptr.vmem [resolvable:$true] %s1520_s26 }
0x1574   :  { %p14638_p2 = scmp.ne.s32.totalorder %s1509_s14, %s14637_s28  ;;  %p14642_p3 = scmp.lt.s32.totalorder %s1509_s14, %s1509_s14 }
0x1575   :  { %p14643_p4 = scmp.lt.s32.totalorder %s14637_s28, %s14637_s28 }
0x1577   :  { %1499 = dma.hbm_to_vmem [thread:$0]  %s17234_s17, 2048, %s1497_s3, [#allocation16 + $0x7] }
0x1578   :  { %p14644_p5 = por %p14643_p4, %p14642_p3 }
0x157a   :  { %p14645_p6 = pnand %p14644_p5, %p14638_p2 }
0x157c   :  { %14648 = shalt.err (!%p14645_p6)  }
0x157d   :  { %s17235_s30 = sld [smem:[#allocation317_spill]]  ;;  %s14657_s7 = scalar_lea.vmem %s1521_s26, 2048 }
0x157e   :  { %p14658_p7 = scmp.ne.s32.totalorder %s1521_s26, %s14657_s7  ;;  %p14662_p8 = scmp.lt.s32.totalorder %s1521_s26, %s1521_s26 }
0x157f   :  { %p14663_p9 = scmp.lt.s32.totalorder %s14657_s7, %s14657_s7 }
0x1581   :  { %p14664_p10 = por %p14663_p9, %p14662_p8 }
0x1583   :  { %1511 = dma.hbm_to_vmem [thread:$0]  %s17235_s30, 1024, %s1509_s14, [#allocation16 + $0x8] }
0x1584   :  { %p14665_p11 = pnand %p14664_p10, %p14658_p7 }
0x1586   :  { %14668 = shalt.err (!%p14665_p11)  }
0x1587   :  { %s17236_s19 = sld [smem:[#allocation318_spill]]  ;;  %s15070_s27 = smov [#allocation12]  }
0x1588   :  { %s1532_s10 = sshll.u32 %s15070_s27, 4  ;;  %s15071_s12 = smov [#allocation13]   ;;  %s1533_s10 = int_to_ptr.vmem [resolvable:$true] %s1532_s10 }
0x1589   :  { %s1544_s11 = sshll.u32 %s15071_s12, 4  ;;  %s14677_s0 = scalar_lea.vmem %s1533_s10, 2048  ;;  %s1545_s11 = int_to_ptr.vmem [resolvable:$true] %s1544_s11 }
0x158a   :  { %p14678_p12 = scmp.ne.s32.totalorder %s1533_s10, %s14677_s0  ;;  %p14682_p13 = scmp.lt.s32.totalorder %s1533_s10, %s1533_s10 }
0x158b   :  { %p14683_p0 = scmp.lt.s32.totalorder %s14677_s0, %s14677_s0 }
0x158d   :  { %1523 = dma.hbm_to_vmem [thread:$0]  %s17236_s19, 2048, %s1521_s26, [#allocation16 + $0x9] }
0x158e   :  { %p14684_p1 = por %p14683_p0, %p14682_p13 }
0x1590   :  { %p14685_p2 = pnand %p14684_p1, %p14678_p12 }
0x1592   :  { %14688 = shalt.err (!%p14685_p2)  }
0x1593   :  { %s17237_s15 = sld [smem:[#allocation319_spill]]  ;;  %s14697_s9 = scalar_lea.vmem %s1545_s11, 1024 }
0x1594   :  { %p14698_p3 = scmp.ne.s32.totalorder %s1545_s11, %s14697_s9  ;;  %p14702_p4 = scmp.lt.s32.totalorder %s1545_s11, %s1545_s11 }
0x1595   :  { %p14703_p5 = scmp.lt.s32.totalorder %s14697_s9, %s14697_s9 }
0x1597   :  { %p14704_p6 = por %p14703_p5, %p14702_p4 }
0x1599   :  { %1535 = dma.hbm_to_vmem [thread:$0]  %s17237_s15, 2048, %s1533_s10, [#allocation16 + $0xa] }
0x159a   :  { %p14705_p7 = pnand %p14704_p6, %p14698_p3 }
0x159c   :  { %14708 = shalt.err (!%p14705_p7)  }
0x159d   :  { %1547 = dma.hbm_to_vmem [thread:$0]  %s15617_s24, 1024, %s1545_s11, [#allocation16 + $0xb] }
0x159e   :  { %s15072_s13 = smov [#allocation14]   ;;  %s15073_s2 = smov [#allocation15]  }
0x159f   :  { %s1556_s1 = sshll.u32 %s15072_s13, 4  ;;  %s1568_s20 = sshll.u32 %s15073_s2, 4  ;;  %s1557_s1 = int_to_ptr.vmem [resolvable:$true] %s1556_s1  ;;  %s1569_s20 = int_to_ptr.vmem [resolvable:$true] %s1568_s20 }
0x15a0   :  { %s14717_s4 = scalar_lea.vmem %s1557_s1, 1024  ;;  %p14722_p9 = scmp.lt.s32.totalorder %s1557_s1, %s1557_s1 }
0x15a1   :  { %p14718_p8 = scmp.ne.s32.totalorder %s1557_s1, %s14717_s4  ;;  %p14723_p10 = scmp.lt.s32.totalorder %s14717_s4, %s14717_s4 }
0x15a3   :  { %p14724_p11 = por %p14723_p10, %p14722_p9 }
0x15a5   :  { %p14725_p12 = pnand %p14724_p11, %p14718_p8 }
0x15a7   :  { %14728 = shalt.err (!%p14725_p12)  }
0x15a8   :  { %1559 = dma.hbm_to_vmem [thread:$0]  %s15622_s5, 1024, %s1557_s1, [#allocation16 + $0xc] }
0x15a9   :  { %s14737_s16 = scalar_lea.vmem %s1569_s20, 2048  ;;  %p14742_p0 = scmp.lt.s32.totalorder %s1569_s20, %s1569_s20 }
0x15aa   :  { %p14738_p13 = scmp.ne.s32.totalorder %s1569_s20, %s14737_s16  ;;  %p14743_p1 = scmp.lt.s32.totalorder %s14737_s16, %s14737_s16 }
0x15ac   :  { %p14744_p2 = por %p14743_p1, %p14742_p0 }
0x15ae   :  { %p14745_p3 = pnand %p14744_p2, %p14738_p13 }
0x15b0   :  { %14748 = shalt.err (!%p14745_p3)  }
0x15b1   :  { %1571 = dma.hbm_to_vmem [thread:$0]  %s15627_s6, 2048, %s1569_s20, [#allocation16 + $0xd]  ;;  %v5830_v39 = vld [vmem:[#allocation67] sm:$0x3]  ;;  %v5844_v40 = vld [vmem:[#allocation63] sm:$0x3] }
0x15b2   :  { %v5835_v42 = vrot.slane %v5830_v39, %v15932_v11  ;;  %v5849_v32 = vrot.slane %v5844_v40, %v15932_v11  ;;  %v5839_v19 = vrot.slane %v5830_v39, %v15935_v13  ;;  %v5853_v29 = vrot.slane %v5844_v40, %v15935_v13 }
0x15e3   :  { %v5809_v44 = vpop.f32.mrf.mxu1 }
0x15e4   :  { %v5818_v18 = vmul.f32 %v5809_v44, %v5809_v44  ;;  %v5822_v41 = vsub.f32 %v16489_v1, %v5809_v44 }
0x15e5   :  { %v5811_v2 = vpop.f32.mrf.mxu1 }
0x15e6   :  { %v5819_v46 = vmul.f32 %v5811_v2, %v5811_v2  ;;  %v5823_v25 = vsub.f32 %v16491_v48, %v5811_v2 }
0x15e7   :  { %v5813_v59 = vpop.f32.mrf.mxu1 }
0x15e8   :  { %v5820_v6 = vsub.f32 %v5813_v59, %v5818_v18 }
0x15e9   :  { %v5815_v47 = vpop.f32.mrf.mxu1 }
0x15ea   :  { %v5824_v7 = vadd.f32 1e-05, %v5820_v6  ;;  %v5821_v51 = vsub.f32 %v5815_v47, %v5819_v46 }
0x15ec   :  { %12198 = vrsqrt.f32 %v5824_v7  ;;  %v5825_v54 = vadd.f32 1e-05, %v5821_v51 }
0x15ee   :  { %12200 = vrsqrt.f32 %v5825_v54 }
0x15f9   :  { %v12199_v34 = vpop.eup %12198 }
0x15fa   :  { %v5828_v5 = vmul.f32 %v12199_v34, %v5822_v41 }
0x15fb   :  { %v12201_v45 = vpop.eup %12200 }
0x15fc   :  { %v5842_v24 = vmul.f32 %v5835_v42, %v5828_v5  ;;  %v5829_v26 = vmul.f32 %v12201_v45, %v5823_v25 }
0x15fe   :  { %v5856_v22 = vadd.f32 %v5849_v32, %v5842_v24  ;;  %v5843_v28 = vmul.f32 %v5839_v19, %v5829_v26 }
0x1600   :  { %v5858_v27 = vmin.f32 %v5856_v22, 20.0  ;;  %v5857_v23 = vadd.f32 %v5853_v29, %v5843_v28  ;;  %vm5876_vm4 = vcmp.gt.f32.partialorder %v5856_v22, 20.0 }
0x1602   :  { %v5860_v33 = vmul.f32 1.442695, %v5858_v27  ;;  %v5859_v35 = vmin.f32 %v5857_v23, 20.0  ;;  %vm5877_vm5 = vcmp.gt.f32.partialorder %v5857_v23, 20.0 }
0x1604   :  { %12202 = vpow2.f32 %v5860_v33  ;;  %v5862_v31 = vmul.f32 1.442695, %v5859_v35 }
0x1606   :  { %12204 = vpow2.f32 %v5862_v31 }
0x1611   :  { %v12203_v36 = vpop.eup %12202 }
0x1612   :  { %v5864_v38 = vadd.f32 2.0, %v12203_v36 }
0x1613   :  { %v12205_v17 = vpop.eup %12204 }
0x1614   :  { %v5866_v9 = vmul.f32 %v12203_v36, %v5864_v38  ;;  %v5865_v10 = vadd.f32 2.0, %v12205_v17 }
0x1616   :  { %v5870_v14 = vadd.f32 2.0, %v5866_v9  ;;  %v5867_v15 = vmul.f32 %v12205_v17, %v5865_v10  ;;  %v5868_v57 = vmul.f32 %v5866_v9, %v5856_v22 }
0x1618   :  { %12206 = vrcp.f32 %v5870_v14  ;;  %v5871_v21 = vadd.f32 2.0, %v5867_v15  ;;  %v5869_v16 = vmul.f32 %v5867_v15, %v5857_v23 }
0x161a   :  { %12208 = vrcp.f32 %v5871_v21 }
0x1625   :  { %v12207_v58 = vpop.eup %12206 }
0x1626   :  { %v5874_v20 = vmul.f32 %v12207_v58, %v5868_v57 }
0x1627   :  { %v12209_v30 = vpop.eup %12208 }
0x1628   :  { %v5878_v55 = vsel %vm5876_vm4, %v5856_v22, %v5874_v20  ;;  %v5875_v56 = vmul.f32 %v12209_v30, %v5869_v16 }
0x1629   :  { %v16520_v60 = vadd.f32 %v5878_v55, %v16419_v8 }
0x162a   :  { %v5879_v4 = vsel %vm5877_vm5, %v5857_v23, %v5875_v56 }
0x162b   :  { %v16523_v50 = vadd.f32 %v5879_v4, %v16421_v61 }
0x162c   :  { %14833 = dma.done.wait [#allocation16], 4096 }
0x162d   :  { %14834 = vsyncadd [#allocation16], 4294963200 }
0x162e   :  { %14835 = dma.done.wait [#allocation16 + $0x1], 2048 }
0x162f   :  { %14836 = vsyncadd [#allocation16 + $0x1], 4294965248 }
0x1630   :  { %14837 = dma.done.wait [#allocation16 + $0x2], 4096 }
0x1631   :  { %14838 = vsyncadd [#allocation16 + $0x2], 4294963200 }
0x1632   :  { %14839 = dma.done.wait [#allocation16 + $0x3], 4096 }
0x1633   :  { %14840 = vsyncadd [#allocation16 + $0x3], 4294963200 }
0x1634   :  { %14841 = dma.done.wait [#allocation16 + $0x4], 4096 }
0x1635   :  { %14842 = vsyncadd [#allocation16 + $0x4], 4294963200 }
0x1636   :  { %14843 = dma.done.wait [#allocation16 + $0x5], 4096 }
0x1637   :  { %14844 = vsyncadd [#allocation16 + $0x5], 4294963200 }
0x1638   :  { %14845 = dma.done.wait [#allocation16 + $0x6], 2048 }
0x1639   :  { %14846 = vsyncadd [#allocation16 + $0x6], 4294965248 }
0x163a   :  { %14847 = dma.done.wait [#allocation16 + $0x7], 2048 }
0x163b   :  { %14848 = vsyncadd [#allocation16 + $0x7], 4294965248 }
0x163c   :  { %14849 = dma.done.wait [#allocation16 + $0x8], 1024 }
0x163d   :  { %14850 = vsyncadd [#allocation16 + $0x8], 4294966272 }
0x163e   :  { %14851 = dma.done.wait [#allocation16 + $0x9], 2048 }
0x163f   :  { %14852 = vsyncadd [#allocation16 + $0x9], 4294965248 }
0x1640   :  { %14853 = dma.done.wait [#allocation16 + $0xa], 2048 }
0x1641   :  { %14854 = vsyncadd [#allocation16 + $0xa], 4294965248 }
0x1642   :  { %14855 = dma.done.wait [#allocation16 + $0xb], 1024 }
0x1643   :  { %14856 = vsyncadd [#allocation16 + $0xb], 4294966272 }
0x1644   :  { %14857 = dma.done.wait [#allocation16 + $0xc], 1024 }
0x1645   :  { %14858 = vsyncadd [#allocation16 + $0xc], 4294966272 }
0x1646   :  { %14859 = dma.done.wait [#allocation16 + $0xd], 2048 }
0x1647   :  { %14860 = vsyncadd [#allocation16 + $0xd], 4294965248  ;;  %v16527_v8 = vpack.c.bf16 %v16523_v50, %v16523_v50  ;;  %v12242_v61 = vld [vmem:[#allocation4 + $0x74] ss:$8 sps:$4 sm:$0xff]   ;;  %v12244_v1 = vld [vmem:[#allocation4 + $0x70] ss:$8 sps:$4 sm:$0xff]   ;;  %v16580_v4 = vpack.c.bf16 %v16520_v60, %v16520_v60 }
0x1648   :  { %6122 = vmatprep.subr.bf16.mxu0 %v12242_v61  ;;  %v12245_v53 = vld [vmem:[#allocation4 + $0x64] ss:$8 sps:$4 sm:$0xff]   ;;  %v12247_v48 = vld [vmem:[#allocation4 + $0x60] ss:$8 sps:$4 sm:$0xff]   ;;  %v12248_v52 = vld [vmem:[#allocation4 + $0x54] ss:$8 sps:$4 sm:$0xff]  }
0x1649   :  { %6154 = vmatprep.mubr.bf16.mxu0 %v16527_v8  ;;  %6123 = vmatpush1.bf16.msra.mxu0 %v12244_v1  ;;  %v12250_v3 = vld [vmem:[#allocation4 + $0x50] ss:$8 sps:$4 sm:$0xff]   ;;  %v12251_v49 = vld [vmem:[#allocation4 + $0x44] ss:$8 sps:$4 sm:$0xff]   ;;  %v12253_v12 = vld [vmem:[#allocation4 + $0x40] ss:$8 sps:$4 sm:$0xff]  }
0x164a   :  { %6124 = vmatprep.subr.bf16.mxu0 %v12245_v53  ;;  %v12254_v62 = vld [vmem:[#allocation4 + $0x34] ss:$8 sps:$4 sm:$0xff]   ;;  %v12256_v63 = vld [vmem:[#allocation4 + $0x30] ss:$8 sps:$4 sm:$0xff]   ;;  %v12257_v44 = vld [vmem:[#allocation4 + $0x24] ss:$8 sps:$4 sm:$0xff]  }
0x164b   :  { %v12259_v2 = vld [vmem:[#allocation4 + $0x20] ss:$8 sps:$4 sm:$0xff]   ;;  %v12260_v18 = vld [vmem:[#allocation4 + $0x14] ss:$8 sps:$4 sm:$0xff]   ;;  %v12262_v6 = vld [vmem:[#allocation4 + $0x10] ss:$8 sps:$4 sm:$0xff]  }
0x164c   :  { %v16530_v59 = vld [vmem:[#allocation84 + $0x74] ss:$8 sps:$4 sm:$0xff]   ;;  %v12292_v46 = vld [vmem:[#allocation84 + $0x70] ss:$8 sps:$4 sm:$0xff]   ;;  %v12293_v47 = vld [vmem:[#allocation84 + $0x64] ss:$8 sps:$4 sm:$0xff]  }
0x164d   :  { %6125 = vmatpush1.bf16.msra.mxu0 %v12247_v48  ;;  %v12263_v7 = vld [vmem:[#allocation4 + $0x4] ss:$8 sps:$4 sm:$0xff]   ;;  %6359 = vmatprep.subr.bf16.mxu1 %v16530_v59  ;;  %v12265_v39 = vld [vmem:[#allocation4] ss:$8 sps:$4 sm:$0xff]   ;;  %v12266_v40 = vld [vmem:[#allocation4 + $0xf4] ss:$8 sps:$4 sm:$0xff]  }
0x164e   :  { %6126 = vmatprep.subr.bf16.mxu0 %v12248_v52  ;;  %6360 = vmatpush1.bf16.msra.mxu1 %v12292_v46  ;;  %v12295_v51 = vld [vmem:[#allocation84 + $0x60] ss:$8 sps:$4 sm:$0xff]   ;;  %v12296_v54 = vld [vmem:[#allocation84 + $0x54] ss:$8 sps:$4 sm:$0xff]   ;;  %v12298_v41 = vld [vmem:[#allocation84 + $0x50] ss:$8 sps:$4 sm:$0xff]  }
0x164f   :  { %6361 = vmatprep.subr.bf16.mxu1 %v12293_v47  ;;  %v12299_v42 = vld [vmem:[#allocation84 + $0x44] ss:$8 sps:$4 sm:$0xff]   ;;  %v12268_v34 = vld [vmem:[#allocation4 + $0xf0] ss:$8 sps:$4 sm:$0xff]   ;;  %vm9901_vm4 = vcmask 523264  }
0x1650   :  { %v12269_v25 = vld [vmem:[#allocation4 + $0xe4] ss:$8 sps:$4 sm:$0xff]   ;;  %v12271_v19 = vld [vmem:[#allocation4 + $0xe0] ss:$8 sps:$4 sm:$0xff]   ;;  %v12272_v45 = vld [vmem:[#allocation4 + $0xd4] ss:$8 sps:$4 sm:$0xff]  }
0x1651   :  { %6127 = vmatpush1.bf16.msra.mxu0 %v12250_v3  ;;  %v16533_v5 = vld [vmem:[#allocation84 + $0x40] ss:$8 sps:$4 sm:$0xff]   ;;  %v16535_v32 = vld [vmem:[#allocation84 + $0x34] ss:$8 sps:$4 sm:$0xff]   ;;  %v16538_v24 = vld [vmem:[#allocation84 + $0x30] ss:$8 sps:$4 sm:$0xff]  }
0x1652   :  { %6128 = vmatprep.subr.bf16.mxu0 %v12251_v49  ;;  %6362 = vmatpush1.bf16.msra.mxu1 %v12295_v51  ;;  %v12274_v26 = vld [vmem:[#allocation4 + $0xd0] ss:$8 sps:$4 sm:$0xff]   ;;  %v16541_v29 = vld [vmem:[#allocation84 + $0x24] ss:$8 sps:$4 sm:$0xff]  }
0x1653   :  { %6363 = vmatprep.subr.bf16.mxu1 %v12296_v54  ;;  %v12275_v22 = vld [vmem:[#allocation4 + $0xc4] ss:$8 sps:$4 sm:$0xff]   ;;  %v12277_v23 = vld [vmem:[#allocation4 + $0xc0] ss:$8 sps:$4 sm:$0xff]   ;;  %v12278_v33 = vld [vmem:[#allocation4 + $0xb4] ss:$8 sps:$4 sm:$0xff]  }
0x1654   :  { %v16543_v28 = vld [vmem:[#allocation84 + $0x20] ss:$8 sps:$4 sm:$0xff]   ;;  %v16545_v27 = vld [vmem:[#allocation84 + $0x14] ss:$8 sps:$4 sm:$0xff]   ;;  %v16549_v35 = vld [vmem:[#allocation84 + $0x10] ss:$8 sps:$4 sm:$0xff]  }
0x1655   :  { %6129 = vmatpush1.bf16.msra.mxu0 %v12253_v12  ;;  %v16551_v31 = vld [vmem:[#allocation84 + $0x4] ss:$8 sps:$4 sm:$0xff]   ;;  %v12280_v36 = vld [vmem:[#allocation4 + $0xb0] ss:$8 sps:$4 sm:$0xff]  }
0x1656   :  { %6130 = vmatprep.subr.bf16.mxu0 %v12254_v62  ;;  %6364 = vmatpush1.bf16.msra.mxu1 %v12298_v41  ;;  %v12281_v38 = vld [vmem:[#allocation4 + $0xa4] ss:$8 sps:$4 sm:$0xff]   ;;  %v12283_v10 = vld [vmem:[#allocation4 + $0xa0] ss:$8 sps:$4 sm:$0xff]   ;;  %v12284_v14 = vld [vmem:[#allocation4 + $0x94] ss:$8 sps:$4 sm:$0xff]  }
0x1657   :  { %6365 = vmatprep.subr.bf16.mxu1 %v12299_v42  ;;  %v16555_v17 = vld [vmem:[#allocation84] ss:$8 sps:$4 sm:$0xff]   ;;  %v16557_v9 = vld [vmem:[#allocation84 + $0xf4] ss:$8 sps:$4 sm:$0xff]   ;;  %v16561_v15 = vld [vmem:[#allocation84 + $0xf0] ss:$8 sps:$4 sm:$0xff]  }
0x1658   :  { %v16563_v21 = vld [vmem:[#allocation84 + $0xe4] ss:$8 sps:$4 sm:$0xff]   ;;  %v12286_v57 = vld [vmem:[#allocation4 + $0x90] ss:$8 sps:$4 sm:$0xff]  }
0x1659   :  { %6131 = vmatpush1.bf16.msra.mxu0 %v12256_v63  ;;  %v12287_v58 = vld [vmem:[#allocation4 + $0x84] ss:$8 sps:$4 sm:$0xff]   ;;  %v12289_v30 = vld [vmem:[#allocation4 + $0x80] ss:$8 sps:$4 sm:$0xff]   ;;  %v5950_v46 = vld [vmem:[#allocation85] sm:$0x3] }
0x165a   :  { %6132 = vmatprep.subr.bf16.mxu0 %v12257_v44  ;;  %6366 = vmatpush1.bf16.msra.mxu1 %v16533_v5  ;;  %v16567_v20 = vld [vmem:[#allocation84 + $0xe0] ss:$8 sps:$4 sm:$0xff]   ;;  %v16569_v16 = vld [vmem:[#allocation84 + $0xd4] ss:$8 sps:$4 sm:$0xff]   ;;  %v16573_v55 = vld [vmem:[#allocation84 + $0xd0] ss:$8 sps:$4 sm:$0xff]   ;;  %v5959_v47 = vrot.slane %v5950_v46, %v15935_v13 }
0x165b   :  { %6367 = vmatprep.subr.bf16.mxu1 %v16535_v32  ;;  %v16575_v56 = vld [vmem:[#allocation84 + $0xc4] ss:$8 sps:$4 sm:$0xff]   ;;  %v16583_v61 = vld [vmem:[#allocation84 + $0xc0] ss:$8 sps:$4 sm:$0xff]   ;;  %v16585_v1 = vld [vmem:[#allocation84 + $0xb4] ss:$8 sps:$4 sm:$0xff]  }
0x165c   :  { %v16590_v53 = vld [vmem:[#allocation84 + $0xb0] ss:$8 sps:$4 sm:$0xff]   ;;  %v16593_v48 = vld [vmem:[#allocation84 + $0xa4] ss:$8 sps:$4 sm:$0xff]   ;;  %v16597_v52 = vld [vmem:[#allocation84 + $0xa0] ss:$8 sps:$4 sm:$0xff]  }
0x165d   :  { %6133 = vmatpush1.bf16.msra.mxu0 %v12259_v2  ;;  %v16602_v3 = vld [vmem:[#allocation84 + $0x94] ss:$8 sps:$4 sm:$0xff]   ;;  %v16604_v49 = vld [vmem:[#allocation84 + $0x90] ss:$8 sps:$4 sm:$0xff]   ;;  %v16608_v12 = vld [vmem:[#allocation84 + $0x84] ss:$8 sps:$4 sm:$0xff]  }
0x165e   :  { %6134 = vmatprep.subr.bf16.mxu0 %v12260_v18  ;;  %6368 = vmatpush1.bf16.msra.mxu1 %v16538_v24  ;;  %v16610_v62 = vld [vmem:[#allocation84 + $0x80] ss:$8 sps:$4 sm:$0xff]   ;;  %v12341_v2 = vld [vmem:[#allocation96] ss:$8 sps:$4 sm:$0xff]   ;;  %v12343_v18 = vld [vmem:[#allocation96 + $0x4] ss:$8 sps:$4 sm:$0xff]  }
0x165f   :  { %6369 = vmatprep.subr.bf16.mxu1 %v16541_v29  ;;  %v12338_v63 = vld [vmem:[#allocation96 + $0x10] ss:$8 sps:$4 sm:$0xff]   ;;  %v12340_v44 = vld [vmem:[#allocation96 + $0x14] ss:$8 sps:$4 sm:$0xff]  }
0x1661   :  { %6135 = vmatpush1.bf16.msra.mxu0 %v12262_v6  ;;  %v5955_v6 = vrot.slane %v5950_v46, %v15932_v11 }
0x1662   :  { %6136 = vmatprep.subr.bf16.mxu0 %v12263_v7  ;;  %6370 = vmatpush1.bf16.msra.mxu1 %v16543_v28 }
0x1663   :  { %6371 = vmatprep.subr.bf16.mxu1 %v16545_v27 }
0x1665   :  { %6137 = vmatpush1.bf16.msra.mxu0 %v12265_v39 }
0x1666   :  { %6138 = vmatprep.subr.bf16.mxu0 %v12266_v40  ;;  %6372 = vmatpush1.bf16.msra.mxu1 %v16549_v35 }
0x1667   :  { %6373 = vmatprep.subr.bf16.mxu1 %v16551_v31 }
0x1669   :  { %6139 = vmatpush2.bf16.msra.mxu0 %v12268_v34 }
0x166a   :  { %6140 = vmatprep.subr.bf16.mxu0 %v12269_v25  ;;  %6374 = vmatpush1.bf16.msra.mxu1 %v16555_v17 }
0x166b   :  { %6375 = vmatprep.subr.bf16.mxu1 %v16557_v9 }
0x166d   :  { %6141 = vmatpush2.bf16.msra.mxu0 %v12271_v19  ;;  %v16629_v19 = vld [vmem:[#allocation84 + $0x70] ss:$8 sps:$4 sm:$0xff]  }
0x166e   :  { %6142 = vmatprep.subr.bf16.mxu0 %v12272_v45  ;;  %6376 = vmatpush2.bf16.msra.mxu1 %v16561_v15  ;;  %v16632_v45 = vld [vmem:[#allocation84 + $0x64] ss:$8 sps:$4 sm:$0xff]  }
0x166f   :  { %6377 = vmatprep.subr.bf16.mxu1 %v16563_v21 }
0x1671   :  { %6143 = vmatpush2.bf16.msra.mxu0 %v12274_v26  ;;  %v16635_v26 = vld [vmem:[#allocation84 + $0x60] ss:$8 sps:$4 sm:$0xff]  }
0x1672   :  { %6144 = vmatprep.subr.bf16.mxu0 %v12275_v22  ;;  %6378 = vmatpush2.bf16.msra.mxu1 %v16567_v20  ;;  %v16638_v22 = vld [vmem:[#allocation84 + $0x54] ss:$8 sps:$4 sm:$0xff]  }
0x1673   :  { %6379 = vmatprep.subr.bf16.mxu1 %v16569_v16 }
0x1675   :  { %6145 = vmatpush2.bf16.msra.mxu0 %v12277_v23  ;;  %v16641_v23 = vld [vmem:[#allocation84 + $0x50] ss:$8 sps:$4 sm:$0xff]  }
0x1676   :  { %6146 = vmatprep.subr.bf16.mxu0 %v12278_v33  ;;  %6380 = vmatpush2.bf16.msra.mxu1 %v16573_v55  ;;  %v16644_v33 = vld [vmem:[#allocation84 + $0x44] ss:$8 sps:$4 sm:$0xff]  }
0x1677   :  { %6381 = vmatprep.subr.bf16.mxu1 %v16575_v56 }
0x1679   :  { %6147 = vmatpush2.bf16.msra.mxu0 %v12280_v36  ;;  %v12353_v36 = vld [vmem:[#allocation5 + $0x40] ss:$8 sps:$4 sm:$0xff]  }
0x167a   :  { %6148 = vmatprep.subr.bf16.mxu0 %v12281_v38  ;;  %6382 = vmatpush2.bf16.msra.mxu1 %v16583_v61  ;;  %v12358_v38 = vld [vmem:[#allocation5 + $0x34] ss:$8 sps:$4 sm:$0xff]  }
0x167b   :  { %6383 = vmatprep.subr.bf16.mxu1 %v16585_v1 }
0x167d   :  { %6149 = vmatpush2.bf16.msra.mxu0 %v12283_v10  ;;  %v12359_v10 = vld [vmem:[#allocation5 + $0x20] ss:$8 sps:$4 sm:$0xff]  }
0x167e   :  { %6150 = vmatprep.subr.bf16.mxu0 %v12284_v14  ;;  %6384 = vmatpush2.bf16.msra.mxu1 %v16590_v53  ;;  %v12364_v14 = vld [vmem:[#allocation5 + $0x14] ss:$8 sps:$4 sm:$0xff]  }
0x167f   :  { %6385 = vmatprep.subr.bf16.mxu1 %v16593_v48 }
0x1681   :  { %6151 = vmatpush2.bf16.msra.mxu0 %v12286_v57  ;;  %v12365_v57 = vld [vmem:[#allocation5] ss:$8 sps:$4 sm:$0xff]  }
0x1682   :  { %6152 = vmatprep.subr.bf16.mxu0 %v12287_v58  ;;  %6386 = vmatpush2.bf16.msra.mxu1 %v16597_v52  ;;  %v12370_v58 = vld [vmem:[#allocation5 + $0xf4] ss:$8 sps:$4 sm:$0xff]  }
0x1683   :  { %6387 = vmatprep.subr.bf16.mxu1 %v16602_v3 }
0x1685   :  { %6153 = vmatpush2.bf16.msra.mxu0 %v12289_v30  ;;  %v12371_v30 = vld [vmem:[#allocation5 + $0xe0] ss:$8 sps:$4 sm:$0xff]  }
0x1686   :  { %6388 = vmatpush2.bf16.msra.mxu1 %v16604_v49  ;;  %6512 = vmatprep.subr.bf16.mxu0 %v12340_v44  ;;  %v12385_v44 = vld [vmem:[#allocation5 + $0xa4] ss:$8 sps:$4 sm:$0xff]  }
0x1687   :  { %6389 = vmatprep.subr.bf16.mxu1 %v16608_v12 }
0x1688   :  { %6155 = vmatmul.mubr.bf16.vlgmr.msra.gmra.mxu0 %v16580_v4 }
0x1689   :  { %6532 = vmatprep.mubr.bf16.mxu0 %v15059_v43  ;;  %6513 = vmatpush1.bf16.msra.mxu0 %v12338_v63 }
0x168a   :  { %6390 = vmatpush2.bf16.msra.mxu1 %v16610_v62  ;;  %6514 = vmatprep.subr.bf16.mxu0 %v12343_v18 }
0x168b   :  { %6794 = vmatprep.subr.bf16.mxu1 %v16530_v59 }
0x168d   :  { %6515 = vmatpush1.bf16.msra.mxu0 %v12341_v2  ;;  %v12383_v2 = vld [vmem:[#allocation5 + $0xa0] ss:$8 sps:$4 sm:$0xff]  }
0x1690   :  { %10603 = vmatmul.mubr.msk.bf16.vlgmr.msra.gmra.mxu0 %vm1597_vm1, %v15915_v37 }
0x1748   :  { %v6156_v7 = vpop.f32.mrf.mxu0 }
0x1749   :  { %v16619_v51 = vadd.f32 %v6156_v7, %v5955_v6  ;;  %v12388_v6 = vld [vmem:[#allocation5 + $0x94] ss:$8 sps:$4 sm:$0xff]   ;;  %v12391_v7 = vld [vmem:[#allocation5 + $0x84] ss:$8 sps:$4 sm:$0xff]  }
0x174a   :  { %v6158_v59 = vpop.f32.mrf.mxu0 }
0x174b   :  { %v16621_v54 = vadd.f32 %v6158_v59, %v5959_v47  ;;  %v6163_v39 = vmul.f32 %v16619_v51, %v16619_v51  ;;  %v12386_v47 = vld [vmem:[#allocation5 + $0x90] ss:$8 sps:$4 sm:$0xff]   ;;  %v12389_v59 = vld [vmem:[#allocation5 + $0x80] ss:$8 sps:$4 sm:$0xff]  }
0x174c   :  { %v6160_v40 = vpop.f32.mrf.mxu0 }
0x174d   :  { %v6164_v41 = vmul.f32 %v16621_v54, %v16621_v54  ;;  %v6165_v25 = vpack.c.bf16 %v6163_v39, %v16619_v51 }
0x174e   :  { %v6161_v42 = vpop.f32.mrf.mxu0 }
0x174f   :  { %v6166_v34 = vpack.c.bf16 %v6164_v41, %v16621_v54 }
0x1751   :  { %6391 = vmatprep.mubr.bf16.mxu1 %v6166_v34 }
0x1752   :  { %6392 = vmatmul.mubr.bf16.vlgmr.msra.gmra.mxu1 %v6165_v25 }
0x1753   :  { %6795 = vmatpush1.bf16.msra.mxu1 %v16629_v19 }
0x1754   :  { %6796 = vmatprep.subr.bf16.mxu1 %v16632_v45 }
0x1757   :  { %6797 = vmatpush1.bf16.msra.mxu1 %v16635_v26 }
0x1758   :  { %6798 = vmatprep.subr.bf16.mxu1 %v16638_v22 }
0x175b   :  { %6799 = vmatpush1.bf16.msra.mxu1 %v16641_v23 }
0x175c   :  { %6800 = vmatprep.subr.bf16.mxu1 %v16644_v33 }
0x175f   :  { %6801 = vmatpush1.bf16.msra.mxu1 %v16533_v5  ;;  %v16672_v5 = vld [vmem:[#allocation84 + $0x74] ss:$8 sps:$4 sm:$0xff]  }
0x1760   :  { %6802 = vmatprep.subr.bf16.mxu1 %v16535_v32  ;;  %v12344_v32 = vld [vmem:[#allocation5 + $0x70] ss:$8 sps:$4 sm:$0xff]  }
0x1763   :  { %6803 = vmatpush1.bf16.msra.mxu1 %v16538_v24  ;;  %v12346_v24 = vld [vmem:[#allocation5 + $0x74] ss:$8 sps:$4 sm:$0xff]  }
0x1764   :  { %6804 = vmatprep.subr.bf16.mxu1 %v16541_v29  ;;  %v12349_v29 = vld [vmem:[#allocation5 + $0x64] ss:$8 sps:$4 sm:$0xff]   ;;  %6749 = vmatprep.subr.bf16.mxu0 %v12346_v24 }
0x1765   :  { %6750 = vmatpush1.bf16.msra.mxu0 %v12344_v32 }
0x1766   :  { %6751 = vmatprep.subr.bf16.mxu0 %v12349_v29 }
0x1767   :  { %6805 = vmatpush1.bf16.msra.mxu1 %v16543_v28  ;;  %v12347_v28 = vld [vmem:[#allocation5 + $0x60] ss:$8 sps:$4 sm:$0xff]  }
0x1768   :  { %6806 = vmatprep.subr.bf16.mxu1 %v16545_v27  ;;  %v12352_v27 = vld [vmem:[#allocation5 + $0x54] ss:$8 sps:$4 sm:$0xff]  }
0x1769   :  { %6752 = vmatpush1.bf16.msra.mxu0 %v12347_v28 }
0x176a   :  { %6753 = vmatprep.subr.bf16.mxu0 %v12352_v27  ;;  %v6414_v27 = vld [vmem:[#allocation93] sm:$0x3] }
0x176b   :  { %6807 = vmatpush1.bf16.msra.mxu1 %v16549_v35  ;;  %v12350_v35 = vld [vmem:[#allocation5 + $0x50] ss:$8 sps:$4 sm:$0xff]  }
0x176c   :  { %6808 = vmatprep.subr.bf16.mxu1 %v16551_v31  ;;  %v12355_v31 = vld [vmem:[#allocation5 + $0x44] ss:$8 sps:$4 sm:$0xff]  }
0x176d   :  { %6754 = vmatpush1.bf16.msra.mxu0 %v12350_v35  ;;  %v6428_v35 = vld [vmem:[#allocation88] sm:$0x3] }
0x176e   :  { %6755 = vmatprep.subr.bf16.mxu0 %v12355_v31 }
0x176f   :  { %6809 = vmatpush1.bf16.msra.mxu1 %v16555_v17  ;;  %v12356_v17 = vld [vmem:[#allocation5 + $0x30] ss:$8 sps:$4 sm:$0xff]  }
0x1770   :  { %6810 = vmatprep.subr.bf16.mxu1 %v16557_v9  ;;  %v12361_v9 = vld [vmem:[#allocation5 + $0x24] ss:$8 sps:$4 sm:$0xff]  }
0x1771   :  { %6756 = vmatpush1.bf16.msra.mxu0 %v12353_v36  ;;  %v6419_v36 = vrot.slane %v6414_v27, %v15932_v11 }
0x1772   :  { %6757 = vmatprep.subr.bf16.mxu0 %v12358_v38 }
0x1773   :  { %6811 = vmatpush2.bf16.msra.mxu1 %v16561_v15  ;;  %v12362_v15 = vld [vmem:[#allocation5 + $0x10] ss:$8 sps:$4 sm:$0xff]  }
0x1774   :  { %6812 = vmatprep.subr.bf16.mxu1 %v16563_v21  ;;  %v12367_v21 = vld [vmem:[#allocation5 + $0x4] ss:$8 sps:$4 sm:$0xff]  }
0x1775   :  { %6758 = vmatpush1.bf16.msra.mxu0 %v12356_v17 }
0x1776   :  { %6759 = vmatprep.subr.bf16.mxu0 %v12361_v9 }
0x1777   :  { %6813 = vmatpush2.bf16.msra.mxu1 %v16567_v20  ;;  %v12368_v20 = vld [vmem:[#allocation5 + $0xf0] ss:$8 sps:$4 sm:$0xff]  }
0x1778   :  { %6814 = vmatprep.subr.bf16.mxu1 %v16569_v16  ;;  %v12373_v16 = vld [vmem:[#allocation5 + $0xe4] ss:$8 sps:$4 sm:$0xff]  }
0x1779   :  { %6760 = vmatpush1.bf16.msra.mxu0 %v12359_v10  ;;  %v6433_v10 = vrot.slane %v6428_v35, %v15932_v11 }
0x177a   :  { %6761 = vmatprep.subr.bf16.mxu0 %v12364_v14  ;;  %v6423_v14 = vrot.slane %v6414_v27, %v15935_v13 }
0x177b   :  { %6815 = vmatpush2.bf16.msra.mxu1 %v16573_v55  ;;  %v12376_v55 = vld [vmem:[#allocation5 + $0xd4] ss:$8 sps:$4 sm:$0xff]  }
0x177c   :  { %6816 = vmatprep.subr.bf16.mxu1 %v16575_v56  ;;  %v12374_v56 = vld [vmem:[#allocation5 + $0xd0] ss:$8 sps:$4 sm:$0xff]  }
0x177d   :  { %6762 = vmatpush1.bf16.msra.mxu0 %v12362_v15 }
0x177e   :  { %6763 = vmatprep.subr.bf16.mxu0 %v12367_v21 }
0x177f   :  { %6817 = vmatpush2.bf16.msra.mxu1 %v16583_v61  ;;  %v12379_v61 = vld [vmem:[#allocation5 + $0xc4] ss:$8 sps:$4 sm:$0xff]  }
0x1780   :  { %6818 = vmatprep.subr.bf16.mxu1 %v16585_v1  ;;  %v12377_v1 = vld [vmem:[#allocation5 + $0xc0] ss:$8 sps:$4 sm:$0xff]  }
0x1781   :  { %6764 = vmatpush1.bf16.msra.mxu0 %v12365_v57 }
0x1782   :  { %6765 = vmatprep.subr.bf16.mxu0 %v12370_v58  ;;  %v6437_v58 = vrot.slane %v6428_v35, %v15935_v13 }
0x1783   :  { %6819 = vmatpush2.bf16.msra.mxu1 %v16590_v53  ;;  %v12382_v53 = vld [vmem:[#allocation5 + $0xb4] ss:$8 sps:$4 sm:$0xff]  }
0x1784   :  { %6820 = vmatprep.subr.bf16.mxu1 %v16593_v48  ;;  %v12380_v48 = vld [vmem:[#allocation5 + $0xb0] ss:$8 sps:$4 sm:$0xff]  }
0x1785   :  { %6766 = vmatpush2.bf16.msra.mxu0 %v12368_v20 }
0x1786   :  { %6767 = vmatprep.subr.bf16.mxu0 %v12373_v16 }
0x1787   :  { %6821 = vmatpush2.bf16.msra.mxu1 %v16597_v52  ;;  %v16675_v52 = vpop.f32.mrf.mxu0 }
0x1788   :  { %6822 = vmatprep.subr.bf16.mxu1 %v16602_v3 }
0x1789   :  { %6768 = vmatpush2.bf16.msra.mxu0 %v12371_v30  ;;  %v16677_v63 = vpop.f32.mrf.mxu0 }
0x178a   :  { %6769 = vmatprep.subr.bf16.mxu0 %v12376_v55 }
0x178b   :  { %6823 = vmatpush2.bf16.msra.mxu1 %v16604_v49  ;;  %v6538_v18 = vpop.f32.mrf.mxu0 }
0x178c   :  { %6824 = vmatprep.subr.bf16.mxu1 %v16608_v12 }
0x178d   :  { %6770 = vmatpush2.bf16.msra.mxu0 %v12374_v56  ;;  %v6539_v46 = vpop.f32.mrf.mxu0 }
0x178e   :  { %6771 = vmatprep.subr.bf16.mxu0 %v12379_v61 }
0x178f   :  { %6825 = vmatpush2.bf16.msra.mxu1 %v16610_v62 }
0x1790   :  { %7152 = vmatprep.subr.bf16.mxu1 %v16672_v5 }
0x1791   :  { %6772 = vmatpush2.bf16.msra.mxu0 %v12377_v1 }
0x1792   :  { %6773 = vmatprep.subr.bf16.mxu0 %v12382_v53 }
0x1795   :  { %6774 = vmatpush2.bf16.msra.mxu0 %v12380_v48 }
0x1796   :  { %6775 = vmatprep.subr.bf16.mxu0 %v12385_v44 }
0x1799   :  { %6776 = vmatpush2.bf16.msra.mxu0 %v12383_v2 }
0x179a   :  { %6777 = vmatprep.subr.bf16.mxu0 %v12388_v6  ;;  %v6468_v6 = vld [vmem:[#allocation91] sm:$0x3] }
0x179d   :  { %6778 = vmatpush2.bf16.msra.mxu0 %v12386_v47  ;;  %v6473_v47 = vrot.slane %v6468_v6, %v15932_v11 }
0x179e   :  { %6779 = vmatprep.subr.bf16.mxu0 %v12391_v7 }
0x17a1   :  { %6780 = vmatpush2.bf16.msra.mxu0 %v12389_v59 }
0x1812   :  { %v6393_v39 = vpop.f32.mrf.mxu1 }
0x1813   :  { %v6402_v41 = vmul.f32 %v6393_v39, %v6393_v39  ;;  %v6406_v31 = vsub.f32 %v16619_v51, %v6393_v39  ;;  %v6477_v39 = vrot.slane %v6468_v6, %v15935_v13  ;;  %v16749_v6 = vld [vmem:[#allocation84 + $0xd0] ss:$8 sps:$4 sm:$0xff]  }
0x1814   :  { %v6395_v40 = vpop.f32.mrf.mxu1 }
0x1815   :  { %v6403_v34 = vmul.f32 %v6395_v40, %v6395_v40  ;;  %v6407_v17 = vsub.f32 %v16621_v54, %v6395_v40 }
0x1816   :  { %v6397_v42 = vpop.f32.mrf.mxu1 }
0x1817   :  { %v6404_v25 = vsub.f32 %v6397_v42, %v6402_v41  ;;  %v6535_v41 = vadd.f32 %v16675_v52, %v6473_v47  ;;  %v16752_v47 = vld [vmem:[#allocation84 + $0xc4] ss:$8 sps:$4 sm:$0xff]  }
0x1818   :  { %v6399_v32 = vpop.f32.mrf.mxu1 }
0x1819   :  { %v6408_v24 = vadd.f32 1e-05, %v6404_v25  ;;  %v6405_v29 = vsub.f32 %v6399_v32, %v6403_v34 }
0x181b   :  { %12682 = vrsqrt.f32 %v6408_v24  ;;  %v6409_v28 = vadd.f32 1e-05, %v6405_v29  ;;  %v6537_v24 = vadd.f32 %v16677_v63, %v6477_v39  ;;  %v16761_v39 = vld [vmem:[#allocation84 + $0xb0] ss:$8 sps:$4 sm:$0xff]  }
0x181d   :  { %12684 = vrsqrt.f32 %v6409_v28 }
0x1828   :  { %v12683_v38 = vpop.eup %12682 }
0x1829   :  { %v6412_v9 = vmul.f32 %v12683_v38, %v6406_v31 }
0x182a   :  { %v12685_v15 = vpop.eup %12684 }
0x182b   :  { %v6426_v21 = vmul.f32 %v6419_v36, %v6412_v9  ;;  %v6413_v57 = vmul.f32 %v12685_v15, %v6407_v17  ;;  %v6577_v36 = vld [vmem:[#allocation87] sm:$0x3] }
0x182c   :  { %v6582_v38 = vrot.slane %v6577_v36, %v15932_v11  ;;  %v6586_v52 = vrot.slane %v6577_v36, %v15935_v13  ;;  %v12410_v36 = vld [vmem:[#allocation6 + $0x10] ss:$8 sps:$4 sm:$0xff]  }
0x182d   :  { %v6440_v20 = vadd.f32 %v6433_v10, %v6426_v21  ;;  %v6427_v16 = vmul.f32 %v6423_v14, %v6413_v57 }
0x182f   :  { %v6442_v30 = vmin.f32 %v6440_v20, 20.0  ;;  %v6441_v55 = vadd.f32 %v6437_v58, %v6427_v16  ;;  %vm6460_vm6 = vcmp.gt.f32.partialorder %v6440_v20, 20.0  ;;  %v16707_v16 = vld [vmem:[#allocation84 + $0x40] ss:$8 sps:$4 sm:$0xff]  }
0x1831   :  { %v6444_v51 = vmul.f32 1.442695, %v6442_v30  ;;  %v6443_v56 = vmin.f32 %v6441_v55, 20.0  ;;  %vm6461_vm7 = vcmp.gt.f32.partialorder %v6441_v55, 20.0  ;;  %v16710_v30 = vld [vmem:[#allocation84 + $0x34] ss:$8 sps:$4 sm:$0xff]  }
0x1833   :  { %12686 = vpow2.f32 %v6444_v51  ;;  %v6446_v61 = vmul.f32 1.442695, %v6443_v56  ;;  %v16716_v51 = vld [vmem:[#allocation84 + $0x24] ss:$8 sps:$4 sm:$0xff]   ;;  %v16719_v56 = vld [vmem:[#allocation84 + $0x20] ss:$8 sps:$4 sm:$0xff]  }
0x1835   :  { %12688 = vpow2.f32 %v6446_v61  ;;  %v16722_v61 = vld [vmem:[#allocation84 + $0x14] ss:$8 sps:$4 sm:$0xff]  }
0x1840   :  { %v12687_v54 = vpop.eup %12686 }
0x1841   :  { %v6448_v1 = vadd.f32 2.0, %v12687_v54 }
0x1842   :  { %v12689_v53 = vpop.eup %12688 }
0x1843   :  { %v6450_v48 = vmul.f32 %v12687_v54, %v6448_v1  ;;  %v6449_v44 = vadd.f32 2.0, %v12689_v53  ;;  %v16725_v54 = vld [vmem:[#allocation84 + $0x10] ss:$8 sps:$4 sm:$0xff]   ;;  %v16728_v1 = vld [vmem:[#allocation84 + $0x4] ss:$8 sps:$4 sm:$0xff]  }
0x1845   :  { %v6454_v2 = vadd.f32 2.0, %v6450_v48  ;;  %v6451_v18 = vmul.f32 %v12689_v53, %v6449_v44  ;;  %v6452_v7 = vmul.f32 %v6450_v48, %v6440_v20  ;;  %v16731_v53 = vld [vmem:[#allocation84] ss:$8 sps:$4 sm:$0xff]   ;;  %v16734_v48 = vld [vmem:[#allocation84 + $0xf4] ss:$8 sps:$4 sm:$0xff]  }
0x1846   :  { %v16737_v44 = vld [vmem:[#allocation84 + $0xf0] ss:$8 sps:$4 sm:$0xff]  }
0x1847   :  { %12690 = vrcp.f32 %v6454_v2  ;;  %v6455_v46 = vadd.f32 2.0, %v6451_v18  ;;  %v6453_v42 = vmul.f32 %v6451_v18, %v6441_v55  ;;  %v16740_v2 = vld [vmem:[#allocation84 + $0xe4] ss:$8 sps:$4 sm:$0xff]   ;;  %v16743_v18 = vld [vmem:[#allocation84 + $0xe0] ss:$8 sps:$4 sm:$0xff]  }
0x1849   :  { %12692 = vrcp.f32 %v6455_v46  ;;  %v16746_v46 = vld [vmem:[#allocation84 + $0xd4] ss:$8 sps:$4 sm:$0xff]  }
0x1854   :  { %v12691_v59 = vpop.eup %12690 }
0x1855   :  { %v6458_v40 = vmul.f32 %v12691_v59, %v6452_v7  ;;  %v16755_v7 = vld [vmem:[#allocation84 + $0xc0] ss:$8 sps:$4 sm:$0xff]   ;;  %v16758_v59 = vld [vmem:[#allocation84 + $0xb4] ss:$8 sps:$4 sm:$0xff]  }
0x1856   :  { %v12693_v34 = vpop.eup %12692 }
0x1857   :  { %v6462_v25 = vsel %vm6460_vm6, %v6440_v20, %v6458_v40  ;;  %v6459_v32 = vmul.f32 %v12693_v34, %v6453_v42  ;;  %v16764_v40 = vld [vmem:[#allocation84 + $0xa4] ss:$8 sps:$4 sm:$0xff]   ;;  %v12392_v34 = vld [vmem:[#allocation6 + $0x70] ss:$8 sps:$4 sm:$0xff]  }
0x1858   :  { %v6541_v29 = vadd.f32 %v6535_v41, %v6462_v25  ;;  %v16767_v41 = vld [vmem:[#allocation84 + $0xa0] ss:$8 sps:$4 sm:$0xff]  }
0x1859   :  { %v6463_v28 = vsel %vm6461_vm7, %v6441_v55, %v6459_v32  ;;  %v16713_v55 = vld [vmem:[#allocation84 + $0x30] ss:$8 sps:$4 sm:$0xff]  }
0x185a   :  { %v6542_v27 = vadd.f32 %v6537_v24, %v6463_v28  ;;  %v6543_v31 = vpack.c.bf16 %v6541_v29, %v6541_v29  ;;  %v12394_v42 = vld [vmem:[#allocation6 + $0x74] ss:$8 sps:$4 sm:$0xff]   ;;  %v12397_v25 = vld [vmem:[#allocation6 + $0x64] ss:$8 sps:$4 sm:$0xff]   ;;  %v12395_v32 = vld [vmem:[#allocation6 + $0x60] ss:$8 sps:$4 sm:$0xff]  }
0x185b   :  { %7107 = vmatprep.subr.bf16.mxu0 %v12394_v42  ;;  %v12400_v24 = vld [vmem:[#allocation6 + $0x54] ss:$8 sps:$4 sm:$0xff]   ;;  %v12398_v29 = vld [vmem:[#allocation6 + $0x50] ss:$8 sps:$4 sm:$0xff]   ;;  %v12403_v28 = vld [vmem:[#allocation6 + $0x44] ss:$8 sps:$4 sm:$0xff]  }
0x185c   :  { %v6544_v35 = vpack.c.bf16 %v6542_v27, %v6542_v27  ;;  %v12409_v27 = vld [vmem:[#allocation6 + $0x24] ss:$8 sps:$4 sm:$0xff]   ;;  %v12430_v42 = vld [vmem:[#allocation6 + $0xb4] ss:$8 sps:$4 sm:$0xff]  }
0x185e   :  { %6781 = vmatprep.mubr.bf16.mxu0 %v6544_v35  ;;  %v12407_v35 = vld [vmem:[#allocation6 + $0x20] ss:$8 sps:$4 sm:$0xff]  }
0x185f   :  { %6782 = vmatmul.mubr.bf16.vlgmr.msra.gmra.mxu0 %v6543_v31  ;;  %v12412_v31 = vld [vmem:[#allocation6 + $0x14] ss:$8 sps:$4 sm:$0xff]  }
0x1860   :  { %7108 = vmatpush1.bf16.msra.mxu0 %v12392_v34  ;;  %v12428_v34 = vld [vmem:[#allocation6 + $0xb0] ss:$8 sps:$4 sm:$0xff]  }
0x1861   :  { %7109 = vmatprep.subr.bf16.mxu0 %v12397_v25  ;;  %v12433_v25 = vld [vmem:[#allocation6 + $0xa4] ss:$8 sps:$4 sm:$0xff]  }
0x1864   :  { %7110 = vmatpush1.bf16.msra.mxu0 %v12395_v32  ;;  %v12431_v32 = vld [vmem:[#allocation6 + $0xa0] ss:$8 sps:$4 sm:$0xff]  }
0x1865   :  { %7111 = vmatprep.subr.bf16.mxu0 %v12400_v24  ;;  %v12436_v24 = vld [vmem:[#allocation6 + $0x94] ss:$8 sps:$4 sm:$0xff]  }
0x1868   :  { %7112 = vmatpush1.bf16.msra.mxu0 %v12398_v29  ;;  %v12434_v29 = vld [vmem:[#allocation6 + $0x90] ss:$8 sps:$4 sm:$0xff]  }
0x1869   :  { %7113 = vmatprep.subr.bf16.mxu0 %v12403_v28  ;;  %v12439_v28 = vld [vmem:[#allocation6 + $0x84] ss:$8 sps:$4 sm:$0xff]  }
0x191f   :  { %v6783_v17 = vpop.f32.mrf.mxu0 }
0x1920   :  { %v16691_v9 = vadd.f32 %v6783_v17, %v6582_v38  ;;  %v12415_v38 = vld [vmem:[#allocation6 + $0x4] ss:$8 sps:$4 sm:$0xff]   ;;  %v12418_v17 = vld [vmem:[#allocation6 + $0xf4] ss:$8 sps:$4 sm:$0xff]  }
0x1921   :  { %v6785_v10 = vpop.f32.mrf.mxu0 }
0x1922   :  { %v16693_v14 = vadd.f32 %v6785_v10, %v6586_v52  ;;  %v6790_v63 = vmul.f32 %v16691_v9, %v16691_v9  ;;  %v12413_v52 = vld [vmem:[#allocation6] ss:$8 sps:$4 sm:$0xff]   ;;  %v12416_v10 = vld [vmem:[#allocation6 + $0xf0] ss:$8 sps:$4 sm:$0xff]  }
0x1923   :  { %v6787_v15 = vpop.f32.mrf.mxu0 }
0x1924   :  { %v6791_v21 = vmul.f32 %v16693_v14, %v16693_v14  ;;  %v6792_v20 = vpack.c.bf16 %v6790_v63, %v16691_v9  ;;  %v12421_v63 = vld [vmem:[#allocation6 + $0xe4] ss:$8 sps:$4 sm:$0xff]   ;;  %v12419_v15 = vld [vmem:[#allocation6 + $0xe0] ss:$8 sps:$4 sm:$0xff]  }
0x1925   :  { %v6788_v57 = vpop.f32.mrf.mxu0 }
0x1926   :  { %v6793_v58 = vpack.c.bf16 %v6791_v21, %v16693_v14  ;;  %v12424_v21 = vld [vmem:[#allocation6 + $0xd4] ss:$8 sps:$4 sm:$0xff]   ;;  %v12422_v57 = vld [vmem:[#allocation6 + $0xd0] ss:$8 sps:$4 sm:$0xff]  }
0x1928   :  { %6826 = vmatprep.mubr.bf16.mxu1 %v6793_v58  ;;  %v12427_v58 = vld [vmem:[#allocation6 + $0xc4] ss:$8 sps:$4 sm:$0xff]  }
0x1929   :  { %6827 = vmatmul.mubr.bf16.vlgmr.msra.gmra.mxu1 %v6792_v20  ;;  %v12425_v20 = vld [vmem:[#allocation6 + $0xc0] ss:$8 sps:$4 sm:$0xff]  }
0x192a   :  { %7153 = vmatpush1.bf16.msra.mxu1 %v16629_v19 }
0x192b   :  { %7154 = vmatprep.subr.bf16.mxu1 %v16632_v45 }
0x192e   :  { %7155 = vmatpush1.bf16.msra.mxu1 %v16635_v26 }
0x192f   :  { %7156 = vmatprep.subr.bf16.mxu1 %v16638_v22 }
0x1932   :  { %7157 = vmatpush1.bf16.msra.mxu1 %v16641_v23 }
0x1933   :  { %7158 = vmatprep.subr.bf16.mxu1 %v16644_v33 }
0x1936   :  { %7159 = vmatpush1.bf16.msra.mxu1 %v16707_v16 }
0x1937   :  { %7160 = vmatprep.subr.bf16.mxu1 %v16710_v30 }
0x193a   :  { %7161 = vmatpush1.bf16.msra.mxu1 %v16713_v55 }
0x193b   :  { %7162 = vmatprep.subr.bf16.mxu1 %v16716_v51 }
0x193e   :  { %7163 = vmatpush1.bf16.msra.mxu1 %v16719_v56 }
0x193f   :  { %7164 = vmatprep.subr.bf16.mxu1 %v16722_v61 }
0x1942   :  { %7165 = vmatpush1.bf16.msra.mxu1 %v16725_v54 }
0x1943   :  { %7166 = vmatprep.subr.bf16.mxu1 %v16728_v1 }
0x1946   :  { %7167 = vmatpush1.bf16.msra.mxu1 %v16731_v53 }
0x1947   :  { %7168 = vmatprep.subr.bf16.mxu1 %v16734_v48 }
0x194a   :  { %7169 = vmatpush2.bf16.msra.mxu1 %v16737_v44 }
0x194b   :  { %7170 = vmatprep.subr.bf16.mxu1 %v16740_v2 }
0x194e   :  { %7171 = vmatpush2.bf16.msra.mxu1 %v16743_v18 }
0x194f   :  { %7172 = vmatprep.subr.bf16.mxu1 %v16746_v46 }
0x1952   :  { %7173 = vmatpush2.bf16.msra.mxu1 %v16749_v6 }
0x1953   :  { %7174 = vmatprep.subr.bf16.mxu1 %v16752_v47 }
0x1956   :  { %7175 = vmatpush2.bf16.msra.mxu1 %v16755_v7 }
0x1957   :  { %7176 = vmatprep.subr.bf16.mxu1 %v16758_v59 }
0x195a   :  { %7177 = vmatpush2.bf16.msra.mxu1 %v16761_v39 }
0x195b   :  { %7178 = vmatprep.subr.bf16.mxu1 %v16764_v40 }
0x195e   :  { %7179 = vmatpush2.bf16.msra.mxu1 %v16767_v41 }
0x195f   :  { %7180 = vmatprep.subr.bf16.mxu1 %v16602_v3  ;;  %v12401_v3 = vld [vmem:[#allocation6 + $0x40] ss:$8 sps:$4 sm:$0xff]  }
0x1960   :  { %7114 = vmatpush1.bf16.msra.mxu0 %v12401_v3  ;;  %v12437_v3 = vld [vmem:[#allocation6 + $0x80] ss:$8 sps:$4 sm:$0xff]  }
0x1962   :  { %7181 = vmatpush2.bf16.msra.mxu1 %v16604_v49  ;;  %v12406_v49 = vld [vmem:[#allocation6 + $0x34] ss:$8 sps:$4 sm:$0xff]  }
0x1963   :  { %7182 = vmatprep.subr.bf16.mxu1 %v16608_v12  ;;  %v12404_v12 = vld [vmem:[#allocation6 + $0x30] ss:$8 sps:$4 sm:$0xff]   ;;  %7115 = vmatprep.subr.bf16.mxu0 %v12406_v49 }
0x1964   :  { %7116 = vmatpush1.bf16.msra.mxu0 %v12404_v12 }
0x1965   :  { %7117 = vmatprep.subr.bf16.mxu0 %v12409_v27 }
0x1966   :  { %7183 = vmatpush2.bf16.msra.mxu1 %v16610_v62 }
0x1968   :  { %7118 = vmatpush1.bf16.msra.mxu0 %v12407_v35 }
0x1969   :  { %7119 = vmatprep.subr.bf16.mxu0 %v12412_v31 }
0x196c   :  { %7120 = vmatpush1.bf16.msra.mxu0 %v12410_v36 }
0x196d   :  { %7121 = vmatprep.subr.bf16.mxu0 %v12415_v38 }
0x1970   :  { %7122 = vmatpush1.bf16.msra.mxu0 %v12413_v52 }
0x1971   :  { %7123 = vmatprep.subr.bf16.mxu0 %v12418_v17 }
0x1974   :  { %7124 = vmatpush2.bf16.msra.mxu0 %v12416_v10 }
0x1975   :  { %7125 = vmatprep.subr.bf16.mxu0 %v12421_v63  ;;  %v6849_v63 = vld [vmem:[#allocation94] sm:$0x3] }
0x1978   :  { %7126 = vmatpush2.bf16.msra.mxu0 %v12419_v15  ;;  %v6863_v15 = vld [vmem:[#allocation90] sm:$0x3] }
0x1979   :  { %7127 = vmatprep.subr.bf16.mxu0 %v12424_v21 }
0x197c   :  { %7128 = vmatpush2.bf16.msra.mxu0 %v12422_v57  ;;  %v6854_v57 = vrot.slane %v6849_v63, %v15932_v11 }
0x197d   :  { %7129 = vmatprep.subr.bf16.mxu0 %v12427_v58 }
0x1980   :  { %7130 = vmatpush2.bf16.msra.mxu0 %v12425_v20 }
0x1981   :  { %7131 = vmatprep.subr.bf16.mxu0 %v12430_v42 }
0x1984   :  { %7132 = vmatpush2.bf16.msra.mxu0 %v12428_v34  ;;  %v6858_v34 = vrot.slane %v6849_v63, %v15935_v13 }
0x1985   :  { %7133 = vmatprep.subr.bf16.mxu0 %v12433_v25  ;;  %v6868_v25 = vrot.slane %v6863_v15, %v15932_v11 }
0x1988   :  { %7134 = vmatpush2.bf16.msra.mxu0 %v12431_v32 }
0x1989   :  { %7135 = vmatprep.subr.bf16.mxu0 %v12436_v24 }
0x198c   :  { %7136 = vmatpush2.bf16.msra.mxu0 %v12434_v29 }
0x198d   :  { %7137 = vmatprep.subr.bf16.mxu0 %v12439_v28  ;;  %v6872_v28 = vrot.slane %v6863_v15, %v15935_v13 }
0x1990   :  { %7138 = vmatpush2.bf16.msra.mxu0 %v12437_v3 }
0x19e9   :  { %v6828_v49 = vpop.f32.mrf.mxu1 }
0x19ea   :  { %v6837_v27 = vmul.f32 %v6828_v49, %v6828_v49  ;;  %v6841_v21 = vsub.f32 %v16691_v9, %v6828_v49 }
0x19eb   :  { %v6830_v12 = vpop.f32.mrf.mxu1 }
0x19ec   :  { %v6838_v31 = vmul.f32 %v6830_v12, %v6830_v12  ;;  %v6842_v20 = vsub.f32 %v16693_v14, %v6830_v12 }
0x19ed   :  { %v6832_v35 = vpop.f32.mrf.mxu1 }
0x19ee   :  { %v6839_v36 = vsub.f32 %v6832_v35, %v6837_v27 }
0x19ef   :  { %v6834_v38 = vpop.f32.mrf.mxu1 }
0x19f0   :  { %v6843_v52 = vadd.f32 1e-05, %v6839_v36  ;;  %v6840_v17 = vsub.f32 %v6834_v38, %v6838_v31 }
0x19f2   :  { %12694 = vrsqrt.f32 %v6843_v52  ;;  %v6844_v10 = vadd.f32 1e-05, %v6840_v17 }
0x19f4   :  { %12696 = vrsqrt.f32 %v6844_v10 }
0x19ff   :  { %v12695_v58 = vpop.eup %12694 }
0x1a00   :  { %v6847_v42 = vmul.f32 %v12695_v58, %v6841_v21 }
0x1a01   :  { %v12697_v32 = vpop.eup %12696 }
0x1a02   :  { %v6861_v24 = vmul.f32 %v6854_v57, %v6847_v42  ;;  %v6848_v29 = vmul.f32 %v12697_v32, %v6842_v20 }
0x1a04   :  { %v6862_v3 = vmul.f32 %v6858_v34, %v6848_v29  ;;  %v6875_v27 = vadd.f32 %v6868_v25, %v6861_v24 }
0x1a06   :  { %v6876_v35 = vadd.f32 %v6872_v28, %v6862_v3  ;;  %v6877_v31 = vmin.f32 %v6875_v27, 20.0  ;;  %vm6895_vm8 = vcmp.gt.f32.partialorder %v6875_v27, 20.0 }
0x1a08   :  { %v6878_v9 = vmin.f32 %v6876_v35, 20.0  ;;  %v6879_v49 = vmul.f32 1.442695, %v6877_v31  ;;  %vm6896_vm9 = vcmp.gt.f32.partialorder %v6876_v35, 20.0  ;;  %v12440_v31 = vld [vmem:[#allocation108 + $0x10] ss:$8 sps:$4 sm:$0xff]  }
0x1a0a   :  { %v6881_v36 = vmul.f32 1.442695, %v6878_v9  ;;  %12698 = vpow2.f32 %v6879_v49  ;;  %v12445_v9 = vld [vmem:[#allocation108 + $0x4] ss:$8 sps:$4 sm:$0xff]  }
0x1a0b   :  { %v12467_v49 = vld [vmem:[#allocation7] ss:$8 sps:$4 sm:$0xff]  }
0x1a0c   :  { %12700 = vpow2.f32 %v6881_v36  ;;  %v12472_v36 = vld [vmem:[#allocation7 + $0xf4] ss:$8 sps:$4 sm:$0xff]  }
0x1a17   :  { %v12699_v14 = vpop.eup %12698 }
0x1a18   :  { %v6883_v12 = vadd.f32 2.0, %v12699_v14 }
0x1a19   :  { %v12701_v38 = vpop.eup %12700 }
0x1a1a   :  { %v6884_v52 = vadd.f32 2.0, %v12701_v38  ;;  %v6885_v17 = vmul.f32 %v12699_v14, %v6883_v12  ;;  %v12470_v14 = vld [vmem:[#allocation7 + $0xf0] ss:$8 sps:$4 sm:$0xff]   ;;  %v12475_v12 = vld [vmem:[#allocation7 + $0xe4] ss:$8 sps:$4 sm:$0xff]  }
0x1a1c   :  { %v6886_v10 = vmul.f32 %v12701_v38, %v6884_v52  ;;  %v6889_v63 = vadd.f32 2.0, %v6885_v17  ;;  %v6887_v15 = vmul.f32 %v6885_v17, %v6875_v27  ;;  %v12473_v38 = vld [vmem:[#allocation7 + $0xe0] ss:$8 sps:$4 sm:$0xff]   ;;  %v12478_v52 = vld [vmem:[#allocation7 + $0xd4] ss:$8 sps:$4 sm:$0xff]  }
0x1a1d   :  { %v12476_v17 = vld [vmem:[#allocation7 + $0xd0] ss:$8 sps:$4 sm:$0xff]  }
0x1a1e   :  { %v6890_v21 = vadd.f32 2.0, %v6886_v10  ;;  %12702 = vrcp.f32 %v6889_v63  ;;  %v6888_v58 = vmul.f32 %v6886_v10, %v6876_v35  ;;  %v12481_v10 = vld [vmem:[#allocation7 + $0xc4] ss:$8 sps:$4 sm:$0xff]   ;;  %v12479_v63 = vld [vmem:[#allocation7 + $0xc0] ss:$8 sps:$4 sm:$0xff]  }
0x1a20   :  { %12704 = vrcp.f32 %v6890_v21  ;;  %v12484_v21 = vld [vmem:[#allocation7 + $0xb4] ss:$8 sps:$4 sm:$0xff]  }
0x1a2b   :  { %v12703_v57 = vpop.eup %12702 }
0x1a2c   :  { %v6893_v20 = vmul.f32 %v12703_v57, %v6887_v15  ;;  %v12482_v15 = vld [vmem:[#allocation7 + $0xb0] ss:$8 sps:$4 sm:$0xff]  }
0x1a2d   :  { %v12705_v42 = vpop.eup %12704 }
0x1a2e   :  { %v6894_v34 = vmul.f32 %v12705_v42, %v6888_v58  ;;  %v6897_v25 = vsel %vm6895_vm8, %v6875_v27, %v6893_v20  ;;  %v12442_v27 = vld [vmem:[#allocation108 + $0x14] ss:$8 sps:$4 sm:$0xff]  }
0x1a2f   :  { %v16781_v24 = vadd.f32 %v6897_v25, %v16520_v60  ;;  %7305 = vmatprep.subr.bf16.mxu0 %v12442_v27  ;;  %v12443_v60 = vld [vmem:[#allocation108] ss:$8 sps:$4 sm:$0xff]   ;;  %v12487_v20 = vld [vmem:[#allocation7 + $0xa4] ss:$8 sps:$4 sm:$0xff]  }
0x1a30   :  { %v6898_v32 = vsel %vm6896_vm9, %v6876_v35, %v6894_v34  ;;  %v12469_v35 = vld [vmem:[#allocation7 + $0x4] ss:$8 sps:$4 sm:$0xff]   ;;  %v12485_v42 = vld [vmem:[#allocation7 + $0xa0] ss:$8 sps:$4 sm:$0xff]  }
0x1a31   :  { %v16784_v29 = vadd.f32 %v6898_v32, %v16523_v50  ;;  %v6901_v3 = vpack.c.bf16 %v16781_v24, %v16781_v24  ;;  %v12794_v50 = vld [vmem:[#allocation84 + $0x94] ss:$8 sps:$4 sm:$0xff]  }
0x1a32   :  { %v12490_v32 = vld [vmem:[#allocation7 + $0x94] ss:$8 sps:$4 sm:$0xff]  }
0x1a33   :  { %v6902_v28 = vpack.c.bf16 %v16784_v29, %v16784_v29 }
0x1a35   :  { %7139 = vmatprep.mubr.bf16.mxu0 %v6902_v28  ;;  %v12488_v28 = vld [vmem:[#allocation7 + $0x90] ss:$8 sps:$4 sm:$0xff]  }
0x1a36   :  { %7140 = vmatmul.mubr.bf16.vlgmr.msra.gmra.mxu0 %v6901_v3  ;;  %v12493_v3 = vld [vmem:[#allocation7 + $0x84] ss:$8 sps:$4 sm:$0xff]  }
0x1a37   :  { %7325 = vmatprep.mubr.bf16.mxu0 %v15059_v43  ;;  %7306 = vmatpush1.bf16.msra.mxu0 %v12440_v31  ;;  %v12491_v31 = vld [vmem:[#allocation7 + $0x80] ss:$8 sps:$4 sm:$0xff]  }
0x1a38   :  { %7307 = vmatprep.subr.bf16.mxu0 %v12445_v9 }
0x1a3b   :  { %7308 = vmatpush1.bf16.msra.mxu0 %v12443_v60 }
0x1a3c   :  { %7587 = vmatprep.subr.bf16.mxu0 %v16672_v5 }
0x1a3e   :  { %10672 = vmatmul.mubr.msk.bf16.vlgmr.msra.gmra.mxu0 %vm1597_vm1, %v15915_v37 }
0x1a3f   :  { %7588 = vmatpush1.bf16.msra.mxu0 %v16629_v19  ;;  %v12795_v19 = vld [vmem:[#allocation84 + $0x90] ss:$8 sps:$4 sm:$0xff]  }
0x1a40   :  { %7589 = vmatprep.subr.bf16.mxu0 %v16632_v45  ;;  %v12796_v45 = vld [vmem:[#allocation84 + $0x84] ss:$8 sps:$4 sm:$0xff]  }
0x1a43   :  { %7590 = vmatpush1.bf16.msra.mxu0 %v16635_v26  ;;  %v6935_v26 = vld [vmem:[#allocation97] sm:$0x3] }
0x1a44   :  { %7591 = vmatprep.subr.bf16.mxu0 %v16638_v22  ;;  %v6940_v22 = vrot.slane %v6935_v26, %v15932_v11 }
0x1a47   :  { %7592 = vmatpush1.bf16.msra.mxu0 %v16641_v23  ;;  %v6944_v23 = vrot.slane %v6935_v26, %v15935_v13 }
0x1a48   :  { %7593 = vmatprep.subr.bf16.mxu0 %v16644_v33 }
0x1a4b   :  { %7594 = vmatpush1.bf16.msra.mxu0 %v16707_v16 }
0x1a4c   :  { %7595 = vmatprep.subr.bf16.mxu0 %v16710_v30 }
0x1a4f   :  { %7596 = vmatpush1.bf16.msra.mxu0 %v16713_v55 }
0x1a50   :  { %7597 = vmatprep.subr.bf16.mxu0 %v16716_v51 }
0x1a53   :  { %7598 = vmatpush1.bf16.msra.mxu0 %v16719_v56 }
0x1a54   :  { %7599 = vmatprep.subr.bf16.mxu0 %v16722_v61 }
0x1a57   :  { %7600 = vmatpush1.bf16.msra.mxu0 %v16725_v54 }
0x1a58   :  { %7601 = vmatprep.subr.bf16.mxu0 %v16728_v1  ;;  %v12446_v1 = vld [vmem:[#allocation7 + $0x70] ss:$8 sps:$4 sm:$0xff]  }
0x1a5b   :  { %7602 = vmatpush1.bf16.msra.mxu0 %v16731_v53  ;;  %v12448_v53 = vld [vmem:[#allocation7 + $0x74] ss:$8 sps:$4 sm:$0xff]  }
0x1a5c   :  { %7603 = vmatprep.subr.bf16.mxu0 %v16734_v48  ;;  %v12451_v48 = vld [vmem:[#allocation7 + $0x64] ss:$8 sps:$4 sm:$0xff]   ;;  %7542 = vmatprep.subr.bf16.mxu1 %v12448_v53 }
0x1a5f   :  { %7604 = vmatpush2.bf16.msra.mxu0 %v16737_v44  ;;  %v12449_v44 = vld [vmem:[#allocation7 + $0x60] ss:$8 sps:$4 sm:$0xff]  }
0x1a60   :  { %7605 = vmatprep.subr.bf16.mxu0 %v16740_v2  ;;  %v12454_v2 = vld [vmem:[#allocation7 + $0x54] ss:$8 sps:$4 sm:$0xff]  }
0x1a63   :  { %7606 = vmatpush2.bf16.msra.mxu0 %v16743_v18  ;;  %v12452_v18 = vld [vmem:[#allocation7 + $0x50] ss:$8 sps:$4 sm:$0xff]  }
0x1a64   :  { %7607 = vmatprep.subr.bf16.mxu0 %v16746_v46  ;;  %v12457_v46 = vld [vmem:[#allocation7 + $0x44] ss:$8 sps:$4 sm:$0xff]  }
0x1a67   :  { %7608 = vmatpush2.bf16.msra.mxu0 %v16749_v6  ;;  %v12455_v6 = vld [vmem:[#allocation7 + $0x40] ss:$8 sps:$4 sm:$0xff]  }
0x1a68   :  { %7609 = vmatprep.subr.bf16.mxu0 %v16752_v47  ;;  %v12460_v47 = vld [vmem:[#allocation7 + $0x34] ss:$8 sps:$4 sm:$0xff]  }
0x1a6b   :  { %7610 = vmatpush2.bf16.msra.mxu0 %v16755_v7  ;;  %v12458_v7 = vld [vmem:[#allocation7 + $0x30] ss:$8 sps:$4 sm:$0xff]  }
0x1a6c   :  { %7611 = vmatprep.subr.bf16.mxu0 %v16758_v59  ;;  %v12463_v59 = vld [vmem:[#allocation7 + $0x24] ss:$8 sps:$4 sm:$0xff]  }
0x1a6f   :  { %7612 = vmatpush2.bf16.msra.mxu0 %v16761_v39  ;;  %v12461_v39 = vld [vmem:[#allocation7 + $0x20] ss:$8 sps:$4 sm:$0xff]  }
0x1a70   :  { %7613 = vmatprep.subr.bf16.mxu0 %v16764_v40  ;;  %v12466_v40 = vld [vmem:[#allocation7 + $0x14] ss:$8 sps:$4 sm:$0xff]  }
0x1a73   :  { %7614 = vmatpush2.bf16.msra.mxu0 %v16767_v41  ;;  %v12464_v41 = vld [vmem:[#allocation7 + $0x10] ss:$8 sps:$4 sm:$0xff]  }
0x1a74   :  { %7615 = vmatprep.subr.bf16.mxu0 %v12794_v50 }
0x1a77   :  { %7616 = vmatpush2.bf16.msra.mxu0 %v12795_v19 }
0x1a78   :  { %7617 = vmatprep.subr.bf16.mxu0 %v12796_v45 }
0x1a7b   :  { %7618 = vmatpush2.bf16.msra.mxu0 %v16610_v62 }
0x1af6   :  { %v7141_v33 = vpop.f32.mrf.mxu0 }
0x1af7   :  { %v16824_v5 = vadd.f32 %v7141_v33, %v6940_v22 }
0x1af8   :  { %v7143_v16 = vpop.f32.mrf.mxu0 }
0x1af9   :  { %v16826_v30 = vadd.f32 %v7143_v16, %v6944_v23  ;;  %v7148_v55 = vmul.f32 %v16824_v5, %v16824_v5  ;;  %v7207_v16 = vld [vmem:[#allocation105] sm:$0x3] }
0x1afa   :  { %v7145_v51 = vpop.f32.mrf.mxu0  ;;  %v7216_v53 = vrot.slane %v7207_v16, %v15935_v13 }
0x1afb   :  { %v7149_v56 = vmul.f32 %v16826_v30, %v16826_v30  ;;  %v7150_v54 = vpack.c.bf16 %v7148_v55, %v16824_v5  ;;  %v7221_v55 = vld [vmem:[#allocation100] sm:$0x3] }
0x1afc   :  { %v7146_v61 = vpop.f32.mrf.mxu0 }
0x1afd   :  { %v7151_v62 = vpack.c.bf16 %v7149_v56, %v16826_v30  ;;  %v7212_v56 = vrot.slane %v7207_v16, %v15932_v11 }
0x1afe   :  { %v16834_v57 = vpop.f32.mrf.mxu0 }
0x1aff   :  { %7184 = vmatprep.mubr.bf16.mxu1 %v7151_v62 }
0x1b00   :  { %7185 = vmatmul.mubr.bf16.vlgmr.msra.gmra.mxu1 %v7150_v54  ;;  %v16836_v58 = vpop.f32.mrf.mxu0 }
0x1b01   :  { %7543 = vmatpush1.bf16.msra.mxu1 %v12446_v1  ;;  %v7226_v1 = vrot.slane %v7221_v55, %v15932_v11 }
0x1b02   :  { %7544 = vmatprep.subr.bf16.mxu1 %v12451_v48  ;;  %v7331_v34 = vpop.f32.mrf.mxu0 }
0x1b04   :  { %v7332_v25 = vpop.f32.mrf.mxu0 }
0x1b05   :  { %7545 = vmatpush1.bf16.msra.mxu1 %v12449_v44 }
0x1b06   :  { %7546 = vmatprep.subr.bf16.mxu1 %v12454_v2 }
0x1b09   :  { %7547 = vmatpush1.bf16.msra.mxu1 %v12452_v18  ;;  %v7230_v18 = vrot.slane %v7221_v55, %v15935_v13 }
0x1b0a   :  { %7548 = vmatprep.subr.bf16.mxu1 %v12457_v46 }
0x1b0d   :  { %7549 = vmatpush1.bf16.msra.mxu1 %v12455_v6 }
0x1b0e   :  { %7550 = vmatprep.subr.bf16.mxu1 %v12460_v47 }
0x1b11   :  { %7551 = vmatpush1.bf16.msra.mxu1 %v12458_v7 }
0x1b12   :  { %7552 = vmatprep.subr.bf16.mxu1 %v12463_v59 }
0x1b15   :  { %7553 = vmatpush1.bf16.msra.mxu1 %v12461_v39 }
0x1b16   :  { %7554 = vmatprep.subr.bf16.mxu1 %v12466_v40 }
0x1b19   :  { %7555 = vmatpush1.bf16.msra.mxu1 %v12464_v41 }
0x1b1a   :  { %7556 = vmatprep.subr.bf16.mxu1 %v12469_v35 }
0x1b1d   :  { %7557 = vmatpush1.bf16.msra.mxu1 %v12467_v49 }
0x1b1e   :  { %7558 = vmatprep.subr.bf16.mxu1 %v12472_v36 }
0x1b21   :  { %7559 = vmatpush2.bf16.msra.mxu1 %v12470_v14 }
0x1b22   :  { %7560 = vmatprep.subr.bf16.mxu1 %v12475_v12 }
0x1b25   :  { %7561 = vmatpush2.bf16.msra.mxu1 %v12473_v38  ;;  %v7261_v38 = vld [vmem:[#allocation103] sm:$0x3] }
0x1b26   :  { %7562 = vmatprep.subr.bf16.mxu1 %v12478_v52  ;;  %v7266_v52 = vrot.slane %v7261_v38, %v15932_v11 }
0x1b29   :  { %7563 = vmatpush2.bf16.msra.mxu1 %v12476_v17 }
0x1b2a   :  { %7564 = vmatprep.subr.bf16.mxu1 %v12481_v10 }
0x1b2d   :  { %7565 = vmatpush2.bf16.msra.mxu1 %v12479_v63  ;;  %v7270_v63 = vrot.slane %v7261_v38, %v15935_v13  ;;  %v12520_v38 = vld [vmem:[#allocation8 + $0x48] sm:$0xff]  }
0x1b2e   :  { %7566 = vmatprep.subr.bf16.mxu1 %v12484_v21 }
0x1b31   :  { %7567 = vmatpush2.bf16.msra.mxu1 %v12482_v15  ;;  %v7328_v15 = vadd.f32 %v16834_v57, %v7266_v52  ;;  %v12519_v52 = vld [vmem:[#allocation9 + $0x8] sm:$0xff]  }
0x1b32   :  { %7568 = vmatprep.subr.bf16.mxu1 %v12487_v20 }
0x1b35   :  { %7569 = vmatpush2.bf16.msra.mxu1 %v12485_v42 }
0x1b36   :  { %7570 = vmatprep.subr.bf16.mxu1 %v12490_v32  ;;  %v7330_v32 = vadd.f32 %v16836_v58, %v7270_v63  ;;  %v12524_v63 = vld [vmem:[#allocation8 + $0x40] sm:$0xff]  }
0x1b39   :  { %7571 = vmatpush2.bf16.msra.mxu1 %v12488_v28 }
0x1b3a   :  { %7572 = vmatprep.subr.bf16.mxu1 %v12493_v3 }
0x1b3d   :  { %7573 = vmatpush2.bf16.msra.mxu1 %v12491_v31 }
0x1bc0   :  { %v7186_v27 = vpop.f32.mrf.mxu1 }
0x1bc1   :  { %v7195_v60 = vmul.f32 %v7186_v27, %v7186_v27  ;;  %v7199_v51 = vsub.f32 %v16824_v5, %v7186_v27 }
0x1bc2   :  { %v7188_v9 = vpop.f32.mrf.mxu1 }
0x1bc3   :  { %v7196_v19 = vmul.f32 %v7188_v9, %v7188_v9  ;;  %v7200_v62 = vsub.f32 %v16826_v30, %v7188_v9 }
0x1bc4   :  { %v7190_v50 = vpop.f32.mrf.mxu1 }
0x1bc5   :  { %v7197_v45 = vsub.f32 %v7190_v50, %v7195_v60  ;;  %v7370_v60 = vld [vmem:[#allocation99] sm:$0x3] }
0x1bc6   :  { %v7192_v26 = vpop.f32.mrf.mxu1  ;;  %v7375_v50 = vrot.slane %v7370_v60, %v15932_v11  ;;  %v7379_v57 = vrot.slane %v7370_v60, %v15935_v13  ;;  %v7642_v60 = vld [vmem:[#allocation106] sm:$0x3] }
0x1bc7   :  { %v7201_v22 = vadd.f32 1e-05, %v7197_v45  ;;  %v7198_v23 = vsub.f32 %v7192_v26, %v7196_v19 }
0x1bc9   :  { %12706 = vrsqrt.f32 %v7201_v22  ;;  %v7202_v33 = vadd.f32 1e-05, %v7198_v23 }
0x1bcb   :  { %12708 = vrsqrt.f32 %v7202_v33 }
0x1bd6   :  { %v12707_v61 = vpop.eup %12706 }
0x1bd7   :  { %v7205_v54 = vmul.f32 %v12707_v61, %v7199_v51  ;;  %v12495_v61 = vld [vmem:[#allocation9 + $0x38] sm:$0xff]  }
0x1bd8   :  { %v12709_v48 = vpop.eup %12708 }
0x1bd9   :  { %v7219_v44 = vmul.f32 %v7212_v56, %v7205_v54  ;;  %v7206_v2 = vmul.f32 %v12709_v48, %v7200_v62  ;;  %v12494_v56 = vld [vmem:[#allocation9 + $0x78] sm:$0xff]   ;;  %v12497_v54 = vld [vmem:[#allocation9 + $0x70] sm:$0xff]  }
0x1bda   :  { %v12496_v62 = vld [vmem:[#allocation8 + $0x78] sm:$0xff]   ;;  %11010 = vmatprep.subr.bf16.mxu0 %v12494_v56  ;;  %v12499_v48 = vld [vmem:[#allocation9 + $0x30] sm:$0xff]  }
0x1bdb   :  { %v7233_v46 = vadd.f32 %v7226_v1, %v7219_v44  ;;  %v7220_v6 = vmul.f32 %v7216_v53, %v7206_v2  ;;  %v12498_v1 = vld [vmem:[#allocation8 + $0x38] sm:$0xff]   ;;  %10988 = vmatprep.subr.bf16.mxu1 %v12496_v62  ;;  %v12500_v53 = vld [vmem:[#allocation8 + $0x70] sm:$0xff]   ;;  %v12501_v2 = vld [vmem:[#allocation9 + $0x68] sm:$0xff]  }
0x1bdc   :  { %v12502_v44 = vld [vmem:[#allocation8 + $0x30] sm:$0xff]  }
0x1bdd   :  { %v7235_v47 = vmin.f32 %v7233_v46, 20.0  ;;  %v7234_v7 = vadd.f32 %v7230_v18, %v7220_v6  ;;  %vm7253_vm10 = vcmp.gt.f32.partialorder %v7233_v46, 20.0  ;;  %v12504_v18 = vld [vmem:[#allocation8 + $0x68] sm:$0xff]  }
0x1bde   :  { %v12506_v6 = vld [vmem:[#allocation8 + $0x28] sm:$0xff]  }
0x1bdf   :  { %v7237_v5 = vmul.f32 1.442695, %v7235_v47  ;;  %v7236_v59 = vmin.f32 %v7234_v7, 20.0  ;;  %vm7254_vm11 = vcmp.gt.f32.partialorder %v7234_v7, 20.0  ;;  %v12505_v47 = vld [vmem:[#allocation9 + $0x60] sm:$0xff]  }
0x1be1   :  { %12710 = vpow2.f32 %v7237_v5  ;;  %v7239_v39 = vmul.f32 1.442695, %v7236_v59  ;;  %v12507_v5 = vld [vmem:[#allocation9 + $0x20] sm:$0xff]  }
0x1be2   :  { %v12510_v59 = vld [vmem:[#allocation8 + $0x20] sm:$0xff]  }
0x1be3   :  { %12712 = vpow2.f32 %v7239_v39  ;;  %v12509_v39 = vld [vmem:[#allocation9 + $0x58] sm:$0xff]  }
0x1bee   :  { %v12711_v30 = vpop.eup %12710 }
0x1bef   :  { %v7241_v40 = vadd.f32 2.0, %v12711_v30 }
0x1bf0   :  { %v12713_v41 = vpop.eup %12712 }
0x1bf1   :  { %v7243_v35 = vmul.f32 %v12711_v30, %v7241_v40  ;;  %v7242_v49 = vadd.f32 2.0, %v12713_v41  ;;  %v12512_v30 = vld [vmem:[#allocation8 + $0x58] sm:$0xff]  }
0x1bf2   :  { %v12511_v40 = vld [vmem:[#allocation9 + $0x18] sm:$0xff]  }
0x1bf3   :  { %v7247_v36 = vadd.f32 2.0, %v7243_v35  ;;  %v7244_v14 = vmul.f32 %v12713_v41, %v7242_v49  ;;  %v7245_v17 = vmul.f32 %v7243_v35, %v7233_v46  ;;  %v12514_v41 = vld [vmem:[#allocation8 + $0x18] sm:$0xff]   ;;  %v12513_v35 = vld [vmem:[#allocation9 + $0x50] sm:$0xff]  }
0x1bf4   :  { %v12516_v49 = vld [vmem:[#allocation8 + $0x50] sm:$0xff]  }
0x1bf5   :  { %12714 = vrcp.f32 %v7247_v36  ;;  %v7248_v12 = vadd.f32 2.0, %v7244_v14  ;;  %v7246_v20 = vmul.f32 %v7244_v14, %v7234_v7  ;;  %v12515_v36 = vld [vmem:[#allocation9 + $0x10] sm:$0xff]  }
0x1bf6   :  { %v12518_v14 = vld [vmem:[#allocation8 + $0x10] sm:$0xff]  }
0x1bf7   :  { %12716 = vrcp.f32 %v7248_v12  ;;  %v12517_v12 = vld [vmem:[#allocation9 + $0x48] sm:$0xff]  }
0x1c02   :  { %v12715_v10 = vpop.eup %12714 }
0x1c03   :  { %v7251_v21 = vmul.f32 %v12715_v10, %v7245_v17  ;;  %v12522_v17 = vld [vmem:[#allocation8 + $0x8] sm:$0xff]   ;;  %v12521_v10 = vld [vmem:[#allocation9 + $0x40] sm:$0xff]  }
0x1c04   :  { %v12717_v42 = vpop.eup %12716 }
0x1c05   :  { %v7255_v34 = vsel %vm7253_vm10, %v7233_v46, %v7251_v21  ;;  %v7252_v25 = vmul.f32 %v12717_v42, %v7246_v20  ;;  %v12503_v46 = vld [vmem:[#allocation9 + $0x28] sm:$0xff]   ;;  %v12523_v21 = vld [vmem:[#allocation9] sm:$0xff]  }
0x1c06   :  { %v7334_v28 = vadd.f32 %v7328_v15, %v7255_v34  ;;  %v12525_v15 = vld [vmem:[#allocation8] sm:$0xff]  }
0x1c07   :  { %v7256_v3 = vsel %vm7254_vm11, %v7234_v7, %v7252_v25  ;;  %v12508_v7 = vld [vmem:[#allocation8 + $0x60] sm:$0xff]  }
0x1c08   :  { %v7335_v31 = vadd.f32 %v7330_v32, %v7256_v3  ;;  %v7336_v9 = vpack.c.bf16 %v7334_v28, %v7334_v28 }
0x1c0a   :  { %v7337_v27 = vpack.c.bf16 %v7335_v31, %v7335_v31 }
0x1c0c   :  { %7574 = vmatprep.mubr.bf16.mxu1 %v7337_v27 }
0x1c0d   :  { %7575 = vmatmul.mubr.bf16.vlgmr.msra.gmra.mxu1 %v7336_v9 }
0x1c0e   :  { %10989 = vmatpush3.bf16.msra.mxu1 %v12498_v1 }
0x1c0f   :  { %10990 = vmatprep.subr.bf16.mxu1 %v12500_v53 }
0x1c12   :  { %10991 = vmatpush3.bf16.msra.mxu1 %v12502_v44 }
0x1c13   :  { %10992 = vmatprep.subr.bf16.mxu1 %v12504_v18 }
0x1c16   :  { %10993 = vmatpush3.bf16.msra.mxu1 %v12506_v6 }
0x1c17   :  { %10994 = vmatprep.subr.bf16.mxu1 %v12508_v7 }
0x1c1a   :  { %10995 = vmatpush3.bf16.msra.mxu1 %v12510_v59 }
0x1c1b   :  { %10996 = vmatprep.subr.bf16.mxu1 %v12512_v30 }
0x1c1e   :  { %10997 = vmatpush3.bf16.msra.mxu1 %v12514_v41 }
0x1c1f   :  { %10998 = vmatprep.subr.bf16.mxu1 %v12516_v49 }
0x1c22   :  { %10999 = vmatpush3.bf16.msra.mxu1 %v12518_v14 }
0x1c23   :  { %11000 = vmatprep.subr.bf16.mxu1 %v12520_v38 }
0x1c26   :  { %11001 = vmatpush3.bf16.msra.mxu1 %v12522_v17 }
0x1c27   :  { %11002 = vmatprep.subr.bf16.mxu1 %v12524_v63  ;;  %v16897_v63 = vld [vmem:[#allocation82 + $0x18] sm:$0xff]  }
0x1c2a   :  { %11003 = vmatpush3.bf16.msra.mxu1 %v12525_v15 }
0x1c2b   :  { %11215 = vmatprep.subr.bf16.mxu1 %v15057_v0 }
0x1ccd   :  { %v7576_v19 = vpop.f32.mrf.mxu1 }
0x1cce   :  { %v16850_v45 = vadd.f32 %v7576_v19, %v7375_v50  ;;  %v7656_v50 = vld [vmem:[#allocation102] sm:$0x3]  ;;  %v7647_v19 = vrot.slane %v7642_v60, %v15932_v11 }
0x1ccf   :  { %v7578_v26 = vpop.f32.mrf.mxu1 }
0x1cd0   :  { %v16852_v22 = vadd.f32 %v7578_v26, %v7379_v57  ;;  %v7583_v58 = vmul.f32 %v16850_v45, %v16850_v45 }
0x1cd1   :  { %v7580_v23 = vpop.f32.mrf.mxu1 }
0x1cd2   :  { %v7584_v33 = vmul.f32 %v16852_v22, %v16852_v22  ;;  %v7585_v51 = vpack.c.bf16 %v7583_v58, %v16850_v45 }
0x1cd3   :  { %v7581_v16 = vpop.f32.mrf.mxu1 }
0x1cd4   :  { %v7586_v55 = vpack.c.bf16 %v7584_v33, %v16852_v22  ;;  %v7651_v33 = vrot.slane %v7642_v60, %v15935_v13  ;;  %v7661_v16 = vrot.slane %v7656_v50, %v15932_v11 }
0x1cd6   :  { %7619 = vmatprep.mubr.bf16.mxu0 %v7586_v55 }
0x1cd7   :  { %7620 = vmatmul.mubr.bf16.vlgmr.msra.gmra.mxu0 %v7585_v51 }
0x1cd8   :  { %8031 = vmatprep.mubr.bf16.mxu0 %v16527_v8  ;;  %11011 = vmatpush3.bf16.msra.mxu0 %v12495_v61  ;;  %v7665_v61 = vrot.slane %v7656_v50, %v15935_v13 }
0x1cd9   :  { %11012 = vmatprep.subr.bf16.mxu0 %v12497_v54 }
0x1cdc   :  { %11013 = vmatpush3.bf16.msra.mxu0 %v12499_v48 }
0x1cdd   :  { %11014 = vmatprep.subr.bf16.mxu0 %v12501_v2 }
0x1ce0   :  { %11015 = vmatpush3.bf16.msra.mxu0 %v12503_v46 }
0x1ce1   :  { %11016 = vmatprep.subr.bf16.mxu0 %v12505_v47 }
0x1ce4   :  { %11017 = vmatpush3.bf16.msra.mxu0 %v12507_v5 }
0x1ce5   :  { %11018 = vmatprep.subr.bf16.mxu0 %v12509_v39 }
0x1ce8   :  { %11019 = vmatpush3.bf16.msra.mxu0 %v12511_v40 }
0x1ce9   :  { %11020 = vmatprep.subr.bf16.mxu0 %v12513_v35 }
0x1cec   :  { %11021 = vmatpush3.bf16.msra.mxu0 %v12515_v36 }
0x1ced   :  { %11022 = vmatprep.subr.bf16.mxu0 %v12517_v12 }
0x1cf0   :  { %11023 = vmatpush3.bf16.msra.mxu0 %v12519_v52  ;;  %v16876_v52 = vld [vmem:[#allocation82 + $0x38] sm:$0xff]  }
0x1cf1   :  { %11024 = vmatprep.subr.bf16.mxu0 %v12521_v10  ;;  %v16883_v10 = vld [vmem:[#allocation82 + $0x30] sm:$0xff]  }
0x1cf4   :  { %11025 = vmatpush3.bf16.msra.mxu0 %v12523_v21 }
0x1cf5   :  { %11235 = vmatprep.subr.bf16.mxu0 %v15057_v0 }
0x1cf7   :  { %8032 = vmatmul.mubr.bf16.vlgmr.msra.gmra.mxu0 %v16580_v4 }
0x1cf8   :  { %11239 = vmatprep.mubr.msk.bf16.mxu0 %vm15058_vm0, %v15057_v0 }
0x1d97   :  { %v7621_v20 = vpop.f32.mrf.mxu0 }
0x1d98   :  { %v7630_v34 = vmul.f32 %v7621_v20, %v7621_v20  ;;  %v7634_v57 = vsub.f32 %v16850_v45, %v7621_v20 }
0x1d99   :  { %v7623_v42 = vpop.f32.mrf.mxu0 }
0x1d9a   :  { %v7631_v32 = vmul.f32 %v7623_v42, %v7623_v42  ;;  %v7635_v58 = vsub.f32 %v16852_v22, %v7623_v42 }
0x1d9b   :  { %v7625_v25 = vpop.f32.mrf.mxu0 }
0x1d9c   :  { %v7632_v28 = vsub.f32 %v7625_v25, %v7630_v34  ;;  %v16902_v25 = vld [vmem:[#allocation82 + $0x10] sm:$0xff]  }
0x1d9d   :  { %v7627_v3 = vpop.f32.mrf.mxu0 }
0x1d9e   :  { %v7636_v31 = vadd.f32 1e-05, %v7632_v28  ;;  %v7633_v27 = vsub.f32 %v7627_v3, %v7631_v32  ;;  %v16906_v32 = vld [vmem:[#allocation82 + $0x8] sm:$0xff]   ;;  %v16910_v28 = vld [vmem:[#allocation82] sm:$0xff]   ;;  %v12534_v3 = vld [vmem:[#allocation126 + $0x8] sm:$0xff]  }
0x1d9f   :  { %11236 = vmatpush3.bf16.msra.mxu0 %v12534_v3 }
0x1da0   :  { %12718 = vrsqrt.f32 %v7636_v31  ;;  %v7637_v9 = vadd.f32 1e-05, %v7633_v27  ;;  %v12535_v31 = vld [vmem:[#allocation126] sm:$0xff]   ;;  %11237 = vmatprep.subr.bf16.mxu0 %v15057_v0 }
0x1da2   :  { %12720 = vrsqrt.f32 %v7637_v9  ;;  %v10705_v9 = vld [vmem:[#allocation114] ss:$0 sm:$0xff] }
0x1da3   :  { %11238 = vmatpush3.bf16.msra.mxu0 %v12535_v31 }
0x1da4   :  { %11243 = vmatprep.subr.bf16.mxu0 %v15057_v0 }
0x1da6   :  { %11240 = vmatmul.mubr.msk.bf16.vlgmr.msra.gmra.mxu0 %vm1597_vm1, %v15915_v37 }
0x1da7   :  { %11259 = vmatprep.mubr.msk.bf16.mxu0 %vm15058_vm0, %v15057_v0 }
0x1dad   :  { %v12719_v26 = vpop.eup %12718 }
0x1dae   :  { %v7640_v23 = vmul.f32 %v12719_v26, %v7634_v57 }
0x1daf   :  { %v12721_v55 = vpop.eup %12720 }
0x1db0   :  { %v7654_v51 = vmul.f32 %v7647_v19, %v7640_v23  ;;  %v7641_v56 = vmul.f32 %v12721_v55, %v7635_v58  ;;  %v12537_v55 = vld [vmem:[#allocation10 + $0x30] sm:$0xff]  }
0x1db2   :  { %v7655_v62 = vmul.f32 %v7651_v33, %v7641_v56  ;;  %v7668_v54 = vadd.f32 %v7661_v16, %v7654_v51  ;;  %v12536_v16 = vld [vmem:[#allocation10 + $0x38] sm:$0xff]   ;;  %v12538_v51 = vld [vmem:[#allocation10 + $0x28] sm:$0xff]   ;;  %v12539_v56 = vld [vmem:[#allocation10 + $0x20] sm:$0xff]  }
0x1db3   :  { %11244 = vmatpush3.bf16.msra.mxu0 %v12536_v16  ;;  %v12551_v16 = vld [vmem:[#allocation11 + $0x20] sm:$0xff]  }
0x1db4   :  { %v7669_v1 = vadd.f32 %v7665_v61, %v7655_v62  ;;  %v7670_v53 = vmin.f32 %v7668_v54, 20.0  ;;  %vm7688_vm12 = vcmp.gt.f32.partialorder %v7668_v54, 20.0  ;;  %11245 = vmatprep.subr.bf16.mxu0 %v15057_v0  ;;  %v12540_v61 = vld [vmem:[#allocation10 + $0x18] sm:$0xff]   ;;  %v12541_v62 = vld [vmem:[#allocation10 + $0x10] sm:$0xff]  }
0x1db6   :  { %v7671_v45 = vmin.f32 %v7669_v1, 20.0  ;;  %v7672_v48 = vmul.f32 1.442695, %v7670_v53  ;;  %vm7689_vm13 = vcmp.gt.f32.partialorder %v7669_v1, 20.0  ;;  %v12542_v53 = vld [vmem:[#allocation10 + $0x8] sm:$0xff]  }
0x1db7   :  { %v11026_v21 = vpop.f32.mrf.mxu0  ;;  %11246 = vmatpush3.bf16.msra.mxu0 %v12537_v55  ;;  %v12552_v55 = vld [vmem:[#allocation11 + $0x58] sm:$0xff]  }
0x1db8   :  { %v7674_v44 = vmul.f32 1.442695, %v7671_v45  ;;  %12722 = vpow2.f32 %v7672_v48  ;;  %11247 = vmatprep.subr.bf16.mxu0 %v15057_v0 }
0x1db9   :  { %v11027_v15 = vpop.f32.mrf.mxu0 }
0x1dba   :  { %12724 = vpow2.f32 %v7674_v44  ;;  %v11028_v20 = vadd.f32 %v11027_v15, %v11026_v21  ;;  %v12543_v44 = vld [vmem:[#allocation10] sm:$0xff]  }
0x1dbb   :  { %v11029_v42 = vpop.f32.mrf.mxu0  ;;  %11248 = vmatpush3.bf16.msra.mxu0 %v12538_v51  ;;  %v12553_v51 = vld [vmem:[#allocation11 + $0x18] sm:$0xff]  }
0x1dbc   :  { %11249 = vmatprep.subr.bf16.mxu0 %v15057_v0  ;;  %v10748_v42 = vld [vmem:[#allocation121] ss:$0 sm:$0xff] }
0x1dbd   :  { %v11030_v34 = vpop.f32.mrf.mxu0 }
0x1dbf   :  { %11250 = vmatpush3.bf16.msra.mxu0 %v12539_v56  ;;  %v12554_v56 = vld [vmem:[#allocation11 + $0x50] sm:$0xff]  }
0x1dc0   :  { %11251 = vmatprep.subr.bf16.mxu0 %v15057_v0 }
0x1dc3   :  { %11252 = vmatpush3.bf16.msra.mxu0 %v12540_v61  ;;  %v12555_v61 = vld [vmem:[#allocation11 + $0x10] sm:$0xff]  }
0x1dc4   :  { %11253 = vmatprep.subr.bf16.mxu0 %v15057_v0 }
0x1dc5   :  { %v12723_v22 = vpop.eup %12722 }
0x1dc6   :  { %v7676_v2 = vadd.f32 2.0, %v12723_v22 }
0x1dc7   :  { %v12725_v18 = vpop.eup %12724  ;;  %11254 = vmatpush3.bf16.msra.mxu0 %v12541_v62  ;;  %v12556_v62 = vld [vmem:[#allocation11 + $0x48] sm:$0xff]  }
0x1dc8   :  { %v7677_v46 = vadd.f32 2.0, %v12725_v18  ;;  %v7678_v6 = vmul.f32 %v12723_v22, %v7676_v2  ;;  %11255 = vmatprep.subr.bf16.mxu0 %v15057_v0  ;;  %v12544_v22 = vld [vmem:[#allocation11 + $0x78] sm:$0xff]  }
0x1dca   :  { %v7679_v47 = vmul.f32 %v12725_v18, %v7677_v46  ;;  %v7682_v7 = vadd.f32 2.0, %v7678_v6  ;;  %v7680_v59 = vmul.f32 %v7678_v6, %v7668_v54 }
0x1dcb   :  { %11256 = vmatpush3.bf16.msra.mxu0 %v12542_v53  ;;  %v12560_v53 = vld [vmem:[#allocation12 + $0x78] sm:$0xff]  }
0x1dcc   :  { %v7683_v5 = vadd.f32 2.0, %v7679_v47  ;;  %12726 = vrcp.f32 %v7682_v7  ;;  %v7681_v30 = vmul.f32 %v7679_v47, %v7669_v1  ;;  %11257 = vmatprep.subr.bf16.mxu0 %v15057_v0 }
0x1dce   :  { %12728 = vrcp.f32 %v7683_v5 }
0x1dcf   :  { %11258 = vmatpush3.bf16.msra.mxu0 %v12543_v44 }
0x1dd0   :  { %11062 = vmatprep.subr.bf16.mxu0 %v12544_v22 }
0x1dd9   :  { %v12727_v39 = vpop.eup %12726 }
0x1dda   :  { %v7686_v40 = vmul.f32 %v12727_v39, %v7680_v59 }
0x1ddb   :  { %v12729_v41 = vpop.eup %12728 }
0x1ddc   :  { %v7687_v35 = vmul.f32 %v12729_v41, %v7681_v30  ;;  %v7690_v49 = vsel %vm7688_vm12, %v7668_v54, %v7686_v40  ;;  %v10746_v30 = vld [vmem:[#allocation123] ss:$0 sm:$0xff]  ;;  %v10747_v41 = vld [vmem:[#allocation117] ss:$0 sm:$0xff] }
0x1ddd   :  { %v7692_v14 = vadd.f32 %v7690_v49, %v16781_v24  ;;  %v16889_v24 = vld [vmem:[#allocation82 + $0x28] sm:$0xff]  }
0x1dde   :  { %v7691_v36 = vsel %vm7689_vm13, %v7669_v1, %v7687_v35 }
0x1ddf   :  { %v7693_v12 = vadd.f32 %v7691_v36, %v16784_v29  ;;  %v16878_v17 = vpack.c.bf16 %v7692_v14, %v7692_v14  ;;  %v16893_v29 = vld [vmem:[#allocation82 + $0x20] sm:$0xff]  }
0x1de1   :  { %v16874_v38 = vpack.c.bf16 %v7693_v12, %v7693_v12 }
0x1de3   :  { %7863 = vmatprep.mubr.bf16.mxu1 %v16874_v38 }
0x1de4   :  { %7864 = vmatmul.mubr.bf16.vlgmr.msra.gmra.mxu1 %v16878_v17 }
0x1de5   :  { %11216 = vmatpush3.bf16.msra.mxu1 %v16876_v52  ;;  %11231 = vmatprep.mubr.msk.bf16.mxu1 %vm15058_vm0, %v15057_v0 }
0x1de6   :  { %11217 = vmatprep.subr.bf16.mxu1 %v15057_v0 }
0x1de9   :  { %11218 = vmatpush3.bf16.msra.mxu1 %v16883_v10 }
0x1dea   :  { %11219 = vmatprep.subr.bf16.mxu1 %v15057_v0 }
0x1ded   :  { %11220 = vmatpush3.bf16.msra.mxu1 %v16889_v24 }
0x1dee   :  { %11221 = vmatprep.subr.bf16.mxu1 %v15057_v0 }
0x1df1   :  { %11222 = vmatpush3.bf16.msra.mxu1 %v16893_v29 }
0x1df2   :  { %11223 = vmatprep.subr.bf16.mxu1 %v15057_v0 }
0x1df5   :  { %11224 = vmatpush3.bf16.msra.mxu1 %v16897_v63 }
0x1df6   :  { %11225 = vmatprep.subr.bf16.mxu1 %v15057_v0 }
0x1df9   :  { %11226 = vmatpush3.bf16.msra.mxu1 %v16902_v25 }
0x1dfa   :  { %11227 = vmatprep.subr.bf16.mxu1 %v15057_v0 }
0x1dfd   :  { %11228 = vmatpush3.bf16.msra.mxu1 %v16906_v32 }
0x1dfe   :  { %11229 = vmatprep.subr.bf16.mxu1 %v15057_v0 }
0x1e01   :  { %11230 = vmatpush3.bf16.msra.mxu1 %v16910_v28 }
0x1e02   :  { %11263 = vmatprep.subr.bf16.mxu1 %v15057_v0 }
0x1e66   :  { %v8237_v54 = vpop.f32.mrf.mxu0 }
0x1e67   :  { %v8238_v31 = vadd.f32 %v10748_v42, %v8237_v54  ;;  %v12558_v54 = vld [vmem:[#allocation11 + $0x40] sm:$0xff]  }
0x1e68   :  { %v11241_v1 = vpop.f32.mrf.mxu0 }
0x1e69   :  { %v12559_v1 = vld [vmem:[#allocation11] sm:$0xff]  }
0x1e6a   :  { %v8240_v45 = vpop.f32.mrf.mxu0 }
0x1e6b   :  { %v10752_v45 = vld [vmem:[#allocation115] ss:$0 sm:$0xff] }
0x1e6c   :  { %v11242_v48 = vpop.f32.mrf.mxu0 }
0x1ea4   :  { %v11004_v27 = vpop.f32.mrf.mxu1 }
0x1ea6   :  { %v11005_v60 = vpop.f32.mrf.mxu1 }
0x1ea7   :  { %v11006_v50 = vadd.f32 %v11005_v60, %v11004_v27 }
0x1ea8   :  { %v11007_v57 = vpop.f32.mrf.mxu1 }
0x1ea9   :  { %v7866_v19 = vadd.f32 %v11006_v50, %v10705_v9  ;;  %v12545_v50 = vld [vmem:[#allocation11 + $0x38] sm:$0xff]  }
0x1eaa   :  { %v11008_v26 = vpop.f32.mrf.mxu1 }
0x1eab   :  { %v8039_v58 = vadd.f32 %v11028_v20, %v7866_v19  ;;  %v12546_v19 = vld [vmem:[#allocation11 + $0x70] sm:$0xff]  }
0x1eac   :  { %v12547_v26 = vld [vmem:[#allocation11 + $0x30] sm:$0xff]  }
0x1ead   :  { %v8040_v23 = vmul.f32 %v8039_v58, %v8039_v58 }
0x1eaf   :  { %v8041_v33 = vpack.c.bf16 %v8040_v23, %v8039_v58  ;;  %v12549_v23 = vld [vmem:[#allocation11 + $0x28] sm:$0xff]  }
0x1eb1   :  { %11232 = vmatmul.mubr.bf16.vlgmr.msra.gmra.mxu1 %v8041_v33  ;;  %v12550_v33 = vld [vmem:[#allocation11 + $0x60] sm:$0xff]  }
0x1eb2   :  { %11264 = vmatpush3.bf16.msra.mxu1 %v16876_v52  ;;  %11279 = vmatprep.mubr.msk.bf16.mxu1 %vm15058_vm0, %v15057_v0 }
0x1eb3   :  { %11265 = vmatprep.subr.bf16.mxu1 %v15057_v0 }
0x1eb6   :  { %11266 = vmatpush3.bf16.msra.mxu1 %v16883_v10 }
0x1eb7   :  { %11267 = vmatprep.subr.bf16.mxu1 %v15057_v0 }
0x1eba   :  { %11268 = vmatpush3.bf16.msra.mxu1 %v16889_v24 }
0x1ebb   :  { %11269 = vmatprep.subr.bf16.mxu1 %v15057_v0 }
0x1ebe   :  { %11270 = vmatpush3.bf16.msra.mxu1 %v16893_v29 }
0x1ebf   :  { %11271 = vmatprep.subr.bf16.mxu1 %v15057_v0 }
0x1ec2   :  { %11272 = vmatpush3.bf16.msra.mxu1 %v16897_v63 }
0x1ec3   :  { %11273 = vmatprep.subr.bf16.mxu1 %v15057_v0 }
0x1ec6   :  { %11274 = vmatpush3.bf16.msra.mxu1 %v16902_v25 }
0x1ec7   :  { %11275 = vmatprep.subr.bf16.mxu1 %v15057_v0 }
0x1eca   :  { %11276 = vmatpush3.bf16.msra.mxu1 %v16906_v32 }
0x1ecb   :  { %11277 = vmatprep.subr.bf16.mxu1 %v15057_v0 }
0x1ece   :  { %11278 = vmatpush3.bf16.msra.mxu1 %v16910_v28 }
0x1ecf   :  { %11084 = vmatprep.subr.bf16.mxu1 %v12560_v53 }
0x1f71   :  { %v8140_v2 = vpop.f32.mrf.mxu1 }
0x1f72   :  { %v8147_v46 = vmul.f32 %v8140_v2, %v8140_v2  ;;  %v8149_v59 = vsub.f32 %v8039_v58, %v8140_v2  ;;  %v12548_v58 = vld [vmem:[#allocation11 + $0x68] sm:$0xff]  }
0x1f73   :  { %v11233_v18 = vpop.f32.mrf.mxu1 }
0x1f75   :  { %v8143_v6 = vpop.f32.mrf.mxu1 }
0x1f76   :  { %v8148_v47 = vsub.f32 %v8143_v6, %v8147_v46  ;;  %v12561_v46 = vld [vmem:[#allocation12 + $0x38] sm:$0xff]  }
0x1f77   :  { %v11234_v7 = vpop.f32.mrf.mxu1 }
0x1f78   :  { %v8150_v5 = vadd.f32 1e-05, %v8148_v47  ;;  %v12562_v47 = vld [vmem:[#allocation12 + $0x70] sm:$0xff]  }
0x1f7a   :  { %12730 = vrsqrt.f32 %v8150_v5  ;;  %v12564_v5 = vld [vmem:[#allocation12 + $0x68] sm:$0xff]  }
0x1f87   :  { %v12731_v39 = vpop.eup %12730 }
0x1f88   :  { %v8152_v40 = vmul.f32 %v12731_v39, %v8149_v59  ;;  %v12565_v59 = vld [vmem:[#allocation12 + $0x28] sm:$0xff]   ;;  %v12566_v39 = vld [vmem:[#allocation12 + $0x60] sm:$0xff]  }
0x1f8a   :  { %v8160_v35 = vmul.f32 %v10746_v30, %v8152_v40  ;;  %v12567_v30 = vld [vmem:[#allocation12 + $0x20] sm:$0xff]   ;;  %v12568_v40 = vld [vmem:[#allocation12 + $0x58] sm:$0xff]  }
0x1f8c   :  { %v8168_v49 = vadd.f32 %v10747_v41, %v8160_v35  ;;  %v12569_v41 = vld [vmem:[#allocation12 + $0x18] sm:$0xff]   ;;  %v12570_v35 = vld [vmem:[#allocation12 + $0x50] sm:$0xff]  }
0x1f8e   :  { %v8169_v36 = vmin.f32 %v8168_v49, 20.0  ;;  %vm8178_vm14 = vcmp.gt.f32.partialorder %v8168_v49, 20.0 }
0x1f90   :  { %v8170_v14 = vmul.f32 1.442695, %v8169_v36  ;;  %v12572_v36 = vld [vmem:[#allocation12 + $0x48] sm:$0xff]  }
0x1f92   :  { %12732 = vpow2.f32 %v8170_v14  ;;  %v12574_v14 = vld [vmem:[#allocation12 + $0x40] sm:$0xff]  }
0x1f9f   :  { %v12733_v12 = vpop.eup %12732 }
0x1fa0   :  { %v8172_v21 = vadd.f32 2.0, %v12733_v12 }
0x1fa2   :  { %v8173_v15 = vmul.f32 %v12733_v12, %v8172_v21  ;;  %v12575_v21 = vld [vmem:[#allocation12] sm:$0xff]  }
0x1fa4   :  { %v8175_v20 = vadd.f32 2.0, %v8173_v15  ;;  %v8174_v34 = vmul.f32 %v8173_v15, %v8168_v49 }
0x1fa6   :  { %12734 = vrcp.f32 %v8175_v20 }
0x1fb3   :  { %v12735_v3 = vpop.eup %12734 }
0x1fb4   :  { %v8177_v27 = vmul.f32 %v12735_v3, %v8174_v34  ;;  %v12577_v3 = vld [vmem:[#allocation13 + $0x30] sm:$0xff]  }
0x1fb6   :  { %v8179_v9 = vsel %vm8178_vm14, %v8168_v49, %v8177_v27  ;;  %v12571_v49 = vld [vmem:[#allocation12 + $0x10] sm:$0xff]   ;;  %v12579_v27 = vld [vmem:[#allocation13 + $0x20] sm:$0xff]  }
0x1fb7   :  { %v8243_v60 = vadd.f32 %v8238_v31, %v8179_v9  ;;  %v12578_v31 = vld [vmem:[#allocation13 + $0x28] sm:$0xff]   ;;  %v12580_v9 = vld [vmem:[#allocation13 + $0x18] sm:$0xff]  }
0x1fb9   :  { %v8244_v57 = vpack.c.bf16 %v8243_v60, %v8243_v60  ;;  %v12581_v60 = vld [vmem:[#allocation13 + $0x10] sm:$0xff]  }
0x1fbb   :  { %11260 = vmatmul.mubr.bf16.vlgmr.msra.gmra.mxu0 %v8244_v57  ;;  %v12583_v57 = vld [vmem:[#allocation13] sm:$0xff]  }
0x1fbc   :  { %11063 = vmatpush3.bf16.msra.mxu0 %v12545_v50  ;;  %8599 = vmatprep.mubr.bf16.mxu0 %v16874_v38  ;;  %v12557_v38 = vld [vmem:[#allocation11 + $0x8] sm:$0xff]  }
0x1fbd   :  { %11064 = vmatprep.subr.bf16.mxu0 %v12546_v19  ;;  %v12582_v50 = vld [vmem:[#allocation13 + $0x8] sm:$0xff]  }
0x1fc0   :  { %11065 = vmatpush3.bf16.msra.mxu0 %v12547_v26 }
0x1fc1   :  { %11066 = vmatprep.subr.bf16.mxu0 %v12548_v58 }
0x1fc4   :  { %11067 = vmatpush3.bf16.msra.mxu0 %v12549_v23 }
0x1fc5   :  { %11068 = vmatprep.subr.bf16.mxu0 %v12550_v33 }
0x1fc8   :  { %11069 = vmatpush3.bf16.msra.mxu0 %v12551_v16 }
0x1fc9   :  { %11070 = vmatprep.subr.bf16.mxu0 %v12552_v55 }
0x1fcc   :  { %11071 = vmatpush3.bf16.msra.mxu0 %v12553_v51 }
0x1fcd   :  { %11072 = vmatprep.subr.bf16.mxu0 %v12554_v56 }
0x1fd0   :  { %11073 = vmatpush3.bf16.msra.mxu0 %v12555_v61  ;;  %v10761_v61 = vld [vmem:[#allocation124] ss:$0 sm:$0xff] }
0x1fd1   :  { %11074 = vmatprep.subr.bf16.mxu0 %v12556_v62 }
0x1fd4   :  { %11075 = vmatpush3.bf16.msra.mxu0 %v12557_v38  ;;  %v10762_v38 = vld [vmem:[#allocation118] ss:$0 sm:$0xff] }
0x1fd5   :  { %11076 = vmatprep.subr.bf16.mxu0 %v12558_v54 }
0x1fd8   :  { %11077 = vmatpush3.bf16.msra.mxu0 %v12559_v1 }
0x1fd9   :  { %11283 = vmatprep.subr.bf16.mxu0 %v15057_v0 }
0x1fdb   :  { %8600 = vmatmul.mubr.bf16.vlgmr.msra.gmra.mxu0 %v16878_v17  ;;  %v12563_v17 = vld [vmem:[#allocation12 + $0x30] sm:$0xff]  }
0x1fdc   :  { %11299 = vmatprep.mubr.msk.bf16.mxu0 %vm15058_vm0, %v15057_v0 }
0x207b   :  { %v8350_v48 = vpop.f32.mrf.mxu0 }
0x207c   :  { %v16949_v44 = vadd.f32 %v10752_v45, %v8350_v48 }
0x207d   :  { %v11261_v22 = vpop.f32.mrf.mxu0 }
0x207e   :  { %v8356_v2 = vmul.f32 %v16949_v44, %v16949_v44 }
0x207f   :  { %v8353_v18 = vpop.f32.mrf.mxu0 }
0x2080   :  { %v8357_v6 = vpack.c.bf16 %v8356_v2, %v16949_v44 }
0x2081   :  { %v11262_v7 = vpop.f32.mrf.mxu0 }
0x2082   :  { %11280 = vmatmul.mubr.bf16.vlgmr.msra.gmra.mxu1 %v8357_v6 }
0x2083   :  { %11085 = vmatpush3.bf16.msra.mxu1 %v12561_v46  ;;  %8767 = vmatprep.mubr.bf16.mxu1 %v16527_v8  ;;  %v12573_v8 = vld [vmem:[#allocation12 + $0x8] sm:$0xff]  }
0x2084   :  { %11086 = vmatprep.subr.bf16.mxu1 %v12562_v47 }
0x2087   :  { %11087 = vmatpush3.bf16.msra.mxu1 %v12563_v17  ;;  %v10763_v17 = vld [vmem:[#allocation120] ss:$0 sm:$0xff] }
0x2088   :  { %11088 = vmatprep.subr.bf16.mxu1 %v12564_v5 }
0x208b   :  { %11089 = vmatpush3.bf16.msra.mxu1 %v12565_v59 }
0x208c   :  { %11090 = vmatprep.subr.bf16.mxu1 %v12566_v39 }
0x208f   :  { %11091 = vmatpush3.bf16.msra.mxu1 %v12567_v30 }
0x2090   :  { %11092 = vmatprep.subr.bf16.mxu1 %v12568_v40 }
0x2093   :  { %11093 = vmatpush3.bf16.msra.mxu1 %v12569_v41 }
0x2094   :  { %11094 = vmatprep.subr.bf16.mxu1 %v12570_v35 }
0x2097   :  { %11095 = vmatpush3.bf16.msra.mxu1 %v12571_v49 }
0x2098   :  { %11096 = vmatprep.subr.bf16.mxu1 %v12572_v36  ;;  %v12584_v36 = vld [vmem:[#allocation138 + $0x8] sm:$0xff]  }
0x209b   :  { %v11078_v12 = vpop.f32.mrf.mxu0  ;;  %11097 = vmatpush3.bf16.msra.mxu1 %v12573_v8  ;;  %v12585_v8 = vld [vmem:[#allocation138] sm:$0xff]  }
0x209c   :  { %11098 = vmatprep.subr.bf16.mxu1 %v12574_v14  ;;  %v10796_v14 = vld [vmem:[#allocation127] ss:$0 sm:$0xff] }
0x209d   :  { %v11079_v15 = vpop.f32.mrf.mxu0 }
0x209e   :  { %v16955_v20 = vadd.f32 %v11079_v15, %v11078_v12 }
0x209f   :  { %v11081_v42 = vpop.f32.mrf.mxu0  ;;  %11099 = vmatpush3.bf16.msra.mxu1 %v12575_v21 }
0x20a0   :  { %11303 = vmatprep.subr.bf16.mxu1 %v15057_v0  ;;  %v8602_v39 = vadd.f32 %v16955_v20, %v10763_v17 }
0x20a1   :  { %v11082_v34 = vpop.f32.mrf.mxu0 }
0x20a2   :  { %8768 = vmatmul.mubr.bf16.vlgmr.msra.gmra.mxu1 %v16580_v4  ;;  %v12576_v4 = vld [vmem:[#allocation13 + $0x38] sm:$0xff]  }
0x20a3   :  { %11304 = vmatpush3.bf16.msra.mxu1 %v16876_v52  ;;  %11319 = vmatprep.mubr.msk.bf16.mxu1 %vm15058_vm0, %v15057_v0 }
0x20a4   :  { %11305 = vmatprep.subr.bf16.mxu1 %v15057_v0  ;;  %11284 = vmatpush3.bf16.msra.mxu0 %v12576_v4 }
0x20a5   :  { %11285 = vmatprep.subr.bf16.mxu0 %v15057_v0 }
0x20a7   :  { %11306 = vmatpush3.bf16.msra.mxu1 %v16883_v10 }
0x20a8   :  { %11307 = vmatprep.subr.bf16.mxu1 %v15057_v0  ;;  %11286 = vmatpush3.bf16.msra.mxu0 %v12577_v3  ;;  %v12592_v3 = vld [vmem:[#allocation14 + $0x8] sm:$0xff]  }
0x20a9   :  { %11287 = vmatprep.subr.bf16.mxu0 %v15057_v0 }
0x20ab   :  { %11308 = vmatpush3.bf16.msra.mxu1 %v16889_v24 }
0x20ac   :  { %11309 = vmatprep.subr.bf16.mxu1 %v15057_v0  ;;  %11288 = vmatpush3.bf16.msra.mxu0 %v12578_v31 }
0x20ad   :  { %11289 = vmatprep.subr.bf16.mxu0 %v15057_v0 }
0x20af   :  { %11310 = vmatpush3.bf16.msra.mxu1 %v16893_v29 }
0x20b0   :  { %11311 = vmatprep.subr.bf16.mxu1 %v15057_v0  ;;  %11290 = vmatpush3.bf16.msra.mxu0 %v12579_v27  ;;  %v12593_v27 = vld [vmem:[#allocation14] sm:$0xff]  }
0x20b1   :  { %11291 = vmatprep.subr.bf16.mxu0 %v15057_v0 }
0x20b3   :  { %11312 = vmatpush3.bf16.msra.mxu1 %v16897_v63 }
0x20b4   :  { %11313 = vmatprep.subr.bf16.mxu1 %v15057_v0  ;;  %11292 = vmatpush3.bf16.msra.mxu0 %v12580_v9 }
0x20b5   :  { %11293 = vmatprep.subr.bf16.mxu0 %v15057_v0 }
0x20b7   :  { %11314 = vmatpush3.bf16.msra.mxu1 %v16902_v25 }
0x20b8   :  { %11315 = vmatprep.subr.bf16.mxu1 %v15057_v0  ;;  %11294 = vmatpush3.bf16.msra.mxu0 %v12581_v60 }
0x20b9   :  { %11295 = vmatprep.subr.bf16.mxu0 %v15057_v0 }
0x20bb   :  { %11316 = vmatpush3.bf16.msra.mxu1 %v16906_v32 }
0x20bc   :  { %11317 = vmatprep.subr.bf16.mxu1 %v15057_v0  ;;  %11296 = vmatpush3.bf16.msra.mxu0 %v12582_v50 }
0x20bd   :  { %11297 = vmatprep.subr.bf16.mxu0 %v15057_v0 }
0x20bf   :  { %11318 = vmatpush3.bf16.msra.mxu1 %v16910_v28 }
0x20c0   :  { %11351 = vmatprep.subr.bf16.mxu1 %v15057_v0  ;;  %11298 = vmatpush3.bf16.msra.mxu0 %v12583_v57 }
0x20c1   :  { %11323 = vmatprep.subr.bf16.mxu0 %v15057_v0 }
0x2142   :  { %v8392_v19 = vpop.f32.mrf.mxu1 }
0x2143   :  { %v8399_v58 = vmul.f32 %v8392_v19, %v8392_v19  ;;  %v8401_v51 = vsub.f32 %v16949_v44, %v8392_v19 }
0x2144   :  { %v11281_v26 = vpop.f32.mrf.mxu1 }
0x2146   :  { %v8395_v23 = vpop.f32.mrf.mxu1 }
0x2147   :  { %v8400_v33 = vsub.f32 %v8395_v23, %v8399_v58 }
0x2148   :  { %v11282_v16 = vpop.f32.mrf.mxu1 }
0x2149   :  { %v8402_v55 = vadd.f32 1e-05, %v8400_v33  ;;  %v10805_v16 = vld [vmem:[#allocation135] ss:$0 sm:$0xff] }
0x214b   :  { %12736 = vrsqrt.f32 %v8402_v55 }
0x2158   :  { %v12737_v56 = vpop.eup %12736 }
0x2159   :  { %v8404_v62 = vmul.f32 %v12737_v56, %v8401_v51  ;;  %v10806_v51 = vld [vmem:[#allocation130] ss:$0 sm:$0xff] }
0x215b   :  { %v8412_v54 = vmul.f32 %v10761_v61, %v8404_v62 }
0x215d   :  { %v8420_v1 = vadd.f32 %v10762_v38, %v8412_v54 }
0x215f   :  { %v8421_v53 = vmin.f32 %v8420_v1, 20.0  ;;  %vm8430_vm15 = vcmp.gt.f32.partialorder %v8420_v1, 20.0 }
0x2161   :  { %v8422_v45 = vmul.f32 1.442695, %v8421_v53 }
0x2162   :  { %v11100_v48 = vpop.f32.mrf.mxu1 }
0x2163   :  { %12738 = vpow2.f32 %v8422_v45  ;;  %v10807_v45 = vld [vmem:[#allocation133] ss:$0 sm:$0xff] }
0x2164   :  { %v11101_v22 = vpop.f32.mrf.mxu1 }
0x2165   :  { %v11102_v44 = vadd.f32 %v11101_v22, %v11100_v48 }
0x2166   :  { %v11103_v2 = vpop.f32.mrf.mxu1 }
0x2167   :  { %v8775_v40 = vadd.f32 %v11102_v44, %v8602_v39 }
0x2168   :  { %v11104_v18 = vpop.f32.mrf.mxu1 }
0x2170   :  { %v12739_v46 = vpop.eup %12738 }
0x2171   :  { %v8424_v6 = vadd.f32 2.0, %v12739_v46 }
0x2173   :  { %v8425_v47 = vmul.f32 %v12739_v46, %v8424_v6 }
0x2175   :  { %v8427_v7 = vadd.f32 2.0, %v8425_v47  ;;  %v8426_v5 = vmul.f32 %v8425_v47, %v8420_v1 }
0x2177   :  { %12740 = vrcp.f32 %v8427_v7  ;;  %v10811_v7 = vld [vmem:[#allocation129] ss:$0 sm:$0xff] }
0x2184   :  { %v12741_v59 = vpop.eup %12740 }
0x2185   :  { %v8429_v30 = vmul.f32 %v12741_v59, %v8426_v5 }
0x2187   :  { %v8431_v41 = vsel %vm8430_vm15, %v8420_v1, %v8429_v30 }
0x2188   :  { %v16987_v35 = vadd.f32 %v8775_v40, %v8431_v41  ;;  %v12594_v41 = vld [vmem:[#allocation15 + $0x70] ss:$8 sps:$4 sm:$0xff]  }
0x218a   :  { %v8777_v49 = vpack.c.bf16 %v16987_v35, %v16987_v35 }
0x218c   :  { %11300 = vmatmul.mubr.bf16.vlgmr.msra.gmra.mxu0 %v8777_v49  ;;  %v12596_v49 = vld [vmem:[#allocation15 + $0x74] ss:$8 sps:$4 sm:$0xff]  }
0x218d   :  { %11327 = vmatprep.mubr.msk.bf16.mxu0 %vm15058_vm0, %v15057_v0  ;;  %11324 = vmatpush3.bf16.msra.mxu0 %v12584_v36  ;;  %v12599_v36 = vld [vmem:[#allocation15 + $0x64] ss:$8 sps:$4 sm:$0xff]  }
0x218e   :  { %11325 = vmatprep.subr.bf16.mxu0 %v15057_v0 }
0x2191   :  { %11326 = vmatpush3.bf16.msra.mxu0 %v12585_v8  ;;  %v12597_v8 = vld [vmem:[#allocation15 + $0x60] ss:$8 sps:$4 sm:$0xff]  }
0x2192   :  { %11331 = vmatprep.subr.bf16.mxu0 %v15057_v0 }
0x2194   :  { %11328 = vmatmul.mubr.msk.bf16.vlgmr.msra.gmra.mxu0 %vm1597_vm1, %v15915_v37  ;;  %v12586_v37 = vld [vmem:[#allocation14 + $0x38] sm:$0xff]  }
0x2195   :  { %11347 = vmatprep.mubr.msk.bf16.mxu0 %vm15058_vm0, %v15057_v0  ;;  %11332 = vmatpush3.bf16.msra.mxu0 %v12586_v37  ;;  %v12612_v37 = vld [vmem:[#allocation15 + $0x10] ss:$8 sps:$4 sm:$0xff]  }
0x2196   :  { %11333 = vmatprep.subr.bf16.mxu0 %v15057_v0 }
0x224c   :  { %v8883_v12 = vpop.f32.mrf.mxu0 }
0x224d   :  { %v8884_v21 = vadd.f32 %v10796_v14, %v8883_v12  ;;  %v12600_v14 = vld [vmem:[#allocation15 + $0x50] ss:$8 sps:$4 sm:$0xff]   ;;  %v12605_v12 = vld [vmem:[#allocation15 + $0x44] ss:$8 sps:$4 sm:$0xff]  }
0x224e   :  { %v11301_v15 = vpop.f32.mrf.mxu0 }
0x224f   :  { %v8889_v20 = vmul.f32 %v8884_v21, %v8884_v21  ;;  %v12608_v15 = vld [vmem:[#allocation15 + $0x34] ss:$8 sps:$4 sm:$0xff]  }
0x2250   :  { %v8886_v42 = vpop.f32.mrf.mxu0 }
0x2251   :  { %v8890_v34 = vpack.c.bf16 %v8889_v20, %v8884_v21  ;;  %v12606_v20 = vld [vmem:[#allocation15 + $0x30] ss:$8 sps:$4 sm:$0xff]   ;;  %v12611_v42 = vld [vmem:[#allocation15 + $0x24] ss:$8 sps:$4 sm:$0xff]  }
0x2252   :  { %v11302_v4 = vpop.f32.mrf.mxu0 }
0x2253   :  { %11320 = vmatmul.mubr.bf16.vlgmr.msra.gmra.mxu1 %v8890_v34  ;;  %v12609_v34 = vld [vmem:[#allocation15 + $0x20] ss:$8 sps:$4 sm:$0xff]   ;;  %v12614_v4 = vld [vmem:[#allocation15 + $0x14] ss:$8 sps:$4 sm:$0xff]  }
0x2254   :  { %11352 = vmatpush3.bf16.msra.mxu1 %v16876_v52  ;;  %11367 = vmatprep.mubr.msk.bf16.mxu1 %vm15058_vm0, %v15057_v0  ;;  %v12587_v52 = vld [vmem:[#allocation14 + $0x30] sm:$0xff]  }
0x2255   :  { %11353 = vmatprep.subr.bf16.mxu1 %v15057_v0  ;;  %11334 = vmatpush3.bf16.msra.mxu0 %v12587_v52  ;;  %v12617_v52 = vld [vmem:[#allocation15 + $0x4] ss:$8 sps:$4 sm:$0xff]  }
0x2256   :  { %11335 = vmatprep.subr.bf16.mxu0 %v15057_v0 }
0x2258   :  { %11354 = vmatpush3.bf16.msra.mxu1 %v16883_v10  ;;  %v12588_v10 = vld [vmem:[#allocation14 + $0x28] sm:$0xff]  }
0x2259   :  { %11355 = vmatprep.subr.bf16.mxu1 %v15057_v0  ;;  %11336 = vmatpush3.bf16.msra.mxu0 %v12588_v10  ;;  %v12615_v10 = vld [vmem:[#allocation15] ss:$8 sps:$4 sm:$0xff]  }
0x225a   :  { %11337 = vmatprep.subr.bf16.mxu0 %v15057_v0 }
0x225c   :  { %11356 = vmatpush3.bf16.msra.mxu1 %v16889_v24  ;;  %v12589_v24 = vld [vmem:[#allocation14 + $0x20] sm:$0xff]  }
0x225d   :  { %11357 = vmatprep.subr.bf16.mxu1 %v15057_v0  ;;  %11338 = vmatpush3.bf16.msra.mxu0 %v12589_v24  ;;  %v12797_v24 = vld [vmem:[#allocation84 + $0x74] ss:$8 sps:$4 sm:$0xff]  }
0x225e   :  { %11339 = vmatprep.subr.bf16.mxu0 %v15057_v0 }
0x2260   :  { %11358 = vmatpush3.bf16.msra.mxu1 %v16893_v29  ;;  %v12590_v29 = vld [vmem:[#allocation14 + $0x18] sm:$0xff]  }
0x2261   :  { %11359 = vmatprep.subr.bf16.mxu1 %v15057_v0  ;;  %11340 = vmatpush3.bf16.msra.mxu0 %v12590_v29  ;;  %v12618_v29 = vld [vmem:[#allocation2 + $0x70] ss:$8 sps:$4 sm:$0xff]  }
0x2262   :  { %11341 = vmatprep.subr.bf16.mxu0 %v15057_v0 }
0x2264   :  { %11360 = vmatpush3.bf16.msra.mxu1 %v16897_v63  ;;  %v9022_v63 = vpop.f32.mrf.mxu0 }
0x2265   :  { %11361 = vmatprep.subr.bf16.mxu1 %v15057_v0  ;;  %v9023_v2 = vadd.f32 %v10807_v45, %v9022_v63  ;;  %v12620_v63 = vld [vmem:[#allocation2 + $0x74] ss:$8 sps:$4 sm:$0xff]  }
0x2268   :  { %11362 = vmatpush3.bf16.msra.mxu1 %v16902_v25  ;;  %v12591_v25 = vld [vmem:[#allocation14 + $0x10] sm:$0xff]  }
0x2269   :  { %11363 = vmatprep.subr.bf16.mxu1 %v15057_v0  ;;  %11342 = vmatpush3.bf16.msra.mxu0 %v12591_v25  ;;  %v12623_v25 = vld [vmem:[#allocation2 + $0x64] ss:$8 sps:$4 sm:$0xff]  }
0x226a   :  { %11343 = vmatprep.subr.bf16.mxu0 %v15057_v0 }
0x226c   :  { %11364 = vmatpush3.bf16.msra.mxu1 %v16906_v32  ;;  %v11329_v32 = vpop.f32.mrf.mxu0 }
0x226d   :  { %11365 = vmatprep.subr.bf16.mxu1 %v15057_v0  ;;  %11344 = vmatpush3.bf16.msra.mxu0 %v12592_v3  ;;  %v12621_v32 = vld [vmem:[#allocation2 + $0x60] ss:$8 sps:$4 sm:$0xff]   ;;  %v12624_v3 = vld [vmem:[#allocation2 + $0x50] ss:$8 sps:$4 sm:$0xff]  }
0x226e   :  { %11345 = vmatprep.subr.bf16.mxu0 %v15057_v0 }
0x2270   :  { %11366 = vmatpush3.bf16.msra.mxu1 %v16910_v28  ;;  %v9025_v28 = vpop.f32.mrf.mxu0 }
0x2271   :  { %11346 = vmatpush3.bf16.msra.mxu0 %v12593_v27  ;;  %9574 = vmatprep.subr.bf16.mxu1 %v12620_v63  ;;  %v12626_v28 = vld [vmem:[#allocation2 + $0x54] ss:$8 sps:$4 sm:$0xff]   ;;  %v12627_v27 = vld [vmem:[#allocation2 + $0x40] ss:$8 sps:$4 sm:$0xff]  }
0x2272   :  { %v11330_v31 = vpop.f32.mrf.mxu0  ;;  %9327 = vmatprep.subr.bf16.mxu0 %v12596_v49  ;;  %v12806_v63 = vld [vmem:[#allocation84 + $0x30] ss:$8 sps:$4 sm:$0xff]  }
0x2273   :  { %v12629_v31 = vld [vmem:[#allocation2 + $0x44] ss:$8 sps:$4 sm:$0xff]  }
0x2313   :  { %v8925_v9 = vpop.f32.mrf.mxu1 }
0x2314   :  { %v8932_v50 = vmul.f32 %v8925_v9, %v8925_v9  ;;  %v8934_v23 = vsub.f32 %v8884_v21, %v8925_v9  ;;  %v12603_v21 = vld [vmem:[#allocation15 + $0x40] ss:$8 sps:$4 sm:$0xff]   ;;  %v12632_v9 = vld [vmem:[#allocation2 + $0x34] ss:$8 sps:$4 sm:$0xff]  }
0x2315   :  { %v11321_v60 = vpop.f32.mrf.mxu1 }
0x2316   :  { %v12630_v60 = vld [vmem:[#allocation2 + $0x30] ss:$8 sps:$4 sm:$0xff]  }
0x2317   :  { %v8928_v57 = vpop.f32.mrf.mxu1 }
0x2318   :  { %v8933_v19 = vsub.f32 %v8928_v57, %v8932_v50  ;;  %v12635_v50 = vld [vmem:[#allocation2 + $0x24] ss:$8 sps:$4 sm:$0xff]   ;;  %v12633_v57 = vld [vmem:[#allocation2 + $0x20] ss:$8 sps:$4 sm:$0xff]  }
0x2319   :  { %v11322_v26 = vpop.f32.mrf.mxu1 }
0x231a   :  { %v8935_v58 = vadd.f32 1e-05, %v8933_v19  ;;  %v12638_v19 = vld [vmem:[#allocation2 + $0x14] ss:$8 sps:$4 sm:$0xff]   ;;  %v12636_v26 = vld [vmem:[#allocation2 + $0x10] ss:$8 sps:$4 sm:$0xff]  }
0x231c   :  { %12742 = vrsqrt.f32 %v8935_v58  ;;  %v12641_v58 = vld [vmem:[#allocation2 + $0x4] ss:$8 sps:$4 sm:$0xff]  }
0x2329   :  { %v12743_v33 = vpop.eup %12742 }
0x232a   :  { %v8937_v55 = vmul.f32 %v12743_v33, %v8934_v23  ;;  %v12639_v23 = vld [vmem:[#allocation2] ss:$8 sps:$4 sm:$0xff]   ;;  %v12644_v33 = vld [vmem:[#allocation2 + $0xf4] ss:$8 sps:$4 sm:$0xff]  }
0x232c   :  { %v8945_v56 = vmul.f32 %v10805_v16, %v8937_v55  ;;  %v12642_v16 = vld [vmem:[#allocation2 + $0xf0] ss:$8 sps:$4 sm:$0xff]   ;;  %v12647_v55 = vld [vmem:[#allocation2 + $0xe4] ss:$8 sps:$4 sm:$0xff]  }
0x232e   :  { %v8953_v61 = vadd.f32 %v10806_v51, %v8945_v56  ;;  %v12645_v51 = vld [vmem:[#allocation2 + $0xe0] ss:$8 sps:$4 sm:$0xff]   ;;  %v12650_v56 = vld [vmem:[#allocation2 + $0xd4] ss:$8 sps:$4 sm:$0xff]  }
0x2330   :  { %v8954_v62 = vmin.f32 %v8953_v61, 20.0  ;;  %vm8963_vm0 = vcmp.gt.f32.partialorder %v8953_v61, 20.0 }
0x2332   :  { %v8955_v38 = vmul.f32 1.442695, %v8954_v62  ;;  %v12653_v62 = vld [vmem:[#allocation2 + $0xc4] ss:$8 sps:$4 sm:$0xff]  }
0x2334   :  { %12744 = vpow2.f32 %v8955_v38  ;;  %v12651_v38 = vld [vmem:[#allocation2 + $0xc0] ss:$8 sps:$4 sm:$0xff]  }
0x2341   :  { %v12745_v0 = vpop.eup %12744 }
0x2342   :  { %v8957_v54 = vadd.f32 2.0, %v12745_v0 }
0x2344   :  { %v8958_v1 = vmul.f32 %v12745_v0, %v8957_v54  ;;  %v12656_v0 = vld [vmem:[#allocation2 + $0xb4] ss:$8 sps:$4 sm:$0xff]   ;;  %v12654_v54 = vld [vmem:[#allocation2 + $0xb0] ss:$8 sps:$4 sm:$0xff]  }
0x2346   :  { %v8960_v53 = vadd.f32 2.0, %v8958_v1  ;;  %v8959_v48 = vmul.f32 %v8958_v1, %v8953_v61  ;;  %v12659_v1 = vld [vmem:[#allocation2 + $0xa4] ss:$8 sps:$4 sm:$0xff]  }
0x2348   :  { %12746 = vrcp.f32 %v8960_v53  ;;  %v12657_v53 = vld [vmem:[#allocation2 + $0xa0] ss:$8 sps:$4 sm:$0xff]  }
0x2355   :  { %v12747_v22 = vpop.eup %12746 }
0x2356   :  { %v8962_v18 = vmul.f32 %v12747_v22, %v8959_v48 }
0x2358   :  { %v8964_v46 = vsel %vm8963_vm0, %v8953_v61, %v8962_v18  ;;  %v12648_v61 = vld [vmem:[#allocation2 + $0xd0] ss:$8 sps:$4 sm:$0xff]  }
0x2359   :  { %v9028_v6 = vadd.f32 %v9023_v2, %v8964_v46 }
0x235b   :  { %v9029_v47 = vpack.c.bf16 %v9028_v6, %v9028_v6 }
0x235d   :  { %11348 = vmatmul.mubr.bf16.vlgmr.msra.gmra.mxu0 %v9029_v47 }
0x235e   :  { %9359 = vmatprep.mubr.bf16.mxu0 %v15059_v43  ;;  %9328 = vmatpush1.bf16.msra.mxu0 %v12594_v41  ;;  %v12602_v43 = vld [vmem:[#allocation15 + $0x54] ss:$8 sps:$4 sm:$0xff]  }
0x235f   :  { %9329 = vmatprep.subr.bf16.mxu0 %v12599_v36 }
0x2362   :  { %9330 = vmatpush1.bf16.msra.mxu0 %v12597_v8 }
0x2363   :  { %9331 = vmatprep.subr.bf16.mxu0 %v12602_v43 }
0x2366   :  { %9332 = vmatpush1.bf16.msra.mxu0 %v12600_v14 }
0x2367   :  { %9333 = vmatprep.subr.bf16.mxu0 %v12605_v12 }
0x236a   :  { %9334 = vmatpush1.bf16.msra.mxu0 %v12603_v21 }
0x236b   :  { %9335 = vmatprep.subr.bf16.mxu0 %v12608_v15 }
0x236e   :  { %9336 = vmatpush1.bf16.msra.mxu0 %v12606_v20 }
0x236f   :  { %9337 = vmatprep.subr.bf16.mxu0 %v12611_v42  ;;  %v12798_v42 = vld [vmem:[#allocation84 + $0x70] ss:$8 sps:$4 sm:$0xff]  }
0x2372   :  { %9338 = vmatpush1.bf16.msra.mxu0 %v12609_v34  ;;  %v12799_v34 = vld [vmem:[#allocation84 + $0x64] ss:$8 sps:$4 sm:$0xff]  }
0x2373   :  { %9339 = vmatprep.subr.bf16.mxu0 %v12614_v4  ;;  %v12800_v4 = vld [vmem:[#allocation84 + $0x60] ss:$8 sps:$4 sm:$0xff]  }
0x2376   :  { %9340 = vmatpush1.bf16.msra.mxu0 %v12612_v37  ;;  %v12801_v37 = vld [vmem:[#allocation84 + $0x54] ss:$8 sps:$4 sm:$0xff]  }
0x2377   :  { %9341 = vmatprep.subr.bf16.mxu0 %v12617_v52  ;;  %v12802_v52 = vld [vmem:[#allocation84 + $0x50] ss:$8 sps:$4 sm:$0xff]  }
0x237a   :  { %9342 = vmatpush1.bf16.msra.mxu0 %v12615_v10  ;;  %v12803_v10 = vld [vmem:[#allocation84 + $0x44] ss:$8 sps:$4 sm:$0xff]  }
0x237b   :  { %9619 = vmatprep.subr.bf16.mxu0 %v12797_v24  ;;  %v12804_v24 = vld [vmem:[#allocation84 + $0x40] ss:$8 sps:$4 sm:$0xff]  }
0x241d   :  { %v9135_v17 = vpop.f32.mrf.mxu0 }
0x241e   :  { %v17024_v44 = vadd.f32 %v10811_v7, %v9135_v17  ;;  %v10820_v17 = vld [vmem:[#allocation136] ss:$0 sm:$0xff] }
0x241f   :  { %v11349_v5 = vpop.f32.mrf.mxu0 }
0x2420   :  { %v9141_v59 = vmul.f32 %v17024_v44, %v17024_v44 }
0x2421   :  { %v9138_v39 = vpop.f32.mrf.mxu0 }
0x2422   :  { %v9142_v30 = vpack.c.bf16 %v9141_v59, %v17024_v44  ;;  %v10821_v59 = vld [vmem:[#allocation132] ss:$0 sm:$0xff] }
0x2423   :  { %v11350_v40 = vpop.f32.mrf.mxu0 }
0x2424   :  { %11368 = vmatmul.mubr.bf16.vlgmr.msra.gmra.mxu1 %v9142_v30 }
0x2425   :  { %9575 = vmatpush1.bf16.msra.mxu1 %v12618_v29  ;;  %v12805_v29 = vld [vmem:[#allocation84 + $0x34] ss:$8 sps:$4 sm:$0xff]  }
0x2426   :  { %9576 = vmatprep.subr.bf16.mxu1 %v12623_v25  ;;  %v12808_v25 = vld [vmem:[#allocation84 + $0x20] ss:$8 sps:$4 sm:$0xff]  }
0x2429   :  { %9577 = vmatpush1.bf16.msra.mxu1 %v12621_v32  ;;  %v12809_v32 = vld [vmem:[#allocation84 + $0x14] ss:$8 sps:$4 sm:$0xff]  }
0x242a   :  { %9578 = vmatprep.subr.bf16.mxu1 %v12626_v28  ;;  %v12810_v28 = vld [vmem:[#allocation84 + $0x10] ss:$8 sps:$4 sm:$0xff]  }
0x242d   :  { %9579 = vmatpush1.bf16.msra.mxu1 %v12624_v3  ;;  %v12811_v3 = vld [vmem:[#allocation84 + $0x4] ss:$8 sps:$4 sm:$0xff]  }
0x242e   :  { %9580 = vmatprep.subr.bf16.mxu1 %v12629_v31  ;;  %v12812_v31 = vld [vmem:[#allocation84] ss:$8 sps:$4 sm:$0xff]  }
0x2431   :  { %9581 = vmatpush1.bf16.msra.mxu1 %v12627_v27  ;;  %v12813_v27 = vld [vmem:[#allocation84 + $0xf4] ss:$8 sps:$4 sm:$0xff]  }
0x2432   :  { %9582 = vmatprep.subr.bf16.mxu1 %v12632_v9  ;;  %v12814_v9 = vld [vmem:[#allocation84 + $0xf0] ss:$8 sps:$4 sm:$0xff]  }
0x2435   :  { %9583 = vmatpush1.bf16.msra.mxu1 %v12630_v60  ;;  %v12815_v60 = vld [vmem:[#allocation84 + $0xe4] ss:$8 sps:$4 sm:$0xff]  }
0x2436   :  { %9584 = vmatprep.subr.bf16.mxu1 %v12635_v50  ;;  %v12816_v50 = vld [vmem:[#allocation84 + $0xe0] ss:$8 sps:$4 sm:$0xff]  }
0x2439   :  { %9585 = vmatpush1.bf16.msra.mxu1 %v12633_v57  ;;  %v12817_v57 = vld [vmem:[#allocation84 + $0xd4] ss:$8 sps:$4 sm:$0xff]  }
0x243a   :  { %9586 = vmatprep.subr.bf16.mxu1 %v12638_v19  ;;  %v12818_v19 = vld [vmem:[#allocation84 + $0xd0] ss:$8 sps:$4 sm:$0xff]  }
0x243d   :  { %9587 = vmatpush1.bf16.msra.mxu1 %v12636_v26  ;;  %v12819_v26 = vld [vmem:[#allocation84 + $0xc4] ss:$8 sps:$4 sm:$0xff]  }
0x243e   :  { %9588 = vmatprep.subr.bf16.mxu1 %v12641_v58  ;;  %v12820_v58 = vld [vmem:[#allocation84 + $0xc0] ss:$8 sps:$4 sm:$0xff]  }
0x2441   :  { %9589 = vmatpush1.bf16.msra.mxu1 %v12639_v23  ;;  %v12821_v23 = vld [vmem:[#allocation84 + $0xb4] ss:$8 sps:$4 sm:$0xff]  }
0x2442   :  { %9590 = vmatprep.subr.bf16.mxu1 %v12644_v33  ;;  %v12822_v33 = vld [vmem:[#allocation84 + $0xb0] ss:$8 sps:$4 sm:$0xff]  }
0x2445   :  { %9591 = vmatpush2.bf16.msra.mxu1 %v12642_v16  ;;  %v12823_v16 = vld [vmem:[#allocation84 + $0xa4] ss:$8 sps:$4 sm:$0xff]  }
0x2446   :  { %9592 = vmatprep.subr.bf16.mxu1 %v12647_v55  ;;  %v12824_v55 = vld [vmem:[#allocation84 + $0xa0] ss:$8 sps:$4 sm:$0xff]  }
0x2449   :  { %9593 = vmatpush2.bf16.msra.mxu1 %v12645_v51  ;;  %v12825_v51 = vld [vmem:[#allocation84 + $0x94] ss:$8 sps:$4 sm:$0xff]  }
0x244a   :  { %9594 = vmatprep.subr.bf16.mxu1 %v12650_v56  ;;  %v12826_v56 = vld [vmem:[#allocation84 + $0x90] ss:$8 sps:$4 sm:$0xff]  }
0x244d   :  { %9595 = vmatpush2.bf16.msra.mxu1 %v12648_v61  ;;  %v12827_v61 = vld [vmem:[#allocation84 + $0x84] ss:$8 sps:$4 sm:$0xff]  }
0x244e   :  { %9596 = vmatprep.subr.bf16.mxu1 %v12653_v62  ;;  %v12828_v62 = vld [vmem:[#allocation84 + $0x80] ss:$8 sps:$4 sm:$0xff]  }
0x2451   :  { %9597 = vmatpush2.bf16.msra.mxu1 %v12651_v38  ;;  %v12662_v38 = vld [vmem:[#allocation2 + $0x94] ss:$8 sps:$4 sm:$0xff]  }
0x2452   :  { %9598 = vmatprep.subr.bf16.mxu1 %v12656_v0  ;;  %v12660_v0 = vld [vmem:[#allocation2 + $0x90] ss:$8 sps:$4 sm:$0xff]  }
0x2455   :  { %9599 = vmatpush2.bf16.msra.mxu1 %v12654_v54  ;;  %v12665_v54 = vld [vmem:[#allocation2 + $0x84] ss:$8 sps:$4 sm:$0xff]  }
0x2456   :  { %9600 = vmatprep.subr.bf16.mxu1 %v12659_v1  ;;  %v12663_v1 = vld [vmem:[#allocation2 + $0x80] ss:$8 sps:$4 sm:$0xff]  }
0x2459   :  { %9601 = vmatpush2.bf16.msra.mxu1 %v12657_v53  ;;  %v9235_v53 = vld [vmem:[#allocation139] sm:$0x3] }
0x245a   :  { %9602 = vmatprep.subr.bf16.mxu1 %v12662_v38 }
0x245d   :  { %9603 = vmatpush2.bf16.msra.mxu1 %v12660_v0 }
0x245e   :  { %9604 = vmatprep.subr.bf16.mxu1 %v12665_v54 }
0x2461   :  { %9605 = vmatpush2.bf16.msra.mxu1 %v12663_v1 }
0x24e4   :  { %v9177_v45 = vpop.f32.mrf.mxu1 }
0x24e5   :  { %v9184_v22 = vmul.f32 %v9177_v45, %v9177_v45  ;;  %v9186_v47 = vsub.f32 %v17024_v44, %v9177_v45  ;;  %v9240_v45 = vrot.slane %v9235_v53, %v15932_v11 }
0x24e6   :  { %v11369_v48 = vpop.f32.mrf.mxu1 }
0x24e7   :  { %v9244_v48 = vrot.slane %v9235_v53, %v15935_v13 }
0x24e8   :  { %v9180_v2 = vpop.f32.mrf.mxu1 }
0x24e9   :  { %v9185_v18 = vsub.f32 %v9180_v2, %v9184_v22 }
0x24ea   :  { %v11370_v46 = vpop.f32.mrf.mxu1 }
0x24eb   :  { %v9187_v6 = vadd.f32 1e-05, %v9185_v18 }
0x24ed   :  { %12748 = vrsqrt.f32 %v9187_v6 }
0x24fa   :  { %v12749_v7 = vpop.eup %12748 }
0x24fb   :  { %v9189_v5 = vmul.f32 %v12749_v7, %v9186_v47 }
0x24fd   :  { %v9197_v39 = vmul.f32 %v10820_v17, %v9189_v5  ;;  %v9402_v5 = vld [vmem:[#allocation73] sm:$0x3] }
0x24ff   :  { %v9205_v30 = vadd.f32 %v10821_v59, %v9197_v39  ;;  %v9407_v59 = vrot.slane %v9402_v5, %v15932_v11  ;;  %v9411_v39 = vrot.slane %v9402_v5, %v15935_v13 }
0x2501   :  { %v9206_v40 = vmin.f32 %v9205_v30, 20.0  ;;  %vm9215_vm1 = vcmp.gt.f32.partialorder %v9205_v30, 20.0 }
0x2503   :  { %v9207_v41 = vmul.f32 1.442695, %v9206_v40 }
0x2505   :  { %12750 = vpow2.f32 %v9207_v41 }
0x2512   :  { %v12751_v49 = vpop.eup %12750 }
0x2513   :  { %v9209_v36 = vadd.f32 2.0, %v12751_v49 }
0x2515   :  { %v9210_v8 = vmul.f32 %v12751_v49, %v9209_v36 }
0x2517   :  { %v9212_v43 = vadd.f32 2.0, %v9210_v8  ;;  %v9211_v14 = vmul.f32 %v9210_v8, %v9205_v30 }
0x2519   :  { %12752 = vrcp.f32 %v9212_v43 }
0x2526   :  { %v12753_v12 = vpop.eup %12752 }
0x2527   :  { %v9214_v21 = vmul.f32 %v12753_v12, %v9211_v14 }
0x2529   :  { %v9216_v15 = vsel %vm9215_vm1, %v9205_v30, %v9214_v21 }
0x252a   :  { %v9217_v44 = vadd.f32 %v9216_v15, %v16987_v35  ;;  %v12807_v35 = vld [vmem:[#allocation84 + $0x24] ss:$8 sps:$4 sm:$0xff]  }
0x252b   :  { %v12666_v15 = vld [vmem:[#allocation3 + $0x78] sm:$0xff]  }
0x252c   :  { %v9218_v20 = vpack.c.bf16 %v9217_v44, %v9217_v44  ;;  %v12667_v44 = vld [vmem:[#allocation3 + $0x38] sm:$0xff]   ;;  %11145 = vmatprep.subr.bf16.mxu1 %v12666_v15 }
0x252e   :  { %9360 = vmatmul.mubr.bf16.vlgmr.msra.gmra.mxu0 %v9218_v20  ;;  %v12668_v20 = vld [vmem:[#allocation3 + $0x70] sm:$0xff]  }
0x252f   :  { %9620 = vmatpush1.bf16.msra.mxu0 %v12798_v42  ;;  %v12669_v42 = vld [vmem:[#allocation3 + $0x30] sm:$0xff]  }
0x2530   :  { %9621 = vmatprep.subr.bf16.mxu0 %v12799_v34  ;;  %v12670_v34 = vld [vmem:[#allocation3 + $0x68] sm:$0xff]  }
0x2533   :  { %9622 = vmatpush1.bf16.msra.mxu0 %v12800_v4  ;;  %v12671_v4 = vld [vmem:[#allocation3 + $0x28] sm:$0xff]  }
0x2534   :  { %9623 = vmatprep.subr.bf16.mxu0 %v12801_v37  ;;  %v12672_v37 = vld [vmem:[#allocation3 + $0x60] sm:$0xff]  }
0x2537   :  { %9624 = vmatpush1.bf16.msra.mxu0 %v12802_v52  ;;  %v12673_v52 = vld [vmem:[#allocation3 + $0x20] sm:$0xff]  }
0x2538   :  { %9625 = vmatprep.subr.bf16.mxu0 %v12803_v10  ;;  %v12674_v10 = vld [vmem:[#allocation3 + $0x58] sm:$0xff]  }
0x253b   :  { %9626 = vmatpush1.bf16.msra.mxu0 %v12804_v24  ;;  %v12675_v24 = vld [vmem:[#allocation3 + $0x18] sm:$0xff]  }
0x253c   :  { %9627 = vmatprep.subr.bf16.mxu0 %v12805_v29  ;;  %v12676_v29 = vld [vmem:[#allocation3 + $0x50] sm:$0xff]  }
0x253f   :  { %9628 = vmatpush1.bf16.msra.mxu0 %v12806_v63  ;;  %v12677_v63 = vld [vmem:[#allocation3 + $0x10] sm:$0xff]  }
0x2540   :  { %9629 = vmatprep.subr.bf16.mxu0 %v12807_v35  ;;  %v12678_v35 = vld [vmem:[#allocation3 + $0x48] sm:$0xff]  }
0x2543   :  { %9630 = vmatpush1.bf16.msra.mxu0 %v12808_v25  ;;  %v12679_v25 = vld [vmem:[#allocation3 + $0x8] sm:$0xff]  }
0x2544   :  { %9631 = vmatprep.subr.bf16.mxu0 %v12809_v32  ;;  %v12680_v32 = vld [vmem:[#allocation3 + $0x40] sm:$0xff]  }
0x2547   :  { %9632 = vmatpush1.bf16.msra.mxu0 %v12810_v28  ;;  %v12681_v28 = vld [vmem:[#allocation3] sm:$0xff]  }
0x2548   :  { %9633 = vmatprep.subr.bf16.mxu0 %v12811_v3 }
0x254b   :  { %9634 = vmatpush1.bf16.msra.mxu0 %v12812_v31 }
0x254c   :  { %9635 = vmatprep.subr.bf16.mxu0 %v12813_v27 }
0x254f   :  { %9636 = vmatpush2.bf16.msra.mxu0 %v12814_v9 }
0x2550   :  { %9637 = vmatprep.subr.bf16.mxu0 %v12815_v60 }
0x2553   :  { %9638 = vmatpush2.bf16.msra.mxu0 %v12816_v50 }
0x2554   :  { %9639 = vmatprep.subr.bf16.mxu0 %v12817_v57 }
0x2557   :  { %9640 = vmatpush2.bf16.msra.mxu0 %v12818_v19 }
0x2558   :  { %9641 = vmatprep.subr.bf16.mxu0 %v12819_v26 }
0x255b   :  { %9642 = vmatpush2.bf16.msra.mxu0 %v12820_v58 }
0x255c   :  { %9643 = vmatprep.subr.bf16.mxu0 %v12821_v23  ;;  %v9674_v23 = vld [vmem:[#allocation76] sm:$0x3] }
0x255f   :  { %9644 = vmatpush2.bf16.msra.mxu0 %v12822_v33  ;;  %v9688_v33 = vld [vmem:[#allocation75] sm:$0x3] }
0x2560   :  { %9645 = vmatprep.subr.bf16.mxu0 %v12823_v16  ;;  %v9693_v38 = vrot.slane %v9688_v33, %v15932_v11  ;;  %v9697_v1 = vrot.slane %v9688_v33, %v15935_v13 }
0x2563   :  { %9646 = vmatpush2.bf16.msra.mxu0 %v12824_v55  ;;  %v9679_v55 = vrot.slane %v9674_v23, %v15932_v11 }
0x2564   :  { %9647 = vmatprep.subr.bf16.mxu0 %v12825_v51 }
0x2567   :  { %9648 = vmatpush2.bf16.msra.mxu0 %v12826_v56 }
0x2568   :  { %9649 = vmatprep.subr.bf16.mxu0 %v12827_v61 }
0x256b   :  { %9650 = vmatpush2.bf16.msra.mxu0 %v12828_v62  ;;  %v9683_v62 = vrot.slane %v9674_v23, %v15935_v13 }
0x25ee   :  { %v9361_v22 = vpop.f32.mrf.mxu0 }
0x25ef   :  { %v9362_v2 = vadd.f32 %v9361_v22, %v9240_v45 }
0x25f0   :  { %v9363_v18 = vpop.f32.mrf.mxu0 }
0x25f1   :  { %v9364_v46 = vadd.f32 %v9363_v18, %v9244_v48  ;;  %v9368_v7 = vpack.c.bf16 %v9362_v2, %v9362_v2 }
0x25f2   :  { %v9365_v6 = vpop.f32.mrf.mxu0 }
0x25f3   :  { %v9369_v47 = vpack.c.bf16 %v9364_v46, %v9364_v46 }
0x25f4   :  { %v9366_v17 = vpop.f32.mrf.mxu0 }
0x25f5   :  { %9606 = vmatprep.mubr.bf16.mxu1 %v9369_v47 }
0x25f6   :  { %9607 = vmatmul.mubr.bf16.vlgmr.msra.gmra.mxu1 %v9368_v7 }
0x25f7   :  { %11146 = vmatpush3.bf16.msra.mxu1 %v12667_v44  ;;  %v10870_v44 = vld [vmem:[#allocation78] ss:$0 sm:$0xff] }
0x25f8   :  { %11147 = vmatprep.subr.bf16.mxu1 %v12668_v20 }
0x25fb   :  { %11148 = vmatpush3.bf16.msra.mxu1 %v12669_v42 }
0x25fc   :  { %11149 = vmatprep.subr.bf16.mxu1 %v12670_v34 }
0x25ff   :  { %11150 = vmatpush3.bf16.msra.mxu1 %v12671_v4 }
0x2600   :  { %11151 = vmatprep.subr.bf16.mxu1 %v12672_v37 }
0x2603   :  { %11152 = vmatpush3.bf16.msra.mxu1 %v12673_v52 }
0x2604   :  { %11153 = vmatprep.subr.bf16.mxu1 %v12674_v10 }
0x2607   :  { %11154 = vmatpush3.bf16.msra.mxu1 %v12675_v24 }
0x2608   :  { %11155 = vmatprep.subr.bf16.mxu1 %v12676_v29 }
0x260b   :  { %11156 = vmatpush3.bf16.msra.mxu1 %v12677_v63 }
0x260c   :  { %11157 = vmatprep.subr.bf16.mxu1 %v12678_v35 }
0x260f   :  { %11158 = vmatpush3.bf16.msra.mxu1 %v12679_v25 }
0x2610   :  { %11159 = vmatprep.subr.bf16.mxu1 %v12680_v32 }
0x2613   :  { %11160 = vmatpush3.bf16.msra.mxu1 %v12681_v28 }
0x26b6   :  { %v9608_v30 = vpop.f32.mrf.mxu1 }
0x26b7   :  { %v9609_v40 = vadd.f32 %v9608_v30, %v9407_v59 }
0x26b8   :  { %v9610_v41 = vpop.f32.mrf.mxu1 }
0x26b9   :  { %v17035_v49 = vadd.f32 %v9610_v41, %v9411_v39  ;;  %v9615_v36 = vmul.f32 %v9609_v40, %v9609_v40 }
0x26ba   :  { %v9612_v8 = vpop.f32.mrf.mxu1 }
0x26bb   :  { %v9616_v43 = vmul.f32 %v17035_v49, %v17035_v49  ;;  %v9617_v21 = vpack.c.bf16 %v9615_v36, %v9609_v40 }
0x26bc   :  { %v9613_v14 = vpop.f32.mrf.mxu1 }
0x26bd   :  { %v9618_v12 = vpack.c.bf16 %v9616_v43, %v17035_v49 }
0x26bf   :  { %9651 = vmatprep.mubr.bf16.mxu0 %v9618_v12 }
0x26c0   :  { %9652 = vmatmul.mubr.bf16.vlgmr.msra.gmra.mxu0 %v9617_v21 }
0x2780   :  { %v9653_v3 = vpop.f32.mrf.mxu0 }
0x2781   :  { %v9662_v27 = vmul.f32 %v9653_v3, %v9653_v3  ;;  %v9666_v16 = vsub.f32 %v9609_v40, %v9653_v3 }
0x2782   :  { %v9655_v31 = vpop.f32.mrf.mxu0 }
0x2783   :  { %v9663_v60 = vmul.f32 %v9655_v31, %v9655_v31  ;;  %v9667_v56 = vsub.f32 %v17035_v49, %v9655_v31 }
0x2784   :  { %v9657_v9 = vpop.f32.mrf.mxu0 }
0x2785   :  { %v9664_v50 = vsub.f32 %v9657_v9, %v9662_v27 }
0x2786   :  { %v9659_v57 = vpop.f32.mrf.mxu0 }
0x2787   :  { %v9668_v19 = vadd.f32 1e-05, %v9664_v50  ;;  %v9665_v26 = vsub.f32 %v9659_v57, %v9663_v60 }
0x2789   :  { %12754 = vrsqrt.f32 %v9668_v19  ;;  %v9669_v58 = vadd.f32 1e-05, %v9665_v26 }
0x278b   :  { %12756 = vrsqrt.f32 %v9669_v58 }
0x2796   :  { %v12755_v51 = vpop.eup %12754 }
0x2797   :  { %v9672_v61 = vmul.f32 %v12755_v51, %v9666_v16 }
0x2798   :  { %v12757_v0 = vpop.eup %12756 }
0x2799   :  { %v9673_v54 = vmul.f32 %v12757_v0, %v9667_v56  ;;  %v9686_v53 = vmul.f32 %v9679_v55, %v9672_v61 }
0x279b   :  { %v9687_v45 = vmul.f32 %v9683_v62, %v9673_v54  ;;  %v9700_v48 = vadd.f32 %v9693_v38, %v9686_v53 }
0x279d   :  { %v9701_v22 = vadd.f32 %v9697_v1, %v9687_v45  ;;  %v9702_v2 = vmin.f32 %v9700_v48, 20.0  ;;  %vm9720_vm2 = vcmp.gt.f32.partialorder %v9700_v48, 20.0 }
0x279f   :  { %v9703_v18 = vmin.f32 %v9701_v22, 20.0  ;;  %v9704_v46 = vmul.f32 1.442695, %v9702_v2  ;;  %vm9721_vm3 = vcmp.gt.f32.partialorder %v9701_v22, 20.0 }
0x27a1   :  { %v9706_v6 = vmul.f32 1.442695, %v9703_v18  ;;  %12758 = vpow2.f32 %v9704_v46 }
0x27a3   :  { %12760 = vpow2.f32 %v9706_v6 }
0x27ae   :  { %v12759_v47 = vpop.eup %12758 }
0x27af   :  { %v9708_v7 = vadd.f32 2.0, %v12759_v47 }
0x27b0   :  { %v12761_v17 = vpop.eup %12760 }
0x27b1   :  { %v9709_v5 = vadd.f32 2.0, %v12761_v17  ;;  %v9710_v59 = vmul.f32 %v12759_v47, %v9708_v7 }
0x27b3   :  { %v9711_v11 = vmul.f32 %v12761_v17, %v9709_v5  ;;  %v9714_v39 = vadd.f32 2.0, %v9710_v59  ;;  %v9712_v13 = vmul.f32 %v9710_v59, %v9700_v48 }
0x27b5   :  { %v9715_v30 = vadd.f32 2.0, %v9711_v11  ;;  %12762 = vrcp.f32 %v9714_v39  ;;  %v9713_v41 = vmul.f32 %v9711_v11, %v9701_v22 }
0x27b7   :  { %12764 = vrcp.f32 %v9715_v30 }
0x27c2   :  { %v12763_v40 = vpop.eup %12762 }
0x27c3   :  { %v9718_v49 = vmul.f32 %v12763_v40, %v9712_v13 }
0x27c4   :  { %v12765_v36 = vpop.eup %12764 }
0x27c5   :  { %v9719_v8 = vmul.f32 %v12765_v36, %v9713_v41  ;;  %v9722_v43 = vsel %vm9720_vm2, %v9700_v48, %v9718_v49 }
0x27c6   :  { %v9724_v21 = vpack.c.bf16 %v9722_v43, %v9722_v43 }
0x27c7   :  { %v9723_v14 = vsel %vm9721_vm3, %v9701_v22, %v9719_v8 }
0x27c8   :  { %v9725_v12 = vpack.c.bf16 %v9723_v14, %v9723_v14 }
0x27ca   :  { %9893 = vmatprep.mubr.bf16.mxu1 %v9725_v12 }
0x27cb   :  { %9894 = vmatmul.mubr.bf16.vlgmr.msra.gmra.mxu1 %v9724_v21 }
0x288b   :  { %v11161_v15 = vpop.f32.mrf.mxu1 }
0x288d   :  { %v11162_v20 = vpop.f32.mrf.mxu1 }
0x288e   :  { %v11163_v42 = vadd.f32 %v11162_v20, %v11161_v15 }
0x288f   :  { %v11164_v34 = vpop.f32.mrf.mxu1 }
0x2890   :  { %v9896_v4 = vadd.f32 %v11163_v42, %v10870_v44 }
0x2891   :  { %v11165_v37 = vpop.f32.mrf.mxu1 }
0x2892   :  { %9902 = vst.msk [vmem:[%s15632_s25] sm:$0xff] %vm9901_vm4, %v9896_v4 }
0x2893   :  { %9907 = vsyncpa [#allocation18], 1 }
0x2894   :  { %9908 = vsyncpa [#allocation20], 1 }
0x2895   :  { %9909 = vsyncpa [#allocation23], 1 }
0x2896   :  { %9910 = vsyncpa [#allocation26], 1 }
0x2897   :  { %9911 = vsyncpa [#allocation29], 1 }
0x2898   :  { %9912 = vsyncpa [#allocation32], 1 }
0x2899   :  { %9913 = vsyncpa [#allocation35], 1 }
0x289a   :  { %9914 = vsyncpa [#allocation38], 1 }
0x289b   :  { %9915 = vsyncpa [#allocation41], 1 }
0x289c   :  { %9916 = vsyncpa [#allocation44], 1 }
0x289d   :  { %9917 = vsyncpa [#allocation47], 1 }
0x289e   :  { %9918 = vsyncpa [#allocation50], 1 }
0x289f   :  { %9919 = vsyncpa [#allocation53], 1 }
0x28a0   :  { %9920 = vsyncpa [#allocation56], 1 }
0x28a1   :  { %9921 = vsyncpa [#allocation59], 1 }
0x28a2   :  { %9922 = vsyncpa [#allocation62], 1 }
0x28a3   :  { %9923 = vsyncpa [#allocation65], 1 }
0x28a4   :  { %9924 = vsyncpa [#allocation68], 1 }
0x28a5   :  { %9925 = vsyncpa [#allocation71], 1 }
0x28a6   :  { %9926 = vsyncpa [#allocation74], 1 }
0x28a7   :  { %9927 = vsyncpa [#allocation77], 1 }
0x28a8   :  { %9928 = vsyncpa [#allocation80], 1 }
0x28a9   :  { %9929 = vsyncpa [#allocation83], 1 }
0x28aa   :  { %9930 = vsyncpa [#allocation86], 1 }
0x28ab   :  { %9931 = vsyncpa [#allocation89], 1 }
0x28ac   :  { %9932 = vsyncpa [#allocation92], 1 }
0x28ad   :  { %9933 = vsyncpa [#allocation95], 1 }
0x28ae   :  { %9934 = vsyncpa [#allocation98], 1 }
0x28af   :  { %9935 = vsyncpa [#allocation101], 1 }
0x28b0   :  { %9936 = vsyncpa [#allocation104], 1 }
0x28b1   :  { %9937 = vsyncpa [#allocation107], 1 }
0x28b2   :  { %9938 = vsyncpa [#allocation110], 1 }
0x28b3   :  { %9939 = vsyncpa [#allocation113], 1 }
0x28b4   :  { %9940 = vsyncpa [#allocation116], 1 }
0x28b5   :  { %9941 = vsyncpa [#allocation119], 1 }
0x28b6   :  { %9942 = vsyncpa [#allocation122], 1 }
0x28b7   :  { %9943 = vsyncpa [#allocation125], 1 }
0x28b8   :  { %9944 = vsyncpa [#allocation128], 1 }
0x28b9   :  { %9945 = vsyncpa [#allocation131], 1 }
0x28ba   :  { %9946 = vsyncpa [#allocation134], 1 }
0x28bb   :  { %9947 = vsyncpa [#allocation137], 1 }
0x28bc   :  { %9948 = vsyncpa [#allocation140], 1 }
0x28bd   :  { %9949 = vsyncmov [#allocation16] }
0x28c0   :  { %s9950_s5 = vpop.sfrf %9949 }
0x28c1   :  { %p10887_p4 = scmp.ne.s32.totalorder %s9950_s5, 0 }
0x28c3   :  { %9954 = shalt.err (%p10887_p4)  }
0x28c4   :  { %9956 = vsyncmov [#allocation16 + $0x1] }
0x28c7   :  { %s9957_s25 = vpop.sfrf %9956 }
0x28c8   :  { %p10888_p5 = scmp.ne.s32.totalorder %s9957_s25, 0 }
0x28ca   :  { %9961 = shalt.err (%p10888_p5)  }
0x28cb   :  { %9963 = vsyncmov [#allocation16 + $0x2] }
0x28ce   :  { %s9964_s24 = vpop.sfrf %9963 }
0x28cf   :  { %p10889_p6 = scmp.ne.s32.totalorder %s9964_s24, 0 }
0x28d1   :  { %9968 = shalt.err (%p10889_p6)  }
0x28d2   :  { %9970 = vsyncmov [#allocation16 + $0x3] }
0x28d5   :  { %s9971_s6 = vpop.sfrf %9970 }
0x28d6   :  { %p10890_p7 = scmp.ne.s32.totalorder %s9971_s6, 0 }
0x28d8   :  { %9975 = shalt.err (%p10890_p7)  }
0x28d9   :  { %9977 = vsyncmov [#allocation16 + $0x4] }
0x28dc   :  { %s9978_s18 = vpop.sfrf %9977 }
0x28dd   :  { %p10891_p8 = scmp.ne.s32.totalorder %s9978_s18, 0 }
0x28df   :  { %9982 = shalt.err (%p10891_p8)  }
0x28e0   :  { %9984 = vsyncmov [#allocation16 + $0x5] }
0x28e3   :  { %s9985_s3 = vpop.sfrf %9984 }
0x28e4   :  { %p10892_p9 = scmp.ne.s32.totalorder %s9985_s3, 0 }
0x28e6   :  { %9989 = shalt.err (%p10892_p9)  }
0x28e7   :  { %9991 = vsyncmov [#allocation16 + $0x6] }
0x28ea   :  { %s9992_s29 = vpop.sfrf %9991 }
0x28eb   :  { %p10893_p10 = scmp.ne.s32.totalorder %s9992_s29, 0 }
0x28ed   :  { %9996 = shalt.err (%p10893_p10)  }
0x28ee   :  { %9998 = vsyncmov [#allocation16 + $0x7] }
0x28f1   :  { %s9999_s22 = vpop.sfrf %9998 }
0x28f2   :  { %p10894_p11 = scmp.ne.s32.totalorder %s9999_s22, 0 }
0x28f4   :  { %10003 = shalt.err (%p10894_p11)  }
0x28f5   :  { %10005 = vsyncmov [#allocation16 + $0x8] }
0x28f8   :  { %s10006_s23 = vpop.sfrf %10005 }
0x28f9   :  { %p10895_p12 = scmp.ne.s32.totalorder %s10006_s23, 0 }
0x28fb   :  { %10010 = shalt.err (%p10895_p12)  }
0x28fc   :  { %10012 = vsyncmov [#allocation16 + $0x9] }
0x28ff   :  { %s10013_s17 = vpop.sfrf %10012 }
0x2900   :  { %p10896_p13 = scmp.ne.s32.totalorder %s10013_s17, 0 }
0x2902   :  { %10017 = shalt.err (%p10896_p13)  }
0x2903   :  { %10019 = vsyncmov [#allocation16 + $0xa] }
0x2906   :  { %s10020_s8 = vpop.sfrf %10019 }
0x2907   :  { %p10897_p0 = scmp.ne.s32.totalorder %s10020_s8, 0 }
0x2909   :  { %10024 = shalt.err (%p10897_p0)  }
0x290a   :  { %10026 = vsyncmov [#allocation16 + $0xb] }
0x290d   :  { %s10027_s14 = vpop.sfrf %10026 }
0x290e   :  { %p10898_p1 = scmp.ne.s32.totalorder %s10027_s14, 0 }
0x2910   :  { %10031 = shalt.err (%p10898_p1)  }
0x2911   :  { %10033 = vsyncmov [#allocation16 + $0xc] }
0x2914   :  { %s10034_s21 = vpop.sfrf %10033 }
0x2915   :  { %p10899_p2 = scmp.ne.s32.totalorder %s10034_s21, 0 }
0x2917   :  { %10038 = shalt.err (%p10899_p2)  }
0x2918   :  { %10040 = vsyncmov [#allocation16 + $0xd] }
0x291b   :  { %s10041_s26 = vpop.sfrf %10040 }
0x291c   :  { %p10900_p3 = scmp.ne.s32.totalorder %s10041_s26, 0 }
0x291e   :  { %10045 = shalt.err (%p10900_p3)  }

</bundles_post_ra>
